<compile_context>
chip_gen: v5e
topology: v5e:2x2
jax: 0.10.0
libtpu: 0.0.40
codegen_flags: <defaults>
</compile_context>

<pallas_src>
import jax
import jax.numpy as jnp
import numpy as np
from jax.experimental import pallas as pl
from jax.experimental.pallas import tpu as pltpu

IN_FEATURES = 243 * 16 * 16   # 62208
OUT_FEATURES = 9


def _linear_logsoftmax_kernel(x_ref, w_ref, b_ref, o_ref):
    """Grid = (N tiles, K tiles); K (axis 1) is the reduction, innermost.

    o_ref's block index is constant over K, so it stays VMEM-resident and is
    the f32 accumulator directly."""
    k = pl.program_id(1)

    @pl.when(k == 0)
    def _():
        o_ref[...] = jnp.zeros_like(o_ref)

    o_ref[...] += jnp.dot(x_ref[...], w_ref[...],
                          preferred_element_type=jnp.float32)

    @pl.when(k == pl.num_programs(1) - 1)
    def _():
        logits = o_ref[...] + b_ref[...]              # (TN, 9)
        m = jnp.max(logits, axis=-1, keepdims=True)
        e = jnp.exp(logits - m)
        s = jnp.sum(e, axis=-1, keepdims=True)
        o_ref[...] = logits - m - jnp.log(s)          # log_softmax(dim=1)


def prepare_params(weight, bias):
    """One-time parameter prep (hoisted out of the per-call path):
    weight (9, K) -> (K, 9) so the hot loop is a plain x @ w MXU matmul."""
    w_t = jnp.asarray(weight, jnp.float32).T                       # (K, 9)
    b2 = jnp.asarray(bias, jnp.float32).reshape(1, OUT_FEATURES)   # (1, 9)
    return w_t, b2


def _pick_tiles(n):
    """Batch tile TN and K tile tk, sized so double-buffered x + weight tiles
    fit comfortably in VMEM on v5e / v6e / v7x (64 MiB physical on v7x)."""
    tn = n if n < 256 else 256          # either == full batch dim or mult. of 8
    budget = 28 * 1024 * 1024
    for tk in (20736, 6912, 3456):      # divisors of 62208, multiples of 128
        x_bytes = 2 * tn * tk * 4                 # double-buffered x tile
        w_bytes = 2 * tk * 128 * 4                # (tk, 9) lane-pads to 128 in VMEM
        if x_bytes + w_bytes <= budget:
            return tn, tk
    return tn, 3456


@jax.jit
def scattering2d_net_forward(x, w_t, b2):
    """x: anything reshapeable to (-1, 62208) (e.g. (N, 243, 16, 16)).
    w_t: (62208, 9), b2: (1, 9). Returns log_softmax logits (N, 9)."""
    x2 = jnp.asarray(x, jnp.float32).reshape(-1, IN_FEATURES)
    n = x2.shape[0]
    tn, tk = _pick_tiles(n)

    return pl.pallas_call(
        _linear_logsoftmax_kernel,
        out_shape=jax.ShapeDtypeStruct((n, OUT_FEATURES), jnp.float32),
        grid_spec=pltpu.PrefetchScalarGridSpec(
            num_scalar_prefetch=0,
            grid=(pl.cdiv(n, tn), IN_FEATURES // tk),
            in_specs=[
                pl.BlockSpec((tn, tk), lambda i, k: (i, k)),            # x tile
                pl.BlockSpec((tk, OUT_FEATURES), lambda i, k: (k, 0)),  # w tile
                pl.BlockSpec((1, OUT_FEATURES), lambda i, k: (0, 0)),   # bias
            ],
            out_specs=pl.BlockSpec((tn, OUT_FEATURES), lambda i, k: (i, 0)),
        ),
        compiler_params=pltpu.CompilerParams(
            dimension_semantics=("parallel", "arbitrary"),
            vmem_limit_bytes=48 * 1024 * 1024,
        ),
    )(x2, w_t, b2)


if __name__ == "__main__":
    key = jax.random.PRNGKey(0)
    kx, kw, kb = jax.random.split(key, 3)

    # Deterministic synthetic parameters (PyTorch-Linear-style uniform init).
    bound = 1.0 / np.sqrt(IN_FEATURES)
    weight = jax.random.uniform(kw, (OUT_FEATURES, IN_FEATURES),
                                minval=-bound, maxval=bound, dtype=jnp.float32)
    bias = jax.random.uniform(kb, (OUT_FEATURES,),
                              minval=-bound, maxval=bound, dtype=jnp.float32)

    # Input consistent with the module: viewable as (-1, 243, 16, 16).
    x = jax.random.normal(kx, (2, 243, 16, 16), dtype=jnp.float32)

    # One-time prep (hoisted out of the per-call path).
    w_t, b2 = prepare_params(weight, bias)

    out = scattering2d_net_forward(x, w_t, b2)
    out = jax.block_until_ready(out)

    # Pure-JAX reference (same semantics as the PyTorch forward).
    logits_ref = x.reshape(-1, IN_FEATURES) @ weight.T + bias
    ref = jax.nn.log_softmax(logits_ref, axis=1)
    np.testing.assert_allclose(np.asarray(out), np.asarray(ref),
                               rtol=1e-2, atol=1e-2)

    assert out.shape == (2, OUT_FEATURES)
    print("KERNEL_OK")
</pallas_src>

<mosaic_0001>
module attributes {stable_mosaic.version = 11 : i64} {
  func.func @_linear_logsoftmax_kernel(%arg0: i32, %arg1: i32, %arg2: memref<2x20736xf32, #tpu.memory_space<vmem>>, %arg3: memref<20736x9xf32, #tpu.memory_space<vmem>>, %arg4: memref<1x9xf32, #tpu.memory_space<vmem>>, %arg5: memref<2x9xf32, #tpu.memory_space<vmem>>) attributes {dimension_semantics = [#tpu.dimension_semantics<parallel>, #tpu.dimension_semantics<arbitrary>], iteration_bounds = array<i64: 1, 3>, scalar_prefetch = 0 : i64, scratch_operands = 0 : i64, tpu.core_type = #tpu.core_type<tc>, window_params = [{transform_indices = @transform_0, window_bounds = array<i64: 2, 20736>}, {transform_indices = @transform_1, window_bounds = array<i64: 20736, 9>}, {pipeline_mode = #tpu.pipeline_mode<synchronous>, transform_indices = @transform_2, window_bounds = array<i64: 1, 9>}, {transform_indices = @transform_3, window_bounds = array<i64: 2, 9>}]} {
    %c0_i32 = arith.constant 0 : i32
    %0 = arith.cmpi eq, %arg1, %c0_i32 : i32
    %1 = arith.extui %0 : i1 to i32
    %c0_i32_0 = arith.constant 0 : i32
    %2 = arith.cmpi ne, %1, %c0_i32_0 : i32
    scf.if %2 {
      %cst_9 = arith.constant 0.000000e+00 : f32
      %12 = vector.broadcast %cst_9 : f32 to vector<2x9xf32>
      %c0_10 = arith.constant 0 : index
      %c0_11 = arith.constant 0 : index
      %13 = vector.load %arg5[%c0_10, %c0_11] : memref<2x9xf32, #tpu.memory_space<vmem>>, vector<2x9xf32>
      tpu.vector_store %arg5[%c0_10, %c0_11], %12 {strides = array<i32>} : memref<2x9xf32, #tpu.memory_space<vmem>>, vector<2x9xf32>,
    } else {
    }
    %c0 = arith.constant 0 : index
    %c0_1 = arith.constant 0 : index
    %3 = vector.load %arg5[%c0, %c0_1] : memref<2x9xf32, #tpu.memory_space<vmem>>, vector<2x9xf32>
    %c0_2 = arith.constant 0 : index
    %c0_3 = arith.constant 0 : index
    %4 = vector.load %arg2[%c0_2, %c0_3] : memref<2x20736xf32, #tpu.memory_space<vmem>>, vector<2x20736xf32>
    %c0_4 = arith.constant 0 : index
    %c0_5 = arith.constant 0 : index
    %5 = vector.load %arg3[%c0_4, %c0_5] : memref<20736x9xf32, #tpu.memory_space<vmem>>, vector<20736x9xf32>
    %cst = arith.constant dense<0.000000e+00> : vector<2x9xf32>
    %6 = tpu.matmul %4, %5, %cst {dimension_numbers = #tpu.dot_dimension_numbers<[1], [0], [0], [1], [0, 0, 1, 1], [], []>} : vector<2x20736xf32>, vector<20736x9xf32>, vector<2x9xf32> -> vector<2x9xf32>
    %7 = arith.addf %3, %6 : vector<2x9xf32>
    %c0_6 = arith.constant 0 : index
    %c0_7 = arith.constant 0 : index
    %8 = vector.load %arg5[%c0_6, %c0_7] : memref<2x9xf32, #tpu.memory_space<vmem>>, vector<2x9xf32>
    tpu.vector_store %arg5[%c0_6, %c0_7], %7 {strides = array<i32>} : memref<2x9xf32, #tpu.memory_space<vmem>>, vector<2x9xf32>,
    %c2_i32 = arith.constant 2 : i32
    %9 = arith.cmpi eq, %arg1, %c2_i32 : i32
    %10 = arith.extui %9 : i1 to i32
    %c0_i32_8 = arith.constant 0 : i32
    %11 = arith.cmpi ne, %10, %c0_i32_8 : i32
    scf.if %11 {
      %c0_9 = arith.constant 0 : index
      %c0_10 = arith.constant 0 : index
      %12 = vector.load %arg5[%c0_9, %c0_10] : memref<2x9xf32, #tpu.memory_space<vmem>>, vector<2x9xf32>
      %c0_11 = arith.constant 0 : index
      %c0_12 = arith.constant 0 : index
      %13 = vector.load %arg4[%c0_11, %c0_12] : memref<1x9xf32, #tpu.memory_space<vmem>>, vector<1x9xf32>
      %14 = vector.broadcast %13 : vector<1x9xf32> to vector<2x9xf32>
      %15 = arith.addf %12, %14 : vector<2x9xf32>
      %cst_13 = arith.constant dense<0xFF800000> : vector<2xf32>
      %16 = vector.multi_reduction <maximumf>, %15, %cst_13 [1] : vector<2x9xf32> to vector<2xf32>
      %17 = vector.shape_cast %16 : vector<2xf32> to vector<2x1xf32>
      %18 = vector.broadcast %17 : vector<2x1xf32> to vector<2x9xf32>
      %19 = arith.subf %15, %18 : vector<2x9xf32>
      %20 = math.exp %19 : vector<2x9xf32>
      %cst_14 = arith.constant dense<0.000000e+00> : vector<2xf32>
      %21 = vector.multi_reduction <add>, %20, %cst_14 [1] : vector<2x9xf32> to vector<2xf32>
      %22 = vector.shape_cast %21 : vector<2xf32> to vector<2x1xf32>
      %23 = vector.broadcast %17 : vector<2x1xf32> to vector<2x9xf32>
      %24 = arith.subf %15, %23 : vector<2x9xf32>
      %25 = math.log %22 : vector<2x1xf32>
      %26 = vector.broadcast %25 : vector<2x1xf32> to vector<2x9xf32>
      %27 = arith.subf %24, %26 : vector<2x9xf32>
      %c0_15 = arith.constant 0 : index
      %c0_16 = arith.constant 0 : index
      %28 = vector.load %arg5[%c0_15, %c0_16] : memref<2x9xf32, #tpu.memory_space<vmem>>, vector<2x9xf32>
      tpu.vector_store %arg5[%c0_15, %c0_16], %27 {strides = array<i32>} : memref<2x9xf32, #tpu.memory_space<vmem>>, vector<2x9xf32>,
    } else {
    }
    return
  }
  func.func @transform_0(%arg0: i32, %arg1: i32) -> (i32, i32) {
    %c0_i32 = arith.constant 0 : i32
    return %arg0, %arg1 : i32, i32
  }
  func.func @transform_1(%arg0: i32, %arg1: i32) -> (i32, i32) {
    %c0_i32 = arith.constant 0 : i32
    %c0_i32_0 = arith.constant 0 : i32
    return %arg1, %c0_i32 : i32, i32
  }
  func.func @transform_2(%arg0: i32, %arg1: i32) -> (i32, i32) {
    %c0_i32 = arith.constant 0 : i32
    %c0_i32_0 = arith.constant 0 : i32
    %c0_i32_1 = arith.constant 0 : i32
    return %c0_i32, %c0_i32_0 : i32, i32
  }
  func.func @transform_3(%arg0: i32, %arg1: i32) -> (i32, i32) {
    %c0_i32 = arith.constant 0 : i32
    %c0_i32_0 = arith.constant 0 : i32
    return %arg0, %c0_i32 : i32, i32
  }
}

</mosaic_0001>

<bundles_post_ra>
// kernel: scattering2d_net_forward.1
= control target key start
LH: loop header
LB: loop body
LE: loop exit
PB: predicated region body
PF: predicated region fallthrough
CT: control target
= control target key end

     0   :  { %8 = vsyncpa [#allocation3], 0  ;;  %s6731_s12 = smov 0   ;;  %s6733_s13 = smov 0   ;;  %s9522_s0 = inlined_call_operand.vmem [shape: f32[2,62208], index: 0, kind: input, shape index: {}]   ;;  %s9523_s1 = inlined_call_operand.vmem [shape: f32[62208,9], index: 1, kind: input, shape index: {}]   ;;  %s9524_s2 = inlined_call_operand.vmem [shape: f32[1,9], index: 2, kind: input, shape index: {}]   ;;  %s9525_s3 = inlined_call_operand.hbm [shape: f32[2,9], index: 3, kind: output, shape index: {}]  }
   0x1   :  { %s6735_s14 = smov 0  }
   0x2 LB: > { %s6604_s15 = sadd.s32 4294967295, %s6707_s14   ;;  %s23_s16 = sadd.s32 1, %s6703_s13  ;;  %s6707_s14 = sphi %s6735_s14, %s14_s14   ;;  %s6703_s13 = sphi %s6733_s13, %s9527_s13   ;;  %s6699_s12 = sphi %s6731_s12, %s9526_s12  }
   0x3   : > { %p24_p0 = scmp.ge.s32.totalorder %s23_s16, 3  ;;  %p6607_p1 = scmp.ge.s32.totalorder %s6707_s14, 1 }
   0x4   : > { %p168_p2 = scmp.lt.s32.totalorder %s6707_s14, 4 }
   0x5   : > { %s9529_s16 = smov (%p24_p0, %s23_s16), 0 }
   0x6   : > { %p169_p3 = pnand %p6607_p1, %p168_p2 }
   0x7   : > { %s196_s17 = smul.u32 (!%p169_p3), 162, %s6699_s12  ;;  %p6610_p6 = scmp.ne.s32.totalorder (!%p169_p3), %s6699_s12, 0 }
   0x8   : > { %172 = sbr.rel (%p169_p3) target bundleno = 1820 (0x71c), region = 32 }
   0x9   : > { %s206_s18 = smul.u32 (!%p169_p3), 2592, %s6699_s12  ;;  %p199_p4 = scmp.lt.s32.totalorder (!%p169_p3), %s196_s17, 485 }
   0xb   : > { %p207_p5 = scmp.lt.s32.totalorder (!%p169_p3), %s206_s18, 7775 }
   0xd   : > { %s9531_s17 = smov (!%p199_p4, %s196_s17), 485  ;;  %s9533_s18 = smov (!%p207_p5, %s206_s18), 7775 }
   0xe   : > { %s6608_s19 = sshll.u32 %s9531_s17, 1  ;;  %s6609_s23 = sshll.u32 %s9533_s18, 3 }
   0xf   : > { %s6757_s22 = scalar_lea.vmem %s9522_s0, %s6608_s19  ;;  %s6762_s26 = scalar_lea.vmem %s9523_s1, %s6609_s23 }
  0x10   : > { %215 = sbr.rel (%p6610_p6) target bundleno = 23 (0x17), region = 36 }
  0x15   : > { %vm216_vm0 = vcmask 66560   ;;  %v6709_v0 = vmov 0.0  }
  0x16   : > { %217 = vst.msk [vmem:[#allocation2] sm:$0x3] %vm216_vm0, %v6709_v0 }
  0x17 PF: > { %v275_v1 = vld [vmem:[%s6762_s26 + $0x78] sm:$0xff]  ;;  %v274_v3 = vld [vmem:[%s6762_s26 + $0x70] sm:$0xff]  ;;  %v273_v7 = vld [vmem:[%s6762_s26 + $0x68] sm:$0xff]  ;;  %vm6500_vm1 = vcmask 66560   ;;  %p6611_p7 = scmp.ne.s32.totalorder %s6699_s12, 2 }
  0x18   : > { %v307_v2 = vld [vmem:[%s6762_s26 + $0x178] sm:$0xff]  ;;  %3259 = vmatpush.msra.mxu0 %v275_v1  ;;  %v306_v5 = vld [vmem:[%s6762_s26 + $0x170] sm:$0xff]  ;;  %v305_v9 = vld [vmem:[%s6762_s26 + $0x168] sm:$0xff] }
  0x19   : > { %3299 = vmatpush.msra.mxu2 %v307_v2  ;;  %v291_v4 = vld [vmem:[%s6762_s26 + $0xf8] sm:$0xff]  ;;  %v290_v8 = vld [vmem:[%s6762_s26 + $0xf0] sm:$0xff]  ;;  %v289_v11 = vld [vmem:[%s6762_s26 + $0xe8] sm:$0xff] }
  0x1a   : > { %v323_v6 = vld [vmem:[%s6762_s26 + $0x1f8] sm:$0xff]  ;;  %3279 = vmatpush.msra.mxu1 %v291_v4  ;;  %3260 = vmatpush.msra.mxu0 %v274_v3  ;;  %v322_v10 = vld [vmem:[%s6762_s26 + $0x1f0] sm:$0xff]  ;;  %v272_v12 = vld [vmem:[%s6762_s26 + $0x60] sm:$0xff] }
  0x1b   : > { %3319 = vmatpush.msra.mxu3 %v323_v6  ;;  %3300 = vmatpush.msra.mxu2 %v306_v5  ;;  %v304_v13 = vld [vmem:[%s6762_s26 + $0x160] sm:$0xff]  ;;  %v321_v14 = vld [vmem:[%s6762_s26 + $0x1e8] sm:$0xff]  ;;  %v271_v17 = vld [vmem:[%s6762_s26 + $0x58] sm:$0xff] }
  0x1c   : > { %3280 = vmatpush.msra.mxu1 %v290_v8  ;;  %3261 = vmatpush.msra.mxu0 %v273_v7  ;;  %v288_v15 = vld [vmem:[%s6762_s26 + $0xe0] sm:$0xff]  ;;  %v303_v18 = vld [vmem:[%s6762_s26 + $0x158] sm:$0xff]  ;;  %v270_v21 = vld [vmem:[%s6762_s26 + $0x50] sm:$0xff] }
  0x1d   : > { %3320 = vmatpush.msra.mxu3 %v322_v10  ;;  %3301 = vmatpush.msra.mxu2 %v305_v9  ;;  %v320_v16 = vld [vmem:[%s6762_s26 + $0x1e0] sm:$0xff]  ;;  %v287_v19 = vld [vmem:[%s6762_s26 + $0xd8] sm:$0xff]  ;;  %v302_v22 = vld [vmem:[%s6762_s26 + $0x150] sm:$0xff] }
  0x1e   : > { %3281 = vmatpush.msra.mxu1 %v289_v11  ;;  %3262 = vmatpush.msra.mxu0 %v272_v12  ;;  %v319_v20 = vld [vmem:[%s6762_s26 + $0x1d8] sm:$0xff]  ;;  %v286_v23 = vld [vmem:[%s6762_s26 + $0xd0] sm:$0xff]  ;;  %v269_v25 = vld [vmem:[%s6762_s26 + $0x48] sm:$0xff] }
  0x1f   : > { %3321 = vmatpush.msra.mxu3 %v321_v14  ;;  %3302 = vmatpush.msra.mxu2 %v304_v13  ;;  %v318_v24 = vld [vmem:[%s6762_s26 + $0x1d0] sm:$0xff]  ;;  %v301_v26 = vld [vmem:[%s6762_s26 + $0x148] sm:$0xff]  ;;  %v268_v29 = vld [vmem:[%s6762_s26 + $0x40] sm:$0xff] }
  0x20   : > { %3282 = vmatpush.msra.mxu1 %v288_v15  ;;  %3263 = vmatpush.msra.mxu0 %v271_v17  ;;  %v285_v27 = vld [vmem:[%s6762_s26 + $0xc8] sm:$0xff]  ;;  %v300_v30 = vld [vmem:[%s6762_s26 + $0x140] sm:$0xff]  ;;  %v267_v33 = vld [vmem:[%s6762_s26 + $0x38] sm:$0xff] }
  0x21   : > { %3322 = vmatpush.msra.mxu3 %v320_v16  ;;  %3303 = vmatpush.msra.mxu2 %v303_v18  ;;  %v317_v28 = vld [vmem:[%s6762_s26 + $0x1c8] sm:$0xff]  ;;  %v284_v31 = vld [vmem:[%s6762_s26 + $0xc0] sm:$0xff]  ;;  %v299_v34 = vld [vmem:[%s6762_s26 + $0x138] sm:$0xff] }
  0x22   : > { %3283 = vmatpush.msra.mxu1 %v287_v19  ;;  %3264 = vmatpush.msra.mxu0 %v270_v21  ;;  %v316_v32 = vld [vmem:[%s6762_s26 + $0x1c0] sm:$0xff]  ;;  %v283_v35 = vld [vmem:[%s6762_s26 + $0xb8] sm:$0xff]  ;;  %v266_v37 = vld [vmem:[%s6762_s26 + $0x30] sm:$0xff] }
  0x23   : > { %3323 = vmatpush.msra.mxu3 %v319_v20  ;;  %3304 = vmatpush.msra.mxu2 %v302_v22  ;;  %v315_v36 = vld [vmem:[%s6762_s26 + $0x1b8] sm:$0xff]  ;;  %v298_v38 = vld [vmem:[%s6762_s26 + $0x130] sm:$0xff]  ;;  %v265_v41 = vld [vmem:[%s6762_s26 + $0x28] sm:$0xff] }
  0x24   : > { %3284 = vmatpush.msra.mxu1 %v286_v23  ;;  %3265 = vmatpush.msra.mxu0 %v269_v25  ;;  %v282_v39 = vld [vmem:[%s6762_s26 + $0xb0] sm:$0xff]  ;;  %v297_v42 = vld [vmem:[%s6762_s26 + $0x128] sm:$0xff]  ;;  %v264_v45 = vld [vmem:[%s6762_s26 + $0x20] sm:$0xff] }
  0x25   : > { %3324 = vmatpush.msra.mxu3 %v318_v24  ;;  %3305 = vmatpush.msra.mxu2 %v301_v26  ;;  %v314_v40 = vld [vmem:[%s6762_s26 + $0x1b0] sm:$0xff]  ;;  %v281_v43 = vld [vmem:[%s6762_s26 + $0xa8] sm:$0xff]  ;;  %v296_v46 = vld [vmem:[%s6762_s26 + $0x120] sm:$0xff] }
  0x26   : > { %3285 = vmatpush.msra.mxu1 %v285_v27  ;;  %3266 = vmatpush.msra.mxu0 %v268_v29  ;;  %v313_v44 = vld [vmem:[%s6762_s26 + $0x1a8] sm:$0xff]  ;;  %v280_v47 = vld [vmem:[%s6762_s26 + $0xa0] sm:$0xff]  ;;  %v263_v49 = vld [vmem:[%s6762_s26 + $0x18] sm:$0xff] }
  0x27   : > { %3325 = vmatpush.msra.mxu3 %v317_v28  ;;  %3306 = vmatpush.msra.mxu2 %v300_v30  ;;  %v312_v48 = vld [vmem:[%s6762_s26 + $0x1a0] sm:$0xff]  ;;  %v295_v50 = vld [vmem:[%s6762_s26 + $0x118] sm:$0xff]  ;;  %v262_v53 = vld [vmem:[%s6762_s26 + $0x10] sm:$0xff] }
  0x28   : > { %3286 = vmatpush.msra.mxu1 %v284_v31  ;;  %3267 = vmatpush.msra.mxu0 %v267_v33  ;;  %v279_v51 = vld [vmem:[%s6762_s26 + $0x98] sm:$0xff]  ;;  %v294_v54 = vld [vmem:[%s6762_s26 + $0x110] sm:$0xff]  ;;  %v261_v57 = vld [vmem:[%s6762_s26 + $0x8] sm:$0xff] }
  0x29   : > { %3326 = vmatpush.msra.mxu3 %v316_v32  ;;  %3307 = vmatpush.msra.mxu2 %v299_v34  ;;  %v311_v52 = vld [vmem:[%s6762_s26 + $0x198] sm:$0xff]  ;;  %v278_v55 = vld [vmem:[%s6762_s26 + $0x90] sm:$0xff]  ;;  %v293_v58 = vld [vmem:[%s6762_s26 + $0x108] sm:$0xff] }
  0x2a   : > { %3287 = vmatpush.msra.mxu1 %v283_v35  ;;  %3268 = vmatpush.msra.mxu0 %v266_v37  ;;  %v310_v56 = vld [vmem:[%s6762_s26 + $0x190] sm:$0xff]  ;;  %v277_v59 = vld [vmem:[%s6762_s26 + $0x88] sm:$0xff]  ;;  %v260_v61 = vld [vmem:[%s6762_s26] sm:$0xff] }
  0x2b   : > { %3327 = vmatpush.msra.mxu3 %v315_v36  ;;  %3308 = vmatpush.msra.mxu2 %v298_v38  ;;  %v309_v60 = vld [vmem:[%s6762_s26 + $0x188] sm:$0xff]  ;;  %v292_v62 = vld [vmem:[%s6762_s26 + $0x100] sm:$0xff]  ;;  %v339_v63 = vld [vmem:[%s6762_s26 + $0x278] sm:$0xff] }
  0x2c   : > { %3288 = vmatpush.msra.mxu1 %v282_v39  ;;  %3269 = vmatpush.msra.mxu0 %v265_v41  ;;  %v371_v0 = vld [vmem:[%s6762_s26 + $0x378] sm:$0xff]  ;;  %v276_v1 = vld [vmem:[%s6762_s26 + $0x80] sm:$0xff]  ;;  %v338_v3 = vld [vmem:[%s6762_s26 + $0x270] sm:$0xff] }
  0x2d   : > { %3328 = vmatpush.msra.mxu3 %v314_v40  ;;  %3309 = vmatpush.msra.mxu2 %v297_v42  ;;  %v308_v2 = vld [vmem:[%s6762_s26 + $0x180] sm:$0xff]  ;;  %v355_v4 = vld [vmem:[%s6762_s26 + $0x2f8] sm:$0xff]  ;;  %v370_v5 = vld [vmem:[%s6762_s26 + $0x370] sm:$0xff] }
  0x2e   : > { %3289 = vmatpush.msra.mxu1 %v281_v43  ;;  %3270 = vmatpush.msra.mxu0 %v264_v45  ;;  %v387_v6 = vld [vmem:[%s6762_s26 + $0x3f8] sm:$0xff]  ;;  %v337_v7 = vld [vmem:[%s6762_s26 + $0x268] sm:$0xff]  ;;  %v354_v8 = vld [vmem:[%s6762_s26 + $0x2f0] sm:$0xff] }
  0x2f   : > { %3329 = vmatpush.msra.mxu3 %v313_v44  ;;  %3310 = vmatpush.msra.mxu2 %v296_v46  ;;  %v369_v9 = vld [vmem:[%s6762_s26 + $0x368] sm:$0xff]  ;;  %v386_v10 = vld [vmem:[%s6762_s26 + $0x3f0] sm:$0xff]  ;;  %v336_v11 = vld [vmem:[%s6762_s26 + $0x260] sm:$0xff] }
  0x30   : > { %3290 = vmatpush.msra.mxu1 %v280_v47  ;;  %3271 = vmatpush.msra.mxu0 %v263_v49  ;;  %v353_v12 = vld [vmem:[%s6762_s26 + $0x2e8] sm:$0xff]  ;;  %v368_v13 = vld [vmem:[%s6762_s26 + $0x360] sm:$0xff]  ;;  %v335_v15 = vld [vmem:[%s6762_s26 + $0x258] sm:$0xff] }
  0x31   : > { %3330 = vmatpush.msra.mxu3 %v312_v48  ;;  %3311 = vmatpush.msra.mxu2 %v295_v50  ;;  %v385_v14 = vld [vmem:[%s6762_s26 + $0x3e8] sm:$0xff]  ;;  %v352_v16 = vld [vmem:[%s6762_s26 + $0x2e0] sm:$0xff]  ;;  %v367_v17 = vld [vmem:[%s6762_s26 + $0x358] sm:$0xff] }
  0x32   : > { %3291 = vmatpush.msra.mxu1 %v279_v51  ;;  %3272 = vmatpush.msra.mxu0 %v262_v53  ;;  %v384_v18 = vld [vmem:[%s6762_s26 + $0x3e0] sm:$0xff]  ;;  %v334_v19 = vld [vmem:[%s6762_s26 + $0x250] sm:$0xff]  ;;  %v351_v20 = vld [vmem:[%s6762_s26 + $0x2d8] sm:$0xff] }
  0x33   : > { %3331 = vmatpush.msra.mxu3 %v311_v52  ;;  %3312 = vmatpush.msra.mxu2 %v294_v54  ;;  %v219_v21 = vld [vmem:[%s6757_s22] sm:$0xff]  ;;  %v366_v22 = vld [vmem:[%s6762_s26 + $0x350] sm:$0xff]  ;;  %v383_v23 = vld [vmem:[%s6762_s26 + $0x3d8] sm:$0xff] }
  0x34   : > { %3292 = vmatpush.msra.mxu1 %v278_v55  ;;  %3273 = vmatpush.msra.mxu0 %v261_v57  ;;  %2893 = vst [vmem:[#allocation1] ss:$4 sm:$0xff] %v219_v21  ;;  %v333_v24 = vld [vmem:[%s6762_s26 + $0x248] sm:$0xff]  ;;  %v350_v25 = vld [vmem:[%s6762_s26 + $0x2d0] sm:$0xff]  ;;  %v332_v28 = vld [vmem:[%s6762_s26 + $0x240] sm:$0xff] }
  0x35   : > { %3332 = vmatpush.msra.mxu3 %v310_v56  ;;  %3313 = vmatpush.msra.mxu2 %v293_v58  ;;  %v365_v26 = vld [vmem:[%s6762_s26 + $0x348] sm:$0xff]  ;;  %v382_v27 = vld [vmem:[%s6762_s26 + $0x3d0] sm:$0xff]  ;;  %v364_v30 = vld [vmem:[%s6762_s26 + $0x340] sm:$0xff] }
  0x36   : > { %3293 = vmatpush.msra.mxu1 %v277_v59  ;;  %3274 = vmatpush.msra.mxu0 %v260_v61  ;;  %v349_v29 = vld [vmem:[%s6762_s26 + $0x2c8] sm:$0xff]  ;;  %v331_v32 = vld [vmem:[%s6762_s26 + $0x238] sm:$0xff]  ;;  %v348_v33 = vld [vmem:[%s6762_s26 + $0x2c0] sm:$0xff] }
  0x37   : > { %3333 = vmatpush.msra.mxu3 %v309_v60  ;;  %3314 = vmatpush.msra.mxu2 %v292_v62  ;;  %v381_v31 = vld [vmem:[%s6762_s26 + $0x3c8] sm:$0xff]  ;;  %v363_v35 = vld [vmem:[%s6762_s26 + $0x338] sm:$0xff]  ;;  %v380_v36 = vld [vmem:[%s6762_s26 + $0x3c0] sm:$0xff] }
  0x38   : > { %3339 = vmatpush.msrb.mxu0 %v339_v63  ;;  %3294 = vmatpush.msra.mxu1 %v276_v1  ;;  %v220_v34 = vld [vmem:[%s6757_s22 + $0x8] sm:$0xff]  ;;  %v330_v37 = vld [vmem:[%s6762_s26 + $0x230] sm:$0xff]  ;;  %v347_v38 = vld [vmem:[%s6762_s26 + $0x2b8] sm:$0xff] }
  0x39   : > { %3379 = vmatpush.msrb.mxu2 %v371_v0  ;;  %3334 = vmatpush.msra.mxu3 %v308_v2  ;;  %2895 = vst [vmem:[#allocation1 + $0x20] ss:$4 sm:$0xff] %v220_v34  ;;  %v362_v39 = vld [vmem:[%s6762_s26 + $0x330] sm:$0xff]  ;;  %v379_v40 = vld [vmem:[%s6762_s26 + $0x3b8] sm:$0xff]  ;;  %v329_v41 = vld [vmem:[%s6762_s26 + $0x228] sm:$0xff] }
  0x3a   : > { %3340 = vmatpush.msrb.mxu0 %v338_v3  ;;  %3359 = vmatpush.msrb.mxu1 %v355_v4  ;;  %v346_v42 = vld [vmem:[%s6762_s26 + $0x2b0] sm:$0xff]  ;;  %v361_v43 = vld [vmem:[%s6762_s26 + $0x328] sm:$0xff]  ;;  %v328_v45 = vld [vmem:[%s6762_s26 + $0x220] sm:$0xff] }
  0x3b   : > { %3380 = vmatpush.msrb.mxu2 %v370_v5  ;;  %3399 = vmatpush.msrb.mxu3 %v387_v6  ;;  %v378_v44 = vld [vmem:[%s6762_s26 + $0x3b0] sm:$0xff]  ;;  %v345_v46 = vld [vmem:[%s6762_s26 + $0x2a8] sm:$0xff]  ;;  %v360_v47 = vld [vmem:[%s6762_s26 + $0x320] sm:$0xff] }
  0x3c   : > { %3341 = vmatpush.msrb.mxu0 %v337_v7  ;;  %3360 = vmatpush.msrb.mxu1 %v354_v8  ;;  %v377_v48 = vld [vmem:[%s6762_s26 + $0x3a8] sm:$0xff]  ;;  %v327_v49 = vld [vmem:[%s6762_s26 + $0x218] sm:$0xff]  ;;  %v344_v50 = vld [vmem:[%s6762_s26 + $0x2a0] sm:$0xff] }
  0x3d   : > { %3381 = vmatpush.msrb.mxu2 %v369_v9  ;;  %3400 = vmatpush.msrb.mxu3 %v386_v10  ;;  %v359_v51 = vld [vmem:[%s6762_s26 + $0x318] sm:$0xff]  ;;  %v376_v52 = vld [vmem:[%s6762_s26 + $0x3a0] sm:$0xff]  ;;  %v326_v53 = vld [vmem:[%s6762_s26 + $0x210] sm:$0xff] }
  0x3e   : > { %3342 = vmatpush.msrb.mxu0 %v336_v11  ;;  %3361 = vmatpush.msrb.mxu1 %v353_v12  ;;  %v343_v54 = vld [vmem:[%s6762_s26 + $0x298] sm:$0xff]  ;;  %v358_v55 = vld [vmem:[%s6762_s26 + $0x310] sm:$0xff]  ;;  %v325_v58 = vld [vmem:[%s6762_s26 + $0x208] sm:$0xff] }
  0x3f   : > { %3382 = vmatpush.msrb.mxu2 %v368_v13  ;;  %3401 = vmatpush.msrb.mxu3 %v385_v14  ;;  %v375_v56 = vld [vmem:[%s6762_s26 + $0x398] sm:$0xff]  ;;  %v2898_v57 = vld.sshfl [vmem:[#allocation1 + $0x10] sm:$0xff pattern:$0x73625140]  ;;  %v357_v60 = vld [vmem:[%s6762_s26 + $0x308] sm:$0xff] }
  0x40   : > { %3343 = vmatpush.msrb.mxu0 %v335_v15  ;;  %3362 = vmatpush.msrb.mxu1 %v352_v16  ;;  %v342_v59 = vld [vmem:[%s6762_s26 + $0x290] sm:$0xff]  ;;  %v2896_v62 = vld.sshfl [vmem:[#allocation1] sm:$0xff pattern:$0x73625140]  ;;  %v341_v1 = vld [vmem:[%s6762_s26 + $0x288] sm:$0xff] }
  0x41   : > { %3383 = vmatpush.msrb.mxu2 %v367_v17  ;;  %3402 = vmatpush.msrb.mxu3 %v384_v18  ;;  %v374_v61 = vld [vmem:[%s6762_s26 + $0x390] sm:$0xff]  ;;  %v2899_v63 = vld.sshfl [vmem:[#allocation1 + $0x18] sm:$0xff pattern:$0x73625140]  ;;  %v324_v0 = vld [vmem:[%s6762_s26 + $0x200] sm:$0xff] }
  0x42   : > { %3344 = vmatpush.msrb.mxu0 %v334_v19  ;;  %3363 = vmatpush.msrb.mxu1 %v351_v20  ;;  %v356_v2 = vld [vmem:[%s6762_s26 + $0x300] sm:$0xff]  ;;  %v373_v3 = vld [vmem:[%s6762_s26 + $0x388] sm:$0xff]  ;;  %v403_v5 = vld [vmem:[%s6762_s26 + $0x478] sm:$0xff] }
  0x43   : > { %3384 = vmatpush.msrb.mxu2 %v366_v22  ;;  %3403 = vmatpush.msrb.mxu3 %v383_v23  ;;  %v2897_v4 = vld.sshfl [vmem:[#allocation1 + $0x8] sm:$0xff pattern:$0x73625140]  ;;  %v435_v6 = vld [vmem:[%s6762_s26 + $0x578] sm:$0xff]  ;;  %v340_v7 = vld [vmem:[%s6762_s26 + $0x280] sm:$0xff] }
  0x44   : > { %3345 = vmatpush.msrb.mxu0 %v333_v24  ;;  %3364 = vmatpush.msrb.mxu1 %v350_v25  ;;  %v372_v8 = vld [vmem:[%s6762_s26 + $0x380] sm:$0xff]  ;;  %v402_v9 = vld [vmem:[%s6762_s26 + $0x470] sm:$0xff]  ;;  %v419_v10 = vld [vmem:[%s6762_s26 + $0x4f8] sm:$0xff] }
  0x45   : > { %3385 = vmatpush.msrb.mxu2 %v365_v26  ;;  %3404 = vmatpush.msrb.mxu3 %v382_v27  ;;  %v434_v11 = vld [vmem:[%s6762_s26 + $0x570] sm:$0xff]  ;;  %v451_v12 = vld [vmem:[%s6762_s26 + $0x5f8] sm:$0xff]  ;;  %v401_v14 = vld [vmem:[%s6762_s26 + $0x468] sm:$0xff] }
  0x46   : > { %3346 = vmatpush.msrb.mxu0 %v332_v28  ;;  %3365 = vmatpush.msrb.mxu1 %v349_v29  ;;  %v2902_v13 = vld.sshfl [vmem:[#allocation1 + $0x30] sm:$0xff pattern:$0x73625140]  ;;  %v433_v16 = vld [vmem:[%s6762_s26 + $0x568] sm:$0xff]  ;;  %v400_v21 = vld [vmem:[%s6762_s26 + $0x460] sm:$0xff] }
  0x47   : > { %3386 = vmatpush.msrb.mxu2 %v364_v30  ;;  %3405 = vmatpush.msrb.mxu3 %v381_v31  ;;  %v418_v15 = vld [vmem:[%s6762_s26 + $0x4f0] sm:$0xff]  ;;  %v2900_v19 = vld.sshfl [vmem:[#allocation1 + $0x20] sm:$0xff pattern:$0x73625140]  ;;  %v417_v22 = vld [vmem:[%s6762_s26 + $0x4e8] sm:$0xff] }
  0x48   : > { %3347 = vmatpush.msrb.mxu0 %v331_v32  ;;  %3366 = vmatpush.msrb.mxu1 %v348_v33  ;;  %v221_v17 = vld [vmem:[%s6757_s22 + $0x10] sm:$0xff]  ;;  %v2903_v20 = vld.sshfl [vmem:[#allocation1 + $0x38] sm:$0xff pattern:$0x73625140]  ;;  %v432_v23 = vld [vmem:[%s6762_s26 + $0x560] sm:$0xff] }
  0x49   : > { %3387 = vmatpush.msrb.mxu2 %v363_v35  ;;  %3406 = vmatpush.msrb.mxu3 %v380_v36  ;;  %v450_v18 = vld [vmem:[%s6762_s26 + $0x5f0] sm:$0xff]  ;;  %2904 = vst [vmem:[#allocation1] ss:$4 sm:$0xff] %v221_v17  ;;  %v449_v24 = vld [vmem:[%s6762_s26 + $0x5e8] sm:$0xff]  ;;  %v399_v26 = vld [vmem:[%s6762_s26 + $0x458] sm:$0xff] }
  0x4a   : > { %3348 = vmatpush.msrb.mxu0 %v330_v37  ;;  %3367 = vmatpush.msrb.mxu1 %v347_v38  ;;  %v2901_v25 = vld.sshfl [vmem:[#allocation1 + $0x28] sm:$0xff pattern:$0x73625140]  ;;  %v416_v27 = vld [vmem:[%s6762_s26 + $0x4e0] sm:$0xff]  ;;  %v431_v28 = vld [vmem:[%s6762_s26 + $0x558] sm:$0xff] }
  0x4b   : > { %3388 = vmatpush.msrb.mxu2 %v362_v39  ;;  %3407 = vmatpush.msrb.mxu3 %v379_v40  ;;  %v448_v29 = vld [vmem:[%s6762_s26 + $0x5e0] sm:$0xff]  ;;  %v398_v30 = vld [vmem:[%s6762_s26 + $0x450] sm:$0xff]  ;;  %v415_v31 = vld [vmem:[%s6762_s26 + $0x4d8] sm:$0xff] }
  0x4c   : > { %3349 = vmatpush.msrb.mxu0 %v329_v41  ;;  %3368 = vmatpush.msrb.mxu1 %v346_v42  ;;  %v430_v32 = vld [vmem:[%s6762_s26 + $0x550] sm:$0xff]  ;;  %v447_v33 = vld [vmem:[%s6762_s26 + $0x5d8] sm:$0xff]  ;;  %v397_v34 = vld [vmem:[%s6762_s26 + $0x448] sm:$0xff] }
  0x4d   : > { %3389 = vmatpush.msrb.mxu2 %v361_v43  ;;  %3408 = vmatpush.msrb.mxu3 %v378_v44  ;;  %v414_v35 = vld [vmem:[%s6762_s26 + $0x4d0] sm:$0xff]  ;;  %v429_v36 = vld [vmem:[%s6762_s26 + $0x548] sm:$0xff]  ;;  %v396_v38 = vld [vmem:[%s6762_s26 + $0x440] sm:$0xff] }
  0x4e   : > { %3350 = vmatpush.msrb.mxu0 %v328_v45  ;;  %3369 = vmatpush.msrb.mxu1 %v345_v46  ;;  %v446_v37 = vld [vmem:[%s6762_s26 + $0x5d0] sm:$0xff]  ;;  %v413_v39 = vld [vmem:[%s6762_s26 + $0x4c8] sm:$0xff]  ;;  %v428_v40 = vld [vmem:[%s6762_s26 + $0x540] sm:$0xff] }
  0x4f   : > { %3390 = vmatpush.msrb.mxu2 %v360_v47  ;;  %3409 = vmatpush.msrb.mxu3 %v377_v48  ;;  %v445_v41 = vld [vmem:[%s6762_s26 + $0x5c8] sm:$0xff]  ;;  %v395_v42 = vld [vmem:[%s6762_s26 + $0x438] sm:$0xff]  ;;  %v412_v43 = vld [vmem:[%s6762_s26 + $0x4c0] sm:$0xff] }
  0x50   : > { %3351 = vmatpush.msrb.mxu0 %v327_v49  ;;  %3370 = vmatpush.msrb.mxu1 %v344_v50  ;;  %v427_v44 = vld [vmem:[%s6762_s26 + $0x538] sm:$0xff]  ;;  %v444_v45 = vld [vmem:[%s6762_s26 + $0x5c0] sm:$0xff]  ;;  %v394_v46 = vld [vmem:[%s6762_s26 + $0x430] sm:$0xff] }
  0x51   : > { %3391 = vmatpush.msrb.mxu2 %v359_v51  ;;  %3410 = vmatpush.msrb.mxu3 %v376_v52  ;;  %v411_v47 = vld [vmem:[%s6762_s26 + $0x4b8] sm:$0xff]  ;;  %v426_v48 = vld [vmem:[%s6762_s26 + $0x530] sm:$0xff]  ;;  %v393_v50 = vld [vmem:[%s6762_s26 + $0x428] sm:$0xff] }
  0x52   : > { %3352 = vmatpush.msrb.mxu0 %v326_v53  ;;  %3371 = vmatpush.msrb.mxu1 %v343_v54  ;;  %v443_v49 = vld [vmem:[%s6762_s26 + $0x5b8] sm:$0xff]  ;;  %v410_v51 = vld [vmem:[%s6762_s26 + $0x4b0] sm:$0xff]  ;;  %v425_v52 = vld [vmem:[%s6762_s26 + $0x528] sm:$0xff] }
  0x53   : > { %3392 = vmatpush.msrb.mxu2 %v358_v55  ;;  %3411 = vmatpush.msrb.mxu3 %v375_v56  ;;  %v442_v53 = vld [vmem:[%s6762_s26 + $0x5b0] sm:$0xff]  ;;  %v392_v54 = vld [vmem:[%s6762_s26 + $0x420] sm:$0xff]  ;;  %v409_v55 = vld [vmem:[%s6762_s26 + $0x4a8] sm:$0xff] }
  0x54   : > { %3315 = vmatmul.f32.vlgmr.msra.gmra.mxu2 %v2898_v57  ;;  %3353 = vmatpush.msrb.mxu0 %v325_v58  ;;  %v424_v56 = vld [vmem:[%s6762_s26 + $0x520] sm:$0xff]  ;;  %v441_v57 = vld [vmem:[%s6762_s26 + $0x5a8] sm:$0xff]  ;;  %v391_v58 = vld [vmem:[%s6762_s26 + $0x418] sm:$0xff] }
  0x55   : > { %3372 = vmatpush.msrb.mxu1 %v342_v59  ;;  %3393 = vmatpush.msrb.mxu2 %v357_v60  ;;  %v408_v59 = vld [vmem:[%s6762_s26 + $0x4a0] sm:$0xff]  ;;  %v423_v60 = vld [vmem:[%s6762_s26 + $0x518] sm:$0xff]  ;;  %v2907_v17 = vld.sshfl [vmem:[#allocation1 + $0x8] sm:$0xff pattern:$0x73625140] }
  0x56   : > { %3412 = vmatpush.msrb.mxu3 %v374_v61  ;;  %3275 = vmatmul.f32.vlgmr.msra.gmra.mxu0 %v2896_v62  ;;  %v440_v61 = vld [vmem:[%s6762_s26 + $0x5a0] sm:$0xff]  ;;  %v390_v62 = vld [vmem:[%s6762_s26 + $0x410] sm:$0xff] }
  0x57   : > { %3335 = vmatmul.f32.vlgmr.msra.gmra.mxu3 %v2899_v63  ;;  %3354 = vmatpush.msrb.mxu0 %v324_v0  ;;  %v407_v63 = vld [vmem:[%s6762_s26 + $0x498] sm:$0xff]  ;;  %v422_v0 = vld [vmem:[%s6762_s26 + $0x510] sm:$0xff] }
  0x58   : > { %3373 = vmatpush.msrb.mxu1 %v341_v1  ;;  %3394 = vmatpush.msrb.mxu2 %v356_v2  ;;  %v439_v1 = vld [vmem:[%s6762_s26 + $0x598] sm:$0xff]  ;;  %v389_v2 = vld [vmem:[%s6762_s26 + $0x408] sm:$0xff] }
  0x59   : > { %3413 = vmatpush.msrb.mxu3 %v373_v3  ;;  %3295 = vmatmul.f32.vlgmr.msra.gmra.mxu1 %v2897_v4  ;;  %v406_v3 = vld [vmem:[%s6762_s26 + $0x490] sm:$0xff]  ;;  %v222_v4 = vld [vmem:[%s6757_s22 + $0x18] sm:$0xff] }
  0x5a   : > { %3419 = vmatpush.msra.mxu0 %v403_v5  ;;  %3459 = vmatpush.msra.mxu2 %v435_v6  ;;  %v421_v5 = vld [vmem:[%s6762_s26 + $0x508] sm:$0xff]  ;;  %v438_v6 = vld [vmem:[%s6762_s26 + $0x590] sm:$0xff]  ;;  %2905 = vst [vmem:[#allocation1 + $0x20] ss:$4 sm:$0xff] %v222_v4  ;;  %v471_v4 = vld [vmem:[%s6762_s26 + $0x698] sm:$0xff] }
  0x5b   : > { %3374 = vmatpush.msrb.mxu1 %v340_v7  ;;  %3414 = vmatpush.msrb.mxu3 %v372_v8  ;;  %v388_v7 = vld [vmem:[%s6762_s26 + $0x400] sm:$0xff]  ;;  %v405_v8 = vld [vmem:[%s6762_s26 + $0x488] sm:$0xff] }
  0x5c   : > { %3420 = vmatpush.msra.mxu0 %v402_v9  ;;  %3460 = vmatpush.msra.mxu2 %v434_v11  ;;  %v420_v9 = vld [vmem:[%s6762_s26 + $0x500] sm:$0xff] }
  0x5d   : > { %3439 = vmatpush.msra.mxu1 %v419_v10  ;;  %3479 = vmatpush.msra.mxu3 %v451_v12  ;;  %v437_v10 = vld [vmem:[%s6762_s26 + $0x588] sm:$0xff]  ;;  %v2906_v11 = vld.sshfl [vmem:[#allocation1] sm:$0xff pattern:$0x73625140] }
  0x5e   : > { %3395 = vmatmul.f32.vlgmr.msrb.gmra.mxu2 %v2902_v13  ;;  %3421 = vmatpush.msra.mxu0 %v401_v14  ;;  %v2908_v12 = vld.sshfl [vmem:[#allocation1 + $0x10] sm:$0xff pattern:$0x73625140]  ;;  %v467_v13 = vld [vmem:[%s6762_s26 + $0x678] sm:$0xff] }
  0x5f   : > { %3440 = vmatpush.msra.mxu1 %v418_v15  ;;  %3461 = vmatpush.msra.mxu2 %v433_v16  ;;  %v499_v14 = vld [vmem:[%s6762_s26 + $0x778] sm:$0xff]  ;;  %v404_v15 = vld [vmem:[%s6762_s26 + $0x480] sm:$0xff] }
  0x60   : > { %3480 = vmatpush.msra.mxu3 %v450_v18  ;;  %3355 = vmatmul.f32.vlgmr.msrb.gmra.mxu0 %v2900_v19  ;;  %v436_v16 = vld [vmem:[%s6762_s26 + $0x580] sm:$0xff]  ;;  %v2909_v18 = vld.sshfl [vmem:[#allocation1 + $0x18] sm:$0xff pattern:$0x73625140]  ;;  %v466_v19 = vld [vmem:[%s6762_s26 + $0x670] sm:$0xff] }
  0x61   : > { %3415 = vmatmul.f32.vlgmr.msrb.gmra.mxu3 %v2903_v20  ;;  %3422 = vmatpush.msra.mxu0 %v400_v21  ;;  %v483_v20 = vld [vmem:[%s6762_s26 + $0x6f8] sm:$0xff]  ;;  %v498_v21 = vld [vmem:[%s6762_s26 + $0x770] sm:$0xff] }
  0x62   : > { %3441 = vmatpush.msra.mxu1 %v417_v22  ;;  %3462 = vmatpush.msra.mxu2 %v432_v23  ;;  %v515_v22 = vld [vmem:[%s6762_s26 + $0x7f8] sm:$0xff]  ;;  %v465_v23 = vld [vmem:[%s6762_s26 + $0x668] sm:$0xff] }
  0x63   : > { %3481 = vmatpush.msra.mxu3 %v449_v24  ;;  %3375 = vmatmul.f32.vlgmr.msrb.gmra.mxu1 %v2901_v25  ;;  %v482_v24 = vld [vmem:[%s6762_s26 + $0x6f0] sm:$0xff]  ;;  %v497_v25 = vld [vmem:[%s6762_s26 + $0x768] sm:$0xff] }
  0x64   : > { %3423 = vmatpush.msra.mxu0 %v399_v26  ;;  %3442 = vmatpush.msra.mxu1 %v416_v27  ;;  %v514_v26 = vld [vmem:[%s6762_s26 + $0x7f0] sm:$0xff]  ;;  %v464_v27 = vld [vmem:[%s6762_s26 + $0x660] sm:$0xff] }
  0x65   : > { %3463 = vmatpush.msra.mxu2 %v431_v28  ;;  %3482 = vmatpush.msra.mxu3 %v448_v29  ;;  %v481_v28 = vld [vmem:[%s6762_s26 + $0x6e8] sm:$0xff]  ;;  %v496_v29 = vld [vmem:[%s6762_s26 + $0x760] sm:$0xff] }
  0x66   : > { %3424 = vmatpush.msra.mxu0 %v398_v30  ;;  %3443 = vmatpush.msra.mxu1 %v415_v31  ;;  %v513_v30 = vld [vmem:[%s6762_s26 + $0x7e8] sm:$0xff]  ;;  %v463_v31 = vld [vmem:[%s6762_s26 + $0x658] sm:$0xff] }
  0x67   : > { %3464 = vmatpush.msra.mxu2 %v430_v32  ;;  %3483 = vmatpush.msra.mxu3 %v447_v33  ;;  %v480_v32 = vld [vmem:[%s6762_s26 + $0x6e0] sm:$0xff]  ;;  %v495_v33 = vld [vmem:[%s6762_s26 + $0x758] sm:$0xff] }
  0x68   : > { %3425 = vmatpush.msra.mxu0 %v397_v34  ;;  %3444 = vmatpush.msra.mxu1 %v414_v35  ;;  %v512_v34 = vld [vmem:[%s6762_s26 + $0x7e0] sm:$0xff]  ;;  %v462_v35 = vld [vmem:[%s6762_s26 + $0x650] sm:$0xff] }
  0x69   : > { %3465 = vmatpush.msra.mxu2 %v429_v36  ;;  %3484 = vmatpush.msra.mxu3 %v446_v37  ;;  %v479_v36 = vld [vmem:[%s6762_s26 + $0x6d8] sm:$0xff]  ;;  %v494_v37 = vld [vmem:[%s6762_s26 + $0x750] sm:$0xff] }
  0x6a   : > { %3426 = vmatpush.msra.mxu0 %v396_v38  ;;  %3445 = vmatpush.msra.mxu1 %v413_v39  ;;  %v511_v38 = vld [vmem:[%s6762_s26 + $0x7d8] sm:$0xff]  ;;  %v461_v39 = vld [vmem:[%s6762_s26 + $0x648] sm:$0xff] }
  0x6b   : > { %3466 = vmatpush.msra.mxu2 %v428_v40  ;;  %3485 = vmatpush.msra.mxu3 %v445_v41  ;;  %v478_v40 = vld [vmem:[%s6762_s26 + $0x6d0] sm:$0xff]  ;;  %v493_v41 = vld [vmem:[%s6762_s26 + $0x748] sm:$0xff] }
  0x6c   : > { %3427 = vmatpush.msra.mxu0 %v395_v42  ;;  %3446 = vmatpush.msra.mxu1 %v412_v43  ;;  %v510_v42 = vld [vmem:[%s6762_s26 + $0x7d0] sm:$0xff]  ;;  %v460_v43 = vld [vmem:[%s6762_s26 + $0x640] sm:$0xff] }
  0x6d   : > { %3467 = vmatpush.msra.mxu2 %v427_v44  ;;  %3486 = vmatpush.msra.mxu3 %v444_v45  ;;  %v477_v44 = vld [vmem:[%s6762_s26 + $0x6c8] sm:$0xff]  ;;  %v492_v45 = vld [vmem:[%s6762_s26 + $0x740] sm:$0xff] }
  0x6e   : > { %3428 = vmatpush.msra.mxu0 %v394_v46  ;;  %3447 = vmatpush.msra.mxu1 %v411_v47  ;;  %v509_v46 = vld [vmem:[%s6762_s26 + $0x7c8] sm:$0xff]  ;;  %v459_v47 = vld [vmem:[%s6762_s26 + $0x638] sm:$0xff] }
  0x6f   : > { %3468 = vmatpush.msra.mxu2 %v426_v48  ;;  %3487 = vmatpush.msra.mxu3 %v443_v49  ;;  %v476_v48 = vld [vmem:[%s6762_s26 + $0x6c0] sm:$0xff]  ;;  %v491_v49 = vld [vmem:[%s6762_s26 + $0x738] sm:$0xff] }
  0x70   : > { %3429 = vmatpush.msra.mxu0 %v393_v50  ;;  %3448 = vmatpush.msra.mxu1 %v410_v51  ;;  %v508_v50 = vld [vmem:[%s6762_s26 + $0x7c0] sm:$0xff]  ;;  %v458_v51 = vld [vmem:[%s6762_s26 + $0x630] sm:$0xff] }
  0x71   : > { %3469 = vmatpush.msra.mxu2 %v425_v52  ;;  %3488 = vmatpush.msra.mxu3 %v442_v53  ;;  %v475_v52 = vld [vmem:[%s6762_s26 + $0x6b8] sm:$0xff]  ;;  %v490_v53 = vld [vmem:[%s6762_s26 + $0x730] sm:$0xff] }
  0x72   : > { %3430 = vmatpush.msra.mxu0 %v392_v54  ;;  %3449 = vmatpush.msra.mxu1 %v409_v55  ;;  %v507_v54 = vld [vmem:[%s6762_s26 + $0x7b8] sm:$0xff]  ;;  %v457_v55 = vld [vmem:[%s6762_s26 + $0x628] sm:$0xff] }
  0x73   : > { %3470 = vmatpush.msra.mxu2 %v424_v56  ;;  %3489 = vmatpush.msra.mxu3 %v441_v57  ;;  %v474_v56 = vld [vmem:[%s6762_s26 + $0x6b0] sm:$0xff]  ;;  %v489_v57 = vld [vmem:[%s6762_s26 + $0x728] sm:$0xff] }
  0x74   : > { %3431 = vmatpush.msra.mxu0 %v391_v58  ;;  %3450 = vmatpush.msra.mxu1 %v408_v59  ;;  %v506_v58 = vld [vmem:[%s6762_s26 + $0x7b0] sm:$0xff]  ;;  %v456_v59 = vld [vmem:[%s6762_s26 + $0x620] sm:$0xff] }
  0x75   : > { %3471 = vmatpush.msra.mxu2 %v423_v60  ;;  %3490 = vmatpush.msra.mxu3 %v440_v61  ;;  %v473_v60 = vld [vmem:[%s6762_s26 + $0x6a8] sm:$0xff]  ;;  %v488_v61 = vld [vmem:[%s6762_s26 + $0x720] sm:$0xff] }
  0x76   : > { %3432 = vmatpush.msra.mxu0 %v390_v62  ;;  %3451 = vmatpush.msra.mxu1 %v407_v63  ;;  %v505_v62 = vld [vmem:[%s6762_s26 + $0x7a8] sm:$0xff]  ;;  %v455_v63 = vld [vmem:[%s6762_s26 + $0x618] sm:$0xff] }
  0x77   : > { %3472 = vmatpush.msra.mxu2 %v422_v0  ;;  %3491 = vmatpush.msra.mxu3 %v439_v1  ;;  %v472_v0 = vld [vmem:[%s6762_s26 + $0x6a0] sm:$0xff]  ;;  %v487_v1 = vld [vmem:[%s6762_s26 + $0x718] sm:$0xff] }
  0x78   : > { %3433 = vmatpush.msra.mxu0 %v389_v2  ;;  %3452 = vmatpush.msra.mxu1 %v406_v3  ;;  %v504_v2 = vld [vmem:[%s6762_s26 + $0x7a0] sm:$0xff]  ;;  %v454_v3 = vld [vmem:[%s6762_s26 + $0x610] sm:$0xff] }
  0x79   : > { %3473 = vmatpush.msra.mxu2 %v421_v5  ;;  %3492 = vmatpush.msra.mxu3 %v438_v6  ;;  %v486_v5 = vld [vmem:[%s6762_s26 + $0x710] sm:$0xff]  ;;  %v503_v6 = vld [vmem:[%s6762_s26 + $0x798] sm:$0xff] }
  0x7a   : > { %3434 = vmatpush.msra.mxu0 %v388_v7  ;;  %3453 = vmatpush.msra.mxu1 %v405_v8  ;;  %v453_v7 = vld [vmem:[%s6762_s26 + $0x608] sm:$0xff]  ;;  %v470_v8 = vld [vmem:[%s6762_s26 + $0x690] sm:$0xff] }
  0x7b   : > { %3474 = vmatpush.msra.mxu2 %v420_v9  ;;  %3493 = vmatpush.msra.mxu3 %v437_v10  ;;  %v223_v9 = vld [vmem:[%s6757_s22 + $0x20] sm:$0xff]  ;;  %v485_v10 = vld [vmem:[%s6762_s26 + $0x708] sm:$0xff] }
  0x7c   : > { %3435 = vmatmul.f32.vlgmr.msra.gmra.mxu0 %v2906_v11  ;;  %3475 = vmatmul.f32.vlgmr.msra.gmra.mxu2 %v2908_v12  ;;  %v502_v11 = vld [vmem:[%s6762_s26 + $0x790] sm:$0xff]  ;;  %2914 = vst [vmem:[#allocation1] ss:$4 sm:$0xff] %v223_v9  ;;  %v452_v12 = vld [vmem:[%s6762_s26 + $0x600] sm:$0xff]  ;;  %v535_v9 = vld [vmem:[%s6762_s26 + $0x898] sm:$0xff] }
  0x7d   : > { %3499 = vmatpush.msrb.mxu0 %v467_v13  ;;  %3539 = vmatpush.msrb.mxu2 %v499_v14  ;;  %v469_v13 = vld [vmem:[%s6762_s26 + $0x688] sm:$0xff]  ;;  %v484_v14 = vld [vmem:[%s6762_s26 + $0x700] sm:$0xff] }
  0x7e   : > { %3454 = vmatpush.msra.mxu1 %v404_v15  ;;  %3494 = vmatpush.msra.mxu3 %v436_v16  ;;  %v501_v15 = vld [vmem:[%s6762_s26 + $0x788] sm:$0xff]  ;;  %v2910_v16 = vld.sshfl [vmem:[#allocation1 + $0x20] sm:$0xff pattern:$0x73625140] }
  0x7f   : > { %3455 = vmatmul.f32.vlgmr.msra.gmra.mxu1 %v2907_v17  ;;  %3495 = vmatmul.f32.vlgmr.msra.gmra.mxu3 %v2909_v18  ;;  %v2912_v17 = vld.sshfl [vmem:[#allocation1 + $0x30] sm:$0xff pattern:$0x73625140]  ;;  %v531_v18 = vld [vmem:[%s6762_s26 + $0x878] sm:$0xff] }
  0x80   : > { %3500 = vmatpush.msrb.mxu0 %v466_v19  ;;  %3519 = vmatpush.msrb.mxu1 %v483_v20  ;;  %v563_v19 = vld [vmem:[%s6762_s26 + $0x978] sm:$0xff]  ;;  %v468_v20 = vld [vmem:[%s6762_s26 + $0x680] sm:$0xff] }
  0x81   : > { %3540 = vmatpush.msrb.mxu2 %v498_v21  ;;  %3559 = vmatpush.msrb.mxu3 %v515_v22  ;;  %v500_v21 = vld [vmem:[%s6762_s26 + $0x780] sm:$0xff]  ;;  %v2911_v22 = vld.sshfl [vmem:[#allocation1 + $0x28] sm:$0xff pattern:$0x73625140] }
  0x82   : > { %3501 = vmatpush.msrb.mxu0 %v465_v23  ;;  %3520 = vmatpush.msrb.mxu1 %v482_v24  ;;  %v2913_v23 = vld.sshfl [vmem:[#allocation1 + $0x38] sm:$0xff pattern:$0x73625140]  ;;  %v530_v24 = vld [vmem:[%s6762_s26 + $0x870] sm:$0xff] }
  0x83   : > { %3541 = vmatpush.msrb.mxu2 %v497_v25  ;;  %3560 = vmatpush.msrb.mxu3 %v514_v26  ;;  %v547_v25 = vld [vmem:[%s6762_s26 + $0x8f8] sm:$0xff]  ;;  %v562_v26 = vld [vmem:[%s6762_s26 + $0x970] sm:$0xff] }
  0x84   : > { %3502 = vmatpush.msrb.mxu0 %v464_v27  ;;  %3521 = vmatpush.msrb.mxu1 %v481_v28  ;;  %v579_v27 = vld [vmem:[%s6762_s26 + $0x9f8] sm:$0xff]  ;;  %v529_v28 = vld [vmem:[%s6762_s26 + $0x868] sm:$0xff] }
  0x85   : > { %3542 = vmatpush.msrb.mxu2 %v496_v29  ;;  %3561 = vmatpush.msrb.mxu3 %v513_v30  ;;  %v546_v29 = vld [vmem:[%s6762_s26 + $0x8f0] sm:$0xff]  ;;  %v561_v30 = vld [vmem:[%s6762_s26 + $0x968] sm:$0xff] }
  0x86   : > { %3503 = vmatpush.msrb.mxu0 %v463_v31  ;;  %3522 = vmatpush.msrb.mxu1 %v480_v32  ;;  %v578_v31 = vld [vmem:[%s6762_s26 + $0x9f0] sm:$0xff]  ;;  %v528_v32 = vld [vmem:[%s6762_s26 + $0x860] sm:$0xff] }
  0x87   : > { %3543 = vmatpush.msrb.mxu2 %v495_v33  ;;  %3562 = vmatpush.msrb.mxu3 %v512_v34  ;;  %v545_v33 = vld [vmem:[%s6762_s26 + $0x8e8] sm:$0xff]  ;;  %v560_v34 = vld [vmem:[%s6762_s26 + $0x960] sm:$0xff] }
  0x88   : > { %3504 = vmatpush.msrb.mxu0 %v462_v35  ;;  %3523 = vmatpush.msrb.mxu1 %v479_v36  ;;  %v577_v35 = vld [vmem:[%s6762_s26 + $0x9e8] sm:$0xff]  ;;  %v527_v36 = vld [vmem:[%s6762_s26 + $0x858] sm:$0xff] }
  0x89   : > { %3544 = vmatpush.msrb.mxu2 %v494_v37  ;;  %3563 = vmatpush.msrb.mxu3 %v511_v38  ;;  %v544_v37 = vld [vmem:[%s6762_s26 + $0x8e0] sm:$0xff]  ;;  %v559_v38 = vld [vmem:[%s6762_s26 + $0x958] sm:$0xff] }
  0x8a   : > { %3505 = vmatpush.msrb.mxu0 %v461_v39  ;;  %3524 = vmatpush.msrb.mxu1 %v478_v40  ;;  %v576_v39 = vld [vmem:[%s6762_s26 + $0x9e0] sm:$0xff]  ;;  %v526_v40 = vld [vmem:[%s6762_s26 + $0x850] sm:$0xff] }
  0x8b   : > { %3545 = vmatpush.msrb.mxu2 %v493_v41  ;;  %3564 = vmatpush.msrb.mxu3 %v510_v42  ;;  %v543_v41 = vld [vmem:[%s6762_s26 + $0x8d8] sm:$0xff]  ;;  %v558_v42 = vld [vmem:[%s6762_s26 + $0x950] sm:$0xff] }
  0x8c   : > { %3506 = vmatpush.msrb.mxu0 %v460_v43  ;;  %3525 = vmatpush.msrb.mxu1 %v477_v44  ;;  %v575_v43 = vld [vmem:[%s6762_s26 + $0x9d8] sm:$0xff]  ;;  %v525_v44 = vld [vmem:[%s6762_s26 + $0x848] sm:$0xff] }
  0x8d   : > { %3546 = vmatpush.msrb.mxu2 %v492_v45  ;;  %3565 = vmatpush.msrb.mxu3 %v509_v46  ;;  %v542_v45 = vld [vmem:[%s6762_s26 + $0x8d0] sm:$0xff]  ;;  %v557_v46 = vld [vmem:[%s6762_s26 + $0x948] sm:$0xff] }
  0x8e   : > { %3507 = vmatpush.msrb.mxu0 %v459_v47  ;;  %3526 = vmatpush.msrb.mxu1 %v476_v48  ;;  %v574_v47 = vld [vmem:[%s6762_s26 + $0x9d0] sm:$0xff]  ;;  %v524_v48 = vld [vmem:[%s6762_s26 + $0x840] sm:$0xff] }
  0x8f   : > { %3547 = vmatpush.msrb.mxu2 %v491_v49  ;;  %3566 = vmatpush.msrb.mxu3 %v508_v50  ;;  %v541_v49 = vld [vmem:[%s6762_s26 + $0x8c8] sm:$0xff]  ;;  %v556_v50 = vld [vmem:[%s6762_s26 + $0x940] sm:$0xff] }
  0x90   : > { %3508 = vmatpush.msrb.mxu0 %v458_v51  ;;  %3527 = vmatpush.msrb.mxu1 %v475_v52  ;;  %v573_v51 = vld [vmem:[%s6762_s26 + $0x9c8] sm:$0xff]  ;;  %v523_v52 = vld [vmem:[%s6762_s26 + $0x838] sm:$0xff] }
  0x91   : > { %3548 = vmatpush.msrb.mxu2 %v490_v53  ;;  %3567 = vmatpush.msrb.mxu3 %v507_v54  ;;  %v540_v53 = vld [vmem:[%s6762_s26 + $0x8c0] sm:$0xff]  ;;  %v555_v54 = vld [vmem:[%s6762_s26 + $0x938] sm:$0xff] }
  0x92   : > { %3509 = vmatpush.msrb.mxu0 %v457_v55  ;;  %3528 = vmatpush.msrb.mxu1 %v474_v56  ;;  %v572_v55 = vld [vmem:[%s6762_s26 + $0x9c0] sm:$0xff]  ;;  %v522_v56 = vld [vmem:[%s6762_s26 + $0x830] sm:$0xff] }
  0x93   : > { %3549 = vmatpush.msrb.mxu2 %v489_v57  ;;  %3568 = vmatpush.msrb.mxu3 %v506_v58  ;;  %v539_v57 = vld [vmem:[%s6762_s26 + $0x8b8] sm:$0xff]  ;;  %v554_v58 = vld [vmem:[%s6762_s26 + $0x930] sm:$0xff] }
  0x94   : > { %3510 = vmatpush.msrb.mxu0 %v456_v59  ;;  %3529 = vmatpush.msrb.mxu1 %v473_v60  ;;  %v571_v59 = vld [vmem:[%s6762_s26 + $0x9b8] sm:$0xff]  ;;  %v521_v60 = vld [vmem:[%s6762_s26 + $0x828] sm:$0xff] }
  0x95   : > { %3550 = vmatpush.msrb.mxu2 %v488_v61  ;;  %3569 = vmatpush.msrb.mxu3 %v505_v62  ;;  %v538_v61 = vld [vmem:[%s6762_s26 + $0x8b0] sm:$0xff]  ;;  %v553_v62 = vld [vmem:[%s6762_s26 + $0x928] sm:$0xff] }
  0x96   : > { %3511 = vmatpush.msrb.mxu0 %v455_v63  ;;  %3530 = vmatpush.msrb.mxu1 %v472_v0  ;;  %v570_v63 = vld [vmem:[%s6762_s26 + $0x9b0] sm:$0xff]  ;;  %v520_v0 = vld [vmem:[%s6762_s26 + $0x820] sm:$0xff] }
  0x97   : > { %3551 = vmatpush.msrb.mxu2 %v487_v1  ;;  %3570 = vmatpush.msrb.mxu3 %v504_v2  ;;  %v537_v1 = vld [vmem:[%s6762_s26 + $0x8a8] sm:$0xff]  ;;  %v552_v2 = vld [vmem:[%s6762_s26 + $0x920] sm:$0xff] }
  0x98   : > { %3512 = vmatpush.msrb.mxu0 %v454_v3  ;;  %3531 = vmatpush.msrb.mxu1 %v471_v4  ;;  %v569_v3 = vld [vmem:[%s6762_s26 + $0x9a8] sm:$0xff]  ;;  %v519_v4 = vld [vmem:[%s6762_s26 + $0x818] sm:$0xff] }
  0x99   : > { %3552 = vmatpush.msrb.mxu2 %v486_v5  ;;  %3571 = vmatpush.msrb.mxu3 %v503_v6  ;;  %v536_v5 = vld [vmem:[%s6762_s26 + $0x8a0] sm:$0xff]  ;;  %v551_v6 = vld [vmem:[%s6762_s26 + $0x918] sm:$0xff] }
  0x9a   : > { %3513 = vmatpush.msrb.mxu0 %v453_v7  ;;  %3532 = vmatpush.msrb.mxu1 %v470_v8  ;;  %v568_v7 = vld [vmem:[%s6762_s26 + $0x9a0] sm:$0xff]  ;;  %v518_v8 = vld [vmem:[%s6762_s26 + $0x810] sm:$0xff] }
  0x9b   : > { %3553 = vmatpush.msrb.mxu2 %v485_v10  ;;  %3572 = vmatpush.msrb.mxu3 %v502_v11  ;;  %v550_v10 = vld [vmem:[%s6762_s26 + $0x910] sm:$0xff]  ;;  %v567_v11 = vld [vmem:[%s6762_s26 + $0x998] sm:$0xff] }
  0x9c   : > { %3514 = vmatpush.msrb.mxu0 %v452_v12  ;;  %3533 = vmatpush.msrb.mxu1 %v469_v13  ;;  %v517_v12 = vld [vmem:[%s6762_s26 + $0x808] sm:$0xff]  ;;  %v534_v13 = vld [vmem:[%s6762_s26 + $0x890] sm:$0xff] }
  0x9d   : > { %3554 = vmatpush.msrb.mxu2 %v484_v14  ;;  %3573 = vmatpush.msrb.mxu3 %v501_v15  ;;  %v224_v14 = vld [vmem:[%s6757_s22 + $0x28] sm:$0xff] }
  0x9e   : > { %3515 = vmatmul.f32.vlgmr.msrb.gmra.mxu0 %v2910_v16  ;;  %3555 = vmatmul.f32.vlgmr.msrb.gmra.mxu2 %v2912_v17  ;;  %v549_v15 = vld [vmem:[%s6762_s26 + $0x908] sm:$0xff]  ;;  %v566_v16 = vld [vmem:[%s6762_s26 + $0x990] sm:$0xff]  ;;  %2915 = vst [vmem:[#allocation1 + $0x20] ss:$4 sm:$0xff] %v224_v14  ;;  %v516_v17 = vld [vmem:[%s6762_s26 + $0x800] sm:$0xff] }
  0x9f   : > { %3579 = vmatpush.msra.mxu0 %v531_v18  ;;  %3619 = vmatpush.msra.mxu2 %v563_v19  ;;  %v533_v18 = vld [vmem:[%s6762_s26 + $0x888] sm:$0xff]  ;;  %v548_v19 = vld [vmem:[%s6762_s26 + $0x900] sm:$0xff]  ;;  %v599_v14 = vld [vmem:[%s6762_s26 + $0xa98] sm:$0xff] }
  0xa0   : > { %3534 = vmatpush.msrb.mxu1 %v468_v20  ;;  %3574 = vmatpush.msrb.mxu3 %v500_v21  ;;  %v565_v20 = vld [vmem:[%s6762_s26 + $0x988] sm:$0xff]  ;;  %v2916_v21 = vld.sshfl [vmem:[#allocation1] sm:$0xff pattern:$0x73625140] }
  0xa1   : > { %3535 = vmatmul.f32.vlgmr.msrb.gmra.mxu1 %v2911_v22  ;;  %3575 = vmatmul.f32.vlgmr.msrb.gmra.mxu3 %v2913_v23  ;;  %v2918_v22 = vld.sshfl [vmem:[#allocation1 + $0x10] sm:$0xff pattern:$0x73625140]  ;;  %v595_v23 = vld [vmem:[%s6762_s26 + $0xa78] sm:$0xff] }
  0xa2   : > { %3580 = vmatpush.msra.mxu0 %v530_v24  ;;  %3599 = vmatpush.msra.mxu1 %v547_v25  ;;  %v627_v24 = vld [vmem:[%s6762_s26 + $0xb78] sm:$0xff]  ;;  %v532_v25 = vld [vmem:[%s6762_s26 + $0x880] sm:$0xff] }
  0xa3   : > { %3620 = vmatpush.msra.mxu2 %v562_v26  ;;  %3639 = vmatpush.msra.mxu3 %v579_v27  ;;  %v564_v26 = vld [vmem:[%s6762_s26 + $0x980] sm:$0xff]  ;;  %v2917_v27 = vld.sshfl [vmem:[#allocation1 + $0x8] sm:$0xff pattern:$0x73625140] }
  0xa4   : > { %3581 = vmatpush.msra.mxu0 %v529_v28  ;;  %3600 = vmatpush.msra.mxu1 %v546_v29  ;;  %v2919_v28 = vld.sshfl [vmem:[#allocation1 + $0x18] sm:$0xff pattern:$0x73625140]  ;;  %v594_v29 = vld [vmem:[%s6762_s26 + $0xa70] sm:$0xff] }
  0xa5   : > { %3621 = vmatpush.msra.mxu2 %v561_v30  ;;  %3640 = vmatpush.msra.mxu3 %v578_v31  ;;  %v611_v30 = vld [vmem:[%s6762_s26 + $0xaf8] sm:$0xff]  ;;  %v626_v31 = vld [vmem:[%s6762_s26 + $0xb70] sm:$0xff] }
  0xa6   : > { %3582 = vmatpush.msra.mxu0 %v528_v32  ;;  %3601 = vmatpush.msra.mxu1 %v545_v33  ;;  %v643_v32 = vld [vmem:[%s6762_s26 + $0xbf8] sm:$0xff]  ;;  %v593_v33 = vld [vmem:[%s6762_s26 + $0xa68] sm:$0xff] }
  0xa7   : > { %3622 = vmatpush.msra.mxu2 %v560_v34  ;;  %3641 = vmatpush.msra.mxu3 %v577_v35  ;;  %v610_v34 = vld [vmem:[%s6762_s26 + $0xaf0] sm:$0xff]  ;;  %v625_v35 = vld [vmem:[%s6762_s26 + $0xb68] sm:$0xff] }
  0xa8   : > { %3583 = vmatpush.msra.mxu0 %v527_v36  ;;  %3602 = vmatpush.msra.mxu1 %v544_v37  ;;  %v642_v36 = vld [vmem:[%s6762_s26 + $0xbf0] sm:$0xff]  ;;  %v592_v37 = vld [vmem:[%s6762_s26 + $0xa60] sm:$0xff] }
  0xa9   : > { %3623 = vmatpush.msra.mxu2 %v559_v38  ;;  %3642 = vmatpush.msra.mxu3 %v576_v39  ;;  %v609_v38 = vld [vmem:[%s6762_s26 + $0xae8] sm:$0xff]  ;;  %v624_v39 = vld [vmem:[%s6762_s26 + $0xb60] sm:$0xff] }
  0xaa   : > { %3584 = vmatpush.msra.mxu0 %v526_v40  ;;  %3603 = vmatpush.msra.mxu1 %v543_v41  ;;  %v641_v40 = vld [vmem:[%s6762_s26 + $0xbe8] sm:$0xff]  ;;  %v591_v41 = vld [vmem:[%s6762_s26 + $0xa58] sm:$0xff] }
  0xab   : > { %3624 = vmatpush.msra.mxu2 %v558_v42  ;;  %3643 = vmatpush.msra.mxu3 %v575_v43  ;;  %v608_v42 = vld [vmem:[%s6762_s26 + $0xae0] sm:$0xff]  ;;  %v623_v43 = vld [vmem:[%s6762_s26 + $0xb58] sm:$0xff] }
  0xac   : > { %3585 = vmatpush.msra.mxu0 %v525_v44  ;;  %3604 = vmatpush.msra.mxu1 %v542_v45  ;;  %v640_v44 = vld [vmem:[%s6762_s26 + $0xbe0] sm:$0xff]  ;;  %v590_v45 = vld [vmem:[%s6762_s26 + $0xa50] sm:$0xff] }
  0xad   : > { %3625 = vmatpush.msra.mxu2 %v557_v46  ;;  %3644 = vmatpush.msra.mxu3 %v574_v47  ;;  %v607_v46 = vld [vmem:[%s6762_s26 + $0xad8] sm:$0xff]  ;;  %v622_v47 = vld [vmem:[%s6762_s26 + $0xb50] sm:$0xff] }
  0xae   : > { %3586 = vmatpush.msra.mxu0 %v524_v48  ;;  %3605 = vmatpush.msra.mxu1 %v541_v49  ;;  %v639_v48 = vld [vmem:[%s6762_s26 + $0xbd8] sm:$0xff]  ;;  %v589_v49 = vld [vmem:[%s6762_s26 + $0xa48] sm:$0xff] }
  0xaf   : > { %3626 = vmatpush.msra.mxu2 %v556_v50  ;;  %3645 = vmatpush.msra.mxu3 %v573_v51  ;;  %v606_v50 = vld [vmem:[%s6762_s26 + $0xad0] sm:$0xff]  ;;  %v621_v51 = vld [vmem:[%s6762_s26 + $0xb48] sm:$0xff] }
  0xb0   : > { %3587 = vmatpush.msra.mxu0 %v523_v52  ;;  %3606 = vmatpush.msra.mxu1 %v540_v53  ;;  %v638_v52 = vld [vmem:[%s6762_s26 + $0xbd0] sm:$0xff]  ;;  %v588_v53 = vld [vmem:[%s6762_s26 + $0xa40] sm:$0xff] }
  0xb1   : > { %3627 = vmatpush.msra.mxu2 %v555_v54  ;;  %3646 = vmatpush.msra.mxu3 %v572_v55  ;;  %v605_v54 = vld [vmem:[%s6762_s26 + $0xac8] sm:$0xff]  ;;  %v620_v55 = vld [vmem:[%s6762_s26 + $0xb40] sm:$0xff] }
  0xb2   : > { %3588 = vmatpush.msra.mxu0 %v522_v56  ;;  %3607 = vmatpush.msra.mxu1 %v539_v57  ;;  %v637_v56 = vld [vmem:[%s6762_s26 + $0xbc8] sm:$0xff]  ;;  %v587_v57 = vld [vmem:[%s6762_s26 + $0xa38] sm:$0xff] }
  0xb3   : > { %3628 = vmatpush.msra.mxu2 %v554_v58  ;;  %3647 = vmatpush.msra.mxu3 %v571_v59  ;;  %v604_v58 = vld [vmem:[%s6762_s26 + $0xac0] sm:$0xff]  ;;  %v619_v59 = vld [vmem:[%s6762_s26 + $0xb38] sm:$0xff] }
  0xb4   : > { %3589 = vmatpush.msra.mxu0 %v521_v60  ;;  %3608 = vmatpush.msra.mxu1 %v538_v61  ;;  %v636_v60 = vld [vmem:[%s6762_s26 + $0xbc0] sm:$0xff]  ;;  %v586_v61 = vld [vmem:[%s6762_s26 + $0xa30] sm:$0xff] }
  0xb5   : > { %3629 = vmatpush.msra.mxu2 %v553_v62  ;;  %3648 = vmatpush.msra.mxu3 %v570_v63  ;;  %v603_v62 = vld [vmem:[%s6762_s26 + $0xab8] sm:$0xff]  ;;  %v618_v63 = vld [vmem:[%s6762_s26 + $0xb30] sm:$0xff] }
  0xb6   : > { %3590 = vmatpush.msra.mxu0 %v520_v0  ;;  %3609 = vmatpush.msra.mxu1 %v537_v1  ;;  %v635_v0 = vld [vmem:[%s6762_s26 + $0xbb8] sm:$0xff]  ;;  %v585_v1 = vld [vmem:[%s6762_s26 + $0xa28] sm:$0xff] }
  0xb7   : > { %3630 = vmatpush.msra.mxu2 %v552_v2  ;;  %3649 = vmatpush.msra.mxu3 %v569_v3  ;;  %v602_v2 = vld [vmem:[%s6762_s26 + $0xab0] sm:$0xff]  ;;  %v617_v3 = vld [vmem:[%s6762_s26 + $0xb28] sm:$0xff] }
  0xb8   : > { %3591 = vmatpush.msra.mxu0 %v519_v4  ;;  %3610 = vmatpush.msra.mxu1 %v536_v5  ;;  %v634_v4 = vld [vmem:[%s6762_s26 + $0xbb0] sm:$0xff]  ;;  %v584_v5 = vld [vmem:[%s6762_s26 + $0xa20] sm:$0xff] }
  0xb9   : > { %3631 = vmatpush.msra.mxu2 %v551_v6  ;;  %3650 = vmatpush.msra.mxu3 %v568_v7  ;;  %v601_v6 = vld [vmem:[%s6762_s26 + $0xaa8] sm:$0xff]  ;;  %v616_v7 = vld [vmem:[%s6762_s26 + $0xb20] sm:$0xff] }
  0xba   : > { %3592 = vmatpush.msra.mxu0 %v518_v8  ;;  %3611 = vmatpush.msra.mxu1 %v535_v9  ;;  %v633_v8 = vld [vmem:[%s6762_s26 + $0xba8] sm:$0xff]  ;;  %v583_v9 = vld [vmem:[%s6762_s26 + $0xa18] sm:$0xff] }
  0xbb   : > { %3632 = vmatpush.msra.mxu2 %v550_v10  ;;  %3651 = vmatpush.msra.mxu3 %v567_v11  ;;  %v600_v10 = vld [vmem:[%s6762_s26 + $0xaa0] sm:$0xff]  ;;  %v615_v11 = vld [vmem:[%s6762_s26 + $0xb18] sm:$0xff] }
  0xbc   : > { %3593 = vmatpush.msra.mxu0 %v517_v12  ;;  %3612 = vmatpush.msra.mxu1 %v534_v13  ;;  %v632_v12 = vld [vmem:[%s6762_s26 + $0xba0] sm:$0xff]  ;;  %v582_v13 = vld [vmem:[%s6762_s26 + $0xa10] sm:$0xff] }
  0xbd   : > { %3633 = vmatpush.msra.mxu2 %v549_v15  ;;  %3652 = vmatpush.msra.mxu3 %v566_v16  ;;  %v614_v15 = vld [vmem:[%s6762_s26 + $0xb10] sm:$0xff]  ;;  %v631_v16 = vld [vmem:[%s6762_s26 + $0xb98] sm:$0xff] }
  0xbe   : > { %3594 = vmatpush.msra.mxu0 %v516_v17  ;;  %3613 = vmatpush.msra.mxu1 %v533_v18  ;;  %v581_v17 = vld [vmem:[%s6762_s26 + $0xa08] sm:$0xff]  ;;  %v598_v18 = vld [vmem:[%s6762_s26 + $0xa90] sm:$0xff] }
  0xbf   : > { %3634 = vmatpush.msra.mxu2 %v548_v19  ;;  %3653 = vmatpush.msra.mxu3 %v565_v20  ;;  %v225_v19 = vld [vmem:[%s6757_s22 + $0x30] sm:$0xff]  ;;  %v613_v20 = vld [vmem:[%s6762_s26 + $0xb08] sm:$0xff] }
  0xc0   : > { %3595 = vmatmul.f32.vlgmr.msra.gmra.mxu0 %v2916_v21  ;;  %3635 = vmatmul.f32.vlgmr.msra.gmra.mxu2 %v2918_v22  ;;  %v630_v21 = vld [vmem:[%s6762_s26 + $0xb90] sm:$0xff]  ;;  %2924 = vst [vmem:[#allocation1] ss:$4 sm:$0xff] %v225_v19  ;;  %v580_v22 = vld [vmem:[%s6762_s26 + $0xa00] sm:$0xff]  ;;  %v663_v19 = vld [vmem:[%s6762_s26 + $0xc98] sm:$0xff] }
  0xc1   : > { %3659 = vmatpush.msrb.mxu0 %v595_v23  ;;  %3699 = vmatpush.msrb.mxu2 %v627_v24  ;;  %v597_v23 = vld [vmem:[%s6762_s26 + $0xa88] sm:$0xff]  ;;  %v612_v24 = vld [vmem:[%s6762_s26 + $0xb00] sm:$0xff] }
  0xc2   : > { %3614 = vmatpush.msra.mxu1 %v532_v25  ;;  %3654 = vmatpush.msra.mxu3 %v564_v26  ;;  %v629_v25 = vld [vmem:[%s6762_s26 + $0xb88] sm:$0xff]  ;;  %v2920_v26 = vld.sshfl [vmem:[#allocation1 + $0x20] sm:$0xff pattern:$0x73625140] }
  0xc3   : > { %3615 = vmatmul.f32.vlgmr.msra.gmra.mxu1 %v2917_v27  ;;  %3655 = vmatmul.f32.vlgmr.msra.gmra.mxu3 %v2919_v28  ;;  %v2922_v27 = vld.sshfl [vmem:[#allocation1 + $0x30] sm:$0xff pattern:$0x73625140]  ;;  %v659_v28 = vld [vmem:[%s6762_s26 + $0xc78] sm:$0xff] }
  0xc4   : > { %3660 = vmatpush.msrb.mxu0 %v594_v29  ;;  %3679 = vmatpush.msrb.mxu1 %v611_v30  ;;  %v691_v29 = vld [vmem:[%s6762_s26 + $0xd78] sm:$0xff]  ;;  %v596_v30 = vld [vmem:[%s6762_s26 + $0xa80] sm:$0xff] }
  0xc5   : > { %3700 = vmatpush.msrb.mxu2 %v626_v31  ;;  %3719 = vmatpush.msrb.mxu3 %v643_v32  ;;  %v628_v31 = vld [vmem:[%s6762_s26 + $0xb80] sm:$0xff]  ;;  %v2921_v32 = vld.sshfl [vmem:[#allocation1 + $0x28] sm:$0xff pattern:$0x73625140] }
  0xc6   : > { %3661 = vmatpush.msrb.mxu0 %v593_v33  ;;  %3680 = vmatpush.msrb.mxu1 %v610_v34  ;;  %v2923_v33 = vld.sshfl [vmem:[#allocation1 + $0x38] sm:$0xff pattern:$0x73625140]  ;;  %v658_v34 = vld [vmem:[%s6762_s26 + $0xc70] sm:$0xff] }
  0xc7   : > { %3701 = vmatpush.msrb.mxu2 %v625_v35  ;;  %3720 = vmatpush.msrb.mxu3 %v642_v36  ;;  %v675_v35 = vld [vmem:[%s6762_s26 + $0xcf8] sm:$0xff]  ;;  %v690_v36 = vld [vmem:[%s6762_s26 + $0xd70] sm:$0xff] }
  0xc8   : > { %3662 = vmatpush.msrb.mxu0 %v592_v37  ;;  %3681 = vmatpush.msrb.mxu1 %v609_v38  ;;  %v707_v37 = vld [vmem:[%s6762_s26 + $0xdf8] sm:$0xff]  ;;  %v657_v38 = vld [vmem:[%s6762_s26 + $0xc68] sm:$0xff] }
  0xc9   : > { %3702 = vmatpush.msrb.mxu2 %v624_v39  ;;  %3721 = vmatpush.msrb.mxu3 %v641_v40  ;;  %v674_v39 = vld [vmem:[%s6762_s26 + $0xcf0] sm:$0xff]  ;;  %v689_v40 = vld [vmem:[%s6762_s26 + $0xd68] sm:$0xff] }
  0xca   : > { %3663 = vmatpush.msrb.mxu0 %v591_v41  ;;  %3682 = vmatpush.msrb.mxu1 %v608_v42  ;;  %v706_v41 = vld [vmem:[%s6762_s26 + $0xdf0] sm:$0xff]  ;;  %v656_v42 = vld [vmem:[%s6762_s26 + $0xc60] sm:$0xff] }
  0xcb   : > { %3703 = vmatpush.msrb.mxu2 %v623_v43  ;;  %3722 = vmatpush.msrb.mxu3 %v640_v44  ;;  %v673_v43 = vld [vmem:[%s6762_s26 + $0xce8] sm:$0xff]  ;;  %v688_v44 = vld [vmem:[%s6762_s26 + $0xd60] sm:$0xff] }
  0xcc   : > { %3664 = vmatpush.msrb.mxu0 %v590_v45  ;;  %3683 = vmatpush.msrb.mxu1 %v607_v46  ;;  %v705_v45 = vld [vmem:[%s6762_s26 + $0xde8] sm:$0xff]  ;;  %v655_v46 = vld [vmem:[%s6762_s26 + $0xc58] sm:$0xff] }
  0xcd   : > { %3704 = vmatpush.msrb.mxu2 %v622_v47  ;;  %3723 = vmatpush.msrb.mxu3 %v639_v48  ;;  %v672_v47 = vld [vmem:[%s6762_s26 + $0xce0] sm:$0xff]  ;;  %v687_v48 = vld [vmem:[%s6762_s26 + $0xd58] sm:$0xff] }
  0xce   : > { %3665 = vmatpush.msrb.mxu0 %v589_v49  ;;  %3684 = vmatpush.msrb.mxu1 %v606_v50  ;;  %v704_v49 = vld [vmem:[%s6762_s26 + $0xde0] sm:$0xff]  ;;  %v654_v50 = vld [vmem:[%s6762_s26 + $0xc50] sm:$0xff] }
  0xcf   : > { %3705 = vmatpush.msrb.mxu2 %v621_v51  ;;  %3724 = vmatpush.msrb.mxu3 %v638_v52  ;;  %v671_v51 = vld [vmem:[%s6762_s26 + $0xcd8] sm:$0xff]  ;;  %v686_v52 = vld [vmem:[%s6762_s26 + $0xd50] sm:$0xff] }
  0xd0   : > { %3666 = vmatpush.msrb.mxu0 %v588_v53  ;;  %3685 = vmatpush.msrb.mxu1 %v605_v54  ;;  %v703_v53 = vld [vmem:[%s6762_s26 + $0xdd8] sm:$0xff]  ;;  %v653_v54 = vld [vmem:[%s6762_s26 + $0xc48] sm:$0xff] }
  0xd1   : > { %3706 = vmatpush.msrb.mxu2 %v620_v55  ;;  %3725 = vmatpush.msrb.mxu3 %v637_v56  ;;  %v670_v55 = vld [vmem:[%s6762_s26 + $0xcd0] sm:$0xff]  ;;  %v685_v56 = vld [vmem:[%s6762_s26 + $0xd48] sm:$0xff] }
  0xd2   : > { %3667 = vmatpush.msrb.mxu0 %v587_v57  ;;  %3686 = vmatpush.msrb.mxu1 %v604_v58  ;;  %v702_v57 = vld [vmem:[%s6762_s26 + $0xdd0] sm:$0xff]  ;;  %v652_v58 = vld [vmem:[%s6762_s26 + $0xc40] sm:$0xff] }
  0xd3   : > { %3707 = vmatpush.msrb.mxu2 %v619_v59  ;;  %3726 = vmatpush.msrb.mxu3 %v636_v60  ;;  %v669_v59 = vld [vmem:[%s6762_s26 + $0xcc8] sm:$0xff]  ;;  %v684_v60 = vld [vmem:[%s6762_s26 + $0xd40] sm:$0xff] }
  0xd4   : > { %3668 = vmatpush.msrb.mxu0 %v586_v61  ;;  %3687 = vmatpush.msrb.mxu1 %v603_v62  ;;  %v701_v61 = vld [vmem:[%s6762_s26 + $0xdc8] sm:$0xff]  ;;  %v651_v62 = vld [vmem:[%s6762_s26 + $0xc38] sm:$0xff] }
  0xd5   : > { %3708 = vmatpush.msrb.mxu2 %v618_v63  ;;  %3727 = vmatpush.msrb.mxu3 %v635_v0  ;;  %v668_v63 = vld [vmem:[%s6762_s26 + $0xcc0] sm:$0xff]  ;;  %v683_v0 = vld [vmem:[%s6762_s26 + $0xd38] sm:$0xff] }
  0xd6   : > { %3669 = vmatpush.msrb.mxu0 %v585_v1  ;;  %3688 = vmatpush.msrb.mxu1 %v602_v2  ;;  %v700_v1 = vld [vmem:[%s6762_s26 + $0xdc0] sm:$0xff]  ;;  %v650_v2 = vld [vmem:[%s6762_s26 + $0xc30] sm:$0xff] }
  0xd7   : > { %3709 = vmatpush.msrb.mxu2 %v617_v3  ;;  %3728 = vmatpush.msrb.mxu3 %v634_v4  ;;  %v667_v3 = vld [vmem:[%s6762_s26 + $0xcb8] sm:$0xff]  ;;  %v682_v4 = vld [vmem:[%s6762_s26 + $0xd30] sm:$0xff] }
  0xd8   : > { %3670 = vmatpush.msrb.mxu0 %v584_v5  ;;  %3689 = vmatpush.msrb.mxu1 %v601_v6  ;;  %v699_v5 = vld [vmem:[%s6762_s26 + $0xdb8] sm:$0xff]  ;;  %v649_v6 = vld [vmem:[%s6762_s26 + $0xc28] sm:$0xff] }
  0xd9   : > { %3710 = vmatpush.msrb.mxu2 %v616_v7  ;;  %3729 = vmatpush.msrb.mxu3 %v633_v8  ;;  %v666_v7 = vld [vmem:[%s6762_s26 + $0xcb0] sm:$0xff]  ;;  %v681_v8 = vld [vmem:[%s6762_s26 + $0xd28] sm:$0xff] }
  0xda   : > { %3671 = vmatpush.msrb.mxu0 %v583_v9  ;;  %3690 = vmatpush.msrb.mxu1 %v600_v10  ;;  %v698_v9 = vld [vmem:[%s6762_s26 + $0xdb0] sm:$0xff]  ;;  %v648_v10 = vld [vmem:[%s6762_s26 + $0xc20] sm:$0xff] }
  0xdb   : > { %3711 = vmatpush.msrb.mxu2 %v615_v11  ;;  %3730 = vmatpush.msrb.mxu3 %v632_v12  ;;  %v665_v11 = vld [vmem:[%s6762_s26 + $0xca8] sm:$0xff]  ;;  %v680_v12 = vld [vmem:[%s6762_s26 + $0xd20] sm:$0xff] }
  0xdc   : > { %3672 = vmatpush.msrb.mxu0 %v582_v13  ;;  %3691 = vmatpush.msrb.mxu1 %v599_v14  ;;  %v697_v13 = vld [vmem:[%s6762_s26 + $0xda8] sm:$0xff]  ;;  %v647_v14 = vld [vmem:[%s6762_s26 + $0xc18] sm:$0xff] }
  0xdd   : > { %3712 = vmatpush.msrb.mxu2 %v614_v15  ;;  %3731 = vmatpush.msrb.mxu3 %v631_v16  ;;  %v664_v15 = vld [vmem:[%s6762_s26 + $0xca0] sm:$0xff]  ;;  %v679_v16 = vld [vmem:[%s6762_s26 + $0xd18] sm:$0xff] }
  0xde   : > { %3673 = vmatpush.msrb.mxu0 %v581_v17  ;;  %3692 = vmatpush.msrb.mxu1 %v598_v18  ;;  %v696_v17 = vld [vmem:[%s6762_s26 + $0xda0] sm:$0xff]  ;;  %v646_v18 = vld [vmem:[%s6762_s26 + $0xc10] sm:$0xff] }
  0xdf   : > { %3713 = vmatpush.msrb.mxu2 %v613_v20  ;;  %3732 = vmatpush.msrb.mxu3 %v630_v21  ;;  %v678_v20 = vld [vmem:[%s6762_s26 + $0xd10] sm:$0xff]  ;;  %v695_v21 = vld [vmem:[%s6762_s26 + $0xd98] sm:$0xff] }
  0xe0   : > { %3674 = vmatpush.msrb.mxu0 %v580_v22  ;;  %3693 = vmatpush.msrb.mxu1 %v597_v23  ;;  %v645_v22 = vld [vmem:[%s6762_s26 + $0xc08] sm:$0xff]  ;;  %v662_v23 = vld [vmem:[%s6762_s26 + $0xc90] sm:$0xff] }
  0xe1   : > { %3714 = vmatpush.msrb.mxu2 %v612_v24  ;;  %3733 = vmatpush.msrb.mxu3 %v629_v25  ;;  %v226_v24 = vld [vmem:[%s6757_s22 + $0x38] sm:$0xff]  ;;  %v677_v25 = vld [vmem:[%s6762_s26 + $0xd08] sm:$0xff] }
  0xe2   : > { %3675 = vmatmul.f32.vlgmr.msrb.gmra.mxu0 %v2920_v26  ;;  %3715 = vmatmul.f32.vlgmr.msrb.gmra.mxu2 %v2922_v27  ;;  %v694_v26 = vld [vmem:[%s6762_s26 + $0xd90] sm:$0xff]  ;;  %2925 = vst [vmem:[#allocation1 + $0x20] ss:$4 sm:$0xff] %v226_v24  ;;  %v644_v27 = vld [vmem:[%s6762_s26 + $0xc00] sm:$0xff]  ;;  %v727_v24 = vld [vmem:[%s6762_s26 + $0xe98] sm:$0xff] }
  0xe3   : > { %3739 = vmatpush.msra.mxu0 %v659_v28  ;;  %3779 = vmatpush.msra.mxu2 %v691_v29  ;;  %v661_v28 = vld [vmem:[%s6762_s26 + $0xc88] sm:$0xff]  ;;  %v676_v29 = vld [vmem:[%s6762_s26 + $0xd00] sm:$0xff] }
  0xe4   : > { %3694 = vmatpush.msrb.mxu1 %v596_v30  ;;  %3734 = vmatpush.msrb.mxu3 %v628_v31  ;;  %v693_v30 = vld [vmem:[%s6762_s26 + $0xd88] sm:$0xff]  ;;  %v2926_v31 = vld.sshfl [vmem:[#allocation1] sm:$0xff pattern:$0x73625140] }
  0xe5   : > { %3695 = vmatmul.f32.vlgmr.msrb.gmra.mxu1 %v2921_v32  ;;  %3735 = vmatmul.f32.vlgmr.msrb.gmra.mxu3 %v2923_v33  ;;  %v2928_v32 = vld.sshfl [vmem:[#allocation1 + $0x10] sm:$0xff pattern:$0x73625140]  ;;  %v723_v33 = vld [vmem:[%s6762_s26 + $0xe78] sm:$0xff] }
  0xe6   : > { %3740 = vmatpush.msra.mxu0 %v658_v34  ;;  %3759 = vmatpush.msra.mxu1 %v675_v35  ;;  %v755_v34 = vld [vmem:[%s6762_s26 + $0xf78] sm:$0xff]  ;;  %v660_v35 = vld [vmem:[%s6762_s26 + $0xc80] sm:$0xff] }
  0xe7   : > { %3780 = vmatpush.msra.mxu2 %v690_v36  ;;  %3799 = vmatpush.msra.mxu3 %v707_v37  ;;  %v692_v36 = vld [vmem:[%s6762_s26 + $0xd80] sm:$0xff]  ;;  %v2927_v37 = vld.sshfl [vmem:[#allocation1 + $0x8] sm:$0xff pattern:$0x73625140] }
  0xe8   : > { %3741 = vmatpush.msra.mxu0 %v657_v38  ;;  %3760 = vmatpush.msra.mxu1 %v674_v39  ;;  %v2929_v38 = vld.sshfl [vmem:[#allocation1 + $0x18] sm:$0xff pattern:$0x73625140]  ;;  %v722_v39 = vld [vmem:[%s6762_s26 + $0xe70] sm:$0xff] }
  0xe9   : > { %3781 = vmatpush.msra.mxu2 %v689_v40  ;;  %3800 = vmatpush.msra.mxu3 %v706_v41  ;;  %v739_v40 = vld [vmem:[%s6762_s26 + $0xef8] sm:$0xff]  ;;  %v754_v41 = vld [vmem:[%s6762_s26 + $0xf70] sm:$0xff] }
  0xea   : > { %3742 = vmatpush.msra.mxu0 %v656_v42  ;;  %3761 = vmatpush.msra.mxu1 %v673_v43  ;;  %v771_v42 = vld [vmem:[%s6762_s26 + $0xff8] sm:$0xff]  ;;  %v721_v43 = vld [vmem:[%s6762_s26 + $0xe68] sm:$0xff] }
  0xeb   : > { %3782 = vmatpush.msra.mxu2 %v688_v44  ;;  %3801 = vmatpush.msra.mxu3 %v705_v45  ;;  %v738_v44 = vld [vmem:[%s6762_s26 + $0xef0] sm:$0xff]  ;;  %v753_v45 = vld [vmem:[%s6762_s26 + $0xf68] sm:$0xff] }
  0xec   : > { %3743 = vmatpush.msra.mxu0 %v655_v46  ;;  %3762 = vmatpush.msra.mxu1 %v672_v47  ;;  %v770_v46 = vld [vmem:[%s6762_s26 + $0xff0] sm:$0xff]  ;;  %v720_v47 = vld [vmem:[%s6762_s26 + $0xe60] sm:$0xff] }
  0xed   : > { %3783 = vmatpush.msra.mxu2 %v687_v48  ;;  %3802 = vmatpush.msra.mxu3 %v704_v49  ;;  %v737_v48 = vld [vmem:[%s6762_s26 + $0xee8] sm:$0xff]  ;;  %v752_v49 = vld [vmem:[%s6762_s26 + $0xf60] sm:$0xff] }
  0xee   : > { %3744 = vmatpush.msra.mxu0 %v654_v50  ;;  %3763 = vmatpush.msra.mxu1 %v671_v51  ;;  %v769_v50 = vld [vmem:[%s6762_s26 + $0xfe8] sm:$0xff]  ;;  %v719_v51 = vld [vmem:[%s6762_s26 + $0xe58] sm:$0xff] }
  0xef   : > { %3784 = vmatpush.msra.mxu2 %v686_v52  ;;  %3803 = vmatpush.msra.mxu3 %v703_v53  ;;  %v736_v52 = vld [vmem:[%s6762_s26 + $0xee0] sm:$0xff]  ;;  %v751_v53 = vld [vmem:[%s6762_s26 + $0xf58] sm:$0xff] }
  0xf0   : > { %3745 = vmatpush.msra.mxu0 %v653_v54  ;;  %3764 = vmatpush.msra.mxu1 %v670_v55  ;;  %v768_v54 = vld [vmem:[%s6762_s26 + $0xfe0] sm:$0xff]  ;;  %v718_v55 = vld [vmem:[%s6762_s26 + $0xe50] sm:$0xff] }
  0xf1   : > { %3785 = vmatpush.msra.mxu2 %v685_v56  ;;  %3804 = vmatpush.msra.mxu3 %v702_v57  ;;  %v735_v56 = vld [vmem:[%s6762_s26 + $0xed8] sm:$0xff]  ;;  %v750_v57 = vld [vmem:[%s6762_s26 + $0xf50] sm:$0xff] }
  0xf2   : > { %3746 = vmatpush.msra.mxu0 %v652_v58  ;;  %3765 = vmatpush.msra.mxu1 %v669_v59  ;;  %v767_v58 = vld [vmem:[%s6762_s26 + $0xfd8] sm:$0xff]  ;;  %v717_v59 = vld [vmem:[%s6762_s26 + $0xe48] sm:$0xff] }
  0xf3   : > { %3786 = vmatpush.msra.mxu2 %v684_v60  ;;  %3805 = vmatpush.msra.mxu3 %v701_v61  ;;  %v734_v60 = vld [vmem:[%s6762_s26 + $0xed0] sm:$0xff]  ;;  %v749_v61 = vld [vmem:[%s6762_s26 + $0xf48] sm:$0xff] }
  0xf4   : > { %3747 = vmatpush.msra.mxu0 %v651_v62  ;;  %3766 = vmatpush.msra.mxu1 %v668_v63  ;;  %v766_v62 = vld [vmem:[%s6762_s26 + $0xfd0] sm:$0xff]  ;;  %v716_v63 = vld [vmem:[%s6762_s26 + $0xe40] sm:$0xff] }
  0xf5   : > { %3787 = vmatpush.msra.mxu2 %v683_v0  ;;  %3806 = vmatpush.msra.mxu3 %v700_v1  ;;  %v733_v0 = vld [vmem:[%s6762_s26 + $0xec8] sm:$0xff]  ;;  %v748_v1 = vld [vmem:[%s6762_s26 + $0xf40] sm:$0xff] }
  0xf6   : > { %3748 = vmatpush.msra.mxu0 %v650_v2  ;;  %3767 = vmatpush.msra.mxu1 %v667_v3  ;;  %v765_v2 = vld [vmem:[%s6762_s26 + $0xfc8] sm:$0xff]  ;;  %v715_v3 = vld [vmem:[%s6762_s26 + $0xe38] sm:$0xff] }
  0xf7   : > { %3788 = vmatpush.msra.mxu2 %v682_v4  ;;  %3807 = vmatpush.msra.mxu3 %v699_v5  ;;  %v732_v4 = vld [vmem:[%s6762_s26 + $0xec0] sm:$0xff]  ;;  %v747_v5 = vld [vmem:[%s6762_s26 + $0xf38] sm:$0xff] }
  0xf8   : > { %3749 = vmatpush.msra.mxu0 %v649_v6  ;;  %3768 = vmatpush.msra.mxu1 %v666_v7  ;;  %v764_v6 = vld [vmem:[%s6762_s26 + $0xfc0] sm:$0xff]  ;;  %v714_v7 = vld [vmem:[%s6762_s26 + $0xe30] sm:$0xff] }
  0xf9   : > { %3789 = vmatpush.msra.mxu2 %v681_v8  ;;  %3808 = vmatpush.msra.mxu3 %v698_v9  ;;  %v731_v8 = vld [vmem:[%s6762_s26 + $0xeb8] sm:$0xff]  ;;  %v746_v9 = vld [vmem:[%s6762_s26 + $0xf30] sm:$0xff] }
  0xfa   : > { %3750 = vmatpush.msra.mxu0 %v648_v10  ;;  %3769 = vmatpush.msra.mxu1 %v665_v11  ;;  %v763_v10 = vld [vmem:[%s6762_s26 + $0xfb8] sm:$0xff]  ;;  %v713_v11 = vld [vmem:[%s6762_s26 + $0xe28] sm:$0xff] }
  0xfb   : > { %3790 = vmatpush.msra.mxu2 %v680_v12  ;;  %3809 = vmatpush.msra.mxu3 %v697_v13  ;;  %v730_v12 = vld [vmem:[%s6762_s26 + $0xeb0] sm:$0xff]  ;;  %v745_v13 = vld [vmem:[%s6762_s26 + $0xf28] sm:$0xff] }
  0xfc   : > { %3751 = vmatpush.msra.mxu0 %v647_v14  ;;  %3770 = vmatpush.msra.mxu1 %v664_v15  ;;  %v762_v14 = vld [vmem:[%s6762_s26 + $0xfb0] sm:$0xff]  ;;  %v712_v15 = vld [vmem:[%s6762_s26 + $0xe20] sm:$0xff] }
  0xfd   : > { %3791 = vmatpush.msra.mxu2 %v679_v16  ;;  %3810 = vmatpush.msra.mxu3 %v696_v17  ;;  %v729_v16 = vld [vmem:[%s6762_s26 + $0xea8] sm:$0xff]  ;;  %v744_v17 = vld [vmem:[%s6762_s26 + $0xf20] sm:$0xff] }
  0xfe   : > { %3752 = vmatpush.msra.mxu0 %v646_v18  ;;  %3771 = vmatpush.msra.mxu1 %v663_v19  ;;  %v761_v18 = vld [vmem:[%s6762_s26 + $0xfa8] sm:$0xff]  ;;  %v711_v19 = vld [vmem:[%s6762_s26 + $0xe18] sm:$0xff] }
  0xff   : > { %3792 = vmatpush.msra.mxu2 %v678_v20  ;;  %3811 = vmatpush.msra.mxu3 %v695_v21  ;;  %v728_v20 = vld [vmem:[%s6762_s26 + $0xea0] sm:$0xff]  ;;  %v743_v21 = vld [vmem:[%s6762_s26 + $0xf18] sm:$0xff] }
 0x100   : > { %3753 = vmatpush.msra.mxu0 %v645_v22  ;;  %3772 = vmatpush.msra.mxu1 %v662_v23  ;;  %v760_v22 = vld [vmem:[%s6762_s26 + $0xfa0] sm:$0xff]  ;;  %v710_v23 = vld [vmem:[%s6762_s26 + $0xe10] sm:$0xff] }
 0x101   : > { %3793 = vmatpush.msra.mxu2 %v677_v25  ;;  %3812 = vmatpush.msra.mxu3 %v694_v26  ;;  %v742_v25 = vld [vmem:[%s6762_s26 + $0xf10] sm:$0xff]  ;;  %v759_v26 = vld [vmem:[%s6762_s26 + $0xf98] sm:$0xff] }
 0x102   : > { %3754 = vmatpush.msra.mxu0 %v644_v27  ;;  %3773 = vmatpush.msra.mxu1 %v661_v28  ;;  %v709_v27 = vld [vmem:[%s6762_s26 + $0xe08] sm:$0xff]  ;;  %v726_v28 = vld [vmem:[%s6762_s26 + $0xe90] sm:$0xff] }
 0x103   : > { %3794 = vmatpush.msra.mxu2 %v676_v29  ;;  %3813 = vmatpush.msra.mxu3 %v693_v30  ;;  %v227_v29 = vld [vmem:[%s6757_s22 + $0x40] sm:$0xff]  ;;  %v741_v30 = vld [vmem:[%s6762_s26 + $0xf08] sm:$0xff] }
 0x104   : > { %3755 = vmatmul.f32.vlgmr.msra.gmra.mxu0 %v2926_v31  ;;  %3795 = vmatmul.f32.vlgmr.msra.gmra.mxu2 %v2928_v32  ;;  %v758_v31 = vld [vmem:[%s6762_s26 + $0xf90] sm:$0xff]  ;;  %2934 = vst [vmem:[#allocation1] ss:$4 sm:$0xff] %v227_v29  ;;  %v708_v32 = vld [vmem:[%s6762_s26 + $0xe00] sm:$0xff]  ;;  %v791_v29 = vld [vmem:[%s6762_s26 + $0x1098] sm:$0xff] }
 0x105   : > { %3819 = vmatpush.msrb.mxu0 %v723_v33  ;;  %3859 = vmatpush.msrb.mxu2 %v755_v34  ;;  %v725_v33 = vld [vmem:[%s6762_s26 + $0xe88] sm:$0xff]  ;;  %v740_v34 = vld [vmem:[%s6762_s26 + $0xf00] sm:$0xff] }
 0x106   : > { %3774 = vmatpush.msra.mxu1 %v660_v35  ;;  %3814 = vmatpush.msra.mxu3 %v692_v36  ;;  %v757_v35 = vld [vmem:[%s6762_s26 + $0xf88] sm:$0xff]  ;;  %v2930_v36 = vld.sshfl [vmem:[#allocation1 + $0x20] sm:$0xff pattern:$0x73625140] }
 0x107   : > { %3775 = vmatmul.f32.vlgmr.msra.gmra.mxu1 %v2927_v37  ;;  %3815 = vmatmul.f32.vlgmr.msra.gmra.mxu3 %v2929_v38  ;;  %v2932_v37 = vld.sshfl [vmem:[#allocation1 + $0x30] sm:$0xff pattern:$0x73625140]  ;;  %v787_v38 = vld [vmem:[%s6762_s26 + $0x1078] sm:$0xff] }
 0x108   : > { %3820 = vmatpush.msrb.mxu0 %v722_v39  ;;  %3839 = vmatpush.msrb.mxu1 %v739_v40  ;;  %v819_v39 = vld [vmem:[%s6762_s26 + $0x1178] sm:$0xff]  ;;  %v724_v40 = vld [vmem:[%s6762_s26 + $0xe80] sm:$0xff] }
 0x109   : > { %3860 = vmatpush.msrb.mxu2 %v754_v41  ;;  %3879 = vmatpush.msrb.mxu3 %v771_v42  ;;  %v756_v41 = vld [vmem:[%s6762_s26 + $0xf80] sm:$0xff]  ;;  %v2931_v42 = vld.sshfl [vmem:[#allocation1 + $0x28] sm:$0xff pattern:$0x73625140] }
 0x10a   : > { %3821 = vmatpush.msrb.mxu0 %v721_v43  ;;  %3840 = vmatpush.msrb.mxu1 %v738_v44  ;;  %v2933_v43 = vld.sshfl [vmem:[#allocation1 + $0x38] sm:$0xff pattern:$0x73625140]  ;;  %v786_v44 = vld [vmem:[%s6762_s26 + $0x1070] sm:$0xff] }
 0x10b   : > { %3861 = vmatpush.msrb.mxu2 %v753_v45  ;;  %3880 = vmatpush.msrb.mxu3 %v770_v46  ;;  %v803_v45 = vld [vmem:[%s6762_s26 + $0x10f8] sm:$0xff]  ;;  %v818_v46 = vld [vmem:[%s6762_s26 + $0x1170] sm:$0xff] }
 0x10c   : > { %3822 = vmatpush.msrb.mxu0 %v720_v47  ;;  %3841 = vmatpush.msrb.mxu1 %v737_v48  ;;  %v835_v47 = vld [vmem:[%s6762_s26 + $0x11f8] sm:$0xff]  ;;  %v785_v48 = vld [vmem:[%s6762_s26 + $0x1068] sm:$0xff] }
 0x10d   : > { %3862 = vmatpush.msrb.mxu2 %v752_v49  ;;  %3881 = vmatpush.msrb.mxu3 %v769_v50  ;;  %v802_v49 = vld [vmem:[%s6762_s26 + $0x10f0] sm:$0xff]  ;;  %v817_v50 = vld [vmem:[%s6762_s26 + $0x1168] sm:$0xff] }
 0x10e   : > { %3823 = vmatpush.msrb.mxu0 %v719_v51  ;;  %3842 = vmatpush.msrb.mxu1 %v736_v52  ;;  %v834_v51 = vld [vmem:[%s6762_s26 + $0x11f0] sm:$0xff]  ;;  %v784_v52 = vld [vmem:[%s6762_s26 + $0x1060] sm:$0xff] }
 0x10f   : > { %3863 = vmatpush.msrb.mxu2 %v751_v53  ;;  %3882 = vmatpush.msrb.mxu3 %v768_v54  ;;  %v801_v53 = vld [vmem:[%s6762_s26 + $0x10e8] sm:$0xff]  ;;  %v816_v54 = vld [vmem:[%s6762_s26 + $0x1160] sm:$0xff] }
 0x110   : > { %3824 = vmatpush.msrb.mxu0 %v718_v55  ;;  %3843 = vmatpush.msrb.mxu1 %v735_v56  ;;  %v833_v55 = vld [vmem:[%s6762_s26 + $0x11e8] sm:$0xff]  ;;  %v783_v56 = vld [vmem:[%s6762_s26 + $0x1058] sm:$0xff] }
 0x111   : > { %3864 = vmatpush.msrb.mxu2 %v750_v57  ;;  %3883 = vmatpush.msrb.mxu3 %v767_v58  ;;  %v800_v57 = vld [vmem:[%s6762_s26 + $0x10e0] sm:$0xff]  ;;  %v815_v58 = vld [vmem:[%s6762_s26 + $0x1158] sm:$0xff] }
 0x112   : > { %3825 = vmatpush.msrb.mxu0 %v717_v59  ;;  %3844 = vmatpush.msrb.mxu1 %v734_v60  ;;  %v832_v59 = vld [vmem:[%s6762_s26 + $0x11e0] sm:$0xff]  ;;  %v782_v60 = vld [vmem:[%s6762_s26 + $0x1050] sm:$0xff] }
 0x113   : > { %3865 = vmatpush.msrb.mxu2 %v749_v61  ;;  %3884 = vmatpush.msrb.mxu3 %v766_v62  ;;  %v799_v61 = vld [vmem:[%s6762_s26 + $0x10d8] sm:$0xff]  ;;  %v814_v62 = vld [vmem:[%s6762_s26 + $0x1150] sm:$0xff] }
 0x114   : > { %3826 = vmatpush.msrb.mxu0 %v716_v63  ;;  %3845 = vmatpush.msrb.mxu1 %v733_v0  ;;  %v831_v63 = vld [vmem:[%s6762_s26 + $0x11d8] sm:$0xff]  ;;  %v781_v0 = vld [vmem:[%s6762_s26 + $0x1048] sm:$0xff] }
 0x115   : > { %3866 = vmatpush.msrb.mxu2 %v748_v1  ;;  %3885 = vmatpush.msrb.mxu3 %v765_v2  ;;  %v798_v1 = vld [vmem:[%s6762_s26 + $0x10d0] sm:$0xff]  ;;  %v813_v2 = vld [vmem:[%s6762_s26 + $0x1148] sm:$0xff] }
 0x116   : > { %3827 = vmatpush.msrb.mxu0 %v715_v3  ;;  %3846 = vmatpush.msrb.mxu1 %v732_v4  ;;  %v830_v3 = vld [vmem:[%s6762_s26 + $0x11d0] sm:$0xff]  ;;  %v780_v4 = vld [vmem:[%s6762_s26 + $0x1040] sm:$0xff] }
 0x117   : > { %3867 = vmatpush.msrb.mxu2 %v747_v5  ;;  %3886 = vmatpush.msrb.mxu3 %v764_v6  ;;  %v797_v5 = vld [vmem:[%s6762_s26 + $0x10c8] sm:$0xff]  ;;  %v812_v6 = vld [vmem:[%s6762_s26 + $0x1140] sm:$0xff] }
 0x118   : > { %3828 = vmatpush.msrb.mxu0 %v714_v7  ;;  %3847 = vmatpush.msrb.mxu1 %v731_v8  ;;  %v829_v7 = vld [vmem:[%s6762_s26 + $0x11c8] sm:$0xff]  ;;  %v779_v8 = vld [vmem:[%s6762_s26 + $0x1038] sm:$0xff] }
 0x119   : > { %3868 = vmatpush.msrb.mxu2 %v746_v9  ;;  %3887 = vmatpush.msrb.mxu3 %v763_v10  ;;  %v796_v9 = vld [vmem:[%s6762_s26 + $0x10c0] sm:$0xff]  ;;  %v811_v10 = vld [vmem:[%s6762_s26 + $0x1138] sm:$0xff] }
 0x11a   : > { %3829 = vmatpush.msrb.mxu0 %v713_v11  ;;  %3848 = vmatpush.msrb.mxu1 %v730_v12  ;;  %v828_v11 = vld [vmem:[%s6762_s26 + $0x11c0] sm:$0xff]  ;;  %v778_v12 = vld [vmem:[%s6762_s26 + $0x1030] sm:$0xff] }
 0x11b   : > { %3869 = vmatpush.msrb.mxu2 %v745_v13  ;;  %3888 = vmatpush.msrb.mxu3 %v762_v14  ;;  %v795_v13 = vld [vmem:[%s6762_s26 + $0x10b8] sm:$0xff]  ;;  %v810_v14 = vld [vmem:[%s6762_s26 + $0x1130] sm:$0xff] }
 0x11c   : > { %3830 = vmatpush.msrb.mxu0 %v712_v15  ;;  %3849 = vmatpush.msrb.mxu1 %v729_v16  ;;  %v827_v15 = vld [vmem:[%s6762_s26 + $0x11b8] sm:$0xff]  ;;  %v777_v16 = vld [vmem:[%s6762_s26 + $0x1028] sm:$0xff] }
 0x11d   : > { %3870 = vmatpush.msrb.mxu2 %v744_v17  ;;  %3889 = vmatpush.msrb.mxu3 %v761_v18  ;;  %v794_v17 = vld [vmem:[%s6762_s26 + $0x10b0] sm:$0xff]  ;;  %v809_v18 = vld [vmem:[%s6762_s26 + $0x1128] sm:$0xff] }
 0x11e   : > { %3831 = vmatpush.msrb.mxu0 %v711_v19  ;;  %3850 = vmatpush.msrb.mxu1 %v728_v20  ;;  %v826_v19 = vld [vmem:[%s6762_s26 + $0x11b0] sm:$0xff]  ;;  %v776_v20 = vld [vmem:[%s6762_s26 + $0x1020] sm:$0xff] }
 0x11f   : > { %3871 = vmatpush.msrb.mxu2 %v743_v21  ;;  %3890 = vmatpush.msrb.mxu3 %v760_v22  ;;  %v793_v21 = vld [vmem:[%s6762_s26 + $0x10a8] sm:$0xff]  ;;  %v808_v22 = vld [vmem:[%s6762_s26 + $0x1120] sm:$0xff] }
 0x120   : > { %3832 = vmatpush.msrb.mxu0 %v710_v23  ;;  %3851 = vmatpush.msrb.mxu1 %v727_v24  ;;  %v825_v23 = vld [vmem:[%s6762_s26 + $0x11a8] sm:$0xff]  ;;  %v775_v24 = vld [vmem:[%s6762_s26 + $0x1018] sm:$0xff] }
 0x121   : > { %3872 = vmatpush.msrb.mxu2 %v742_v25  ;;  %3891 = vmatpush.msrb.mxu3 %v759_v26  ;;  %v792_v25 = vld [vmem:[%s6762_s26 + $0x10a0] sm:$0xff]  ;;  %v807_v26 = vld [vmem:[%s6762_s26 + $0x1118] sm:$0xff] }
 0x122   : > { %3833 = vmatpush.msrb.mxu0 %v709_v27  ;;  %3852 = vmatpush.msrb.mxu1 %v726_v28  ;;  %v824_v27 = vld [vmem:[%s6762_s26 + $0x11a0] sm:$0xff]  ;;  %v774_v28 = vld [vmem:[%s6762_s26 + $0x1010] sm:$0xff] }
 0x123   : > { %3873 = vmatpush.msrb.mxu2 %v741_v30  ;;  %3892 = vmatpush.msrb.mxu3 %v758_v31  ;;  %v806_v30 = vld [vmem:[%s6762_s26 + $0x1110] sm:$0xff]  ;;  %v823_v31 = vld [vmem:[%s6762_s26 + $0x1198] sm:$0xff] }
 0x124   : > { %3834 = vmatpush.msrb.mxu0 %v708_v32  ;;  %3853 = vmatpush.msrb.mxu1 %v725_v33  ;;  %v773_v32 = vld [vmem:[%s6762_s26 + $0x1008] sm:$0xff]  ;;  %v790_v33 = vld [vmem:[%s6762_s26 + $0x1090] sm:$0xff] }
 0x125   : > { %3874 = vmatpush.msrb.mxu2 %v740_v34  ;;  %3893 = vmatpush.msrb.mxu3 %v757_v35  ;;  %v228_v34 = vld [vmem:[%s6757_s22 + $0x48] sm:$0xff] }
 0x126   : > { %3835 = vmatmul.f32.vlgmr.msrb.gmra.mxu0 %v2930_v36  ;;  %3875 = vmatmul.f32.vlgmr.msrb.gmra.mxu2 %v2932_v37  ;;  %v805_v35 = vld [vmem:[%s6762_s26 + $0x1108] sm:$0xff]  ;;  %v822_v36 = vld [vmem:[%s6762_s26 + $0x1190] sm:$0xff]  ;;  %2935 = vst [vmem:[#allocation1 + $0x20] ss:$4 sm:$0xff] %v228_v34  ;;  %v772_v37 = vld [vmem:[%s6762_s26 + $0x1000] sm:$0xff] }
 0x127   : > { %3899 = vmatpush.msra.mxu0 %v787_v38  ;;  %3939 = vmatpush.msra.mxu2 %v819_v39  ;;  %v789_v38 = vld [vmem:[%s6762_s26 + $0x1088] sm:$0xff]  ;;  %v804_v39 = vld [vmem:[%s6762_s26 + $0x1100] sm:$0xff]  ;;  %v855_v34 = vld [vmem:[%s6762_s26 + $0x1298] sm:$0xff] }
 0x128   : > { %3854 = vmatpush.msrb.mxu1 %v724_v40  ;;  %3894 = vmatpush.msrb.mxu3 %v756_v41  ;;  %v821_v40 = vld [vmem:[%s6762_s26 + $0x1188] sm:$0xff]  ;;  %v2936_v41 = vld.sshfl [vmem:[#allocation1] sm:$0xff pattern:$0x73625140] }
 0x129   : > { %3855 = vmatmul.f32.vlgmr.msrb.gmra.mxu1 %v2931_v42  ;;  %3895 = vmatmul.f32.vlgmr.msrb.gmra.mxu3 %v2933_v43  ;;  %v2938_v42 = vld.sshfl [vmem:[#allocation1 + $0x10] sm:$0xff pattern:$0x73625140]  ;;  %v851_v43 = vld [vmem:[%s6762_s26 + $0x1278] sm:$0xff] }
 0x12a   : > { %3900 = vmatpush.msra.mxu0 %v786_v44  ;;  %3919 = vmatpush.msra.mxu1 %v803_v45  ;;  %v883_v44 = vld [vmem:[%s6762_s26 + $0x1378] sm:$0xff]  ;;  %v788_v45 = vld [vmem:[%s6762_s26 + $0x1080] sm:$0xff] }
 0x12b   : > { %3940 = vmatpush.msra.mxu2 %v818_v46  ;;  %3959 = vmatpush.msra.mxu3 %v835_v47  ;;  %v820_v46 = vld [vmem:[%s6762_s26 + $0x1180] sm:$0xff]  ;;  %v2937_v47 = vld.sshfl [vmem:[#allocation1 + $0x8] sm:$0xff pattern:$0x73625140] }
 0x12c   : > { %3901 = vmatpush.msra.mxu0 %v785_v48  ;;  %3920 = vmatpush.msra.mxu1 %v802_v49  ;;  %v2939_v48 = vld.sshfl [vmem:[#allocation1 + $0x18] sm:$0xff pattern:$0x73625140]  ;;  %v850_v49 = vld [vmem:[%s6762_s26 + $0x1270] sm:$0xff] }
 0x12d   : > { %3941 = vmatpush.msra.mxu2 %v817_v50  ;;  %3960 = vmatpush.msra.mxu3 %v834_v51  ;;  %v867_v50 = vld [vmem:[%s6762_s26 + $0x12f8] sm:$0xff]  ;;  %v882_v51 = vld [vmem:[%s6762_s26 + $0x1370] sm:$0xff] }
 0x12e   : > { %3902 = vmatpush.msra.mxu0 %v784_v52  ;;  %3921 = vmatpush.msra.mxu1 %v801_v53  ;;  %v899_v52 = vld [vmem:[%s6762_s26 + $0x13f8] sm:$0xff]  ;;  %v849_v53 = vld [vmem:[%s6762_s26 + $0x1268] sm:$0xff] }
 0x12f   : > { %3942 = vmatpush.msra.mxu2 %v816_v54  ;;  %3961 = vmatpush.msra.mxu3 %v833_v55  ;;  %v866_v54 = vld [vmem:[%s6762_s26 + $0x12f0] sm:$0xff]  ;;  %v881_v55 = vld [vmem:[%s6762_s26 + $0x1368] sm:$0xff] }
 0x130   : > { %3903 = vmatpush.msra.mxu0 %v783_v56  ;;  %3922 = vmatpush.msra.mxu1 %v800_v57  ;;  %v898_v56 = vld [vmem:[%s6762_s26 + $0x13f0] sm:$0xff]  ;;  %v848_v57 = vld [vmem:[%s6762_s26 + $0x1260] sm:$0xff] }
 0x131   : > { %3943 = vmatpush.msra.mxu2 %v815_v58  ;;  %3962 = vmatpush.msra.mxu3 %v832_v59  ;;  %v865_v58 = vld [vmem:[%s6762_s26 + $0x12e8] sm:$0xff]  ;;  %v880_v59 = vld [vmem:[%s6762_s26 + $0x1360] sm:$0xff] }
 0x132   : > { %3904 = vmatpush.msra.mxu0 %v782_v60  ;;  %3923 = vmatpush.msra.mxu1 %v799_v61  ;;  %v897_v60 = vld [vmem:[%s6762_s26 + $0x13e8] sm:$0xff]  ;;  %v847_v61 = vld [vmem:[%s6762_s26 + $0x1258] sm:$0xff] }
 0x133   : > { %3944 = vmatpush.msra.mxu2 %v814_v62  ;;  %3963 = vmatpush.msra.mxu3 %v831_v63  ;;  %v864_v62 = vld [vmem:[%s6762_s26 + $0x12e0] sm:$0xff]  ;;  %v879_v63 = vld [vmem:[%s6762_s26 + $0x1358] sm:$0xff] }
 0x134   : > { %3905 = vmatpush.msra.mxu0 %v781_v0  ;;  %3924 = vmatpush.msra.mxu1 %v798_v1  ;;  %v896_v0 = vld [vmem:[%s6762_s26 + $0x13e0] sm:$0xff]  ;;  %v846_v1 = vld [vmem:[%s6762_s26 + $0x1250] sm:$0xff] }
 0x135   : > { %3945 = vmatpush.msra.mxu2 %v813_v2  ;;  %3964 = vmatpush.msra.mxu3 %v830_v3  ;;  %v863_v2 = vld [vmem:[%s6762_s26 + $0x12d8] sm:$0xff]  ;;  %v878_v3 = vld [vmem:[%s6762_s26 + $0x1350] sm:$0xff] }
 0x136   : > { %3906 = vmatpush.msra.mxu0 %v780_v4  ;;  %3925 = vmatpush.msra.mxu1 %v797_v5  ;;  %v895_v4 = vld [vmem:[%s6762_s26 + $0x13d8] sm:$0xff]  ;;  %v845_v5 = vld [vmem:[%s6762_s26 + $0x1248] sm:$0xff] }
 0x137   : > { %3946 = vmatpush.msra.mxu2 %v812_v6  ;;  %3965 = vmatpush.msra.mxu3 %v829_v7  ;;  %v862_v6 = vld [vmem:[%s6762_s26 + $0x12d0] sm:$0xff]  ;;  %v877_v7 = vld [vmem:[%s6762_s26 + $0x1348] sm:$0xff] }
 0x138   : > { %3907 = vmatpush.msra.mxu0 %v779_v8  ;;  %3926 = vmatpush.msra.mxu1 %v796_v9  ;;  %v894_v8 = vld [vmem:[%s6762_s26 + $0x13d0] sm:$0xff]  ;;  %v844_v9 = vld [vmem:[%s6762_s26 + $0x1240] sm:$0xff] }
 0x139   : > { %3947 = vmatpush.msra.mxu2 %v811_v10  ;;  %3966 = vmatpush.msra.mxu3 %v828_v11  ;;  %v861_v10 = vld [vmem:[%s6762_s26 + $0x12c8] sm:$0xff]  ;;  %v876_v11 = vld [vmem:[%s6762_s26 + $0x1340] sm:$0xff] }
 0x13a   : > { %3908 = vmatpush.msra.mxu0 %v778_v12  ;;  %3927 = vmatpush.msra.mxu1 %v795_v13  ;;  %v893_v12 = vld [vmem:[%s6762_s26 + $0x13c8] sm:$0xff]  ;;  %v843_v13 = vld [vmem:[%s6762_s26 + $0x1238] sm:$0xff] }
 0x13b   : > { %3948 = vmatpush.msra.mxu2 %v810_v14  ;;  %3967 = vmatpush.msra.mxu3 %v827_v15  ;;  %v860_v14 = vld [vmem:[%s6762_s26 + $0x12c0] sm:$0xff]  ;;  %v875_v15 = vld [vmem:[%s6762_s26 + $0x1338] sm:$0xff] }
 0x13c   : > { %3909 = vmatpush.msra.mxu0 %v777_v16  ;;  %3928 = vmatpush.msra.mxu1 %v794_v17  ;;  %v892_v16 = vld [vmem:[%s6762_s26 + $0x13c0] sm:$0xff]  ;;  %v842_v17 = vld [vmem:[%s6762_s26 + $0x1230] sm:$0xff] }
 0x13d   : > { %3949 = vmatpush.msra.mxu2 %v809_v18  ;;  %3968 = vmatpush.msra.mxu3 %v826_v19  ;;  %v859_v18 = vld [vmem:[%s6762_s26 + $0x12b8] sm:$0xff]  ;;  %v874_v19 = vld [vmem:[%s6762_s26 + $0x1330] sm:$0xff] }
 0x13e   : > { %3910 = vmatpush.msra.mxu0 %v776_v20  ;;  %3929 = vmatpush.msra.mxu1 %v793_v21  ;;  %v891_v20 = vld [vmem:[%s6762_s26 + $0x13b8] sm:$0xff]  ;;  %v841_v21 = vld [vmem:[%s6762_s26 + $0x1228] sm:$0xff] }
 0x13f   : > { %3950 = vmatpush.msra.mxu2 %v808_v22  ;;  %3969 = vmatpush.msra.mxu3 %v825_v23  ;;  %v858_v22 = vld [vmem:[%s6762_s26 + $0x12b0] sm:$0xff]  ;;  %v873_v23 = vld [vmem:[%s6762_s26 + $0x1328] sm:$0xff] }
 0x140   : > { %3911 = vmatpush.msra.mxu0 %v775_v24  ;;  %3930 = vmatpush.msra.mxu1 %v792_v25  ;;  %v890_v24 = vld [vmem:[%s6762_s26 + $0x13b0] sm:$0xff]  ;;  %v840_v25 = vld [vmem:[%s6762_s26 + $0x1220] sm:$0xff] }
 0x141   : > { %3951 = vmatpush.msra.mxu2 %v807_v26  ;;  %3970 = vmatpush.msra.mxu3 %v824_v27  ;;  %v857_v26 = vld [vmem:[%s6762_s26 + $0x12a8] sm:$0xff]  ;;  %v872_v27 = vld [vmem:[%s6762_s26 + $0x1320] sm:$0xff] }
 0x142   : > { %3912 = vmatpush.msra.mxu0 %v774_v28  ;;  %3931 = vmatpush.msra.mxu1 %v791_v29  ;;  %v889_v28 = vld [vmem:[%s6762_s26 + $0x13a8] sm:$0xff]  ;;  %v839_v29 = vld [vmem:[%s6762_s26 + $0x1218] sm:$0xff] }
 0x143   : > { %3952 = vmatpush.msra.mxu2 %v806_v30  ;;  %3971 = vmatpush.msra.mxu3 %v823_v31  ;;  %v856_v30 = vld [vmem:[%s6762_s26 + $0x12a0] sm:$0xff]  ;;  %v871_v31 = vld [vmem:[%s6762_s26 + $0x1318] sm:$0xff] }
 0x144   : > { %3913 = vmatpush.msra.mxu0 %v773_v32  ;;  %3932 = vmatpush.msra.mxu1 %v790_v33  ;;  %v888_v32 = vld [vmem:[%s6762_s26 + $0x13a0] sm:$0xff]  ;;  %v838_v33 = vld [vmem:[%s6762_s26 + $0x1210] sm:$0xff] }
 0x145   : > { %3953 = vmatpush.msra.mxu2 %v805_v35  ;;  %3972 = vmatpush.msra.mxu3 %v822_v36  ;;  %v870_v35 = vld [vmem:[%s6762_s26 + $0x1310] sm:$0xff]  ;;  %v887_v36 = vld [vmem:[%s6762_s26 + $0x1398] sm:$0xff] }
 0x146   : > { %3914 = vmatpush.msra.mxu0 %v772_v37  ;;  %3933 = vmatpush.msra.mxu1 %v789_v38  ;;  %v837_v37 = vld [vmem:[%s6762_s26 + $0x1208] sm:$0xff]  ;;  %v854_v38 = vld [vmem:[%s6762_s26 + $0x1290] sm:$0xff] }
 0x147   : > { %3954 = vmatpush.msra.mxu2 %v804_v39  ;;  %3973 = vmatpush.msra.mxu3 %v821_v40  ;;  %v229_v39 = vld [vmem:[%s6757_s22 + $0x50] sm:$0xff]  ;;  %v869_v40 = vld [vmem:[%s6762_s26 + $0x1308] sm:$0xff] }
 0x148   : > { %3915 = vmatmul.f32.vlgmr.msra.gmra.mxu0 %v2936_v41  ;;  %3955 = vmatmul.f32.vlgmr.msra.gmra.mxu2 %v2938_v42  ;;  %v886_v41 = vld [vmem:[%s6762_s26 + $0x1390] sm:$0xff]  ;;  %2944 = vst [vmem:[#allocation1] ss:$4 sm:$0xff] %v229_v39  ;;  %v836_v42 = vld [vmem:[%s6762_s26 + $0x1200] sm:$0xff]  ;;  %v919_v39 = vld [vmem:[%s6762_s26 + $0x1498] sm:$0xff] }
 0x149   : > { %3979 = vmatpush.msrb.mxu0 %v851_v43  ;;  %4019 = vmatpush.msrb.mxu2 %v883_v44  ;;  %v853_v43 = vld [vmem:[%s6762_s26 + $0x1288] sm:$0xff]  ;;  %v868_v44 = vld [vmem:[%s6762_s26 + $0x1300] sm:$0xff] }
 0x14a   : > { %3934 = vmatpush.msra.mxu1 %v788_v45  ;;  %3974 = vmatpush.msra.mxu3 %v820_v46  ;;  %v885_v45 = vld [vmem:[%s6762_s26 + $0x1388] sm:$0xff]  ;;  %v2940_v46 = vld.sshfl [vmem:[#allocation1 + $0x20] sm:$0xff pattern:$0x73625140] }
 0x14b   : > { %3935 = vmatmul.f32.vlgmr.msra.gmra.mxu1 %v2937_v47  ;;  %3975 = vmatmul.f32.vlgmr.msra.gmra.mxu3 %v2939_v48  ;;  %v2942_v47 = vld.sshfl [vmem:[#allocation1 + $0x30] sm:$0xff pattern:$0x73625140]  ;;  %v915_v48 = vld [vmem:[%s6762_s26 + $0x1478] sm:$0xff] }
 0x14c   : > { %3980 = vmatpush.msrb.mxu0 %v850_v49  ;;  %3999 = vmatpush.msrb.mxu1 %v867_v50  ;;  %v947_v49 = vld [vmem:[%s6762_s26 + $0x1578] sm:$0xff]  ;;  %v852_v50 = vld [vmem:[%s6762_s26 + $0x1280] sm:$0xff] }
 0x14d   : > { %4020 = vmatpush.msrb.mxu2 %v882_v51  ;;  %4039 = vmatpush.msrb.mxu3 %v899_v52  ;;  %v884_v51 = vld [vmem:[%s6762_s26 + $0x1380] sm:$0xff]  ;;  %v2941_v52 = vld.sshfl [vmem:[#allocation1 + $0x28] sm:$0xff pattern:$0x73625140] }
 0x14e   : > { %3981 = vmatpush.msrb.mxu0 %v849_v53  ;;  %4000 = vmatpush.msrb.mxu1 %v866_v54  ;;  %v2943_v53 = vld.sshfl [vmem:[#allocation1 + $0x38] sm:$0xff pattern:$0x73625140]  ;;  %v914_v54 = vld [vmem:[%s6762_s26 + $0x1470] sm:$0xff] }
 0x14f   : > { %4021 = vmatpush.msrb.mxu2 %v881_v55  ;;  %4040 = vmatpush.msrb.mxu3 %v898_v56  ;;  %v931_v55 = vld [vmem:[%s6762_s26 + $0x14f8] sm:$0xff]  ;;  %v946_v56 = vld [vmem:[%s6762_s26 + $0x1570] sm:$0xff] }
 0x150   : > { %3982 = vmatpush.msrb.mxu0 %v848_v57  ;;  %4001 = vmatpush.msrb.mxu1 %v865_v58  ;;  %v963_v57 = vld [vmem:[%s6762_s26 + $0x15f8] sm:$0xff]  ;;  %v913_v58 = vld [vmem:[%s6762_s26 + $0x1468] sm:$0xff] }
 0x151   : > { %4022 = vmatpush.msrb.mxu2 %v880_v59  ;;  %4041 = vmatpush.msrb.mxu3 %v897_v60  ;;  %v930_v59 = vld [vmem:[%s6762_s26 + $0x14f0] sm:$0xff]  ;;  %v945_v60 = vld [vmem:[%s6762_s26 + $0x1568] sm:$0xff] }
 0x152   : > { %3983 = vmatpush.msrb.mxu0 %v847_v61  ;;  %4002 = vmatpush.msrb.mxu1 %v864_v62  ;;  %v962_v61 = vld [vmem:[%s6762_s26 + $0x15f0] sm:$0xff]  ;;  %v912_v62 = vld [vmem:[%s6762_s26 + $0x1460] sm:$0xff] }
 0x153   : > { %4023 = vmatpush.msrb.mxu2 %v879_v63  ;;  %4042 = vmatpush.msrb.mxu3 %v896_v0  ;;  %v929_v63 = vld [vmem:[%s6762_s26 + $0x14e8] sm:$0xff]  ;;  %v944_v0 = vld [vmem:[%s6762_s26 + $0x1560] sm:$0xff] }
 0x154   : > { %3984 = vmatpush.msrb.mxu0 %v846_v1  ;;  %4003 = vmatpush.msrb.mxu1 %v863_v2  ;;  %v961_v1 = vld [vmem:[%s6762_s26 + $0x15e8] sm:$0xff]  ;;  %v911_v2 = vld [vmem:[%s6762_s26 + $0x1458] sm:$0xff] }
 0x155   : > { %4024 = vmatpush.msrb.mxu2 %v878_v3  ;;  %4043 = vmatpush.msrb.mxu3 %v895_v4  ;;  %v928_v3 = vld [vmem:[%s6762_s26 + $0x14e0] sm:$0xff]  ;;  %v943_v4 = vld [vmem:[%s6762_s26 + $0x1558] sm:$0xff] }
 0x156   : > { %3985 = vmatpush.msrb.mxu0 %v845_v5  ;;  %4004 = vmatpush.msrb.mxu1 %v862_v6  ;;  %v960_v5 = vld [vmem:[%s6762_s26 + $0x15e0] sm:$0xff]  ;;  %v910_v6 = vld [vmem:[%s6762_s26 + $0x1450] sm:$0xff] }
 0x157   : > { %4025 = vmatpush.msrb.mxu2 %v877_v7  ;;  %4044 = vmatpush.msrb.mxu3 %v894_v8  ;;  %v927_v7 = vld [vmem:[%s6762_s26 + $0x14d8] sm:$0xff]  ;;  %v942_v8 = vld [vmem:[%s6762_s26 + $0x1550] sm:$0xff] }
 0x158   : > { %3986 = vmatpush.msrb.mxu0 %v844_v9  ;;  %4005 = vmatpush.msrb.mxu1 %v861_v10  ;;  %v959_v9 = vld [vmem:[%s6762_s26 + $0x15d8] sm:$0xff]  ;;  %v909_v10 = vld [vmem:[%s6762_s26 + $0x1448] sm:$0xff] }
 0x159   : > { %4026 = vmatpush.msrb.mxu2 %v876_v11  ;;  %4045 = vmatpush.msrb.mxu3 %v893_v12  ;;  %v926_v11 = vld [vmem:[%s6762_s26 + $0x14d0] sm:$0xff]  ;;  %v941_v12 = vld [vmem:[%s6762_s26 + $0x1548] sm:$0xff] }
 0x15a   : > { %3987 = vmatpush.msrb.mxu0 %v843_v13  ;;  %4006 = vmatpush.msrb.mxu1 %v860_v14  ;;  %v958_v13 = vld [vmem:[%s6762_s26 + $0x15d0] sm:$0xff]  ;;  %v908_v14 = vld [vmem:[%s6762_s26 + $0x1440] sm:$0xff] }
 0x15b   : > { %4027 = vmatpush.msrb.mxu2 %v875_v15  ;;  %4046 = vmatpush.msrb.mxu3 %v892_v16  ;;  %v925_v15 = vld [vmem:[%s6762_s26 + $0x14c8] sm:$0xff]  ;;  %v940_v16 = vld [vmem:[%s6762_s26 + $0x1540] sm:$0xff] }
 0x15c   : > { %3988 = vmatpush.msrb.mxu0 %v842_v17  ;;  %4007 = vmatpush.msrb.mxu1 %v859_v18  ;;  %v957_v17 = vld [vmem:[%s6762_s26 + $0x15c8] sm:$0xff]  ;;  %v907_v18 = vld [vmem:[%s6762_s26 + $0x1438] sm:$0xff] }
 0x15d   : > { %4028 = vmatpush.msrb.mxu2 %v874_v19  ;;  %4047 = vmatpush.msrb.mxu3 %v891_v20  ;;  %v924_v19 = vld [vmem:[%s6762_s26 + $0x14c0] sm:$0xff]  ;;  %v939_v20 = vld [vmem:[%s6762_s26 + $0x1538] sm:$0xff] }
 0x15e   : > { %3989 = vmatpush.msrb.mxu0 %v841_v21  ;;  %4008 = vmatpush.msrb.mxu1 %v858_v22  ;;  %v956_v21 = vld [vmem:[%s6762_s26 + $0x15c0] sm:$0xff]  ;;  %v906_v22 = vld [vmem:[%s6762_s26 + $0x1430] sm:$0xff] }
 0x15f   : > { %4029 = vmatpush.msrb.mxu2 %v873_v23  ;;  %4048 = vmatpush.msrb.mxu3 %v890_v24  ;;  %v923_v23 = vld [vmem:[%s6762_s26 + $0x14b8] sm:$0xff]  ;;  %v938_v24 = vld [vmem:[%s6762_s26 + $0x1530] sm:$0xff] }
 0x160   : > { %3990 = vmatpush.msrb.mxu0 %v840_v25  ;;  %4009 = vmatpush.msrb.mxu1 %v857_v26  ;;  %v955_v25 = vld [vmem:[%s6762_s26 + $0x15b8] sm:$0xff]  ;;  %v905_v26 = vld [vmem:[%s6762_s26 + $0x1428] sm:$0xff] }
 0x161   : > { %4030 = vmatpush.msrb.mxu2 %v872_v27  ;;  %4049 = vmatpush.msrb.mxu3 %v889_v28  ;;  %v922_v27 = vld [vmem:[%s6762_s26 + $0x14b0] sm:$0xff]  ;;  %v937_v28 = vld [vmem:[%s6762_s26 + $0x1528] sm:$0xff] }
 0x162   : > { %3991 = vmatpush.msrb.mxu0 %v839_v29  ;;  %4010 = vmatpush.msrb.mxu1 %v856_v30  ;;  %v954_v29 = vld [vmem:[%s6762_s26 + $0x15b0] sm:$0xff]  ;;  %v904_v30 = vld [vmem:[%s6762_s26 + $0x1420] sm:$0xff] }
 0x163   : > { %4031 = vmatpush.msrb.mxu2 %v871_v31  ;;  %4050 = vmatpush.msrb.mxu3 %v888_v32  ;;  %v921_v31 = vld [vmem:[%s6762_s26 + $0x14a8] sm:$0xff]  ;;  %v936_v32 = vld [vmem:[%s6762_s26 + $0x1520] sm:$0xff] }
 0x164   : > { %3992 = vmatpush.msrb.mxu0 %v838_v33  ;;  %4011 = vmatpush.msrb.mxu1 %v855_v34  ;;  %v953_v33 = vld [vmem:[%s6762_s26 + $0x15a8] sm:$0xff]  ;;  %v903_v34 = vld [vmem:[%s6762_s26 + $0x1418] sm:$0xff] }
 0x165   : > { %4032 = vmatpush.msrb.mxu2 %v870_v35  ;;  %4051 = vmatpush.msrb.mxu3 %v887_v36  ;;  %v920_v35 = vld [vmem:[%s6762_s26 + $0x14a0] sm:$0xff]  ;;  %v935_v36 = vld [vmem:[%s6762_s26 + $0x1518] sm:$0xff] }
 0x166   : > { %3993 = vmatpush.msrb.mxu0 %v837_v37  ;;  %4012 = vmatpush.msrb.mxu1 %v854_v38  ;;  %v952_v37 = vld [vmem:[%s6762_s26 + $0x15a0] sm:$0xff]  ;;  %v902_v38 = vld [vmem:[%s6762_s26 + $0x1410] sm:$0xff] }
 0x167   : > { %4033 = vmatpush.msrb.mxu2 %v869_v40  ;;  %4052 = vmatpush.msrb.mxu3 %v886_v41  ;;  %v934_v40 = vld [vmem:[%s6762_s26 + $0x1510] sm:$0xff]  ;;  %v951_v41 = vld [vmem:[%s6762_s26 + $0x1598] sm:$0xff] }
 0x168   : > { %3994 = vmatpush.msrb.mxu0 %v836_v42  ;;  %4013 = vmatpush.msrb.mxu1 %v853_v43  ;;  %v901_v42 = vld [vmem:[%s6762_s26 + $0x1408] sm:$0xff]  ;;  %v918_v43 = vld [vmem:[%s6762_s26 + $0x1490] sm:$0xff] }
 0x169   : > { %4034 = vmatpush.msrb.mxu2 %v868_v44  ;;  %4053 = vmatpush.msrb.mxu3 %v885_v45  ;;  %v230_v44 = vld [vmem:[%s6757_s22 + $0x58] sm:$0xff]  ;;  %v933_v45 = vld [vmem:[%s6762_s26 + $0x1508] sm:$0xff] }
 0x16a   : > { %3995 = vmatmul.f32.vlgmr.msrb.gmra.mxu0 %v2940_v46  ;;  %4035 = vmatmul.f32.vlgmr.msrb.gmra.mxu2 %v2942_v47  ;;  %v950_v46 = vld [vmem:[%s6762_s26 + $0x1590] sm:$0xff]  ;;  %2945 = vst [vmem:[#allocation1 + $0x20] ss:$4 sm:$0xff] %v230_v44  ;;  %v900_v47 = vld [vmem:[%s6762_s26 + $0x1400] sm:$0xff]  ;;  %v983_v44 = vld [vmem:[%s6762_s26 + $0x1698] sm:$0xff] }
 0x16b   : > { %4059 = vmatpush.msra.mxu0 %v915_v48  ;;  %4099 = vmatpush.msra.mxu2 %v947_v49  ;;  %v917_v48 = vld [vmem:[%s6762_s26 + $0x1488] sm:$0xff]  ;;  %v932_v49 = vld [vmem:[%s6762_s26 + $0x1500] sm:$0xff] }
 0x16c   : > { %4014 = vmatpush.msrb.mxu1 %v852_v50  ;;  %4054 = vmatpush.msrb.mxu3 %v884_v51  ;;  %v949_v50 = vld [vmem:[%s6762_s26 + $0x1588] sm:$0xff]  ;;  %v2946_v51 = vld.sshfl [vmem:[#allocation1] sm:$0xff pattern:$0x73625140] }
 0x16d   : > { %4015 = vmatmul.f32.vlgmr.msrb.gmra.mxu1 %v2941_v52  ;;  %4055 = vmatmul.f32.vlgmr.msrb.gmra.mxu3 %v2943_v53  ;;  %v2948_v52 = vld.sshfl [vmem:[#allocation1 + $0x10] sm:$0xff pattern:$0x73625140]  ;;  %v979_v53 = vld [vmem:[%s6762_s26 + $0x1678] sm:$0xff] }
 0x16e   : > { %4060 = vmatpush.msra.mxu0 %v914_v54  ;;  %4079 = vmatpush.msra.mxu1 %v931_v55  ;;  %v1011_v54 = vld [vmem:[%s6762_s26 + $0x1778] sm:$0xff]  ;;  %v916_v55 = vld [vmem:[%s6762_s26 + $0x1480] sm:$0xff] }
 0x16f   : > { %4100 = vmatpush.msra.mxu2 %v946_v56  ;;  %4119 = vmatpush.msra.mxu3 %v963_v57  ;;  %v948_v56 = vld [vmem:[%s6762_s26 + $0x1580] sm:$0xff]  ;;  %v2947_v57 = vld.sshfl [vmem:[#allocation1 + $0x8] sm:$0xff pattern:$0x73625140] }
 0x170   : > { %4061 = vmatpush.msra.mxu0 %v913_v58  ;;  %4080 = vmatpush.msra.mxu1 %v930_v59  ;;  %v2949_v58 = vld.sshfl [vmem:[#allocation1 + $0x18] sm:$0xff pattern:$0x73625140]  ;;  %v978_v59 = vld [vmem:[%s6762_s26 + $0x1670] sm:$0xff] }
 0x171   : > { %4101 = vmatpush.msra.mxu2 %v945_v60  ;;  %4120 = vmatpush.msra.mxu3 %v962_v61  ;;  %v995_v60 = vld [vmem:[%s6762_s26 + $0x16f8] sm:$0xff]  ;;  %v1010_v61 = vld [vmem:[%s6762_s26 + $0x1770] sm:$0xff] }
 0x172   : > { %4062 = vmatpush.msra.mxu0 %v912_v62  ;;  %4081 = vmatpush.msra.mxu1 %v929_v63  ;;  %v1027_v62 = vld [vmem:[%s6762_s26 + $0x17f8] sm:$0xff]  ;;  %v977_v63 = vld [vmem:[%s6762_s26 + $0x1668] sm:$0xff] }
 0x173   : > { %4102 = vmatpush.msra.mxu2 %v944_v0  ;;  %4121 = vmatpush.msra.mxu3 %v961_v1  ;;  %v994_v0 = vld [vmem:[%s6762_s26 + $0x16f0] sm:$0xff]  ;;  %v1009_v1 = vld [vmem:[%s6762_s26 + $0x1768] sm:$0xff] }
 0x174   : > { %4063 = vmatpush.msra.mxu0 %v911_v2  ;;  %4082 = vmatpush.msra.mxu1 %v928_v3  ;;  %v1026_v2 = vld [vmem:[%s6762_s26 + $0x17f0] sm:$0xff]  ;;  %v976_v3 = vld [vmem:[%s6762_s26 + $0x1660] sm:$0xff] }
 0x175   : > { %4103 = vmatpush.msra.mxu2 %v943_v4  ;;  %4122 = vmatpush.msra.mxu3 %v960_v5  ;;  %v993_v4 = vld [vmem:[%s6762_s26 + $0x16e8] sm:$0xff]  ;;  %v1008_v5 = vld [vmem:[%s6762_s26 + $0x1760] sm:$0xff] }
 0x176   : > { %4064 = vmatpush.msra.mxu0 %v910_v6  ;;  %4083 = vmatpush.msra.mxu1 %v927_v7  ;;  %v1025_v6 = vld [vmem:[%s6762_s26 + $0x17e8] sm:$0xff]  ;;  %v975_v7 = vld [vmem:[%s6762_s26 + $0x1658] sm:$0xff] }
 0x177   : > { %4104 = vmatpush.msra.mxu2 %v942_v8  ;;  %4123 = vmatpush.msra.mxu3 %v959_v9  ;;  %v992_v8 = vld [vmem:[%s6762_s26 + $0x16e0] sm:$0xff]  ;;  %v1007_v9 = vld [vmem:[%s6762_s26 + $0x1758] sm:$0xff] }
 0x178   : > { %4065 = vmatpush.msra.mxu0 %v909_v10  ;;  %4084 = vmatpush.msra.mxu1 %v926_v11  ;;  %v1024_v10 = vld [vmem:[%s6762_s26 + $0x17e0] sm:$0xff]  ;;  %v974_v11 = vld [vmem:[%s6762_s26 + $0x1650] sm:$0xff] }
 0x179   : > { %4105 = vmatpush.msra.mxu2 %v941_v12  ;;  %4124 = vmatpush.msra.mxu3 %v958_v13  ;;  %v991_v12 = vld [vmem:[%s6762_s26 + $0x16d8] sm:$0xff]  ;;  %v1006_v13 = vld [vmem:[%s6762_s26 + $0x1750] sm:$0xff] }
 0x17a   : > { %4066 = vmatpush.msra.mxu0 %v908_v14  ;;  %4085 = vmatpush.msra.mxu1 %v925_v15  ;;  %v1023_v14 = vld [vmem:[%s6762_s26 + $0x17d8] sm:$0xff]  ;;  %v973_v15 = vld [vmem:[%s6762_s26 + $0x1648] sm:$0xff] }
 0x17b   : > { %4106 = vmatpush.msra.mxu2 %v940_v16  ;;  %4125 = vmatpush.msra.mxu3 %v957_v17  ;;  %v990_v16 = vld [vmem:[%s6762_s26 + $0x16d0] sm:$0xff]  ;;  %v1005_v17 = vld [vmem:[%s6762_s26 + $0x1748] sm:$0xff] }
 0x17c   : > { %4067 = vmatpush.msra.mxu0 %v907_v18  ;;  %4086 = vmatpush.msra.mxu1 %v924_v19  ;;  %v1022_v18 = vld [vmem:[%s6762_s26 + $0x17d0] sm:$0xff]  ;;  %v972_v19 = vld [vmem:[%s6762_s26 + $0x1640] sm:$0xff] }
 0x17d   : > { %4107 = vmatpush.msra.mxu2 %v939_v20  ;;  %4126 = vmatpush.msra.mxu3 %v956_v21  ;;  %v989_v20 = vld [vmem:[%s6762_s26 + $0x16c8] sm:$0xff]  ;;  %v1004_v21 = vld [vmem:[%s6762_s26 + $0x1740] sm:$0xff] }
 0x17e   : > { %4068 = vmatpush.msra.mxu0 %v906_v22  ;;  %4087 = vmatpush.msra.mxu1 %v923_v23  ;;  %v1021_v22 = vld [vmem:[%s6762_s26 + $0x17c8] sm:$0xff]  ;;  %v971_v23 = vld [vmem:[%s6762_s26 + $0x1638] sm:$0xff] }
 0x17f   : > { %4108 = vmatpush.msra.mxu2 %v938_v24  ;;  %4127 = vmatpush.msra.mxu3 %v955_v25  ;;  %v988_v24 = vld [vmem:[%s6762_s26 + $0x16c0] sm:$0xff]  ;;  %v1003_v25 = vld [vmem:[%s6762_s26 + $0x1738] sm:$0xff] }
 0x180   : > { %4069 = vmatpush.msra.mxu0 %v905_v26  ;;  %4088 = vmatpush.msra.mxu1 %v922_v27  ;;  %v1020_v26 = vld [vmem:[%s6762_s26 + $0x17c0] sm:$0xff]  ;;  %v970_v27 = vld [vmem:[%s6762_s26 + $0x1630] sm:$0xff] }
 0x181   : > { %4109 = vmatpush.msra.mxu2 %v937_v28  ;;  %4128 = vmatpush.msra.mxu3 %v954_v29  ;;  %v987_v28 = vld [vmem:[%s6762_s26 + $0x16b8] sm:$0xff]  ;;  %v1002_v29 = vld [vmem:[%s6762_s26 + $0x1730] sm:$0xff] }
 0x182   : > { %4070 = vmatpush.msra.mxu0 %v904_v30  ;;  %4089 = vmatpush.msra.mxu1 %v921_v31  ;;  %v1019_v30 = vld [vmem:[%s6762_s26 + $0x17b8] sm:$0xff]  ;;  %v969_v31 = vld [vmem:[%s6762_s26 + $0x1628] sm:$0xff] }
 0x183   : > { %4110 = vmatpush.msra.mxu2 %v936_v32  ;;  %4129 = vmatpush.msra.mxu3 %v953_v33  ;;  %v986_v32 = vld [vmem:[%s6762_s26 + $0x16b0] sm:$0xff]  ;;  %v1001_v33 = vld [vmem:[%s6762_s26 + $0x1728] sm:$0xff] }
 0x184   : > { %4071 = vmatpush.msra.mxu0 %v903_v34  ;;  %4090 = vmatpush.msra.mxu1 %v920_v35  ;;  %v1018_v34 = vld [vmem:[%s6762_s26 + $0x17b0] sm:$0xff]  ;;  %v968_v35 = vld [vmem:[%s6762_s26 + $0x1620] sm:$0xff] }
 0x185   : > { %4111 = vmatpush.msra.mxu2 %v935_v36  ;;  %4130 = vmatpush.msra.mxu3 %v952_v37  ;;  %v985_v36 = vld [vmem:[%s6762_s26 + $0x16a8] sm:$0xff]  ;;  %v1000_v37 = vld [vmem:[%s6762_s26 + $0x1720] sm:$0xff] }
 0x186   : > { %4072 = vmatpush.msra.mxu0 %v902_v38  ;;  %4091 = vmatpush.msra.mxu1 %v919_v39  ;;  %v1017_v38 = vld [vmem:[%s6762_s26 + $0x17a8] sm:$0xff]  ;;  %v967_v39 = vld [vmem:[%s6762_s26 + $0x1618] sm:$0xff] }
 0x187   : > { %4112 = vmatpush.msra.mxu2 %v934_v40  ;;  %4131 = vmatpush.msra.mxu3 %v951_v41  ;;  %v984_v40 = vld [vmem:[%s6762_s26 + $0x16a0] sm:$0xff]  ;;  %v999_v41 = vld [vmem:[%s6762_s26 + $0x1718] sm:$0xff] }
 0x188   : > { %4073 = vmatpush.msra.mxu0 %v901_v42  ;;  %4092 = vmatpush.msra.mxu1 %v918_v43  ;;  %v1016_v42 = vld [vmem:[%s6762_s26 + $0x17a0] sm:$0xff]  ;;  %v966_v43 = vld [vmem:[%s6762_s26 + $0x1610] sm:$0xff] }
 0x189   : > { %4113 = vmatpush.msra.mxu2 %v933_v45  ;;  %4132 = vmatpush.msra.mxu3 %v950_v46  ;;  %v998_v45 = vld [vmem:[%s6762_s26 + $0x1710] sm:$0xff]  ;;  %v1015_v46 = vld [vmem:[%s6762_s26 + $0x1798] sm:$0xff] }
 0x18a   : > { %4074 = vmatpush.msra.mxu0 %v900_v47  ;;  %4093 = vmatpush.msra.mxu1 %v917_v48  ;;  %v965_v47 = vld [vmem:[%s6762_s26 + $0x1608] sm:$0xff]  ;;  %v982_v48 = vld [vmem:[%s6762_s26 + $0x1690] sm:$0xff] }
 0x18b   : > { %4114 = vmatpush.msra.mxu2 %v932_v49  ;;  %4133 = vmatpush.msra.mxu3 %v949_v50  ;;  %v231_v49 = vld [vmem:[%s6757_s22 + $0x60] sm:$0xff]  ;;  %v997_v50 = vld [vmem:[%s6762_s26 + $0x1708] sm:$0xff] }
 0x18c   : > { %4075 = vmatmul.f32.vlgmr.msra.gmra.mxu0 %v2946_v51  ;;  %4115 = vmatmul.f32.vlgmr.msra.gmra.mxu2 %v2948_v52  ;;  %v1014_v51 = vld [vmem:[%s6762_s26 + $0x1790] sm:$0xff]  ;;  %2954 = vst [vmem:[#allocation1] ss:$4 sm:$0xff] %v231_v49  ;;  %v964_v52 = vld [vmem:[%s6762_s26 + $0x1600] sm:$0xff]  ;;  %v1047_v49 = vld [vmem:[%s6762_s26 + $0x1898] sm:$0xff] }
 0x18d   : > { %4139 = vmatpush.msrb.mxu0 %v979_v53  ;;  %4179 = vmatpush.msrb.mxu2 %v1011_v54  ;;  %v981_v53 = vld [vmem:[%s6762_s26 + $0x1688] sm:$0xff]  ;;  %v996_v54 = vld [vmem:[%s6762_s26 + $0x1700] sm:$0xff] }
 0x18e   : > { %4094 = vmatpush.msra.mxu1 %v916_v55  ;;  %4134 = vmatpush.msra.mxu3 %v948_v56  ;;  %v1013_v55 = vld [vmem:[%s6762_s26 + $0x1788] sm:$0xff]  ;;  %v2950_v56 = vld.sshfl [vmem:[#allocation1 + $0x20] sm:$0xff pattern:$0x73625140] }
 0x18f   : > { %4095 = vmatmul.f32.vlgmr.msra.gmra.mxu1 %v2947_v57  ;;  %4135 = vmatmul.f32.vlgmr.msra.gmra.mxu3 %v2949_v58  ;;  %v2952_v57 = vld.sshfl [vmem:[#allocation1 + $0x30] sm:$0xff pattern:$0x73625140]  ;;  %v1043_v58 = vld [vmem:[%s6762_s26 + $0x1878] sm:$0xff] }
 0x190   : > { %4140 = vmatpush.msrb.mxu0 %v978_v59  ;;  %4159 = vmatpush.msrb.mxu1 %v995_v60  ;;  %v1075_v59 = vld [vmem:[%s6762_s26 + $0x1978] sm:$0xff]  ;;  %v980_v60 = vld [vmem:[%s6762_s26 + $0x1680] sm:$0xff] }
 0x191   : > { %4180 = vmatpush.msrb.mxu2 %v1010_v61  ;;  %4199 = vmatpush.msrb.mxu3 %v1027_v62  ;;  %v1012_v61 = vld [vmem:[%s6762_s26 + $0x1780] sm:$0xff]  ;;  %v2951_v62 = vld.sshfl [vmem:[#allocation1 + $0x28] sm:$0xff pattern:$0x73625140] }
 0x192   : > { %4141 = vmatpush.msrb.mxu0 %v977_v63  ;;  %4160 = vmatpush.msrb.mxu1 %v994_v0  ;;  %v2953_v63 = vld.sshfl [vmem:[#allocation1 + $0x38] sm:$0xff pattern:$0x73625140]  ;;  %v1042_v0 = vld [vmem:[%s6762_s26 + $0x1870] sm:$0xff] }
 0x193   : > { %4181 = vmatpush.msrb.mxu2 %v1009_v1  ;;  %4200 = vmatpush.msrb.mxu3 %v1026_v2  ;;  %v1059_v1 = vld [vmem:[%s6762_s26 + $0x18f8] sm:$0xff]  ;;  %v1074_v2 = vld [vmem:[%s6762_s26 + $0x1970] sm:$0xff] }
 0x194   : > { %4142 = vmatpush.msrb.mxu0 %v976_v3  ;;  %4161 = vmatpush.msrb.mxu1 %v993_v4  ;;  %v1091_v3 = vld [vmem:[%s6762_s26 + $0x19f8] sm:$0xff]  ;;  %v1041_v4 = vld [vmem:[%s6762_s26 + $0x1868] sm:$0xff] }
 0x195   : > { %4182 = vmatpush.msrb.mxu2 %v1008_v5  ;;  %4201 = vmatpush.msrb.mxu3 %v1025_v6  ;;  %v1058_v5 = vld [vmem:[%s6762_s26 + $0x18f0] sm:$0xff]  ;;  %v1073_v6 = vld [vmem:[%s6762_s26 + $0x1968] sm:$0xff] }
 0x196   : > { %4143 = vmatpush.msrb.mxu0 %v975_v7  ;;  %4162 = vmatpush.msrb.mxu1 %v992_v8  ;;  %v1090_v7 = vld [vmem:[%s6762_s26 + $0x19f0] sm:$0xff]  ;;  %v1040_v8 = vld [vmem:[%s6762_s26 + $0x1860] sm:$0xff] }
 0x197   : > { %4183 = vmatpush.msrb.mxu2 %v1007_v9  ;;  %4202 = vmatpush.msrb.mxu3 %v1024_v10  ;;  %v1057_v9 = vld [vmem:[%s6762_s26 + $0x18e8] sm:$0xff]  ;;  %v1072_v10 = vld [vmem:[%s6762_s26 + $0x1960] sm:$0xff] }
 0x198   : > { %4144 = vmatpush.msrb.mxu0 %v974_v11  ;;  %4163 = vmatpush.msrb.mxu1 %v991_v12  ;;  %v1089_v11 = vld [vmem:[%s6762_s26 + $0x19e8] sm:$0xff]  ;;  %v1039_v12 = vld [vmem:[%s6762_s26 + $0x1858] sm:$0xff] }
 0x199   : > { %4184 = vmatpush.msrb.mxu2 %v1006_v13  ;;  %4203 = vmatpush.msrb.mxu3 %v1023_v14  ;;  %v1056_v13 = vld [vmem:[%s6762_s26 + $0x18e0] sm:$0xff]  ;;  %v1071_v14 = vld [vmem:[%s6762_s26 + $0x1958] sm:$0xff] }
 0x19a   : > { %4145 = vmatpush.msrb.mxu0 %v973_v15  ;;  %4164 = vmatpush.msrb.mxu1 %v990_v16  ;;  %v1088_v15 = vld [vmem:[%s6762_s26 + $0x19e0] sm:$0xff]  ;;  %v1038_v16 = vld [vmem:[%s6762_s26 + $0x1850] sm:$0xff] }
 0x19b   : > { %4185 = vmatpush.msrb.mxu2 %v1005_v17  ;;  %4204 = vmatpush.msrb.mxu3 %v1022_v18  ;;  %v1055_v17 = vld [vmem:[%s6762_s26 + $0x18d8] sm:$0xff]  ;;  %v1070_v18 = vld [vmem:[%s6762_s26 + $0x1950] sm:$0xff] }
 0x19c   : > { %4146 = vmatpush.msrb.mxu0 %v972_v19  ;;  %4165 = vmatpush.msrb.mxu1 %v989_v20  ;;  %v1087_v19 = vld [vmem:[%s6762_s26 + $0x19d8] sm:$0xff]  ;;  %v1037_v20 = vld [vmem:[%s6762_s26 + $0x1848] sm:$0xff] }
 0x19d   : > { %4186 = vmatpush.msrb.mxu2 %v1004_v21  ;;  %4205 = vmatpush.msrb.mxu3 %v1021_v22  ;;  %v1054_v21 = vld [vmem:[%s6762_s26 + $0x18d0] sm:$0xff]  ;;  %v1069_v22 = vld [vmem:[%s6762_s26 + $0x1948] sm:$0xff] }
 0x19e   : > { %4147 = vmatpush.msrb.mxu0 %v971_v23  ;;  %4166 = vmatpush.msrb.mxu1 %v988_v24  ;;  %v1086_v23 = vld [vmem:[%s6762_s26 + $0x19d0] sm:$0xff]  ;;  %v1036_v24 = vld [vmem:[%s6762_s26 + $0x1840] sm:$0xff] }
 0x19f   : > { %4187 = vmatpush.msrb.mxu2 %v1003_v25  ;;  %4206 = vmatpush.msrb.mxu3 %v1020_v26  ;;  %v1053_v25 = vld [vmem:[%s6762_s26 + $0x18c8] sm:$0xff]  ;;  %v1068_v26 = vld [vmem:[%s6762_s26 + $0x1940] sm:$0xff] }
 0x1a0   : > { %4148 = vmatpush.msrb.mxu0 %v970_v27  ;;  %4167 = vmatpush.msrb.mxu1 %v987_v28  ;;  %v1085_v27 = vld [vmem:[%s6762_s26 + $0x19c8] sm:$0xff]  ;;  %v1035_v28 = vld [vmem:[%s6762_s26 + $0x1838] sm:$0xff] }
 0x1a1   : > { %4188 = vmatpush.msrb.mxu2 %v1002_v29  ;;  %4207 = vmatpush.msrb.mxu3 %v1019_v30  ;;  %v1052_v29 = vld [vmem:[%s6762_s26 + $0x18c0] sm:$0xff]  ;;  %v1067_v30 = vld [vmem:[%s6762_s26 + $0x1938] sm:$0xff] }
 0x1a2   : > { %4149 = vmatpush.msrb.mxu0 %v969_v31  ;;  %4168 = vmatpush.msrb.mxu1 %v986_v32  ;;  %v1084_v31 = vld [vmem:[%s6762_s26 + $0x19c0] sm:$0xff]  ;;  %v1034_v32 = vld [vmem:[%s6762_s26 + $0x1830] sm:$0xff] }
 0x1a3   : > { %4189 = vmatpush.msrb.mxu2 %v1001_v33  ;;  %4208 = vmatpush.msrb.mxu3 %v1018_v34  ;;  %v1051_v33 = vld [vmem:[%s6762_s26 + $0x18b8] sm:$0xff]  ;;  %v1066_v34 = vld [vmem:[%s6762_s26 + $0x1930] sm:$0xff] }
 0x1a4   : > { %4150 = vmatpush.msrb.mxu0 %v968_v35  ;;  %4169 = vmatpush.msrb.mxu1 %v985_v36  ;;  %v1083_v35 = vld [vmem:[%s6762_s26 + $0x19b8] sm:$0xff]  ;;  %v1033_v36 = vld [vmem:[%s6762_s26 + $0x1828] sm:$0xff] }
 0x1a5   : > { %4190 = vmatpush.msrb.mxu2 %v1000_v37  ;;  %4209 = vmatpush.msrb.mxu3 %v1017_v38  ;;  %v1050_v37 = vld [vmem:[%s6762_s26 + $0x18b0] sm:$0xff]  ;;  %v1065_v38 = vld [vmem:[%s6762_s26 + $0x1928] sm:$0xff] }
 0x1a6   : > { %4151 = vmatpush.msrb.mxu0 %v967_v39  ;;  %4170 = vmatpush.msrb.mxu1 %v984_v40  ;;  %v1082_v39 = vld [vmem:[%s6762_s26 + $0x19b0] sm:$0xff]  ;;  %v1032_v40 = vld [vmem:[%s6762_s26 + $0x1820] sm:$0xff] }
 0x1a7   : > { %4191 = vmatpush.msrb.mxu2 %v999_v41  ;;  %4210 = vmatpush.msrb.mxu3 %v1016_v42  ;;  %v1049_v41 = vld [vmem:[%s6762_s26 + $0x18a8] sm:$0xff]  ;;  %v1064_v42 = vld [vmem:[%s6762_s26 + $0x1920] sm:$0xff] }
 0x1a8   : > { %4152 = vmatpush.msrb.mxu0 %v966_v43  ;;  %4171 = vmatpush.msrb.mxu1 %v983_v44  ;;  %v1081_v43 = vld [vmem:[%s6762_s26 + $0x19a8] sm:$0xff]  ;;  %v1031_v44 = vld [vmem:[%s6762_s26 + $0x1818] sm:$0xff] }
 0x1a9   : > { %4192 = vmatpush.msrb.mxu2 %v998_v45  ;;  %4211 = vmatpush.msrb.mxu3 %v1015_v46  ;;  %v1048_v45 = vld [vmem:[%s6762_s26 + $0x18a0] sm:$0xff]  ;;  %v1063_v46 = vld [vmem:[%s6762_s26 + $0x1918] sm:$0xff] }
 0x1aa   : > { %4153 = vmatpush.msrb.mxu0 %v965_v47  ;;  %4172 = vmatpush.msrb.mxu1 %v982_v48  ;;  %v1080_v47 = vld [vmem:[%s6762_s26 + $0x19a0] sm:$0xff]  ;;  %v1030_v48 = vld [vmem:[%s6762_s26 + $0x1810] sm:$0xff] }
 0x1ab   : > { %4193 = vmatpush.msrb.mxu2 %v997_v50  ;;  %4212 = vmatpush.msrb.mxu3 %v1014_v51  ;;  %v1062_v50 = vld [vmem:[%s6762_s26 + $0x1910] sm:$0xff]  ;;  %v1079_v51 = vld [vmem:[%s6762_s26 + $0x1998] sm:$0xff] }
 0x1ac   : > { %4154 = vmatpush.msrb.mxu0 %v964_v52  ;;  %4173 = vmatpush.msrb.mxu1 %v981_v53  ;;  %v1029_v52 = vld [vmem:[%s6762_s26 + $0x1808] sm:$0xff]  ;;  %v1046_v53 = vld [vmem:[%s6762_s26 + $0x1890] sm:$0xff] }
 0x1ad   : > { %4194 = vmatpush.msrb.mxu2 %v996_v54  ;;  %4213 = vmatpush.msrb.mxu3 %v1013_v55  ;;  %v232_v54 = vld [vmem:[%s6757_s22 + $0x68] sm:$0xff] }
 0x1ae   : > { %4155 = vmatmul.f32.vlgmr.msrb.gmra.mxu0 %v2950_v56  ;;  %4195 = vmatmul.f32.vlgmr.msrb.gmra.mxu2 %v2952_v57  ;;  %v1061_v55 = vld [vmem:[%s6762_s26 + $0x1908] sm:$0xff]  ;;  %v1078_v56 = vld [vmem:[%s6762_s26 + $0x1990] sm:$0xff]  ;;  %2955 = vst [vmem:[#allocation1 + $0x20] ss:$4 sm:$0xff] %v232_v54  ;;  %v1028_v57 = vld [vmem:[%s6762_s26 + $0x1800] sm:$0xff] }
 0x1af   : > { %4219 = vmatpush.msra.mxu0 %v1043_v58  ;;  %4259 = vmatpush.msra.mxu2 %v1075_v59  ;;  %v1045_v58 = vld [vmem:[%s6762_s26 + $0x1888] sm:$0xff]  ;;  %v1060_v59 = vld [vmem:[%s6762_s26 + $0x1900] sm:$0xff]  ;;  %v1111_v54 = vld [vmem:[%s6762_s26 + $0x1a98] sm:$0xff] }
 0x1b0   : > { %4174 = vmatpush.msrb.mxu1 %v980_v60  ;;  %4214 = vmatpush.msrb.mxu3 %v1012_v61  ;;  %v1077_v60 = vld [vmem:[%s6762_s26 + $0x1988] sm:$0xff]  ;;  %v2956_v61 = vld.sshfl [vmem:[#allocation1] sm:$0xff pattern:$0x73625140] }
 0x1b1   : > { %4175 = vmatmul.f32.vlgmr.msrb.gmra.mxu1 %v2951_v62  ;;  %4215 = vmatmul.f32.vlgmr.msrb.gmra.mxu3 %v2953_v63  ;;  %v2958_v62 = vld.sshfl [vmem:[#allocation1 + $0x10] sm:$0xff pattern:$0x73625140]  ;;  %v1107_v63 = vld [vmem:[%s6762_s26 + $0x1a78] sm:$0xff] }
 0x1b2   : > { %4220 = vmatpush.msra.mxu0 %v1042_v0  ;;  %4239 = vmatpush.msra.mxu1 %v1059_v1  ;;  %v1139_v0 = vld [vmem:[%s6762_s26 + $0x1b78] sm:$0xff]  ;;  %v1044_v1 = vld [vmem:[%s6762_s26 + $0x1880] sm:$0xff] }
 0x1b3   : > { %4260 = vmatpush.msra.mxu2 %v1074_v2  ;;  %4279 = vmatpush.msra.mxu3 %v1091_v3  ;;  %v1076_v2 = vld [vmem:[%s6762_s26 + $0x1980] sm:$0xff]  ;;  %v2957_v3 = vld.sshfl [vmem:[#allocation1 + $0x8] sm:$0xff pattern:$0x73625140] }
 0x1b4   : > { %4221 = vmatpush.msra.mxu0 %v1041_v4  ;;  %4240 = vmatpush.msra.mxu1 %v1058_v5  ;;  %v2959_v4 = vld.sshfl [vmem:[#allocation1 + $0x18] sm:$0xff pattern:$0x73625140]  ;;  %v1106_v5 = vld [vmem:[%s6762_s26 + $0x1a70] sm:$0xff] }
 0x1b5   : > { %4261 = vmatpush.msra.mxu2 %v1073_v6  ;;  %4280 = vmatpush.msra.mxu3 %v1090_v7  ;;  %v1123_v6 = vld [vmem:[%s6762_s26 + $0x1af8] sm:$0xff]  ;;  %v1138_v7 = vld [vmem:[%s6762_s26 + $0x1b70] sm:$0xff] }
 0x1b6   : > { %4222 = vmatpush.msra.mxu0 %v1040_v8  ;;  %4241 = vmatpush.msra.mxu1 %v1057_v9  ;;  %v1155_v8 = vld [vmem:[%s6762_s26 + $0x1bf8] sm:$0xff]  ;;  %v1105_v9 = vld [vmem:[%s6762_s26 + $0x1a68] sm:$0xff] }
 0x1b7   : > { %4262 = vmatpush.msra.mxu2 %v1072_v10  ;;  %4281 = vmatpush.msra.mxu3 %v1089_v11  ;;  %v1122_v10 = vld [vmem:[%s6762_s26 + $0x1af0] sm:$0xff]  ;;  %v1137_v11 = vld [vmem:[%s6762_s26 + $0x1b68] sm:$0xff] }
 0x1b8   : > { %4223 = vmatpush.msra.mxu0 %v1039_v12  ;;  %4242 = vmatpush.msra.mxu1 %v1056_v13  ;;  %v1154_v12 = vld [vmem:[%s6762_s26 + $0x1bf0] sm:$0xff]  ;;  %v1104_v13 = vld [vmem:[%s6762_s26 + $0x1a60] sm:$0xff] }
 0x1b9   : > { %4263 = vmatpush.msra.mxu2 %v1071_v14  ;;  %4282 = vmatpush.msra.mxu3 %v1088_v15  ;;  %v1121_v14 = vld [vmem:[%s6762_s26 + $0x1ae8] sm:$0xff]  ;;  %v1136_v15 = vld [vmem:[%s6762_s26 + $0x1b60] sm:$0xff] }
 0x1ba   : > { %4224 = vmatpush.msra.mxu0 %v1038_v16  ;;  %4243 = vmatpush.msra.mxu1 %v1055_v17  ;;  %v1153_v16 = vld [vmem:[%s6762_s26 + $0x1be8] sm:$0xff]  ;;  %v1103_v17 = vld [vmem:[%s6762_s26 + $0x1a58] sm:$0xff] }
 0x1bb   : > { %4264 = vmatpush.msra.mxu2 %v1070_v18  ;;  %4283 = vmatpush.msra.mxu3 %v1087_v19  ;;  %v1120_v18 = vld [vmem:[%s6762_s26 + $0x1ae0] sm:$0xff]  ;;  %v1135_v19 = vld [vmem:[%s6762_s26 + $0x1b58] sm:$0xff] }
 0x1bc   : > { %4225 = vmatpush.msra.mxu0 %v1037_v20  ;;  %4244 = vmatpush.msra.mxu1 %v1054_v21  ;;  %v1152_v20 = vld [vmem:[%s6762_s26 + $0x1be0] sm:$0xff]  ;;  %v1102_v21 = vld [vmem:[%s6762_s26 + $0x1a50] sm:$0xff] }
 0x1bd   : > { %4265 = vmatpush.msra.mxu2 %v1069_v22  ;;  %4284 = vmatpush.msra.mxu3 %v1086_v23  ;;  %v1119_v22 = vld [vmem:[%s6762_s26 + $0x1ad8] sm:$0xff]  ;;  %v1134_v23 = vld [vmem:[%s6762_s26 + $0x1b50] sm:$0xff] }
 0x1be   : > { %4226 = vmatpush.msra.mxu0 %v1036_v24  ;;  %4245 = vmatpush.msra.mxu1 %v1053_v25  ;;  %v1151_v24 = vld [vmem:[%s6762_s26 + $0x1bd8] sm:$0xff]  ;;  %v1101_v25 = vld [vmem:[%s6762_s26 + $0x1a48] sm:$0xff] }
 0x1bf   : > { %4266 = vmatpush.msra.mxu2 %v1068_v26  ;;  %4285 = vmatpush.msra.mxu3 %v1085_v27  ;;  %v1118_v26 = vld [vmem:[%s6762_s26 + $0x1ad0] sm:$0xff]  ;;  %v1133_v27 = vld [vmem:[%s6762_s26 + $0x1b48] sm:$0xff] }
 0x1c0   : > { %4227 = vmatpush.msra.mxu0 %v1035_v28  ;;  %4246 = vmatpush.msra.mxu1 %v1052_v29  ;;  %v1150_v28 = vld [vmem:[%s6762_s26 + $0x1bd0] sm:$0xff]  ;;  %v1100_v29 = vld [vmem:[%s6762_s26 + $0x1a40] sm:$0xff] }
 0x1c1   : > { %4267 = vmatpush.msra.mxu2 %v1067_v30  ;;  %4286 = vmatpush.msra.mxu3 %v1084_v31  ;;  %v1117_v30 = vld [vmem:[%s6762_s26 + $0x1ac8] sm:$0xff]  ;;  %v1132_v31 = vld [vmem:[%s6762_s26 + $0x1b40] sm:$0xff] }
 0x1c2   : > { %4228 = vmatpush.msra.mxu0 %v1034_v32  ;;  %4247 = vmatpush.msra.mxu1 %v1051_v33  ;;  %v1149_v32 = vld [vmem:[%s6762_s26 + $0x1bc8] sm:$0xff]  ;;  %v1099_v33 = vld [vmem:[%s6762_s26 + $0x1a38] sm:$0xff] }
 0x1c3   : > { %4268 = vmatpush.msra.mxu2 %v1066_v34  ;;  %4287 = vmatpush.msra.mxu3 %v1083_v35  ;;  %v1116_v34 = vld [vmem:[%s6762_s26 + $0x1ac0] sm:$0xff]  ;;  %v1131_v35 = vld [vmem:[%s6762_s26 + $0x1b38] sm:$0xff] }
 0x1c4   : > { %4229 = vmatpush.msra.mxu0 %v1033_v36  ;;  %4248 = vmatpush.msra.mxu1 %v1050_v37  ;;  %v1148_v36 = vld [vmem:[%s6762_s26 + $0x1bc0] sm:$0xff]  ;;  %v1098_v37 = vld [vmem:[%s6762_s26 + $0x1a30] sm:$0xff] }
 0x1c5   : > { %4269 = vmatpush.msra.mxu2 %v1065_v38  ;;  %4288 = vmatpush.msra.mxu3 %v1082_v39  ;;  %v1115_v38 = vld [vmem:[%s6762_s26 + $0x1ab8] sm:$0xff]  ;;  %v1130_v39 = vld [vmem:[%s6762_s26 + $0x1b30] sm:$0xff] }
 0x1c6   : > { %4230 = vmatpush.msra.mxu0 %v1032_v40  ;;  %4249 = vmatpush.msra.mxu1 %v1049_v41  ;;  %v1147_v40 = vld [vmem:[%s6762_s26 + $0x1bb8] sm:$0xff]  ;;  %v1097_v41 = vld [vmem:[%s6762_s26 + $0x1a28] sm:$0xff] }
 0x1c7   : > { %4270 = vmatpush.msra.mxu2 %v1064_v42  ;;  %4289 = vmatpush.msra.mxu3 %v1081_v43  ;;  %v1114_v42 = vld [vmem:[%s6762_s26 + $0x1ab0] sm:$0xff]  ;;  %v1129_v43 = vld [vmem:[%s6762_s26 + $0x1b28] sm:$0xff] }
 0x1c8   : > { %4231 = vmatpush.msra.mxu0 %v1031_v44  ;;  %4250 = vmatpush.msra.mxu1 %v1048_v45  ;;  %v1146_v44 = vld [vmem:[%s6762_s26 + $0x1bb0] sm:$0xff]  ;;  %v1096_v45 = vld [vmem:[%s6762_s26 + $0x1a20] sm:$0xff] }
 0x1c9   : > { %4271 = vmatpush.msra.mxu2 %v1063_v46  ;;  %4290 = vmatpush.msra.mxu3 %v1080_v47  ;;  %v1113_v46 = vld [vmem:[%s6762_s26 + $0x1aa8] sm:$0xff]  ;;  %v1128_v47 = vld [vmem:[%s6762_s26 + $0x1b20] sm:$0xff] }
 0x1ca   : > { %4232 = vmatpush.msra.mxu0 %v1030_v48  ;;  %4251 = vmatpush.msra.mxu1 %v1047_v49  ;;  %v1145_v48 = vld [vmem:[%s6762_s26 + $0x1ba8] sm:$0xff]  ;;  %v1095_v49 = vld [vmem:[%s6762_s26 + $0x1a18] sm:$0xff] }
 0x1cb   : > { %4272 = vmatpush.msra.mxu2 %v1062_v50  ;;  %4291 = vmatpush.msra.mxu3 %v1079_v51  ;;  %v1112_v50 = vld [vmem:[%s6762_s26 + $0x1aa0] sm:$0xff]  ;;  %v1127_v51 = vld [vmem:[%s6762_s26 + $0x1b18] sm:$0xff] }
 0x1cc   : > { %4233 = vmatpush.msra.mxu0 %v1029_v52  ;;  %4252 = vmatpush.msra.mxu1 %v1046_v53  ;;  %v1144_v52 = vld [vmem:[%s6762_s26 + $0x1ba0] sm:$0xff]  ;;  %v1094_v53 = vld [vmem:[%s6762_s26 + $0x1a10] sm:$0xff] }
 0x1cd   : > { %4273 = vmatpush.msra.mxu2 %v1061_v55  ;;  %4292 = vmatpush.msra.mxu3 %v1078_v56  ;;  %v1126_v55 = vld [vmem:[%s6762_s26 + $0x1b10] sm:$0xff]  ;;  %v1143_v56 = vld [vmem:[%s6762_s26 + $0x1b98] sm:$0xff] }
 0x1ce   : > { %4234 = vmatpush.msra.mxu0 %v1028_v57  ;;  %4253 = vmatpush.msra.mxu1 %v1045_v58  ;;  %v1093_v57 = vld [vmem:[%s6762_s26 + $0x1a08] sm:$0xff]  ;;  %v1110_v58 = vld [vmem:[%s6762_s26 + $0x1a90] sm:$0xff] }
 0x1cf   : > { %4274 = vmatpush.msra.mxu2 %v1060_v59  ;;  %4293 = vmatpush.msra.mxu3 %v1077_v60  ;;  %v233_v59 = vld [vmem:[%s6757_s22 + $0x70] sm:$0xff]  ;;  %v1125_v60 = vld [vmem:[%s6762_s26 + $0x1b08] sm:$0xff] }
 0x1d0   : > { %4235 = vmatmul.f32.vlgmr.msra.gmra.mxu0 %v2956_v61  ;;  %4275 = vmatmul.f32.vlgmr.msra.gmra.mxu2 %v2958_v62  ;;  %v1142_v61 = vld [vmem:[%s6762_s26 + $0x1b90] sm:$0xff]  ;;  %2964 = vst [vmem:[#allocation1] ss:$4 sm:$0xff] %v233_v59  ;;  %v1092_v62 = vld [vmem:[%s6762_s26 + $0x1a00] sm:$0xff]  ;;  %v1175_v59 = vld [vmem:[%s6762_s26 + $0x1c98] sm:$0xff] }
 0x1d1   : > { %4299 = vmatpush.msrb.mxu0 %v1107_v63  ;;  %4339 = vmatpush.msrb.mxu2 %v1139_v0  ;;  %v1109_v63 = vld [vmem:[%s6762_s26 + $0x1a88] sm:$0xff]  ;;  %v1124_v0 = vld [vmem:[%s6762_s26 + $0x1b00] sm:$0xff] }
 0x1d2   : > { %4254 = vmatpush.msra.mxu1 %v1044_v1  ;;  %4294 = vmatpush.msra.mxu3 %v1076_v2  ;;  %v1141_v1 = vld [vmem:[%s6762_s26 + $0x1b88] sm:$0xff]  ;;  %v2960_v2 = vld.sshfl [vmem:[#allocation1 + $0x20] sm:$0xff pattern:$0x73625140] }
 0x1d3   : > { %4255 = vmatmul.f32.vlgmr.msra.gmra.mxu1 %v2957_v3  ;;  %4295 = vmatmul.f32.vlgmr.msra.gmra.mxu3 %v2959_v4  ;;  %v2962_v3 = vld.sshfl [vmem:[#allocation1 + $0x30] sm:$0xff pattern:$0x73625140]  ;;  %v1171_v4 = vld [vmem:[%s6762_s26 + $0x1c78] sm:$0xff] }
 0x1d4   : > { %4300 = vmatpush.msrb.mxu0 %v1106_v5  ;;  %4319 = vmatpush.msrb.mxu1 %v1123_v6  ;;  %v1203_v5 = vld [vmem:[%s6762_s26 + $0x1d78] sm:$0xff]  ;;  %v1108_v6 = vld [vmem:[%s6762_s26 + $0x1a80] sm:$0xff] }
 0x1d5   : > { %4340 = vmatpush.msrb.mxu2 %v1138_v7  ;;  %4359 = vmatpush.msrb.mxu3 %v1155_v8  ;;  %v1140_v7 = vld [vmem:[%s6762_s26 + $0x1b80] sm:$0xff]  ;;  %v2961_v8 = vld.sshfl [vmem:[#allocation1 + $0x28] sm:$0xff pattern:$0x73625140] }
 0x1d6   : > { %4301 = vmatpush.msrb.mxu0 %v1105_v9  ;;  %4320 = vmatpush.msrb.mxu1 %v1122_v10  ;;  %v2963_v9 = vld.sshfl [vmem:[#allocation1 + $0x38] sm:$0xff pattern:$0x73625140]  ;;  %v1170_v10 = vld [vmem:[%s6762_s26 + $0x1c70] sm:$0xff] }
 0x1d7   : > { %4341 = vmatpush.msrb.mxu2 %v1137_v11  ;;  %4360 = vmatpush.msrb.mxu3 %v1154_v12  ;;  %v1187_v11 = vld [vmem:[%s6762_s26 + $0x1cf8] sm:$0xff]  ;;  %v1202_v12 = vld [vmem:[%s6762_s26 + $0x1d70] sm:$0xff] }
 0x1d8   : > { %4302 = vmatpush.msrb.mxu0 %v1104_v13  ;;  %4321 = vmatpush.msrb.mxu1 %v1121_v14  ;;  %v1219_v13 = vld [vmem:[%s6762_s26 + $0x1df8] sm:$0xff]  ;;  %v1169_v14 = vld [vmem:[%s6762_s26 + $0x1c68] sm:$0xff] }
 0x1d9   : > { %4342 = vmatpush.msrb.mxu2 %v1136_v15  ;;  %4361 = vmatpush.msrb.mxu3 %v1153_v16  ;;  %v1186_v15 = vld [vmem:[%s6762_s26 + $0x1cf0] sm:$0xff]  ;;  %v1201_v16 = vld [vmem:[%s6762_s26 + $0x1d68] sm:$0xff] }
 0x1da   : > { %4303 = vmatpush.msrb.mxu0 %v1103_v17  ;;  %4322 = vmatpush.msrb.mxu1 %v1120_v18  ;;  %v1218_v17 = vld [vmem:[%s6762_s26 + $0x1df0] sm:$0xff]  ;;  %v1168_v18 = vld [vmem:[%s6762_s26 + $0x1c60] sm:$0xff] }
 0x1db   : > { %4343 = vmatpush.msrb.mxu2 %v1135_v19  ;;  %4362 = vmatpush.msrb.mxu3 %v1152_v20  ;;  %v1185_v19 = vld [vmem:[%s6762_s26 + $0x1ce8] sm:$0xff]  ;;  %v1200_v20 = vld [vmem:[%s6762_s26 + $0x1d60] sm:$0xff] }
 0x1dc   : > { %4304 = vmatpush.msrb.mxu0 %v1102_v21  ;;  %4323 = vmatpush.msrb.mxu1 %v1119_v22  ;;  %v1217_v21 = vld [vmem:[%s6762_s26 + $0x1de8] sm:$0xff]  ;;  %v1167_v22 = vld [vmem:[%s6762_s26 + $0x1c58] sm:$0xff] }
 0x1dd   : > { %4344 = vmatpush.msrb.mxu2 %v1134_v23  ;;  %4363 = vmatpush.msrb.mxu3 %v1151_v24  ;;  %v1184_v23 = vld [vmem:[%s6762_s26 + $0x1ce0] sm:$0xff]  ;;  %v1199_v24 = vld [vmem:[%s6762_s26 + $0x1d58] sm:$0xff] }
 0x1de   : > { %4305 = vmatpush.msrb.mxu0 %v1101_v25  ;;  %4324 = vmatpush.msrb.mxu1 %v1118_v26  ;;  %v1216_v25 = vld [vmem:[%s6762_s26 + $0x1de0] sm:$0xff]  ;;  %v1166_v26 = vld [vmem:[%s6762_s26 + $0x1c50] sm:$0xff] }
 0x1df   : > { %4345 = vmatpush.msrb.mxu2 %v1133_v27  ;;  %4364 = vmatpush.msrb.mxu3 %v1150_v28  ;;  %v1183_v27 = vld [vmem:[%s6762_s26 + $0x1cd8] sm:$0xff]  ;;  %v1198_v28 = vld [vmem:[%s6762_s26 + $0x1d50] sm:$0xff] }
 0x1e0   : > { %4306 = vmatpush.msrb.mxu0 %v1100_v29  ;;  %4325 = vmatpush.msrb.mxu1 %v1117_v30  ;;  %v1215_v29 = vld [vmem:[%s6762_s26 + $0x1dd8] sm:$0xff]  ;;  %v1165_v30 = vld [vmem:[%s6762_s26 + $0x1c48] sm:$0xff] }
 0x1e1   : > { %4346 = vmatpush.msrb.mxu2 %v1132_v31  ;;  %4365 = vmatpush.msrb.mxu3 %v1149_v32  ;;  %v1182_v31 = vld [vmem:[%s6762_s26 + $0x1cd0] sm:$0xff]  ;;  %v1197_v32 = vld [vmem:[%s6762_s26 + $0x1d48] sm:$0xff] }
 0x1e2   : > { %4307 = vmatpush.msrb.mxu0 %v1099_v33  ;;  %4326 = vmatpush.msrb.mxu1 %v1116_v34  ;;  %v1214_v33 = vld [vmem:[%s6762_s26 + $0x1dd0] sm:$0xff]  ;;  %v1164_v34 = vld [vmem:[%s6762_s26 + $0x1c40] sm:$0xff] }
 0x1e3   : > { %4347 = vmatpush.msrb.mxu2 %v1131_v35  ;;  %4366 = vmatpush.msrb.mxu3 %v1148_v36  ;;  %v1181_v35 = vld [vmem:[%s6762_s26 + $0x1cc8] sm:$0xff]  ;;  %v1196_v36 = vld [vmem:[%s6762_s26 + $0x1d40] sm:$0xff] }
 0x1e4   : > { %4308 = vmatpush.msrb.mxu0 %v1098_v37  ;;  %4327 = vmatpush.msrb.mxu1 %v1115_v38  ;;  %v1213_v37 = vld [vmem:[%s6762_s26 + $0x1dc8] sm:$0xff]  ;;  %v1163_v38 = vld [vmem:[%s6762_s26 + $0x1c38] sm:$0xff] }
 0x1e5   : > { %4348 = vmatpush.msrb.mxu2 %v1130_v39  ;;  %4367 = vmatpush.msrb.mxu3 %v1147_v40  ;;  %v1180_v39 = vld [vmem:[%s6762_s26 + $0x1cc0] sm:$0xff]  ;;  %v1195_v40 = vld [vmem:[%s6762_s26 + $0x1d38] sm:$0xff] }
 0x1e6   : > { %4309 = vmatpush.msrb.mxu0 %v1097_v41  ;;  %4328 = vmatpush.msrb.mxu1 %v1114_v42  ;;  %v1212_v41 = vld [vmem:[%s6762_s26 + $0x1dc0] sm:$0xff]  ;;  %v1162_v42 = vld [vmem:[%s6762_s26 + $0x1c30] sm:$0xff] }
 0x1e7   : > { %4349 = vmatpush.msrb.mxu2 %v1129_v43  ;;  %4368 = vmatpush.msrb.mxu3 %v1146_v44  ;;  %v1179_v43 = vld [vmem:[%s6762_s26 + $0x1cb8] sm:$0xff]  ;;  %v1194_v44 = vld [vmem:[%s6762_s26 + $0x1d30] sm:$0xff] }
 0x1e8   : > { %4310 = vmatpush.msrb.mxu0 %v1096_v45  ;;  %4329 = vmatpush.msrb.mxu1 %v1113_v46  ;;  %v1211_v45 = vld [vmem:[%s6762_s26 + $0x1db8] sm:$0xff]  ;;  %v1161_v46 = vld [vmem:[%s6762_s26 + $0x1c28] sm:$0xff] }
 0x1e9   : > { %4350 = vmatpush.msrb.mxu2 %v1128_v47  ;;  %4369 = vmatpush.msrb.mxu3 %v1145_v48  ;;  %v1178_v47 = vld [vmem:[%s6762_s26 + $0x1cb0] sm:$0xff]  ;;  %v1193_v48 = vld [vmem:[%s6762_s26 + $0x1d28] sm:$0xff] }
 0x1ea   : > { %4311 = vmatpush.msrb.mxu0 %v1095_v49  ;;  %4330 = vmatpush.msrb.mxu1 %v1112_v50  ;;  %v1210_v49 = vld [vmem:[%s6762_s26 + $0x1db0] sm:$0xff]  ;;  %v1160_v50 = vld [vmem:[%s6762_s26 + $0x1c20] sm:$0xff] }
 0x1eb   : > { %4351 = vmatpush.msrb.mxu2 %v1127_v51  ;;  %4370 = vmatpush.msrb.mxu3 %v1144_v52  ;;  %v1177_v51 = vld [vmem:[%s6762_s26 + $0x1ca8] sm:$0xff]  ;;  %v1192_v52 = vld [vmem:[%s6762_s26 + $0x1d20] sm:$0xff] }
 0x1ec   : > { %4312 = vmatpush.msrb.mxu0 %v1094_v53  ;;  %4331 = vmatpush.msrb.mxu1 %v1111_v54  ;;  %v1209_v53 = vld [vmem:[%s6762_s26 + $0x1da8] sm:$0xff]  ;;  %v1159_v54 = vld [vmem:[%s6762_s26 + $0x1c18] sm:$0xff] }
 0x1ed   : > { %4352 = vmatpush.msrb.mxu2 %v1126_v55  ;;  %4371 = vmatpush.msrb.mxu3 %v1143_v56  ;;  %v1176_v55 = vld [vmem:[%s6762_s26 + $0x1ca0] sm:$0xff]  ;;  %v1191_v56 = vld [vmem:[%s6762_s26 + $0x1d18] sm:$0xff] }
 0x1ee   : > { %4313 = vmatpush.msrb.mxu0 %v1093_v57  ;;  %4332 = vmatpush.msrb.mxu1 %v1110_v58  ;;  %v1208_v57 = vld [vmem:[%s6762_s26 + $0x1da0] sm:$0xff]  ;;  %v1158_v58 = vld [vmem:[%s6762_s26 + $0x1c10] sm:$0xff] }
 0x1ef   : > { %4353 = vmatpush.msrb.mxu2 %v1125_v60  ;;  %4372 = vmatpush.msrb.mxu3 %v1142_v61  ;;  %v1190_v60 = vld [vmem:[%s6762_s26 + $0x1d10] sm:$0xff]  ;;  %v1207_v61 = vld [vmem:[%s6762_s26 + $0x1d98] sm:$0xff] }
 0x1f0   : > { %4314 = vmatpush.msrb.mxu0 %v1092_v62  ;;  %4333 = vmatpush.msrb.mxu1 %v1109_v63  ;;  %v1157_v62 = vld [vmem:[%s6762_s26 + $0x1c08] sm:$0xff]  ;;  %v1174_v63 = vld [vmem:[%s6762_s26 + $0x1c90] sm:$0xff] }
 0x1f1   : > { %4354 = vmatpush.msrb.mxu2 %v1124_v0  ;;  %4373 = vmatpush.msrb.mxu3 %v1141_v1  ;;  %v234_v0 = vld [vmem:[%s6757_s22 + $0x78] sm:$0xff]  ;;  %v1189_v1 = vld [vmem:[%s6762_s26 + $0x1d08] sm:$0xff] }
 0x1f2   : > { %4315 = vmatmul.f32.vlgmr.msrb.gmra.mxu0 %v2960_v2  ;;  %4355 = vmatmul.f32.vlgmr.msrb.gmra.mxu2 %v2962_v3  ;;  %v1206_v2 = vld [vmem:[%s6762_s26 + $0x1d90] sm:$0xff]  ;;  %2965 = vst [vmem:[#allocation1 + $0x20] ss:$4 sm:$0xff] %v234_v0  ;;  %v1156_v3 = vld [vmem:[%s6762_s26 + $0x1c00] sm:$0xff]  ;;  %v1239_v0 = vld [vmem:[%s6762_s26 + $0x1e98] sm:$0xff] }
 0x1f3   : > { %4379 = vmatpush.msra.mxu0 %v1171_v4  ;;  %4419 = vmatpush.msra.mxu2 %v1203_v5  ;;  %v1173_v4 = vld [vmem:[%s6762_s26 + $0x1c88] sm:$0xff]  ;;  %v1188_v5 = vld [vmem:[%s6762_s26 + $0x1d00] sm:$0xff] }
 0x1f4   : > { %4334 = vmatpush.msrb.mxu1 %v1108_v6  ;;  %4374 = vmatpush.msrb.mxu3 %v1140_v7  ;;  %v1205_v6 = vld [vmem:[%s6762_s26 + $0x1d88] sm:$0xff]  ;;  %v2966_v7 = vld.sshfl [vmem:[#allocation1] sm:$0xff pattern:$0x73625140] }
 0x1f5   : > { %4335 = vmatmul.f32.vlgmr.msrb.gmra.mxu1 %v2961_v8  ;;  %4375 = vmatmul.f32.vlgmr.msrb.gmra.mxu3 %v2963_v9  ;;  %v2968_v8 = vld.sshfl [vmem:[#allocation1 + $0x10] sm:$0xff pattern:$0x73625140]  ;;  %v1235_v9 = vld [vmem:[%s6762_s26 + $0x1e78] sm:$0xff] }
 0x1f6   : > { %4380 = vmatpush.msra.mxu0 %v1170_v10  ;;  %4399 = vmatpush.msra.mxu1 %v1187_v11  ;;  %v1267_v10 = vld [vmem:[%s6762_s26 + $0x1f78] sm:$0xff]  ;;  %v1172_v11 = vld [vmem:[%s6762_s26 + $0x1c80] sm:$0xff] }
 0x1f7   : > { %4420 = vmatpush.msra.mxu2 %v1202_v12  ;;  %4439 = vmatpush.msra.mxu3 %v1219_v13  ;;  %v1204_v12 = vld [vmem:[%s6762_s26 + $0x1d80] sm:$0xff]  ;;  %v2967_v13 = vld.sshfl [vmem:[#allocation1 + $0x8] sm:$0xff pattern:$0x73625140] }
 0x1f8   : > { %4381 = vmatpush.msra.mxu0 %v1169_v14  ;;  %4400 = vmatpush.msra.mxu1 %v1186_v15  ;;  %v2969_v14 = vld.sshfl [vmem:[#allocation1 + $0x18] sm:$0xff pattern:$0x73625140]  ;;  %v1234_v15 = vld [vmem:[%s6762_s26 + $0x1e70] sm:$0xff] }
 0x1f9   : > { %4421 = vmatpush.msra.mxu2 %v1201_v16  ;;  %4440 = vmatpush.msra.mxu3 %v1218_v17  ;;  %v1251_v16 = vld [vmem:[%s6762_s26 + $0x1ef8] sm:$0xff]  ;;  %v1266_v17 = vld [vmem:[%s6762_s26 + $0x1f70] sm:$0xff] }
 0x1fa   : > { %4382 = vmatpush.msra.mxu0 %v1168_v18  ;;  %4401 = vmatpush.msra.mxu1 %v1185_v19  ;;  %v1283_v18 = vld [vmem:[%s6762_s26 + $0x1ff8] sm:$0xff]  ;;  %v1233_v19 = vld [vmem:[%s6762_s26 + $0x1e68] sm:$0xff] }
 0x1fb   : > { %4422 = vmatpush.msra.mxu2 %v1200_v20  ;;  %4441 = vmatpush.msra.mxu3 %v1217_v21  ;;  %v1250_v20 = vld [vmem:[%s6762_s26 + $0x1ef0] sm:$0xff]  ;;  %v1265_v21 = vld [vmem:[%s6762_s26 + $0x1f68] sm:$0xff] }
 0x1fc   : > { %4383 = vmatpush.msra.mxu0 %v1167_v22  ;;  %4402 = vmatpush.msra.mxu1 %v1184_v23  ;;  %v1282_v22 = vld [vmem:[%s6762_s26 + $0x1ff0] sm:$0xff]  ;;  %v1232_v23 = vld [vmem:[%s6762_s26 + $0x1e60] sm:$0xff] }
 0x1fd   : > { %4423 = vmatpush.msra.mxu2 %v1199_v24  ;;  %4442 = vmatpush.msra.mxu3 %v1216_v25  ;;  %v1249_v24 = vld [vmem:[%s6762_s26 + $0x1ee8] sm:$0xff]  ;;  %v1264_v25 = vld [vmem:[%s6762_s26 + $0x1f60] sm:$0xff] }
 0x1fe   : > { %4384 = vmatpush.msra.mxu0 %v1166_v26  ;;  %4403 = vmatpush.msra.mxu1 %v1183_v27  ;;  %v1281_v26 = vld [vmem:[%s6762_s26 + $0x1fe8] sm:$0xff]  ;;  %v1231_v27 = vld [vmem:[%s6762_s26 + $0x1e58] sm:$0xff] }
 0x1ff   : > { %4424 = vmatpush.msra.mxu2 %v1198_v28  ;;  %4443 = vmatpush.msra.mxu3 %v1215_v29  ;;  %v1248_v28 = vld [vmem:[%s6762_s26 + $0x1ee0] sm:$0xff]  ;;  %v1263_v29 = vld [vmem:[%s6762_s26 + $0x1f58] sm:$0xff] }
 0x200   : > { %4385 = vmatpush.msra.mxu0 %v1165_v30  ;;  %4404 = vmatpush.msra.mxu1 %v1182_v31  ;;  %v1280_v30 = vld [vmem:[%s6762_s26 + $0x1fe0] sm:$0xff]  ;;  %v1230_v31 = vld [vmem:[%s6762_s26 + $0x1e50] sm:$0xff] }
 0x201   : > { %4425 = vmatpush.msra.mxu2 %v1197_v32  ;;  %4444 = vmatpush.msra.mxu3 %v1214_v33  ;;  %v1247_v32 = vld [vmem:[%s6762_s26 + $0x1ed8] sm:$0xff]  ;;  %v1262_v33 = vld [vmem:[%s6762_s26 + $0x1f50] sm:$0xff] }
 0x202   : > { %4386 = vmatpush.msra.mxu0 %v1164_v34  ;;  %4405 = vmatpush.msra.mxu1 %v1181_v35  ;;  %v1279_v34 = vld [vmem:[%s6762_s26 + $0x1fd8] sm:$0xff]  ;;  %v1229_v35 = vld [vmem:[%s6762_s26 + $0x1e48] sm:$0xff] }
 0x203   : > { %4426 = vmatpush.msra.mxu2 %v1196_v36  ;;  %4445 = vmatpush.msra.mxu3 %v1213_v37  ;;  %v1246_v36 = vld [vmem:[%s6762_s26 + $0x1ed0] sm:$0xff]  ;;  %v1261_v37 = vld [vmem:[%s6762_s26 + $0x1f48] sm:$0xff] }
 0x204   : > { %4387 = vmatpush.msra.mxu0 %v1163_v38  ;;  %4406 = vmatpush.msra.mxu1 %v1180_v39  ;;  %v1278_v38 = vld [vmem:[%s6762_s26 + $0x1fd0] sm:$0xff]  ;;  %v1228_v39 = vld [vmem:[%s6762_s26 + $0x1e40] sm:$0xff] }
 0x205   : > { %4427 = vmatpush.msra.mxu2 %v1195_v40  ;;  %4446 = vmatpush.msra.mxu3 %v1212_v41  ;;  %v1245_v40 = vld [vmem:[%s6762_s26 + $0x1ec8] sm:$0xff]  ;;  %v1260_v41 = vld [vmem:[%s6762_s26 + $0x1f40] sm:$0xff] }
 0x206   : > { %4388 = vmatpush.msra.mxu0 %v1162_v42  ;;  %4407 = vmatpush.msra.mxu1 %v1179_v43  ;;  %v1277_v42 = vld [vmem:[%s6762_s26 + $0x1fc8] sm:$0xff]  ;;  %v1227_v43 = vld [vmem:[%s6762_s26 + $0x1e38] sm:$0xff] }
 0x207   : > { %4428 = vmatpush.msra.mxu2 %v1194_v44  ;;  %4447 = vmatpush.msra.mxu3 %v1211_v45  ;;  %v1244_v44 = vld [vmem:[%s6762_s26 + $0x1ec0] sm:$0xff]  ;;  %v1259_v45 = vld [vmem:[%s6762_s26 + $0x1f38] sm:$0xff] }
 0x208   : > { %4389 = vmatpush.msra.mxu0 %v1161_v46  ;;  %4408 = vmatpush.msra.mxu1 %v1178_v47  ;;  %v1276_v46 = vld [vmem:[%s6762_s26 + $0x1fc0] sm:$0xff]  ;;  %v1226_v47 = vld [vmem:[%s6762_s26 + $0x1e30] sm:$0xff] }
 0x209   : > { %4429 = vmatpush.msra.mxu2 %v1193_v48  ;;  %4448 = vmatpush.msra.mxu3 %v1210_v49  ;;  %v1243_v48 = vld [vmem:[%s6762_s26 + $0x1eb8] sm:$0xff]  ;;  %v1258_v49 = vld [vmem:[%s6762_s26 + $0x1f30] sm:$0xff] }
 0x20a   : > { %4390 = vmatpush.msra.mxu0 %v1160_v50  ;;  %4409 = vmatpush.msra.mxu1 %v1177_v51  ;;  %v1275_v50 = vld [vmem:[%s6762_s26 + $0x1fb8] sm:$0xff]  ;;  %v1225_v51 = vld [vmem:[%s6762_s26 + $0x1e28] sm:$0xff] }
 0x20b   : > { %4430 = vmatpush.msra.mxu2 %v1192_v52  ;;  %4449 = vmatpush.msra.mxu3 %v1209_v53  ;;  %v1242_v52 = vld [vmem:[%s6762_s26 + $0x1eb0] sm:$0xff]  ;;  %v1257_v53 = vld [vmem:[%s6762_s26 + $0x1f28] sm:$0xff] }
 0x20c   : > { %4391 = vmatpush.msra.mxu0 %v1159_v54  ;;  %4410 = vmatpush.msra.mxu1 %v1176_v55  ;;  %v1274_v54 = vld [vmem:[%s6762_s26 + $0x1fb0] sm:$0xff]  ;;  %v1224_v55 = vld [vmem:[%s6762_s26 + $0x1e20] sm:$0xff] }
 0x20d   : > { %4431 = vmatpush.msra.mxu2 %v1191_v56  ;;  %4450 = vmatpush.msra.mxu3 %v1208_v57  ;;  %v1241_v56 = vld [vmem:[%s6762_s26 + $0x1ea8] sm:$0xff]  ;;  %v1256_v57 = vld [vmem:[%s6762_s26 + $0x1f20] sm:$0xff] }
 0x20e   : > { %4392 = vmatpush.msra.mxu0 %v1158_v58  ;;  %4411 = vmatpush.msra.mxu1 %v1175_v59  ;;  %v1273_v58 = vld [vmem:[%s6762_s26 + $0x1fa8] sm:$0xff]  ;;  %v1223_v59 = vld [vmem:[%s6762_s26 + $0x1e18] sm:$0xff] }
 0x20f   : > { %4432 = vmatpush.msra.mxu2 %v1190_v60  ;;  %4451 = vmatpush.msra.mxu3 %v1207_v61  ;;  %v1240_v60 = vld [vmem:[%s6762_s26 + $0x1ea0] sm:$0xff]  ;;  %v1255_v61 = vld [vmem:[%s6762_s26 + $0x1f18] sm:$0xff] }
 0x210   : > { %4393 = vmatpush.msra.mxu0 %v1157_v62  ;;  %4412 = vmatpush.msra.mxu1 %v1174_v63  ;;  %v1272_v62 = vld [vmem:[%s6762_s26 + $0x1fa0] sm:$0xff]  ;;  %v1222_v63 = vld [vmem:[%s6762_s26 + $0x1e10] sm:$0xff] }
 0x211   : > { %4433 = vmatpush.msra.mxu2 %v1189_v1  ;;  %4452 = vmatpush.msra.mxu3 %v1206_v2  ;;  %v1254_v1 = vld [vmem:[%s6762_s26 + $0x1f10] sm:$0xff]  ;;  %v1271_v2 = vld [vmem:[%s6762_s26 + $0x1f98] sm:$0xff] }
 0x212   : > { %4394 = vmatpush.msra.mxu0 %v1156_v3  ;;  %4413 = vmatpush.msra.mxu1 %v1173_v4  ;;  %v1221_v3 = vld [vmem:[%s6762_s26 + $0x1e08] sm:$0xff]  ;;  %v1238_v4 = vld [vmem:[%s6762_s26 + $0x1e90] sm:$0xff] }
 0x213   : > { %4434 = vmatpush.msra.mxu2 %v1188_v5  ;;  %4453 = vmatpush.msra.mxu3 %v1205_v6  ;;  %v235_v5 = vld [vmem:[%s6757_s22 + $0x80] sm:$0xff]  ;;  %v1253_v6 = vld [vmem:[%s6762_s26 + $0x1f08] sm:$0xff] }
 0x214   : > { %4395 = vmatmul.f32.vlgmr.msra.gmra.mxu0 %v2966_v7  ;;  %4435 = vmatmul.f32.vlgmr.msra.gmra.mxu2 %v2968_v8  ;;  %v1270_v7 = vld [vmem:[%s6762_s26 + $0x1f90] sm:$0xff]  ;;  %2974 = vst [vmem:[#allocation1] ss:$4 sm:$0xff] %v235_v5  ;;  %v1220_v8 = vld [vmem:[%s6762_s26 + $0x1e00] sm:$0xff]  ;;  %v1303_v5 = vld [vmem:[%s6762_s26 + $0x2098] sm:$0xff] }
 0x215   : > { %4459 = vmatpush.msrb.mxu0 %v1235_v9  ;;  %4499 = vmatpush.msrb.mxu2 %v1267_v10  ;;  %v1237_v9 = vld [vmem:[%s6762_s26 + $0x1e88] sm:$0xff]  ;;  %v1252_v10 = vld [vmem:[%s6762_s26 + $0x1f00] sm:$0xff] }
 0x216   : > { %4414 = vmatpush.msra.mxu1 %v1172_v11  ;;  %4454 = vmatpush.msra.mxu3 %v1204_v12  ;;  %v1269_v11 = vld [vmem:[%s6762_s26 + $0x1f88] sm:$0xff]  ;;  %v2970_v12 = vld.sshfl [vmem:[#allocation1 + $0x20] sm:$0xff pattern:$0x73625140] }
 0x217   : > { %4415 = vmatmul.f32.vlgmr.msra.gmra.mxu1 %v2967_v13  ;;  %4455 = vmatmul.f32.vlgmr.msra.gmra.mxu3 %v2969_v14  ;;  %v2972_v13 = vld.sshfl [vmem:[#allocation1 + $0x30] sm:$0xff pattern:$0x73625140]  ;;  %v1299_v14 = vld [vmem:[%s6762_s26 + $0x2078] sm:$0xff] }
 0x218   : > { %4460 = vmatpush.msrb.mxu0 %v1234_v15  ;;  %4479 = vmatpush.msrb.mxu1 %v1251_v16  ;;  %v1331_v15 = vld [vmem:[%s6762_s26 + $0x2178] sm:$0xff]  ;;  %v1236_v16 = vld [vmem:[%s6762_s26 + $0x1e80] sm:$0xff] }
 0x219   : > { %4500 = vmatpush.msrb.mxu2 %v1266_v17  ;;  %4519 = vmatpush.msrb.mxu3 %v1283_v18  ;;  %v1268_v17 = vld [vmem:[%s6762_s26 + $0x1f80] sm:$0xff]  ;;  %v2971_v18 = vld.sshfl [vmem:[#allocation1 + $0x28] sm:$0xff pattern:$0x73625140] }
 0x21a   : > { %4461 = vmatpush.msrb.mxu0 %v1233_v19  ;;  %4480 = vmatpush.msrb.mxu1 %v1250_v20  ;;  %v2973_v19 = vld.sshfl [vmem:[#allocation1 + $0x38] sm:$0xff pattern:$0x73625140]  ;;  %v1298_v20 = vld [vmem:[%s6762_s26 + $0x2070] sm:$0xff] }
 0x21b   : > { %4501 = vmatpush.msrb.mxu2 %v1265_v21  ;;  %4520 = vmatpush.msrb.mxu3 %v1282_v22  ;;  %v1315_v21 = vld [vmem:[%s6762_s26 + $0x20f8] sm:$0xff]  ;;  %v1330_v22 = vld [vmem:[%s6762_s26 + $0x2170] sm:$0xff] }
 0x21c   : > { %4462 = vmatpush.msrb.mxu0 %v1232_v23  ;;  %4481 = vmatpush.msrb.mxu1 %v1249_v24  ;;  %v1347_v23 = vld [vmem:[%s6762_s26 + $0x21f8] sm:$0xff]  ;;  %v1297_v24 = vld [vmem:[%s6762_s26 + $0x2068] sm:$0xff] }
 0x21d   : > { %4502 = vmatpush.msrb.mxu2 %v1264_v25  ;;  %4521 = vmatpush.msrb.mxu3 %v1281_v26  ;;  %v1314_v25 = vld [vmem:[%s6762_s26 + $0x20f0] sm:$0xff]  ;;  %v1329_v26 = vld [vmem:[%s6762_s26 + $0x2168] sm:$0xff] }
 0x21e   : > { %4463 = vmatpush.msrb.mxu0 %v1231_v27  ;;  %4482 = vmatpush.msrb.mxu1 %v1248_v28  ;;  %v1346_v27 = vld [vmem:[%s6762_s26 + $0x21f0] sm:$0xff]  ;;  %v1296_v28 = vld [vmem:[%s6762_s26 + $0x2060] sm:$0xff] }
 0x21f   : > { %4503 = vmatpush.msrb.mxu2 %v1263_v29  ;;  %4522 = vmatpush.msrb.mxu3 %v1280_v30  ;;  %v1313_v29 = vld [vmem:[%s6762_s26 + $0x20e8] sm:$0xff]  ;;  %v1328_v30 = vld [vmem:[%s6762_s26 + $0x2160] sm:$0xff] }
 0x220   : > { %4464 = vmatpush.msrb.mxu0 %v1230_v31  ;;  %4483 = vmatpush.msrb.mxu1 %v1247_v32  ;;  %v1345_v31 = vld [vmem:[%s6762_s26 + $0x21e8] sm:$0xff]  ;;  %v1295_v32 = vld [vmem:[%s6762_s26 + $0x2058] sm:$0xff] }
 0x221   : > { %4504 = vmatpush.msrb.mxu2 %v1262_v33  ;;  %4523 = vmatpush.msrb.mxu3 %v1279_v34  ;;  %v1312_v33 = vld [vmem:[%s6762_s26 + $0x20e0] sm:$0xff]  ;;  %v1327_v34 = vld [vmem:[%s6762_s26 + $0x2158] sm:$0xff] }
 0x222   : > { %4465 = vmatpush.msrb.mxu0 %v1229_v35  ;;  %4484 = vmatpush.msrb.mxu1 %v1246_v36  ;;  %v1344_v35 = vld [vmem:[%s6762_s26 + $0x21e0] sm:$0xff]  ;;  %v1294_v36 = vld [vmem:[%s6762_s26 + $0x2050] sm:$0xff] }
 0x223   : > { %4505 = vmatpush.msrb.mxu2 %v1261_v37  ;;  %4524 = vmatpush.msrb.mxu3 %v1278_v38  ;;  %v1311_v37 = vld [vmem:[%s6762_s26 + $0x20d8] sm:$0xff]  ;;  %v1326_v38 = vld [vmem:[%s6762_s26 + $0x2150] sm:$0xff] }
 0x224   : > { %4466 = vmatpush.msrb.mxu0 %v1228_v39  ;;  %4485 = vmatpush.msrb.mxu1 %v1245_v40  ;;  %v1343_v39 = vld [vmem:[%s6762_s26 + $0x21d8] sm:$0xff]  ;;  %v1293_v40 = vld [vmem:[%s6762_s26 + $0x2048] sm:$0xff] }
 0x225   : > { %4506 = vmatpush.msrb.mxu2 %v1260_v41  ;;  %4525 = vmatpush.msrb.mxu3 %v1277_v42  ;;  %v1310_v41 = vld [vmem:[%s6762_s26 + $0x20d0] sm:$0xff]  ;;  %v1325_v42 = vld [vmem:[%s6762_s26 + $0x2148] sm:$0xff] }
 0x226   : > { %4467 = vmatpush.msrb.mxu0 %v1227_v43  ;;  %4486 = vmatpush.msrb.mxu1 %v1244_v44  ;;  %v1342_v43 = vld [vmem:[%s6762_s26 + $0x21d0] sm:$0xff]  ;;  %v1292_v44 = vld [vmem:[%s6762_s26 + $0x2040] sm:$0xff] }
 0x227   : > { %4507 = vmatpush.msrb.mxu2 %v1259_v45  ;;  %4526 = vmatpush.msrb.mxu3 %v1276_v46  ;;  %v1309_v45 = vld [vmem:[%s6762_s26 + $0x20c8] sm:$0xff]  ;;  %v1324_v46 = vld [vmem:[%s6762_s26 + $0x2140] sm:$0xff] }
 0x228   : > { %4468 = vmatpush.msrb.mxu0 %v1226_v47  ;;  %4487 = vmatpush.msrb.mxu1 %v1243_v48  ;;  %v1341_v47 = vld [vmem:[%s6762_s26 + $0x21c8] sm:$0xff]  ;;  %v1291_v48 = vld [vmem:[%s6762_s26 + $0x2038] sm:$0xff] }
 0x229   : > { %4508 = vmatpush.msrb.mxu2 %v1258_v49  ;;  %4527 = vmatpush.msrb.mxu3 %v1275_v50  ;;  %v1308_v49 = vld [vmem:[%s6762_s26 + $0x20c0] sm:$0xff]  ;;  %v1323_v50 = vld [vmem:[%s6762_s26 + $0x2138] sm:$0xff] }
 0x22a   : > { %4469 = vmatpush.msrb.mxu0 %v1225_v51  ;;  %4488 = vmatpush.msrb.mxu1 %v1242_v52  ;;  %v1340_v51 = vld [vmem:[%s6762_s26 + $0x21c0] sm:$0xff]  ;;  %v1290_v52 = vld [vmem:[%s6762_s26 + $0x2030] sm:$0xff] }
 0x22b   : > { %4509 = vmatpush.msrb.mxu2 %v1257_v53  ;;  %4528 = vmatpush.msrb.mxu3 %v1274_v54  ;;  %v1307_v53 = vld [vmem:[%s6762_s26 + $0x20b8] sm:$0xff]  ;;  %v1322_v54 = vld [vmem:[%s6762_s26 + $0x2130] sm:$0xff] }
 0x22c   : > { %4470 = vmatpush.msrb.mxu0 %v1224_v55  ;;  %4489 = vmatpush.msrb.mxu1 %v1241_v56  ;;  %v1339_v55 = vld [vmem:[%s6762_s26 + $0x21b8] sm:$0xff]  ;;  %v1289_v56 = vld [vmem:[%s6762_s26 + $0x2028] sm:$0xff] }
 0x22d   : > { %4510 = vmatpush.msrb.mxu2 %v1256_v57  ;;  %4529 = vmatpush.msrb.mxu3 %v1273_v58  ;;  %v1306_v57 = vld [vmem:[%s6762_s26 + $0x20b0] sm:$0xff]  ;;  %v1321_v58 = vld [vmem:[%s6762_s26 + $0x2128] sm:$0xff] }
 0x22e   : > { %4471 = vmatpush.msrb.mxu0 %v1223_v59  ;;  %4490 = vmatpush.msrb.mxu1 %v1240_v60  ;;  %v1338_v59 = vld [vmem:[%s6762_s26 + $0x21b0] sm:$0xff]  ;;  %v1288_v60 = vld [vmem:[%s6762_s26 + $0x2020] sm:$0xff] }
 0x22f   : > { %4511 = vmatpush.msrb.mxu2 %v1255_v61  ;;  %4530 = vmatpush.msrb.mxu3 %v1272_v62  ;;  %v1305_v61 = vld [vmem:[%s6762_s26 + $0x20a8] sm:$0xff]  ;;  %v1320_v62 = vld [vmem:[%s6762_s26 + $0x2120] sm:$0xff] }
 0x230   : > { %4472 = vmatpush.msrb.mxu0 %v1222_v63  ;;  %4491 = vmatpush.msrb.mxu1 %v1239_v0  ;;  %v1337_v63 = vld [vmem:[%s6762_s26 + $0x21a8] sm:$0xff]  ;;  %v1287_v0 = vld [vmem:[%s6762_s26 + $0x2018] sm:$0xff] }
 0x231   : > { %4512 = vmatpush.msrb.mxu2 %v1254_v1  ;;  %4531 = vmatpush.msrb.mxu3 %v1271_v2  ;;  %v1304_v1 = vld [vmem:[%s6762_s26 + $0x20a0] sm:$0xff]  ;;  %v1319_v2 = vld [vmem:[%s6762_s26 + $0x2118] sm:$0xff] }
 0x232   : > { %4473 = vmatpush.msrb.mxu0 %v1221_v3  ;;  %4492 = vmatpush.msrb.mxu1 %v1238_v4  ;;  %v1336_v3 = vld [vmem:[%s6762_s26 + $0x21a0] sm:$0xff]  ;;  %v1286_v4 = vld [vmem:[%s6762_s26 + $0x2010] sm:$0xff] }
 0x233   : > { %4513 = vmatpush.msrb.mxu2 %v1253_v6  ;;  %4532 = vmatpush.msrb.mxu3 %v1270_v7  ;;  %v1318_v6 = vld [vmem:[%s6762_s26 + $0x2110] sm:$0xff]  ;;  %v1335_v7 = vld [vmem:[%s6762_s26 + $0x2198] sm:$0xff] }
 0x234   : > { %4474 = vmatpush.msrb.mxu0 %v1220_v8  ;;  %4493 = vmatpush.msrb.mxu1 %v1237_v9  ;;  %v1285_v8 = vld [vmem:[%s6762_s26 + $0x2008] sm:$0xff]  ;;  %v1302_v9 = vld [vmem:[%s6762_s26 + $0x2090] sm:$0xff] }
 0x235   : > { %4514 = vmatpush.msrb.mxu2 %v1252_v10  ;;  %4533 = vmatpush.msrb.mxu3 %v1269_v11  ;;  %v236_v10 = vld [vmem:[%s6757_s22 + $0x88] sm:$0xff] }
 0x236   : > { %4475 = vmatmul.f32.vlgmr.msrb.gmra.mxu0 %v2970_v12  ;;  %4515 = vmatmul.f32.vlgmr.msrb.gmra.mxu2 %v2972_v13  ;;  %v1317_v11 = vld [vmem:[%s6762_s26 + $0x2108] sm:$0xff]  ;;  %v1334_v12 = vld [vmem:[%s6762_s26 + $0x2190] sm:$0xff]  ;;  %2975 = vst [vmem:[#allocation1 + $0x20] ss:$4 sm:$0xff] %v236_v10  ;;  %v1284_v13 = vld [vmem:[%s6762_s26 + $0x2000] sm:$0xff] }
 0x237   : > { %4539 = vmatpush.msra.mxu0 %v1299_v14  ;;  %4579 = vmatpush.msra.mxu2 %v1331_v15  ;;  %v1301_v14 = vld [vmem:[%s6762_s26 + $0x2088] sm:$0xff]  ;;  %v1316_v15 = vld [vmem:[%s6762_s26 + $0x2100] sm:$0xff]  ;;  %v1367_v10 = vld [vmem:[%s6762_s26 + $0x2298] sm:$0xff] }
 0x238   : > { %4494 = vmatpush.msrb.mxu1 %v1236_v16  ;;  %4534 = vmatpush.msrb.mxu3 %v1268_v17  ;;  %v1333_v16 = vld [vmem:[%s6762_s26 + $0x2188] sm:$0xff]  ;;  %v2976_v17 = vld.sshfl [vmem:[#allocation1] sm:$0xff pattern:$0x73625140] }
 0x239   : > { %4495 = vmatmul.f32.vlgmr.msrb.gmra.mxu1 %v2971_v18  ;;  %4535 = vmatmul.f32.vlgmr.msrb.gmra.mxu3 %v2973_v19  ;;  %v2978_v18 = vld.sshfl [vmem:[#allocation1 + $0x10] sm:$0xff pattern:$0x73625140]  ;;  %v1363_v19 = vld [vmem:[%s6762_s26 + $0x2278] sm:$0xff] }
 0x23a   : > { %4540 = vmatpush.msra.mxu0 %v1298_v20  ;;  %4559 = vmatpush.msra.mxu1 %v1315_v21  ;;  %v1395_v20 = vld [vmem:[%s6762_s26 + $0x2378] sm:$0xff]  ;;  %v1300_v21 = vld [vmem:[%s6762_s26 + $0x2080] sm:$0xff] }
 0x23b   : > { %4580 = vmatpush.msra.mxu2 %v1330_v22  ;;  %4599 = vmatpush.msra.mxu3 %v1347_v23  ;;  %v1332_v22 = vld [vmem:[%s6762_s26 + $0x2180] sm:$0xff]  ;;  %v2977_v23 = vld.sshfl [vmem:[#allocation1 + $0x8] sm:$0xff pattern:$0x73625140] }
 0x23c   : > { %4541 = vmatpush.msra.mxu0 %v1297_v24  ;;  %4560 = vmatpush.msra.mxu1 %v1314_v25  ;;  %v2979_v24 = vld.sshfl [vmem:[#allocation1 + $0x18] sm:$0xff pattern:$0x73625140]  ;;  %v1362_v25 = vld [vmem:[%s6762_s26 + $0x2270] sm:$0xff] }
 0x23d   : > { %4581 = vmatpush.msra.mxu2 %v1329_v26  ;;  %4600 = vmatpush.msra.mxu3 %v1346_v27  ;;  %v1379_v26 = vld [vmem:[%s6762_s26 + $0x22f8] sm:$0xff]  ;;  %v1394_v27 = vld [vmem:[%s6762_s26 + $0x2370] sm:$0xff] }
 0x23e   : > { %4542 = vmatpush.msra.mxu0 %v1296_v28  ;;  %4561 = vmatpush.msra.mxu1 %v1313_v29  ;;  %v1411_v28 = vld [vmem:[%s6762_s26 + $0x23f8] sm:$0xff]  ;;  %v1361_v29 = vld [vmem:[%s6762_s26 + $0x2268] sm:$0xff] }
 0x23f   : > { %4582 = vmatpush.msra.mxu2 %v1328_v30  ;;  %4601 = vmatpush.msra.mxu3 %v1345_v31  ;;  %v1378_v30 = vld [vmem:[%s6762_s26 + $0x22f0] sm:$0xff]  ;;  %v1393_v31 = vld [vmem:[%s6762_s26 + $0x2368] sm:$0xff] }
 0x240   : > { %4543 = vmatpush.msra.mxu0 %v1295_v32  ;;  %4562 = vmatpush.msra.mxu1 %v1312_v33  ;;  %v1410_v32 = vld [vmem:[%s6762_s26 + $0x23f0] sm:$0xff]  ;;  %v1360_v33 = vld [vmem:[%s6762_s26 + $0x2260] sm:$0xff] }
 0x241   : > { %4583 = vmatpush.msra.mxu2 %v1327_v34  ;;  %4602 = vmatpush.msra.mxu3 %v1344_v35  ;;  %v1377_v34 = vld [vmem:[%s6762_s26 + $0x22e8] sm:$0xff]  ;;  %v1392_v35 = vld [vmem:[%s6762_s26 + $0x2360] sm:$0xff] }
 0x242   : > { %4544 = vmatpush.msra.mxu0 %v1294_v36  ;;  %4563 = vmatpush.msra.mxu1 %v1311_v37  ;;  %v1409_v36 = vld [vmem:[%s6762_s26 + $0x23e8] sm:$0xff]  ;;  %v1359_v37 = vld [vmem:[%s6762_s26 + $0x2258] sm:$0xff] }
 0x243   : > { %4584 = vmatpush.msra.mxu2 %v1326_v38  ;;  %4603 = vmatpush.msra.mxu3 %v1343_v39  ;;  %v1376_v38 = vld [vmem:[%s6762_s26 + $0x22e0] sm:$0xff]  ;;  %v1391_v39 = vld [vmem:[%s6762_s26 + $0x2358] sm:$0xff] }
 0x244   : > { %4545 = vmatpush.msra.mxu0 %v1293_v40  ;;  %4564 = vmatpush.msra.mxu1 %v1310_v41  ;;  %v1408_v40 = vld [vmem:[%s6762_s26 + $0x23e0] sm:$0xff]  ;;  %v1358_v41 = vld [vmem:[%s6762_s26 + $0x2250] sm:$0xff] }
 0x245   : > { %4585 = vmatpush.msra.mxu2 %v1325_v42  ;;  %4604 = vmatpush.msra.mxu3 %v1342_v43  ;;  %v1375_v42 = vld [vmem:[%s6762_s26 + $0x22d8] sm:$0xff]  ;;  %v1390_v43 = vld [vmem:[%s6762_s26 + $0x2350] sm:$0xff] }
 0x246   : > { %4546 = vmatpush.msra.mxu0 %v1292_v44  ;;  %4565 = vmatpush.msra.mxu1 %v1309_v45  ;;  %v1407_v44 = vld [vmem:[%s6762_s26 + $0x23d8] sm:$0xff]  ;;  %v1357_v45 = vld [vmem:[%s6762_s26 + $0x2248] sm:$0xff] }
 0x247   : > { %4586 = vmatpush.msra.mxu2 %v1324_v46  ;;  %4605 = vmatpush.msra.mxu3 %v1341_v47  ;;  %v1374_v46 = vld [vmem:[%s6762_s26 + $0x22d0] sm:$0xff]  ;;  %v1389_v47 = vld [vmem:[%s6762_s26 + $0x2348] sm:$0xff] }
 0x248   : > { %4547 = vmatpush.msra.mxu0 %v1291_v48  ;;  %4566 = vmatpush.msra.mxu1 %v1308_v49  ;;  %v1406_v48 = vld [vmem:[%s6762_s26 + $0x23d0] sm:$0xff]  ;;  %v1356_v49 = vld [vmem:[%s6762_s26 + $0x2240] sm:$0xff] }
 0x249   : > { %4587 = vmatpush.msra.mxu2 %v1323_v50  ;;  %4606 = vmatpush.msra.mxu3 %v1340_v51  ;;  %v1373_v50 = vld [vmem:[%s6762_s26 + $0x22c8] sm:$0xff]  ;;  %v1388_v51 = vld [vmem:[%s6762_s26 + $0x2340] sm:$0xff] }
 0x24a   : > { %4548 = vmatpush.msra.mxu0 %v1290_v52  ;;  %4567 = vmatpush.msra.mxu1 %v1307_v53  ;;  %v1405_v52 = vld [vmem:[%s6762_s26 + $0x23c8] sm:$0xff]  ;;  %v1355_v53 = vld [vmem:[%s6762_s26 + $0x2238] sm:$0xff] }
 0x24b   : > { %4588 = vmatpush.msra.mxu2 %v1322_v54  ;;  %4607 = vmatpush.msra.mxu3 %v1339_v55  ;;  %v1372_v54 = vld [vmem:[%s6762_s26 + $0x22c0] sm:$0xff]  ;;  %v1387_v55 = vld [vmem:[%s6762_s26 + $0x2338] sm:$0xff] }
 0x24c   : > { %4549 = vmatpush.msra.mxu0 %v1289_v56  ;;  %4568 = vmatpush.msra.mxu1 %v1306_v57  ;;  %v1404_v56 = vld [vmem:[%s6762_s26 + $0x23c0] sm:$0xff]  ;;  %v1354_v57 = vld [vmem:[%s6762_s26 + $0x2230] sm:$0xff] }
 0x24d   : > { %4589 = vmatpush.msra.mxu2 %v1321_v58  ;;  %4608 = vmatpush.msra.mxu3 %v1338_v59  ;;  %v1371_v58 = vld [vmem:[%s6762_s26 + $0x22b8] sm:$0xff]  ;;  %v1386_v59 = vld [vmem:[%s6762_s26 + $0x2330] sm:$0xff] }
 0x24e   : > { %4550 = vmatpush.msra.mxu0 %v1288_v60  ;;  %4569 = vmatpush.msra.mxu1 %v1305_v61  ;;  %v1403_v60 = vld [vmem:[%s6762_s26 + $0x23b8] sm:$0xff]  ;;  %v1353_v61 = vld [vmem:[%s6762_s26 + $0x2228] sm:$0xff] }
 0x24f   : > { %4590 = vmatpush.msra.mxu2 %v1320_v62  ;;  %4609 = vmatpush.msra.mxu3 %v1337_v63  ;;  %v1370_v62 = vld [vmem:[%s6762_s26 + $0x22b0] sm:$0xff]  ;;  %v1385_v63 = vld [vmem:[%s6762_s26 + $0x2328] sm:$0xff] }
 0x250   : > { %4551 = vmatpush.msra.mxu0 %v1287_v0  ;;  %4570 = vmatpush.msra.mxu1 %v1304_v1  ;;  %v1402_v0 = vld [vmem:[%s6762_s26 + $0x23b0] sm:$0xff]  ;;  %v1352_v1 = vld [vmem:[%s6762_s26 + $0x2220] sm:$0xff] }
 0x251   : > { %4591 = vmatpush.msra.mxu2 %v1319_v2  ;;  %4610 = vmatpush.msra.mxu3 %v1336_v3  ;;  %v1369_v2 = vld [vmem:[%s6762_s26 + $0x22a8] sm:$0xff]  ;;  %v1384_v3 = vld [vmem:[%s6762_s26 + $0x2320] sm:$0xff] }
 0x252   : > { %4552 = vmatpush.msra.mxu0 %v1286_v4  ;;  %4571 = vmatpush.msra.mxu1 %v1303_v5  ;;  %v1401_v4 = vld [vmem:[%s6762_s26 + $0x23a8] sm:$0xff]  ;;  %v1351_v5 = vld [vmem:[%s6762_s26 + $0x2218] sm:$0xff] }
 0x253   : > { %4592 = vmatpush.msra.mxu2 %v1318_v6  ;;  %4611 = vmatpush.msra.mxu3 %v1335_v7  ;;  %v1368_v6 = vld [vmem:[%s6762_s26 + $0x22a0] sm:$0xff]  ;;  %v1383_v7 = vld [vmem:[%s6762_s26 + $0x2318] sm:$0xff] }
 0x254   : > { %4553 = vmatpush.msra.mxu0 %v1285_v8  ;;  %4572 = vmatpush.msra.mxu1 %v1302_v9  ;;  %v1400_v8 = vld [vmem:[%s6762_s26 + $0x23a0] sm:$0xff]  ;;  %v1350_v9 = vld [vmem:[%s6762_s26 + $0x2210] sm:$0xff] }
 0x255   : > { %4593 = vmatpush.msra.mxu2 %v1317_v11  ;;  %4612 = vmatpush.msra.mxu3 %v1334_v12  ;;  %v1382_v11 = vld [vmem:[%s6762_s26 + $0x2310] sm:$0xff]  ;;  %v1399_v12 = vld [vmem:[%s6762_s26 + $0x2398] sm:$0xff] }
 0x256   : > { %4554 = vmatpush.msra.mxu0 %v1284_v13  ;;  %4573 = vmatpush.msra.mxu1 %v1301_v14  ;;  %v1349_v13 = vld [vmem:[%s6762_s26 + $0x2208] sm:$0xff]  ;;  %v1366_v14 = vld [vmem:[%s6762_s26 + $0x2290] sm:$0xff] }
 0x257   : > { %4594 = vmatpush.msra.mxu2 %v1316_v15  ;;  %4613 = vmatpush.msra.mxu3 %v1333_v16  ;;  %v237_v15 = vld [vmem:[%s6757_s22 + $0x90] sm:$0xff]  ;;  %v1381_v16 = vld [vmem:[%s6762_s26 + $0x2308] sm:$0xff] }
 0x258   : > { %4555 = vmatmul.f32.vlgmr.msra.gmra.mxu0 %v2976_v17  ;;  %4595 = vmatmul.f32.vlgmr.msra.gmra.mxu2 %v2978_v18  ;;  %v1398_v17 = vld [vmem:[%s6762_s26 + $0x2390] sm:$0xff]  ;;  %2984 = vst [vmem:[#allocation1] ss:$4 sm:$0xff] %v237_v15  ;;  %v1348_v18 = vld [vmem:[%s6762_s26 + $0x2200] sm:$0xff]  ;;  %v1431_v15 = vld [vmem:[%s6762_s26 + $0x2498] sm:$0xff] }
 0x259   : > { %4619 = vmatpush.msrb.mxu0 %v1363_v19  ;;  %4659 = vmatpush.msrb.mxu2 %v1395_v20  ;;  %v1365_v19 = vld [vmem:[%s6762_s26 + $0x2288] sm:$0xff]  ;;  %v1380_v20 = vld [vmem:[%s6762_s26 + $0x2300] sm:$0xff] }
 0x25a   : > { %4574 = vmatpush.msra.mxu1 %v1300_v21  ;;  %4614 = vmatpush.msra.mxu3 %v1332_v22  ;;  %v1397_v21 = vld [vmem:[%s6762_s26 + $0x2388] sm:$0xff]  ;;  %v2980_v22 = vld.sshfl [vmem:[#allocation1 + $0x20] sm:$0xff pattern:$0x73625140] }
 0x25b   : > { %4575 = vmatmul.f32.vlgmr.msra.gmra.mxu1 %v2977_v23  ;;  %4615 = vmatmul.f32.vlgmr.msra.gmra.mxu3 %v2979_v24  ;;  %v2982_v23 = vld.sshfl [vmem:[#allocation1 + $0x30] sm:$0xff pattern:$0x73625140]  ;;  %v1427_v24 = vld [vmem:[%s6762_s26 + $0x2478] sm:$0xff] }
 0x25c   : > { %4620 = vmatpush.msrb.mxu0 %v1362_v25  ;;  %4639 = vmatpush.msrb.mxu1 %v1379_v26  ;;  %v1459_v25 = vld [vmem:[%s6762_s26 + $0x2578] sm:$0xff]  ;;  %v1364_v26 = vld [vmem:[%s6762_s26 + $0x2280] sm:$0xff] }
 0x25d   : > { %4660 = vmatpush.msrb.mxu2 %v1394_v27  ;;  %4679 = vmatpush.msrb.mxu3 %v1411_v28  ;;  %v1396_v27 = vld [vmem:[%s6762_s26 + $0x2380] sm:$0xff]  ;;  %v2981_v28 = vld.sshfl [vmem:[#allocation1 + $0x28] sm:$0xff pattern:$0x73625140] }
 0x25e   : > { %4621 = vmatpush.msrb.mxu0 %v1361_v29  ;;  %4640 = vmatpush.msrb.mxu1 %v1378_v30  ;;  %v2983_v29 = vld.sshfl [vmem:[#allocation1 + $0x38] sm:$0xff pattern:$0x73625140]  ;;  %v1426_v30 = vld [vmem:[%s6762_s26 + $0x2470] sm:$0xff] }
 0x25f   : > { %4661 = vmatpush.msrb.mxu2 %v1393_v31  ;;  %4680 = vmatpush.msrb.mxu3 %v1410_v32  ;;  %v1443_v31 = vld [vmem:[%s6762_s26 + $0x24f8] sm:$0xff]  ;;  %v1458_v32 = vld [vmem:[%s6762_s26 + $0x2570] sm:$0xff] }
 0x260   : > { %4622 = vmatpush.msrb.mxu0 %v1360_v33  ;;  %4641 = vmatpush.msrb.mxu1 %v1377_v34  ;;  %v1475_v33 = vld [vmem:[%s6762_s26 + $0x25f8] sm:$0xff]  ;;  %v1425_v34 = vld [vmem:[%s6762_s26 + $0x2468] sm:$0xff] }
 0x261   : > { %4662 = vmatpush.msrb.mxu2 %v1392_v35  ;;  %4681 = vmatpush.msrb.mxu3 %v1409_v36  ;;  %v1442_v35 = vld [vmem:[%s6762_s26 + $0x24f0] sm:$0xff]  ;;  %v1457_v36 = vld [vmem:[%s6762_s26 + $0x2568] sm:$0xff] }
 0x262   : > { %4623 = vmatpush.msrb.mxu0 %v1359_v37  ;;  %4642 = vmatpush.msrb.mxu1 %v1376_v38  ;;  %v1474_v37 = vld [vmem:[%s6762_s26 + $0x25f0] sm:$0xff]  ;;  %v1424_v38 = vld [vmem:[%s6762_s26 + $0x2460] sm:$0xff] }
 0x263   : > { %4663 = vmatpush.msrb.mxu2 %v1391_v39  ;;  %4682 = vmatpush.msrb.mxu3 %v1408_v40  ;;  %v1441_v39 = vld [vmem:[%s6762_s26 + $0x24e8] sm:$0xff]  ;;  %v1456_v40 = vld [vmem:[%s6762_s26 + $0x2560] sm:$0xff] }
 0x264   : > { %4624 = vmatpush.msrb.mxu0 %v1358_v41  ;;  %4643 = vmatpush.msrb.mxu1 %v1375_v42  ;;  %v1473_v41 = vld [vmem:[%s6762_s26 + $0x25e8] sm:$0xff]  ;;  %v1423_v42 = vld [vmem:[%s6762_s26 + $0x2458] sm:$0xff] }
 0x265   : > { %4664 = vmatpush.msrb.mxu2 %v1390_v43  ;;  %4683 = vmatpush.msrb.mxu3 %v1407_v44  ;;  %v1440_v43 = vld [vmem:[%s6762_s26 + $0x24e0] sm:$0xff]  ;;  %v1455_v44 = vld [vmem:[%s6762_s26 + $0x2558] sm:$0xff] }
 0x266   : > { %4625 = vmatpush.msrb.mxu0 %v1357_v45  ;;  %4644 = vmatpush.msrb.mxu1 %v1374_v46  ;;  %v1472_v45 = vld [vmem:[%s6762_s26 + $0x25e0] sm:$0xff]  ;;  %v1422_v46 = vld [vmem:[%s6762_s26 + $0x2450] sm:$0xff] }
 0x267   : > { %4665 = vmatpush.msrb.mxu2 %v1389_v47  ;;  %4684 = vmatpush.msrb.mxu3 %v1406_v48  ;;  %v1439_v47 = vld [vmem:[%s6762_s26 + $0x24d8] sm:$0xff]  ;;  %v1454_v48 = vld [vmem:[%s6762_s26 + $0x2550] sm:$0xff] }
 0x268   : > { %4626 = vmatpush.msrb.mxu0 %v1356_v49  ;;  %4645 = vmatpush.msrb.mxu1 %v1373_v50  ;;  %v1471_v49 = vld [vmem:[%s6762_s26 + $0x25d8] sm:$0xff]  ;;  %v1421_v50 = vld [vmem:[%s6762_s26 + $0x2448] sm:$0xff] }
 0x269   : > { %4666 = vmatpush.msrb.mxu2 %v1388_v51  ;;  %4685 = vmatpush.msrb.mxu3 %v1405_v52  ;;  %v1438_v51 = vld [vmem:[%s6762_s26 + $0x24d0] sm:$0xff]  ;;  %v1453_v52 = vld [vmem:[%s6762_s26 + $0x2548] sm:$0xff] }
 0x26a   : > { %4627 = vmatpush.msrb.mxu0 %v1355_v53  ;;  %4646 = vmatpush.msrb.mxu1 %v1372_v54  ;;  %v1470_v53 = vld [vmem:[%s6762_s26 + $0x25d0] sm:$0xff]  ;;  %v1420_v54 = vld [vmem:[%s6762_s26 + $0x2440] sm:$0xff] }
 0x26b   : > { %4667 = vmatpush.msrb.mxu2 %v1387_v55  ;;  %4686 = vmatpush.msrb.mxu3 %v1404_v56  ;;  %v1437_v55 = vld [vmem:[%s6762_s26 + $0x24c8] sm:$0xff]  ;;  %v1452_v56 = vld [vmem:[%s6762_s26 + $0x2540] sm:$0xff] }
 0x26c   : > { %4628 = vmatpush.msrb.mxu0 %v1354_v57  ;;  %4647 = vmatpush.msrb.mxu1 %v1371_v58  ;;  %v1469_v57 = vld [vmem:[%s6762_s26 + $0x25c8] sm:$0xff]  ;;  %v1419_v58 = vld [vmem:[%s6762_s26 + $0x2438] sm:$0xff] }
 0x26d   : > { %4668 = vmatpush.msrb.mxu2 %v1386_v59  ;;  %4687 = vmatpush.msrb.mxu3 %v1403_v60  ;;  %v1436_v59 = vld [vmem:[%s6762_s26 + $0x24c0] sm:$0xff]  ;;  %v1451_v60 = vld [vmem:[%s6762_s26 + $0x2538] sm:$0xff] }
 0x26e   : > { %4629 = vmatpush.msrb.mxu0 %v1353_v61  ;;  %4648 = vmatpush.msrb.mxu1 %v1370_v62  ;;  %v1468_v61 = vld [vmem:[%s6762_s26 + $0x25c0] sm:$0xff]  ;;  %v1418_v62 = vld [vmem:[%s6762_s26 + $0x2430] sm:$0xff] }
 0x26f   : > { %4669 = vmatpush.msrb.mxu2 %v1385_v63  ;;  %4688 = vmatpush.msrb.mxu3 %v1402_v0  ;;  %v1435_v63 = vld [vmem:[%s6762_s26 + $0x24b8] sm:$0xff]  ;;  %v1450_v0 = vld [vmem:[%s6762_s26 + $0x2530] sm:$0xff] }
 0x270   : > { %4630 = vmatpush.msrb.mxu0 %v1352_v1  ;;  %4649 = vmatpush.msrb.mxu1 %v1369_v2  ;;  %v1467_v1 = vld [vmem:[%s6762_s26 + $0x25b8] sm:$0xff]  ;;  %v1417_v2 = vld [vmem:[%s6762_s26 + $0x2428] sm:$0xff] }
 0x271   : > { %4670 = vmatpush.msrb.mxu2 %v1384_v3  ;;  %4689 = vmatpush.msrb.mxu3 %v1401_v4  ;;  %v1434_v3 = vld [vmem:[%s6762_s26 + $0x24b0] sm:$0xff]  ;;  %v1449_v4 = vld [vmem:[%s6762_s26 + $0x2528] sm:$0xff] }
 0x272   : > { %4631 = vmatpush.msrb.mxu0 %v1351_v5  ;;  %4650 = vmatpush.msrb.mxu1 %v1368_v6  ;;  %v1466_v5 = vld [vmem:[%s6762_s26 + $0x25b0] sm:$0xff]  ;;  %v1416_v6 = vld [vmem:[%s6762_s26 + $0x2420] sm:$0xff] }
 0x273   : > { %4671 = vmatpush.msrb.mxu2 %v1383_v7  ;;  %4690 = vmatpush.msrb.mxu3 %v1400_v8  ;;  %v1433_v7 = vld [vmem:[%s6762_s26 + $0x24a8] sm:$0xff]  ;;  %v1448_v8 = vld [vmem:[%s6762_s26 + $0x2520] sm:$0xff] }
 0x274   : > { %4632 = vmatpush.msrb.mxu0 %v1350_v9  ;;  %4651 = vmatpush.msrb.mxu1 %v1367_v10  ;;  %v1465_v9 = vld [vmem:[%s6762_s26 + $0x25a8] sm:$0xff]  ;;  %v1415_v10 = vld [vmem:[%s6762_s26 + $0x2418] sm:$0xff] }
 0x275   : > { %4672 = vmatpush.msrb.mxu2 %v1382_v11  ;;  %4691 = vmatpush.msrb.mxu3 %v1399_v12  ;;  %v1432_v11 = vld [vmem:[%s6762_s26 + $0x24a0] sm:$0xff]  ;;  %v1447_v12 = vld [vmem:[%s6762_s26 + $0x2518] sm:$0xff] }
 0x276   : > { %4633 = vmatpush.msrb.mxu0 %v1349_v13  ;;  %4652 = vmatpush.msrb.mxu1 %v1366_v14  ;;  %v1464_v13 = vld [vmem:[%s6762_s26 + $0x25a0] sm:$0xff]  ;;  %v1414_v14 = vld [vmem:[%s6762_s26 + $0x2410] sm:$0xff] }
 0x277   : > { %4673 = vmatpush.msrb.mxu2 %v1381_v16  ;;  %4692 = vmatpush.msrb.mxu3 %v1398_v17  ;;  %v1446_v16 = vld [vmem:[%s6762_s26 + $0x2510] sm:$0xff]  ;;  %v1463_v17 = vld [vmem:[%s6762_s26 + $0x2598] sm:$0xff] }
 0x278   : > { %4634 = vmatpush.msrb.mxu0 %v1348_v18  ;;  %4653 = vmatpush.msrb.mxu1 %v1365_v19  ;;  %v1413_v18 = vld [vmem:[%s6762_s26 + $0x2408] sm:$0xff]  ;;  %v1430_v19 = vld [vmem:[%s6762_s26 + $0x2490] sm:$0xff] }
 0x279   : > { %4674 = vmatpush.msrb.mxu2 %v1380_v20  ;;  %4693 = vmatpush.msrb.mxu3 %v1397_v21  ;;  %v238_v20 = vld [vmem:[%s6757_s22 + $0x98] sm:$0xff]  ;;  %v1445_v21 = vld [vmem:[%s6762_s26 + $0x2508] sm:$0xff] }
 0x27a   : > { %4635 = vmatmul.f32.vlgmr.msrb.gmra.mxu0 %v2980_v22  ;;  %4675 = vmatmul.f32.vlgmr.msrb.gmra.mxu2 %v2982_v23  ;;  %v1462_v22 = vld [vmem:[%s6762_s26 + $0x2590] sm:$0xff]  ;;  %2985 = vst [vmem:[#allocation1 + $0x20] ss:$4 sm:$0xff] %v238_v20  ;;  %v1412_v23 = vld [vmem:[%s6762_s26 + $0x2400] sm:$0xff]  ;;  %v1495_v20 = vld [vmem:[%s6762_s26 + $0x2698] sm:$0xff] }
 0x27b   : > { %4699 = vmatpush.msra.mxu0 %v1427_v24  ;;  %4739 = vmatpush.msra.mxu2 %v1459_v25  ;;  %v1429_v24 = vld [vmem:[%s6762_s26 + $0x2488] sm:$0xff]  ;;  %v1444_v25 = vld [vmem:[%s6762_s26 + $0x2500] sm:$0xff] }
 0x27c   : > { %4654 = vmatpush.msrb.mxu1 %v1364_v26  ;;  %4694 = vmatpush.msrb.mxu3 %v1396_v27  ;;  %v1461_v26 = vld [vmem:[%s6762_s26 + $0x2588] sm:$0xff]  ;;  %v2986_v27 = vld.sshfl [vmem:[#allocation1] sm:$0xff pattern:$0x73625140] }
 0x27d   : > { %4655 = vmatmul.f32.vlgmr.msrb.gmra.mxu1 %v2981_v28  ;;  %4695 = vmatmul.f32.vlgmr.msrb.gmra.mxu3 %v2983_v29  ;;  %v2988_v28 = vld.sshfl [vmem:[#allocation1 + $0x10] sm:$0xff pattern:$0x73625140]  ;;  %v1491_v29 = vld [vmem:[%s6762_s26 + $0x2678] sm:$0xff] }
 0x27e   : > { %4700 = vmatpush.msra.mxu0 %v1426_v30  ;;  %4719 = vmatpush.msra.mxu1 %v1443_v31  ;;  %v1523_v30 = vld [vmem:[%s6762_s26 + $0x2778] sm:$0xff]  ;;  %v1428_v31 = vld [vmem:[%s6762_s26 + $0x2480] sm:$0xff] }
 0x27f   : > { %4740 = vmatpush.msra.mxu2 %v1458_v32  ;;  %4759 = vmatpush.msra.mxu3 %v1475_v33  ;;  %v1460_v32 = vld [vmem:[%s6762_s26 + $0x2580] sm:$0xff]  ;;  %v2987_v33 = vld.sshfl [vmem:[#allocation1 + $0x8] sm:$0xff pattern:$0x73625140] }
 0x280   : > { %4701 = vmatpush.msra.mxu0 %v1425_v34  ;;  %4720 = vmatpush.msra.mxu1 %v1442_v35  ;;  %v2989_v34 = vld.sshfl [vmem:[#allocation1 + $0x18] sm:$0xff pattern:$0x73625140]  ;;  %v1490_v35 = vld [vmem:[%s6762_s26 + $0x2670] sm:$0xff] }
 0x281   : > { %4741 = vmatpush.msra.mxu2 %v1457_v36  ;;  %4760 = vmatpush.msra.mxu3 %v1474_v37  ;;  %v1507_v36 = vld [vmem:[%s6762_s26 + $0x26f8] sm:$0xff]  ;;  %v1522_v37 = vld [vmem:[%s6762_s26 + $0x2770] sm:$0xff] }
 0x282   : > { %4702 = vmatpush.msra.mxu0 %v1424_v38  ;;  %4721 = vmatpush.msra.mxu1 %v1441_v39  ;;  %v1539_v38 = vld [vmem:[%s6762_s26 + $0x27f8] sm:$0xff]  ;;  %v1489_v39 = vld [vmem:[%s6762_s26 + $0x2668] sm:$0xff] }
 0x283   : > { %4742 = vmatpush.msra.mxu2 %v1456_v40  ;;  %4761 = vmatpush.msra.mxu3 %v1473_v41  ;;  %v1506_v40 = vld [vmem:[%s6762_s26 + $0x26f0] sm:$0xff]  ;;  %v1521_v41 = vld [vmem:[%s6762_s26 + $0x2768] sm:$0xff] }
 0x284   : > { %4703 = vmatpush.msra.mxu0 %v1423_v42  ;;  %4722 = vmatpush.msra.mxu1 %v1440_v43  ;;  %v1538_v42 = vld [vmem:[%s6762_s26 + $0x27f0] sm:$0xff]  ;;  %v1488_v43 = vld [vmem:[%s6762_s26 + $0x2660] sm:$0xff] }
 0x285   : > { %4743 = vmatpush.msra.mxu2 %v1455_v44  ;;  %4762 = vmatpush.msra.mxu3 %v1472_v45  ;;  %v1505_v44 = vld [vmem:[%s6762_s26 + $0x26e8] sm:$0xff]  ;;  %v1520_v45 = vld [vmem:[%s6762_s26 + $0x2760] sm:$0xff] }
 0x286   : > { %4704 = vmatpush.msra.mxu0 %v1422_v46  ;;  %4723 = vmatpush.msra.mxu1 %v1439_v47  ;;  %v1537_v46 = vld [vmem:[%s6762_s26 + $0x27e8] sm:$0xff]  ;;  %v1487_v47 = vld [vmem:[%s6762_s26 + $0x2658] sm:$0xff] }
 0x287   : > { %4744 = vmatpush.msra.mxu2 %v1454_v48  ;;  %4763 = vmatpush.msra.mxu3 %v1471_v49  ;;  %v1504_v48 = vld [vmem:[%s6762_s26 + $0x26e0] sm:$0xff]  ;;  %v1519_v49 = vld [vmem:[%s6762_s26 + $0x2758] sm:$0xff] }
 0x288   : > { %4705 = vmatpush.msra.mxu0 %v1421_v50  ;;  %4724 = vmatpush.msra.mxu1 %v1438_v51  ;;  %v1536_v50 = vld [vmem:[%s6762_s26 + $0x27e0] sm:$0xff]  ;;  %v1486_v51 = vld [vmem:[%s6762_s26 + $0x2650] sm:$0xff] }
 0x289   : > { %4745 = vmatpush.msra.mxu2 %v1453_v52  ;;  %4764 = vmatpush.msra.mxu3 %v1470_v53  ;;  %v1503_v52 = vld [vmem:[%s6762_s26 + $0x26d8] sm:$0xff]  ;;  %v1518_v53 = vld [vmem:[%s6762_s26 + $0x2750] sm:$0xff] }
 0x28a   : > { %4706 = vmatpush.msra.mxu0 %v1420_v54  ;;  %4725 = vmatpush.msra.mxu1 %v1437_v55  ;;  %v1535_v54 = vld [vmem:[%s6762_s26 + $0x27d8] sm:$0xff]  ;;  %v1485_v55 = vld [vmem:[%s6762_s26 + $0x2648] sm:$0xff] }
 0x28b   : > { %4746 = vmatpush.msra.mxu2 %v1452_v56  ;;  %4765 = vmatpush.msra.mxu3 %v1469_v57  ;;  %v1502_v56 = vld [vmem:[%s6762_s26 + $0x26d0] sm:$0xff]  ;;  %v1517_v57 = vld [vmem:[%s6762_s26 + $0x2748] sm:$0xff] }
 0x28c   : > { %4707 = vmatpush.msra.mxu0 %v1419_v58  ;;  %4726 = vmatpush.msra.mxu1 %v1436_v59  ;;  %v1534_v58 = vld [vmem:[%s6762_s26 + $0x27d0] sm:$0xff]  ;;  %v1484_v59 = vld [vmem:[%s6762_s26 + $0x2640] sm:$0xff] }
 0x28d   : > { %4747 = vmatpush.msra.mxu2 %v1451_v60  ;;  %4766 = vmatpush.msra.mxu3 %v1468_v61  ;;  %v1501_v60 = vld [vmem:[%s6762_s26 + $0x26c8] sm:$0xff]  ;;  %v1516_v61 = vld [vmem:[%s6762_s26 + $0x2740] sm:$0xff] }
 0x28e   : > { %4708 = vmatpush.msra.mxu0 %v1418_v62  ;;  %4727 = vmatpush.msra.mxu1 %v1435_v63  ;;  %v1533_v62 = vld [vmem:[%s6762_s26 + $0x27c8] sm:$0xff]  ;;  %v1483_v63 = vld [vmem:[%s6762_s26 + $0x2638] sm:$0xff] }
 0x28f   : > { %4748 = vmatpush.msra.mxu2 %v1450_v0  ;;  %4767 = vmatpush.msra.mxu3 %v1467_v1  ;;  %v1500_v0 = vld [vmem:[%s6762_s26 + $0x26c0] sm:$0xff]  ;;  %v1515_v1 = vld [vmem:[%s6762_s26 + $0x2738] sm:$0xff] }
 0x290   : > { %4709 = vmatpush.msra.mxu0 %v1417_v2  ;;  %4728 = vmatpush.msra.mxu1 %v1434_v3  ;;  %v1532_v2 = vld [vmem:[%s6762_s26 + $0x27c0] sm:$0xff]  ;;  %v1482_v3 = vld [vmem:[%s6762_s26 + $0x2630] sm:$0xff] }
 0x291   : > { %4749 = vmatpush.msra.mxu2 %v1449_v4  ;;  %4768 = vmatpush.msra.mxu3 %v1466_v5  ;;  %v1499_v4 = vld [vmem:[%s6762_s26 + $0x26b8] sm:$0xff]  ;;  %v1514_v5 = vld [vmem:[%s6762_s26 + $0x2730] sm:$0xff] }
 0x292   : > { %4710 = vmatpush.msra.mxu0 %v1416_v6  ;;  %4729 = vmatpush.msra.mxu1 %v1433_v7  ;;  %v1531_v6 = vld [vmem:[%s6762_s26 + $0x27b8] sm:$0xff]  ;;  %v1481_v7 = vld [vmem:[%s6762_s26 + $0x2628] sm:$0xff] }
 0x293   : > { %4750 = vmatpush.msra.mxu2 %v1448_v8  ;;  %4769 = vmatpush.msra.mxu3 %v1465_v9  ;;  %v1498_v8 = vld [vmem:[%s6762_s26 + $0x26b0] sm:$0xff]  ;;  %v1513_v9 = vld [vmem:[%s6762_s26 + $0x2728] sm:$0xff] }
 0x294   : > { %4711 = vmatpush.msra.mxu0 %v1415_v10  ;;  %4730 = vmatpush.msra.mxu1 %v1432_v11  ;;  %v1530_v10 = vld [vmem:[%s6762_s26 + $0x27b0] sm:$0xff]  ;;  %v1480_v11 = vld [vmem:[%s6762_s26 + $0x2620] sm:$0xff] }
 0x295   : > { %4751 = vmatpush.msra.mxu2 %v1447_v12  ;;  %4770 = vmatpush.msra.mxu3 %v1464_v13  ;;  %v1497_v12 = vld [vmem:[%s6762_s26 + $0x26a8] sm:$0xff]  ;;  %v1512_v13 = vld [vmem:[%s6762_s26 + $0x2720] sm:$0xff] }
 0x296   : > { %4712 = vmatpush.msra.mxu0 %v1414_v14  ;;  %4731 = vmatpush.msra.mxu1 %v1431_v15  ;;  %v1529_v14 = vld [vmem:[%s6762_s26 + $0x27a8] sm:$0xff]  ;;  %v1479_v15 = vld [vmem:[%s6762_s26 + $0x2618] sm:$0xff] }
 0x297   : > { %4752 = vmatpush.msra.mxu2 %v1446_v16  ;;  %4771 = vmatpush.msra.mxu3 %v1463_v17  ;;  %v1496_v16 = vld [vmem:[%s6762_s26 + $0x26a0] sm:$0xff]  ;;  %v1511_v17 = vld [vmem:[%s6762_s26 + $0x2718] sm:$0xff] }
 0x298   : > { %4713 = vmatpush.msra.mxu0 %v1413_v18  ;;  %4732 = vmatpush.msra.mxu1 %v1430_v19  ;;  %v1528_v18 = vld [vmem:[%s6762_s26 + $0x27a0] sm:$0xff]  ;;  %v1478_v19 = vld [vmem:[%s6762_s26 + $0x2610] sm:$0xff] }
 0x299   : > { %4753 = vmatpush.msra.mxu2 %v1445_v21  ;;  %4772 = vmatpush.msra.mxu3 %v1462_v22  ;;  %v1510_v21 = vld [vmem:[%s6762_s26 + $0x2710] sm:$0xff]  ;;  %v1527_v22 = vld [vmem:[%s6762_s26 + $0x2798] sm:$0xff] }
 0x29a   : > { %4714 = vmatpush.msra.mxu0 %v1412_v23  ;;  %4733 = vmatpush.msra.mxu1 %v1429_v24  ;;  %v1477_v23 = vld [vmem:[%s6762_s26 + $0x2608] sm:$0xff]  ;;  %v1494_v24 = vld [vmem:[%s6762_s26 + $0x2690] sm:$0xff] }
 0x29b   : > { %4754 = vmatpush.msra.mxu2 %v1444_v25  ;;  %4773 = vmatpush.msra.mxu3 %v1461_v26  ;;  %v239_v25 = vld [vmem:[%s6757_s22 + $0xa0] sm:$0xff]  ;;  %v1509_v26 = vld [vmem:[%s6762_s26 + $0x2708] sm:$0xff] }
 0x29c   : > { %4715 = vmatmul.f32.vlgmr.msra.gmra.mxu0 %v2986_v27  ;;  %4755 = vmatmul.f32.vlgmr.msra.gmra.mxu2 %v2988_v28  ;;  %v1526_v27 = vld [vmem:[%s6762_s26 + $0x2790] sm:$0xff]  ;;  %2994 = vst [vmem:[#allocation1] ss:$4 sm:$0xff] %v239_v25  ;;  %v1476_v28 = vld [vmem:[%s6762_s26 + $0x2600] sm:$0xff]  ;;  %v1559_v25 = vld [vmem:[%s6762_s26 + $0x2898] sm:$0xff] }
 0x29d   : > { %4779 = vmatpush.msrb.mxu0 %v1491_v29  ;;  %4819 = vmatpush.msrb.mxu2 %v1523_v30  ;;  %v1493_v29 = vld [vmem:[%s6762_s26 + $0x2688] sm:$0xff]  ;;  %v1508_v30 = vld [vmem:[%s6762_s26 + $0x2700] sm:$0xff] }
 0x29e   : > { %4734 = vmatpush.msra.mxu1 %v1428_v31  ;;  %4774 = vmatpush.msra.mxu3 %v1460_v32  ;;  %v1525_v31 = vld [vmem:[%s6762_s26 + $0x2788] sm:$0xff]  ;;  %v2990_v32 = vld.sshfl [vmem:[#allocation1 + $0x20] sm:$0xff pattern:$0x73625140] }
 0x29f   : > { %4735 = vmatmul.f32.vlgmr.msra.gmra.mxu1 %v2987_v33  ;;  %4775 = vmatmul.f32.vlgmr.msra.gmra.mxu3 %v2989_v34  ;;  %v2992_v33 = vld.sshfl [vmem:[#allocation1 + $0x30] sm:$0xff pattern:$0x73625140]  ;;  %v1555_v34 = vld [vmem:[%s6762_s26 + $0x2878] sm:$0xff] }
 0x2a0   : > { %4780 = vmatpush.msrb.mxu0 %v1490_v35  ;;  %4799 = vmatpush.msrb.mxu1 %v1507_v36  ;;  %v1587_v35 = vld [vmem:[%s6762_s26 + $0x2978] sm:$0xff]  ;;  %v1492_v36 = vld [vmem:[%s6762_s26 + $0x2680] sm:$0xff] }
 0x2a1   : > { %4820 = vmatpush.msrb.mxu2 %v1522_v37  ;;  %4839 = vmatpush.msrb.mxu3 %v1539_v38  ;;  %v1524_v37 = vld [vmem:[%s6762_s26 + $0x2780] sm:$0xff]  ;;  %v2991_v38 = vld.sshfl [vmem:[#allocation1 + $0x28] sm:$0xff pattern:$0x73625140] }
 0x2a2   : > { %4781 = vmatpush.msrb.mxu0 %v1489_v39  ;;  %4800 = vmatpush.msrb.mxu1 %v1506_v40  ;;  %v2993_v39 = vld.sshfl [vmem:[#allocation1 + $0x38] sm:$0xff pattern:$0x73625140]  ;;  %v1554_v40 = vld [vmem:[%s6762_s26 + $0x2870] sm:$0xff] }
 0x2a3   : > { %4821 = vmatpush.msrb.mxu2 %v1521_v41  ;;  %4840 = vmatpush.msrb.mxu3 %v1538_v42  ;;  %v1571_v41 = vld [vmem:[%s6762_s26 + $0x28f8] sm:$0xff]  ;;  %v1586_v42 = vld [vmem:[%s6762_s26 + $0x2970] sm:$0xff] }
 0x2a4   : > { %4782 = vmatpush.msrb.mxu0 %v1488_v43  ;;  %4801 = vmatpush.msrb.mxu1 %v1505_v44  ;;  %v1603_v43 = vld [vmem:[%s6762_s26 + $0x29f8] sm:$0xff]  ;;  %v1553_v44 = vld [vmem:[%s6762_s26 + $0x2868] sm:$0xff] }
 0x2a5   : > { %4822 = vmatpush.msrb.mxu2 %v1520_v45  ;;  %4841 = vmatpush.msrb.mxu3 %v1537_v46  ;;  %v1570_v45 = vld [vmem:[%s6762_s26 + $0x28f0] sm:$0xff]  ;;  %v1585_v46 = vld [vmem:[%s6762_s26 + $0x2968] sm:$0xff] }
 0x2a6   : > { %4783 = vmatpush.msrb.mxu0 %v1487_v47  ;;  %4802 = vmatpush.msrb.mxu1 %v1504_v48  ;;  %v1602_v47 = vld [vmem:[%s6762_s26 + $0x29f0] sm:$0xff]  ;;  %v1552_v48 = vld [vmem:[%s6762_s26 + $0x2860] sm:$0xff] }
 0x2a7   : > { %4823 = vmatpush.msrb.mxu2 %v1519_v49  ;;  %4842 = vmatpush.msrb.mxu3 %v1536_v50  ;;  %v1569_v49 = vld [vmem:[%s6762_s26 + $0x28e8] sm:$0xff]  ;;  %v1584_v50 = vld [vmem:[%s6762_s26 + $0x2960] sm:$0xff] }
 0x2a8   : > { %4784 = vmatpush.msrb.mxu0 %v1486_v51  ;;  %4803 = vmatpush.msrb.mxu1 %v1503_v52  ;;  %v1601_v51 = vld [vmem:[%s6762_s26 + $0x29e8] sm:$0xff]  ;;  %v1551_v52 = vld [vmem:[%s6762_s26 + $0x2858] sm:$0xff] }
 0x2a9   : > { %4824 = vmatpush.msrb.mxu2 %v1518_v53  ;;  %4843 = vmatpush.msrb.mxu3 %v1535_v54  ;;  %v1568_v53 = vld [vmem:[%s6762_s26 + $0x28e0] sm:$0xff]  ;;  %v1583_v54 = vld [vmem:[%s6762_s26 + $0x2958] sm:$0xff] }
 0x2aa   : > { %4785 = vmatpush.msrb.mxu0 %v1485_v55  ;;  %4804 = vmatpush.msrb.mxu1 %v1502_v56  ;;  %v1600_v55 = vld [vmem:[%s6762_s26 + $0x29e0] sm:$0xff]  ;;  %v1550_v56 = vld [vmem:[%s6762_s26 + $0x2850] sm:$0xff] }
 0x2ab   : > { %4825 = vmatpush.msrb.mxu2 %v1517_v57  ;;  %4844 = vmatpush.msrb.mxu3 %v1534_v58  ;;  %v1567_v57 = vld [vmem:[%s6762_s26 + $0x28d8] sm:$0xff]  ;;  %v1582_v58 = vld [vmem:[%s6762_s26 + $0x2950] sm:$0xff] }
 0x2ac   : > { %4786 = vmatpush.msrb.mxu0 %v1484_v59  ;;  %4805 = vmatpush.msrb.mxu1 %v1501_v60  ;;  %v1599_v59 = vld [vmem:[%s6762_s26 + $0x29d8] sm:$0xff]  ;;  %v1549_v60 = vld [vmem:[%s6762_s26 + $0x2848] sm:$0xff] }
 0x2ad   : > { %4826 = vmatpush.msrb.mxu2 %v1516_v61  ;;  %4845 = vmatpush.msrb.mxu3 %v1533_v62  ;;  %v1566_v61 = vld [vmem:[%s6762_s26 + $0x28d0] sm:$0xff]  ;;  %v1581_v62 = vld [vmem:[%s6762_s26 + $0x2948] sm:$0xff] }
 0x2ae   : > { %4787 = vmatpush.msrb.mxu0 %v1483_v63  ;;  %4806 = vmatpush.msrb.mxu1 %v1500_v0  ;;  %v1598_v63 = vld [vmem:[%s6762_s26 + $0x29d0] sm:$0xff]  ;;  %v1548_v0 = vld [vmem:[%s6762_s26 + $0x2840] sm:$0xff] }
 0x2af   : > { %4827 = vmatpush.msrb.mxu2 %v1515_v1  ;;  %4846 = vmatpush.msrb.mxu3 %v1532_v2  ;;  %v1565_v1 = vld [vmem:[%s6762_s26 + $0x28c8] sm:$0xff]  ;;  %v1580_v2 = vld [vmem:[%s6762_s26 + $0x2940] sm:$0xff] }
 0x2b0   : > { %4788 = vmatpush.msrb.mxu0 %v1482_v3  ;;  %4807 = vmatpush.msrb.mxu1 %v1499_v4  ;;  %v1597_v3 = vld [vmem:[%s6762_s26 + $0x29c8] sm:$0xff]  ;;  %v1547_v4 = vld [vmem:[%s6762_s26 + $0x2838] sm:$0xff] }
 0x2b1   : > { %4828 = vmatpush.msrb.mxu2 %v1514_v5  ;;  %4847 = vmatpush.msrb.mxu3 %v1531_v6  ;;  %v1564_v5 = vld [vmem:[%s6762_s26 + $0x28c0] sm:$0xff]  ;;  %v1579_v6 = vld [vmem:[%s6762_s26 + $0x2938] sm:$0xff] }
 0x2b2   : > { %4789 = vmatpush.msrb.mxu0 %v1481_v7  ;;  %4808 = vmatpush.msrb.mxu1 %v1498_v8  ;;  %v1596_v7 = vld [vmem:[%s6762_s26 + $0x29c0] sm:$0xff]  ;;  %v1546_v8 = vld [vmem:[%s6762_s26 + $0x2830] sm:$0xff] }
 0x2b3   : > { %4829 = vmatpush.msrb.mxu2 %v1513_v9  ;;  %4848 = vmatpush.msrb.mxu3 %v1530_v10  ;;  %v1563_v9 = vld [vmem:[%s6762_s26 + $0x28b8] sm:$0xff]  ;;  %v1578_v10 = vld [vmem:[%s6762_s26 + $0x2930] sm:$0xff] }
 0x2b4   : > { %4790 = vmatpush.msrb.mxu0 %v1480_v11  ;;  %4809 = vmatpush.msrb.mxu1 %v1497_v12  ;;  %v1595_v11 = vld [vmem:[%s6762_s26 + $0x29b8] sm:$0xff]  ;;  %v1545_v12 = vld [vmem:[%s6762_s26 + $0x2828] sm:$0xff] }
 0x2b5   : > { %4830 = vmatpush.msrb.mxu2 %v1512_v13  ;;  %4849 = vmatpush.msrb.mxu3 %v1529_v14  ;;  %v1562_v13 = vld [vmem:[%s6762_s26 + $0x28b0] sm:$0xff]  ;;  %v1577_v14 = vld [vmem:[%s6762_s26 + $0x2928] sm:$0xff] }
 0x2b6   : > { %4791 = vmatpush.msrb.mxu0 %v1479_v15  ;;  %4810 = vmatpush.msrb.mxu1 %v1496_v16  ;;  %v1594_v15 = vld [vmem:[%s6762_s26 + $0x29b0] sm:$0xff]  ;;  %v1544_v16 = vld [vmem:[%s6762_s26 + $0x2820] sm:$0xff] }
 0x2b7   : > { %4831 = vmatpush.msrb.mxu2 %v1511_v17  ;;  %4850 = vmatpush.msrb.mxu3 %v1528_v18  ;;  %v1561_v17 = vld [vmem:[%s6762_s26 + $0x28a8] sm:$0xff]  ;;  %v1576_v18 = vld [vmem:[%s6762_s26 + $0x2920] sm:$0xff] }
 0x2b8   : > { %4792 = vmatpush.msrb.mxu0 %v1478_v19  ;;  %4811 = vmatpush.msrb.mxu1 %v1495_v20  ;;  %v1593_v19 = vld [vmem:[%s6762_s26 + $0x29a8] sm:$0xff]  ;;  %v1543_v20 = vld [vmem:[%s6762_s26 + $0x2818] sm:$0xff] }
 0x2b9   : > { %4832 = vmatpush.msrb.mxu2 %v1510_v21  ;;  %4851 = vmatpush.msrb.mxu3 %v1527_v22  ;;  %v1560_v21 = vld [vmem:[%s6762_s26 + $0x28a0] sm:$0xff]  ;;  %v1575_v22 = vld [vmem:[%s6762_s26 + $0x2918] sm:$0xff] }
 0x2ba   : > { %4793 = vmatpush.msrb.mxu0 %v1477_v23  ;;  %4812 = vmatpush.msrb.mxu1 %v1494_v24  ;;  %v1592_v23 = vld [vmem:[%s6762_s26 + $0x29a0] sm:$0xff]  ;;  %v1542_v24 = vld [vmem:[%s6762_s26 + $0x2810] sm:$0xff] }
 0x2bb   : > { %4833 = vmatpush.msrb.mxu2 %v1509_v26  ;;  %4852 = vmatpush.msrb.mxu3 %v1526_v27  ;;  %v1574_v26 = vld [vmem:[%s6762_s26 + $0x2910] sm:$0xff]  ;;  %v1591_v27 = vld [vmem:[%s6762_s26 + $0x2998] sm:$0xff] }
 0x2bc   : > { %4794 = vmatpush.msrb.mxu0 %v1476_v28  ;;  %4813 = vmatpush.msrb.mxu1 %v1493_v29  ;;  %v1541_v28 = vld [vmem:[%s6762_s26 + $0x2808] sm:$0xff]  ;;  %v1558_v29 = vld [vmem:[%s6762_s26 + $0x2890] sm:$0xff] }
 0x2bd   : > { %4834 = vmatpush.msrb.mxu2 %v1508_v30  ;;  %4853 = vmatpush.msrb.mxu3 %v1525_v31  ;;  %v240_v30 = vld [vmem:[%s6757_s22 + $0xa8] sm:$0xff] }
 0x2be   : > { %4795 = vmatmul.f32.vlgmr.msrb.gmra.mxu0 %v2990_v32  ;;  %4835 = vmatmul.f32.vlgmr.msrb.gmra.mxu2 %v2992_v33  ;;  %v1573_v31 = vld [vmem:[%s6762_s26 + $0x2908] sm:$0xff]  ;;  %v1590_v32 = vld [vmem:[%s6762_s26 + $0x2990] sm:$0xff]  ;;  %2995 = vst [vmem:[#allocation1 + $0x20] ss:$4 sm:$0xff] %v240_v30  ;;  %v1540_v33 = vld [vmem:[%s6762_s26 + $0x2800] sm:$0xff] }
 0x2bf   : > { %4859 = vmatpush.msra.mxu0 %v1555_v34  ;;  %4899 = vmatpush.msra.mxu2 %v1587_v35  ;;  %v1557_v34 = vld [vmem:[%s6762_s26 + $0x2888] sm:$0xff]  ;;  %v1572_v35 = vld [vmem:[%s6762_s26 + $0x2900] sm:$0xff]  ;;  %v1623_v30 = vld [vmem:[%s6762_s26 + $0x2a98] sm:$0xff] }
 0x2c0   : > { %4814 = vmatpush.msrb.mxu1 %v1492_v36  ;;  %4854 = vmatpush.msrb.mxu3 %v1524_v37  ;;  %v1589_v36 = vld [vmem:[%s6762_s26 + $0x2988] sm:$0xff]  ;;  %v2996_v37 = vld.sshfl [vmem:[#allocation1] sm:$0xff pattern:$0x73625140] }
 0x2c1   : > { %4815 = vmatmul.f32.vlgmr.msrb.gmra.mxu1 %v2991_v38  ;;  %4855 = vmatmul.f32.vlgmr.msrb.gmra.mxu3 %v2993_v39  ;;  %v2998_v38 = vld.sshfl [vmem:[#allocation1 + $0x10] sm:$0xff pattern:$0x73625140]  ;;  %v1619_v39 = vld [vmem:[%s6762_s26 + $0x2a78] sm:$0xff] }
 0x2c2   : > { %4860 = vmatpush.msra.mxu0 %v1554_v40  ;;  %4879 = vmatpush.msra.mxu1 %v1571_v41  ;;  %v1651_v40 = vld [vmem:[%s6762_s26 + $0x2b78] sm:$0xff]  ;;  %v1556_v41 = vld [vmem:[%s6762_s26 + $0x2880] sm:$0xff] }
 0x2c3   : > { %4900 = vmatpush.msra.mxu2 %v1586_v42  ;;  %4919 = vmatpush.msra.mxu3 %v1603_v43  ;;  %v1588_v42 = vld [vmem:[%s6762_s26 + $0x2980] sm:$0xff]  ;;  %v2997_v43 = vld.sshfl [vmem:[#allocation1 + $0x8] sm:$0xff pattern:$0x73625140] }
 0x2c4   : > { %4861 = vmatpush.msra.mxu0 %v1553_v44  ;;  %4880 = vmatpush.msra.mxu1 %v1570_v45  ;;  %v2999_v44 = vld.sshfl [vmem:[#allocation1 + $0x18] sm:$0xff pattern:$0x73625140]  ;;  %v1618_v45 = vld [vmem:[%s6762_s26 + $0x2a70] sm:$0xff] }
 0x2c5   : > { %4901 = vmatpush.msra.mxu2 %v1585_v46  ;;  %4920 = vmatpush.msra.mxu3 %v1602_v47  ;;  %v1635_v46 = vld [vmem:[%s6762_s26 + $0x2af8] sm:$0xff]  ;;  %v1650_v47 = vld [vmem:[%s6762_s26 + $0x2b70] sm:$0xff] }
 0x2c6   : > { %4862 = vmatpush.msra.mxu0 %v1552_v48  ;;  %4881 = vmatpush.msra.mxu1 %v1569_v49  ;;  %v1667_v48 = vld [vmem:[%s6762_s26 + $0x2bf8] sm:$0xff]  ;;  %v1617_v49 = vld [vmem:[%s6762_s26 + $0x2a68] sm:$0xff] }
 0x2c7   : > { %4902 = vmatpush.msra.mxu2 %v1584_v50  ;;  %4921 = vmatpush.msra.mxu3 %v1601_v51  ;;  %v1634_v50 = vld [vmem:[%s6762_s26 + $0x2af0] sm:$0xff]  ;;  %v1649_v51 = vld [vmem:[%s6762_s26 + $0x2b68] sm:$0xff] }
 0x2c8   : > { %4863 = vmatpush.msra.mxu0 %v1551_v52  ;;  %4882 = vmatpush.msra.mxu1 %v1568_v53  ;;  %v1666_v52 = vld [vmem:[%s6762_s26 + $0x2bf0] sm:$0xff]  ;;  %v1616_v53 = vld [vmem:[%s6762_s26 + $0x2a60] sm:$0xff] }
 0x2c9   : > { %4903 = vmatpush.msra.mxu2 %v1583_v54  ;;  %4922 = vmatpush.msra.mxu3 %v1600_v55  ;;  %v1633_v54 = vld [vmem:[%s6762_s26 + $0x2ae8] sm:$0xff]  ;;  %v1648_v55 = vld [vmem:[%s6762_s26 + $0x2b60] sm:$0xff] }
 0x2ca   : > { %4864 = vmatpush.msra.mxu0 %v1550_v56  ;;  %4883 = vmatpush.msra.mxu1 %v1567_v57  ;;  %v1665_v56 = vld [vmem:[%s6762_s26 + $0x2be8] sm:$0xff]  ;;  %v1615_v57 = vld [vmem:[%s6762_s26 + $0x2a58] sm:$0xff] }
 0x2cb   : > { %4904 = vmatpush.msra.mxu2 %v1582_v58  ;;  %4923 = vmatpush.msra.mxu3 %v1599_v59  ;;  %v1632_v58 = vld [vmem:[%s6762_s26 + $0x2ae0] sm:$0xff]  ;;  %v1647_v59 = vld [vmem:[%s6762_s26 + $0x2b58] sm:$0xff] }
 0x2cc   : > { %4865 = vmatpush.msra.mxu0 %v1549_v60  ;;  %4884 = vmatpush.msra.mxu1 %v1566_v61  ;;  %v1664_v60 = vld [vmem:[%s6762_s26 + $0x2be0] sm:$0xff]  ;;  %v1614_v61 = vld [vmem:[%s6762_s26 + $0x2a50] sm:$0xff] }
 0x2cd   : > { %4905 = vmatpush.msra.mxu2 %v1581_v62  ;;  %4924 = vmatpush.msra.mxu3 %v1598_v63  ;;  %v1631_v62 = vld [vmem:[%s6762_s26 + $0x2ad8] sm:$0xff]  ;;  %v1646_v63 = vld [vmem:[%s6762_s26 + $0x2b50] sm:$0xff] }
 0x2ce   : > { %4866 = vmatpush.msra.mxu0 %v1548_v0  ;;  %4885 = vmatpush.msra.mxu1 %v1565_v1  ;;  %v1663_v0 = vld [vmem:[%s6762_s26 + $0x2bd8] sm:$0xff]  ;;  %v1613_v1 = vld [vmem:[%s6762_s26 + $0x2a48] sm:$0xff] }
 0x2cf   : > { %4906 = vmatpush.msra.mxu2 %v1580_v2  ;;  %4925 = vmatpush.msra.mxu3 %v1597_v3  ;;  %v1630_v2 = vld [vmem:[%s6762_s26 + $0x2ad0] sm:$0xff]  ;;  %v1645_v3 = vld [vmem:[%s6762_s26 + $0x2b48] sm:$0xff] }
 0x2d0   : > { %4867 = vmatpush.msra.mxu0 %v1547_v4  ;;  %4886 = vmatpush.msra.mxu1 %v1564_v5  ;;  %v1662_v4 = vld [vmem:[%s6762_s26 + $0x2bd0] sm:$0xff]  ;;  %v1612_v5 = vld [vmem:[%s6762_s26 + $0x2a40] sm:$0xff] }
 0x2d1   : > { %4907 = vmatpush.msra.mxu2 %v1579_v6  ;;  %4926 = vmatpush.msra.mxu3 %v1596_v7  ;;  %v1629_v6 = vld [vmem:[%s6762_s26 + $0x2ac8] sm:$0xff]  ;;  %v1644_v7 = vld [vmem:[%s6762_s26 + $0x2b40] sm:$0xff] }
 0x2d2   : > { %4868 = vmatpush.msra.mxu0 %v1546_v8  ;;  %4887 = vmatpush.msra.mxu1 %v1563_v9  ;;  %v1661_v8 = vld [vmem:[%s6762_s26 + $0x2bc8] sm:$0xff]  ;;  %v1611_v9 = vld [vmem:[%s6762_s26 + $0x2a38] sm:$0xff] }
 0x2d3   : > { %4908 = vmatpush.msra.mxu2 %v1578_v10  ;;  %4927 = vmatpush.msra.mxu3 %v1595_v11  ;;  %v1628_v10 = vld [vmem:[%s6762_s26 + $0x2ac0] sm:$0xff]  ;;  %v1643_v11 = vld [vmem:[%s6762_s26 + $0x2b38] sm:$0xff] }
 0x2d4   : > { %4869 = vmatpush.msra.mxu0 %v1545_v12  ;;  %4888 = vmatpush.msra.mxu1 %v1562_v13  ;;  %v1660_v12 = vld [vmem:[%s6762_s26 + $0x2bc0] sm:$0xff]  ;;  %v1610_v13 = vld [vmem:[%s6762_s26 + $0x2a30] sm:$0xff] }
 0x2d5   : > { %4909 = vmatpush.msra.mxu2 %v1577_v14  ;;  %4928 = vmatpush.msra.mxu3 %v1594_v15  ;;  %v1627_v14 = vld [vmem:[%s6762_s26 + $0x2ab8] sm:$0xff]  ;;  %v1642_v15 = vld [vmem:[%s6762_s26 + $0x2b30] sm:$0xff] }
 0x2d6   : > { %4870 = vmatpush.msra.mxu0 %v1544_v16  ;;  %4889 = vmatpush.msra.mxu1 %v1561_v17  ;;  %v1659_v16 = vld [vmem:[%s6762_s26 + $0x2bb8] sm:$0xff]  ;;  %v1609_v17 = vld [vmem:[%s6762_s26 + $0x2a28] sm:$0xff] }
 0x2d7   : > { %4910 = vmatpush.msra.mxu2 %v1576_v18  ;;  %4929 = vmatpush.msra.mxu3 %v1593_v19  ;;  %v1626_v18 = vld [vmem:[%s6762_s26 + $0x2ab0] sm:$0xff]  ;;  %v1641_v19 = vld [vmem:[%s6762_s26 + $0x2b28] sm:$0xff] }
 0x2d8   : > { %4871 = vmatpush.msra.mxu0 %v1543_v20  ;;  %4890 = vmatpush.msra.mxu1 %v1560_v21  ;;  %v1658_v20 = vld [vmem:[%s6762_s26 + $0x2bb0] sm:$0xff]  ;;  %v1608_v21 = vld [vmem:[%s6762_s26 + $0x2a20] sm:$0xff] }
 0x2d9   : > { %4911 = vmatpush.msra.mxu2 %v1575_v22  ;;  %4930 = vmatpush.msra.mxu3 %v1592_v23  ;;  %v1625_v22 = vld [vmem:[%s6762_s26 + $0x2aa8] sm:$0xff]  ;;  %v1640_v23 = vld [vmem:[%s6762_s26 + $0x2b20] sm:$0xff] }
 0x2da   : > { %4872 = vmatpush.msra.mxu0 %v1542_v24  ;;  %4891 = vmatpush.msra.mxu1 %v1559_v25  ;;  %v1657_v24 = vld [vmem:[%s6762_s26 + $0x2ba8] sm:$0xff]  ;;  %v1607_v25 = vld [vmem:[%s6762_s26 + $0x2a18] sm:$0xff] }
 0x2db   : > { %4912 = vmatpush.msra.mxu2 %v1574_v26  ;;  %4931 = vmatpush.msra.mxu3 %v1591_v27  ;;  %v1624_v26 = vld [vmem:[%s6762_s26 + $0x2aa0] sm:$0xff]  ;;  %v1639_v27 = vld [vmem:[%s6762_s26 + $0x2b18] sm:$0xff] }
 0x2dc   : > { %4873 = vmatpush.msra.mxu0 %v1541_v28  ;;  %4892 = vmatpush.msra.mxu1 %v1558_v29  ;;  %v1656_v28 = vld [vmem:[%s6762_s26 + $0x2ba0] sm:$0xff]  ;;  %v1606_v29 = vld [vmem:[%s6762_s26 + $0x2a10] sm:$0xff] }
 0x2dd   : > { %4913 = vmatpush.msra.mxu2 %v1573_v31  ;;  %4932 = vmatpush.msra.mxu3 %v1590_v32  ;;  %v1638_v31 = vld [vmem:[%s6762_s26 + $0x2b10] sm:$0xff]  ;;  %v1655_v32 = vld [vmem:[%s6762_s26 + $0x2b98] sm:$0xff] }
 0x2de   : > { %4874 = vmatpush.msra.mxu0 %v1540_v33  ;;  %4893 = vmatpush.msra.mxu1 %v1557_v34  ;;  %v1605_v33 = vld [vmem:[%s6762_s26 + $0x2a08] sm:$0xff]  ;;  %v1622_v34 = vld [vmem:[%s6762_s26 + $0x2a90] sm:$0xff] }
 0x2df   : > { %4914 = vmatpush.msra.mxu2 %v1572_v35  ;;  %4933 = vmatpush.msra.mxu3 %v1589_v36  ;;  %v241_v35 = vld [vmem:[%s6757_s22 + $0xb0] sm:$0xff]  ;;  %v1637_v36 = vld [vmem:[%s6762_s26 + $0x2b08] sm:$0xff] }
 0x2e0   : > { %4875 = vmatmul.f32.vlgmr.msra.gmra.mxu0 %v2996_v37  ;;  %4915 = vmatmul.f32.vlgmr.msra.gmra.mxu2 %v2998_v38  ;;  %v1654_v37 = vld [vmem:[%s6762_s26 + $0x2b90] sm:$0xff]  ;;  %3004 = vst [vmem:[#allocation1] ss:$4 sm:$0xff] %v241_v35  ;;  %v1604_v38 = vld [vmem:[%s6762_s26 + $0x2a00] sm:$0xff]  ;;  %v1687_v35 = vld [vmem:[%s6762_s26 + $0x2c98] sm:$0xff] }
 0x2e1   : > { %4939 = vmatpush.msrb.mxu0 %v1619_v39  ;;  %4979 = vmatpush.msrb.mxu2 %v1651_v40  ;;  %v1621_v39 = vld [vmem:[%s6762_s26 + $0x2a88] sm:$0xff]  ;;  %v1636_v40 = vld [vmem:[%s6762_s26 + $0x2b00] sm:$0xff] }
 0x2e2   : > { %4894 = vmatpush.msra.mxu1 %v1556_v41  ;;  %4934 = vmatpush.msra.mxu3 %v1588_v42  ;;  %v1653_v41 = vld [vmem:[%s6762_s26 + $0x2b88] sm:$0xff]  ;;  %v3000_v42 = vld.sshfl [vmem:[#allocation1 + $0x20] sm:$0xff pattern:$0x73625140] }
 0x2e3   : > { %4895 = vmatmul.f32.vlgmr.msra.gmra.mxu1 %v2997_v43  ;;  %4935 = vmatmul.f32.vlgmr.msra.gmra.mxu3 %v2999_v44  ;;  %v3002_v43 = vld.sshfl [vmem:[#allocation1 + $0x30] sm:$0xff pattern:$0x73625140]  ;;  %v1683_v44 = vld [vmem:[%s6762_s26 + $0x2c78] sm:$0xff] }
 0x2e4   : > { %4940 = vmatpush.msrb.mxu0 %v1618_v45  ;;  %4959 = vmatpush.msrb.mxu1 %v1635_v46  ;;  %v1715_v45 = vld [vmem:[%s6762_s26 + $0x2d78] sm:$0xff]  ;;  %v1620_v46 = vld [vmem:[%s6762_s26 + $0x2a80] sm:$0xff] }
 0x2e5   : > { %4980 = vmatpush.msrb.mxu2 %v1650_v47  ;;  %4999 = vmatpush.msrb.mxu3 %v1667_v48  ;;  %v1652_v47 = vld [vmem:[%s6762_s26 + $0x2b80] sm:$0xff]  ;;  %v3001_v48 = vld.sshfl [vmem:[#allocation1 + $0x28] sm:$0xff pattern:$0x73625140] }
 0x2e6   : > { %4941 = vmatpush.msrb.mxu0 %v1617_v49  ;;  %4960 = vmatpush.msrb.mxu1 %v1634_v50  ;;  %v3003_v49 = vld.sshfl [vmem:[#allocation1 + $0x38] sm:$0xff pattern:$0x73625140]  ;;  %v1682_v50 = vld [vmem:[%s6762_s26 + $0x2c70] sm:$0xff] }
 0x2e7   : > { %4981 = vmatpush.msrb.mxu2 %v1649_v51  ;;  %5000 = vmatpush.msrb.mxu3 %v1666_v52  ;;  %v1699_v51 = vld [vmem:[%s6762_s26 + $0x2cf8] sm:$0xff]  ;;  %v1714_v52 = vld [vmem:[%s6762_s26 + $0x2d70] sm:$0xff] }
 0x2e8   : > { %4942 = vmatpush.msrb.mxu0 %v1616_v53  ;;  %4961 = vmatpush.msrb.mxu1 %v1633_v54  ;;  %v1731_v53 = vld [vmem:[%s6762_s26 + $0x2df8] sm:$0xff]  ;;  %v1681_v54 = vld [vmem:[%s6762_s26 + $0x2c68] sm:$0xff] }
 0x2e9   : > { %4982 = vmatpush.msrb.mxu2 %v1648_v55  ;;  %5001 = vmatpush.msrb.mxu3 %v1665_v56  ;;  %v1698_v55 = vld [vmem:[%s6762_s26 + $0x2cf0] sm:$0xff]  ;;  %v1713_v56 = vld [vmem:[%s6762_s26 + $0x2d68] sm:$0xff] }
 0x2ea   : > { %4943 = vmatpush.msrb.mxu0 %v1615_v57  ;;  %4962 = vmatpush.msrb.mxu1 %v1632_v58  ;;  %v1730_v57 = vld [vmem:[%s6762_s26 + $0x2df0] sm:$0xff]  ;;  %v1680_v58 = vld [vmem:[%s6762_s26 + $0x2c60] sm:$0xff] }
 0x2eb   : > { %4983 = vmatpush.msrb.mxu2 %v1647_v59  ;;  %5002 = vmatpush.msrb.mxu3 %v1664_v60  ;;  %v1697_v59 = vld [vmem:[%s6762_s26 + $0x2ce8] sm:$0xff]  ;;  %v1712_v60 = vld [vmem:[%s6762_s26 + $0x2d60] sm:$0xff] }
 0x2ec   : > { %4944 = vmatpush.msrb.mxu0 %v1614_v61  ;;  %4963 = vmatpush.msrb.mxu1 %v1631_v62  ;;  %v1729_v61 = vld [vmem:[%s6762_s26 + $0x2de8] sm:$0xff]  ;;  %v1679_v62 = vld [vmem:[%s6762_s26 + $0x2c58] sm:$0xff] }
 0x2ed   : > { %4984 = vmatpush.msrb.mxu2 %v1646_v63  ;;  %5003 = vmatpush.msrb.mxu3 %v1663_v0  ;;  %v1696_v63 = vld [vmem:[%s6762_s26 + $0x2ce0] sm:$0xff]  ;;  %v1711_v0 = vld [vmem:[%s6762_s26 + $0x2d58] sm:$0xff] }
 0x2ee   : > { %4945 = vmatpush.msrb.mxu0 %v1613_v1  ;;  %4964 = vmatpush.msrb.mxu1 %v1630_v2  ;;  %v1728_v1 = vld [vmem:[%s6762_s26 + $0x2de0] sm:$0xff]  ;;  %v1678_v2 = vld [vmem:[%s6762_s26 + $0x2c50] sm:$0xff] }
 0x2ef   : > { %4985 = vmatpush.msrb.mxu2 %v1645_v3  ;;  %5004 = vmatpush.msrb.mxu3 %v1662_v4  ;;  %v1695_v3 = vld [vmem:[%s6762_s26 + $0x2cd8] sm:$0xff]  ;;  %v1710_v4 = vld [vmem:[%s6762_s26 + $0x2d50] sm:$0xff] }
 0x2f0   : > { %4946 = vmatpush.msrb.mxu0 %v1612_v5  ;;  %4965 = vmatpush.msrb.mxu1 %v1629_v6  ;;  %v1727_v5 = vld [vmem:[%s6762_s26 + $0x2dd8] sm:$0xff]  ;;  %v1677_v6 = vld [vmem:[%s6762_s26 + $0x2c48] sm:$0xff] }
 0x2f1   : > { %4986 = vmatpush.msrb.mxu2 %v1644_v7  ;;  %5005 = vmatpush.msrb.mxu3 %v1661_v8  ;;  %v1694_v7 = vld [vmem:[%s6762_s26 + $0x2cd0] sm:$0xff]  ;;  %v1709_v8 = vld [vmem:[%s6762_s26 + $0x2d48] sm:$0xff] }
 0x2f2   : > { %4947 = vmatpush.msrb.mxu0 %v1611_v9  ;;  %4966 = vmatpush.msrb.mxu1 %v1628_v10  ;;  %v1726_v9 = vld [vmem:[%s6762_s26 + $0x2dd0] sm:$0xff]  ;;  %v1676_v10 = vld [vmem:[%s6762_s26 + $0x2c40] sm:$0xff] }
 0x2f3   : > { %4987 = vmatpush.msrb.mxu2 %v1643_v11  ;;  %5006 = vmatpush.msrb.mxu3 %v1660_v12  ;;  %v1693_v11 = vld [vmem:[%s6762_s26 + $0x2cc8] sm:$0xff]  ;;  %v1708_v12 = vld [vmem:[%s6762_s26 + $0x2d40] sm:$0xff] }
 0x2f4   : > { %4948 = vmatpush.msrb.mxu0 %v1610_v13  ;;  %4967 = vmatpush.msrb.mxu1 %v1627_v14  ;;  %v1725_v13 = vld [vmem:[%s6762_s26 + $0x2dc8] sm:$0xff]  ;;  %v1675_v14 = vld [vmem:[%s6762_s26 + $0x2c38] sm:$0xff] }
 0x2f5   : > { %4988 = vmatpush.msrb.mxu2 %v1642_v15  ;;  %5007 = vmatpush.msrb.mxu3 %v1659_v16  ;;  %v1692_v15 = vld [vmem:[%s6762_s26 + $0x2cc0] sm:$0xff]  ;;  %v1707_v16 = vld [vmem:[%s6762_s26 + $0x2d38] sm:$0xff] }
 0x2f6   : > { %4949 = vmatpush.msrb.mxu0 %v1609_v17  ;;  %4968 = vmatpush.msrb.mxu1 %v1626_v18  ;;  %v1724_v17 = vld [vmem:[%s6762_s26 + $0x2dc0] sm:$0xff]  ;;  %v1674_v18 = vld [vmem:[%s6762_s26 + $0x2c30] sm:$0xff] }
 0x2f7   : > { %4989 = vmatpush.msrb.mxu2 %v1641_v19  ;;  %5008 = vmatpush.msrb.mxu3 %v1658_v20  ;;  %v1691_v19 = vld [vmem:[%s6762_s26 + $0x2cb8] sm:$0xff]  ;;  %v1706_v20 = vld [vmem:[%s6762_s26 + $0x2d30] sm:$0xff] }
 0x2f8   : > { %4950 = vmatpush.msrb.mxu0 %v1608_v21  ;;  %4969 = vmatpush.msrb.mxu1 %v1625_v22  ;;  %v1723_v21 = vld [vmem:[%s6762_s26 + $0x2db8] sm:$0xff]  ;;  %v1673_v22 = vld [vmem:[%s6762_s26 + $0x2c28] sm:$0xff] }
 0x2f9   : > { %4990 = vmatpush.msrb.mxu2 %v1640_v23  ;;  %5009 = vmatpush.msrb.mxu3 %v1657_v24  ;;  %v1690_v23 = vld [vmem:[%s6762_s26 + $0x2cb0] sm:$0xff]  ;;  %v1705_v24 = vld [vmem:[%s6762_s26 + $0x2d28] sm:$0xff] }
 0x2fa   : > { %4951 = vmatpush.msrb.mxu0 %v1607_v25  ;;  %4970 = vmatpush.msrb.mxu1 %v1624_v26  ;;  %v1722_v25 = vld [vmem:[%s6762_s26 + $0x2db0] sm:$0xff]  ;;  %v1672_v26 = vld [vmem:[%s6762_s26 + $0x2c20] sm:$0xff] }
 0x2fb   : > { %4991 = vmatpush.msrb.mxu2 %v1639_v27  ;;  %5010 = vmatpush.msrb.mxu3 %v1656_v28  ;;  %v1689_v27 = vld [vmem:[%s6762_s26 + $0x2ca8] sm:$0xff]  ;;  %v1704_v28 = vld [vmem:[%s6762_s26 + $0x2d20] sm:$0xff] }
 0x2fc   : > { %4952 = vmatpush.msrb.mxu0 %v1606_v29  ;;  %4971 = vmatpush.msrb.mxu1 %v1623_v30  ;;  %v1721_v29 = vld [vmem:[%s6762_s26 + $0x2da8] sm:$0xff]  ;;  %v1671_v30 = vld [vmem:[%s6762_s26 + $0x2c18] sm:$0xff] }
 0x2fd   : > { %4992 = vmatpush.msrb.mxu2 %v1638_v31  ;;  %5011 = vmatpush.msrb.mxu3 %v1655_v32  ;;  %v1688_v31 = vld [vmem:[%s6762_s26 + $0x2ca0] sm:$0xff]  ;;  %v1703_v32 = vld [vmem:[%s6762_s26 + $0x2d18] sm:$0xff] }
 0x2fe   : > { %4953 = vmatpush.msrb.mxu0 %v1605_v33  ;;  %4972 = vmatpush.msrb.mxu1 %v1622_v34  ;;  %v1720_v33 = vld [vmem:[%s6762_s26 + $0x2da0] sm:$0xff]  ;;  %v1670_v34 = vld [vmem:[%s6762_s26 + $0x2c10] sm:$0xff] }
 0x2ff   : > { %4993 = vmatpush.msrb.mxu2 %v1637_v36  ;;  %5012 = vmatpush.msrb.mxu3 %v1654_v37  ;;  %v1702_v36 = vld [vmem:[%s6762_s26 + $0x2d10] sm:$0xff]  ;;  %v1719_v37 = vld [vmem:[%s6762_s26 + $0x2d98] sm:$0xff] }
 0x300   : > { %4954 = vmatpush.msrb.mxu0 %v1604_v38  ;;  %4973 = vmatpush.msrb.mxu1 %v1621_v39  ;;  %v1669_v38 = vld [vmem:[%s6762_s26 + $0x2c08] sm:$0xff]  ;;  %v1686_v39 = vld [vmem:[%s6762_s26 + $0x2c90] sm:$0xff] }
 0x301   : > { %4994 = vmatpush.msrb.mxu2 %v1636_v40  ;;  %5013 = vmatpush.msrb.mxu3 %v1653_v41  ;;  %v242_v40 = vld [vmem:[%s6757_s22 + $0xb8] sm:$0xff]  ;;  %v1701_v41 = vld [vmem:[%s6762_s26 + $0x2d08] sm:$0xff] }
 0x302   : > { %4955 = vmatmul.f32.vlgmr.msrb.gmra.mxu0 %v3000_v42  ;;  %4995 = vmatmul.f32.vlgmr.msrb.gmra.mxu2 %v3002_v43  ;;  %v1718_v42 = vld [vmem:[%s6762_s26 + $0x2d90] sm:$0xff]  ;;  %3005 = vst [vmem:[#allocation1 + $0x20] ss:$4 sm:$0xff] %v242_v40  ;;  %v1668_v43 = vld [vmem:[%s6762_s26 + $0x2c00] sm:$0xff]  ;;  %v1751_v40 = vld [vmem:[%s6762_s26 + $0x2e98] sm:$0xff] }
 0x303   : > { %5019 = vmatpush.msra.mxu0 %v1683_v44  ;;  %5059 = vmatpush.msra.mxu2 %v1715_v45  ;;  %v1685_v44 = vld [vmem:[%s6762_s26 + $0x2c88] sm:$0xff]  ;;  %v1700_v45 = vld [vmem:[%s6762_s26 + $0x2d00] sm:$0xff] }
 0x304   : > { %4974 = vmatpush.msrb.mxu1 %v1620_v46  ;;  %5014 = vmatpush.msrb.mxu3 %v1652_v47  ;;  %v1717_v46 = vld [vmem:[%s6762_s26 + $0x2d88] sm:$0xff]  ;;  %v3006_v47 = vld.sshfl [vmem:[#allocation1] sm:$0xff pattern:$0x73625140] }
 0x305   : > { %4975 = vmatmul.f32.vlgmr.msrb.gmra.mxu1 %v3001_v48  ;;  %5015 = vmatmul.f32.vlgmr.msrb.gmra.mxu3 %v3003_v49  ;;  %v3008_v48 = vld.sshfl [vmem:[#allocation1 + $0x10] sm:$0xff pattern:$0x73625140]  ;;  %v1747_v49 = vld [vmem:[%s6762_s26 + $0x2e78] sm:$0xff] }
 0x306   : > { %5020 = vmatpush.msra.mxu0 %v1682_v50  ;;  %5039 = vmatpush.msra.mxu1 %v1699_v51  ;;  %v1779_v50 = vld [vmem:[%s6762_s26 + $0x2f78] sm:$0xff]  ;;  %v1684_v51 = vld [vmem:[%s6762_s26 + $0x2c80] sm:$0xff] }
 0x307   : > { %5060 = vmatpush.msra.mxu2 %v1714_v52  ;;  %5079 = vmatpush.msra.mxu3 %v1731_v53  ;;  %v1716_v52 = vld [vmem:[%s6762_s26 + $0x2d80] sm:$0xff]  ;;  %v3007_v53 = vld.sshfl [vmem:[#allocation1 + $0x8] sm:$0xff pattern:$0x73625140] }
 0x308   : > { %5021 = vmatpush.msra.mxu0 %v1681_v54  ;;  %5040 = vmatpush.msra.mxu1 %v1698_v55  ;;  %v3009_v54 = vld.sshfl [vmem:[#allocation1 + $0x18] sm:$0xff pattern:$0x73625140]  ;;  %v1746_v55 = vld [vmem:[%s6762_s26 + $0x2e70] sm:$0xff] }
 0x309   : > { %5061 = vmatpush.msra.mxu2 %v1713_v56  ;;  %5080 = vmatpush.msra.mxu3 %v1730_v57  ;;  %v1763_v56 = vld [vmem:[%s6762_s26 + $0x2ef8] sm:$0xff]  ;;  %v1778_v57 = vld [vmem:[%s6762_s26 + $0x2f70] sm:$0xff] }
 0x30a   : > { %5022 = vmatpush.msra.mxu0 %v1680_v58  ;;  %5041 = vmatpush.msra.mxu1 %v1697_v59  ;;  %v1795_v58 = vld [vmem:[%s6762_s26 + $0x2ff8] sm:$0xff]  ;;  %v1745_v59 = vld [vmem:[%s6762_s26 + $0x2e68] sm:$0xff] }
 0x30b   : > { %5062 = vmatpush.msra.mxu2 %v1712_v60  ;;  %5081 = vmatpush.msra.mxu3 %v1729_v61  ;;  %v1762_v60 = vld [vmem:[%s6762_s26 + $0x2ef0] sm:$0xff]  ;;  %v1777_v61 = vld [vmem:[%s6762_s26 + $0x2f68] sm:$0xff] }
 0x30c   : > { %5023 = vmatpush.msra.mxu0 %v1679_v62  ;;  %5042 = vmatpush.msra.mxu1 %v1696_v63  ;;  %v1794_v62 = vld [vmem:[%s6762_s26 + $0x2ff0] sm:$0xff]  ;;  %v1744_v63 = vld [vmem:[%s6762_s26 + $0x2e60] sm:$0xff] }
 0x30d   : > { %5063 = vmatpush.msra.mxu2 %v1711_v0  ;;  %5082 = vmatpush.msra.mxu3 %v1728_v1  ;;  %v1761_v0 = vld [vmem:[%s6762_s26 + $0x2ee8] sm:$0xff]  ;;  %v1776_v1 = vld [vmem:[%s6762_s26 + $0x2f60] sm:$0xff] }
 0x30e   : > { %5024 = vmatpush.msra.mxu0 %v1678_v2  ;;  %5043 = vmatpush.msra.mxu1 %v1695_v3  ;;  %v1793_v2 = vld [vmem:[%s6762_s26 + $0x2fe8] sm:$0xff]  ;;  %v1743_v3 = vld [vmem:[%s6762_s26 + $0x2e58] sm:$0xff] }
 0x30f   : > { %5064 = vmatpush.msra.mxu2 %v1710_v4  ;;  %5083 = vmatpush.msra.mxu3 %v1727_v5  ;;  %v1760_v4 = vld [vmem:[%s6762_s26 + $0x2ee0] sm:$0xff]  ;;  %v1775_v5 = vld [vmem:[%s6762_s26 + $0x2f58] sm:$0xff] }
 0x310   : > { %5025 = vmatpush.msra.mxu0 %v1677_v6  ;;  %5044 = vmatpush.msra.mxu1 %v1694_v7  ;;  %v1792_v6 = vld [vmem:[%s6762_s26 + $0x2fe0] sm:$0xff]  ;;  %v1742_v7 = vld [vmem:[%s6762_s26 + $0x2e50] sm:$0xff] }
 0x311   : > { %5065 = vmatpush.msra.mxu2 %v1709_v8  ;;  %5084 = vmatpush.msra.mxu3 %v1726_v9  ;;  %v1759_v8 = vld [vmem:[%s6762_s26 + $0x2ed8] sm:$0xff]  ;;  %v1774_v9 = vld [vmem:[%s6762_s26 + $0x2f50] sm:$0xff] }
 0x312   : > { %5026 = vmatpush.msra.mxu0 %v1676_v10  ;;  %5045 = vmatpush.msra.mxu1 %v1693_v11  ;;  %v1791_v10 = vld [vmem:[%s6762_s26 + $0x2fd8] sm:$0xff]  ;;  %v1741_v11 = vld [vmem:[%s6762_s26 + $0x2e48] sm:$0xff] }
 0x313   : > { %5066 = vmatpush.msra.mxu2 %v1708_v12  ;;  %5085 = vmatpush.msra.mxu3 %v1725_v13  ;;  %v1758_v12 = vld [vmem:[%s6762_s26 + $0x2ed0] sm:$0xff]  ;;  %v1773_v13 = vld [vmem:[%s6762_s26 + $0x2f48] sm:$0xff] }
 0x314   : > { %5027 = vmatpush.msra.mxu0 %v1675_v14  ;;  %5046 = vmatpush.msra.mxu1 %v1692_v15  ;;  %v1790_v14 = vld [vmem:[%s6762_s26 + $0x2fd0] sm:$0xff]  ;;  %v1740_v15 = vld [vmem:[%s6762_s26 + $0x2e40] sm:$0xff] }
 0x315   : > { %5067 = vmatpush.msra.mxu2 %v1707_v16  ;;  %5086 = vmatpush.msra.mxu3 %v1724_v17  ;;  %v1757_v16 = vld [vmem:[%s6762_s26 + $0x2ec8] sm:$0xff]  ;;  %v1772_v17 = vld [vmem:[%s6762_s26 + $0x2f40] sm:$0xff] }
 0x316   : > { %5028 = vmatpush.msra.mxu0 %v1674_v18  ;;  %5047 = vmatpush.msra.mxu1 %v1691_v19  ;;  %v1789_v18 = vld [vmem:[%s6762_s26 + $0x2fc8] sm:$0xff]  ;;  %v1739_v19 = vld [vmem:[%s6762_s26 + $0x2e38] sm:$0xff] }
 0x317   : > { %5068 = vmatpush.msra.mxu2 %v1706_v20  ;;  %5087 = vmatpush.msra.mxu3 %v1723_v21  ;;  %v1756_v20 = vld [vmem:[%s6762_s26 + $0x2ec0] sm:$0xff]  ;;  %v1771_v21 = vld [vmem:[%s6762_s26 + $0x2f38] sm:$0xff] }
 0x318   : > { %5029 = vmatpush.msra.mxu0 %v1673_v22  ;;  %5048 = vmatpush.msra.mxu1 %v1690_v23  ;;  %v1788_v22 = vld [vmem:[%s6762_s26 + $0x2fc0] sm:$0xff]  ;;  %v1738_v23 = vld [vmem:[%s6762_s26 + $0x2e30] sm:$0xff] }
 0x319   : > { %5069 = vmatpush.msra.mxu2 %v1705_v24  ;;  %5088 = vmatpush.msra.mxu3 %v1722_v25  ;;  %v1755_v24 = vld [vmem:[%s6762_s26 + $0x2eb8] sm:$0xff]  ;;  %v1770_v25 = vld [vmem:[%s6762_s26 + $0x2f30] sm:$0xff] }
 0x31a   : > { %5030 = vmatpush.msra.mxu0 %v1672_v26  ;;  %5049 = vmatpush.msra.mxu1 %v1689_v27  ;;  %v1787_v26 = vld [vmem:[%s6762_s26 + $0x2fb8] sm:$0xff]  ;;  %v1737_v27 = vld [vmem:[%s6762_s26 + $0x2e28] sm:$0xff] }
 0x31b   : > { %5070 = vmatpush.msra.mxu2 %v1704_v28  ;;  %5089 = vmatpush.msra.mxu3 %v1721_v29  ;;  %v1754_v28 = vld [vmem:[%s6762_s26 + $0x2eb0] sm:$0xff]  ;;  %v1769_v29 = vld [vmem:[%s6762_s26 + $0x2f28] sm:$0xff] }
 0x31c   : > { %5031 = vmatpush.msra.mxu0 %v1671_v30  ;;  %5050 = vmatpush.msra.mxu1 %v1688_v31  ;;  %v1786_v30 = vld [vmem:[%s6762_s26 + $0x2fb0] sm:$0xff]  ;;  %v1736_v31 = vld [vmem:[%s6762_s26 + $0x2e20] sm:$0xff] }
 0x31d   : > { %5071 = vmatpush.msra.mxu2 %v1703_v32  ;;  %5090 = vmatpush.msra.mxu3 %v1720_v33  ;;  %v1753_v32 = vld [vmem:[%s6762_s26 + $0x2ea8] sm:$0xff]  ;;  %v1768_v33 = vld [vmem:[%s6762_s26 + $0x2f20] sm:$0xff] }
 0x31e   : > { %5032 = vmatpush.msra.mxu0 %v1670_v34  ;;  %5051 = vmatpush.msra.mxu1 %v1687_v35  ;;  %v1785_v34 = vld [vmem:[%s6762_s26 + $0x2fa8] sm:$0xff]  ;;  %v1735_v35 = vld [vmem:[%s6762_s26 + $0x2e18] sm:$0xff] }
 0x31f   : > { %5072 = vmatpush.msra.mxu2 %v1702_v36  ;;  %5091 = vmatpush.msra.mxu3 %v1719_v37  ;;  %v1752_v36 = vld [vmem:[%s6762_s26 + $0x2ea0] sm:$0xff]  ;;  %v1767_v37 = vld [vmem:[%s6762_s26 + $0x2f18] sm:$0xff] }
 0x320   : > { %5033 = vmatpush.msra.mxu0 %v1669_v38  ;;  %5052 = vmatpush.msra.mxu1 %v1686_v39  ;;  %v1784_v38 = vld [vmem:[%s6762_s26 + $0x2fa0] sm:$0xff]  ;;  %v1734_v39 = vld [vmem:[%s6762_s26 + $0x2e10] sm:$0xff] }
 0x321   : > { %5073 = vmatpush.msra.mxu2 %v1701_v41  ;;  %5092 = vmatpush.msra.mxu3 %v1718_v42  ;;  %v1766_v41 = vld [vmem:[%s6762_s26 + $0x2f10] sm:$0xff]  ;;  %v1783_v42 = vld [vmem:[%s6762_s26 + $0x2f98] sm:$0xff] }
 0x322   : > { %5034 = vmatpush.msra.mxu0 %v1668_v43  ;;  %5053 = vmatpush.msra.mxu1 %v1685_v44  ;;  %v1733_v43 = vld [vmem:[%s6762_s26 + $0x2e08] sm:$0xff]  ;;  %v1750_v44 = vld [vmem:[%s6762_s26 + $0x2e90] sm:$0xff] }
 0x323   : > { %5074 = vmatpush.msra.mxu2 %v1700_v45  ;;  %5093 = vmatpush.msra.mxu3 %v1717_v46  ;;  %v243_v45 = vld [vmem:[%s6757_s22 + $0xc0] sm:$0xff]  ;;  %v1765_v46 = vld [vmem:[%s6762_s26 + $0x2f08] sm:$0xff] }
 0x324   : > { %5035 = vmatmul.f32.vlgmr.msra.gmra.mxu0 %v3006_v47  ;;  %5075 = vmatmul.f32.vlgmr.msra.gmra.mxu2 %v3008_v48  ;;  %v1782_v47 = vld [vmem:[%s6762_s26 + $0x2f90] sm:$0xff]  ;;  %3014 = vst [vmem:[#allocation1] ss:$4 sm:$0xff] %v243_v45  ;;  %v1732_v48 = vld [vmem:[%s6762_s26 + $0x2e00] sm:$0xff]  ;;  %v1815_v45 = vld [vmem:[%s6762_s26 + $0x3098] sm:$0xff] }
 0x325   : > { %5099 = vmatpush.msrb.mxu0 %v1747_v49  ;;  %5139 = vmatpush.msrb.mxu2 %v1779_v50  ;;  %v1749_v49 = vld [vmem:[%s6762_s26 + $0x2e88] sm:$0xff]  ;;  %v1764_v50 = vld [vmem:[%s6762_s26 + $0x2f00] sm:$0xff] }
 0x326   : > { %5054 = vmatpush.msra.mxu1 %v1684_v51  ;;  %5094 = vmatpush.msra.mxu3 %v1716_v52  ;;  %v1781_v51 = vld [vmem:[%s6762_s26 + $0x2f88] sm:$0xff]  ;;  %v3010_v52 = vld.sshfl [vmem:[#allocation1 + $0x20] sm:$0xff pattern:$0x73625140] }
 0x327   : > { %5055 = vmatmul.f32.vlgmr.msra.gmra.mxu1 %v3007_v53  ;;  %5095 = vmatmul.f32.vlgmr.msra.gmra.mxu3 %v3009_v54  ;;  %v3012_v53 = vld.sshfl [vmem:[#allocation1 + $0x30] sm:$0xff pattern:$0x73625140]  ;;  %v1811_v54 = vld [vmem:[%s6762_s26 + $0x3078] sm:$0xff] }
 0x328   : > { %5100 = vmatpush.msrb.mxu0 %v1746_v55  ;;  %5119 = vmatpush.msrb.mxu1 %v1763_v56  ;;  %v1843_v55 = vld [vmem:[%s6762_s26 + $0x3178] sm:$0xff]  ;;  %v1748_v56 = vld [vmem:[%s6762_s26 + $0x2e80] sm:$0xff] }
 0x329   : > { %5140 = vmatpush.msrb.mxu2 %v1778_v57  ;;  %5159 = vmatpush.msrb.mxu3 %v1795_v58  ;;  %v1780_v57 = vld [vmem:[%s6762_s26 + $0x2f80] sm:$0xff]  ;;  %v3011_v58 = vld.sshfl [vmem:[#allocation1 + $0x28] sm:$0xff pattern:$0x73625140] }
 0x32a   : > { %5101 = vmatpush.msrb.mxu0 %v1745_v59  ;;  %5120 = vmatpush.msrb.mxu1 %v1762_v60  ;;  %v3013_v59 = vld.sshfl [vmem:[#allocation1 + $0x38] sm:$0xff pattern:$0x73625140]  ;;  %v1810_v60 = vld [vmem:[%s6762_s26 + $0x3070] sm:$0xff] }
 0x32b   : > { %5141 = vmatpush.msrb.mxu2 %v1777_v61  ;;  %5160 = vmatpush.msrb.mxu3 %v1794_v62  ;;  %v1827_v61 = vld [vmem:[%s6762_s26 + $0x30f8] sm:$0xff]  ;;  %v1842_v62 = vld [vmem:[%s6762_s26 + $0x3170] sm:$0xff] }
 0x32c   : > { %5102 = vmatpush.msrb.mxu0 %v1744_v63  ;;  %5121 = vmatpush.msrb.mxu1 %v1761_v0  ;;  %v1859_v63 = vld [vmem:[%s6762_s26 + $0x31f8] sm:$0xff]  ;;  %v1809_v0 = vld [vmem:[%s6762_s26 + $0x3068] sm:$0xff] }
 0x32d   : > { %5142 = vmatpush.msrb.mxu2 %v1776_v1  ;;  %5161 = vmatpush.msrb.mxu3 %v1793_v2  ;;  %v1826_v1 = vld [vmem:[%s6762_s26 + $0x30f0] sm:$0xff]  ;;  %v1841_v2 = vld [vmem:[%s6762_s26 + $0x3168] sm:$0xff] }
 0x32e   : > { %5103 = vmatpush.msrb.mxu0 %v1743_v3  ;;  %5122 = vmatpush.msrb.mxu1 %v1760_v4  ;;  %v1858_v3 = vld [vmem:[%s6762_s26 + $0x31f0] sm:$0xff]  ;;  %v1808_v4 = vld [vmem:[%s6762_s26 + $0x3060] sm:$0xff] }
 0x32f   : > { %5143 = vmatpush.msrb.mxu2 %v1775_v5  ;;  %5162 = vmatpush.msrb.mxu3 %v1792_v6  ;;  %v1825_v5 = vld [vmem:[%s6762_s26 + $0x30e8] sm:$0xff]  ;;  %v1840_v6 = vld [vmem:[%s6762_s26 + $0x3160] sm:$0xff] }
 0x330   : > { %5104 = vmatpush.msrb.mxu0 %v1742_v7  ;;  %5123 = vmatpush.msrb.mxu1 %v1759_v8  ;;  %v1857_v7 = vld [vmem:[%s6762_s26 + $0x31e8] sm:$0xff]  ;;  %v1807_v8 = vld [vmem:[%s6762_s26 + $0x3058] sm:$0xff] }
 0x331   : > { %5144 = vmatpush.msrb.mxu2 %v1774_v9  ;;  %5163 = vmatpush.msrb.mxu3 %v1791_v10  ;;  %v1824_v9 = vld [vmem:[%s6762_s26 + $0x30e0] sm:$0xff]  ;;  %v1839_v10 = vld [vmem:[%s6762_s26 + $0x3158] sm:$0xff] }
 0x332   : > { %5105 = vmatpush.msrb.mxu0 %v1741_v11  ;;  %5124 = vmatpush.msrb.mxu1 %v1758_v12  ;;  %v1856_v11 = vld [vmem:[%s6762_s26 + $0x31e0] sm:$0xff]  ;;  %v1806_v12 = vld [vmem:[%s6762_s26 + $0x3050] sm:$0xff] }
 0x333   : > { %5145 = vmatpush.msrb.mxu2 %v1773_v13  ;;  %5164 = vmatpush.msrb.mxu3 %v1790_v14  ;;  %v1823_v13 = vld [vmem:[%s6762_s26 + $0x30d8] sm:$0xff]  ;;  %v1838_v14 = vld [vmem:[%s6762_s26 + $0x3150] sm:$0xff] }
 0x334   : > { %5106 = vmatpush.msrb.mxu0 %v1740_v15  ;;  %5125 = vmatpush.msrb.mxu1 %v1757_v16  ;;  %v1855_v15 = vld [vmem:[%s6762_s26 + $0x31d8] sm:$0xff]  ;;  %v1805_v16 = vld [vmem:[%s6762_s26 + $0x3048] sm:$0xff] }
 0x335   : > { %5146 = vmatpush.msrb.mxu2 %v1772_v17  ;;  %5165 = vmatpush.msrb.mxu3 %v1789_v18  ;;  %v1822_v17 = vld [vmem:[%s6762_s26 + $0x30d0] sm:$0xff]  ;;  %v1837_v18 = vld [vmem:[%s6762_s26 + $0x3148] sm:$0xff] }
 0x336   : > { %5107 = vmatpush.msrb.mxu0 %v1739_v19  ;;  %5126 = vmatpush.msrb.mxu1 %v1756_v20  ;;  %v1854_v19 = vld [vmem:[%s6762_s26 + $0x31d0] sm:$0xff]  ;;  %v1804_v20 = vld [vmem:[%s6762_s26 + $0x3040] sm:$0xff] }
 0x337   : > { %5147 = vmatpush.msrb.mxu2 %v1771_v21  ;;  %5166 = vmatpush.msrb.mxu3 %v1788_v22  ;;  %v1821_v21 = vld [vmem:[%s6762_s26 + $0x30c8] sm:$0xff]  ;;  %v1836_v22 = vld [vmem:[%s6762_s26 + $0x3140] sm:$0xff] }
 0x338   : > { %5108 = vmatpush.msrb.mxu0 %v1738_v23  ;;  %5127 = vmatpush.msrb.mxu1 %v1755_v24  ;;  %v1853_v23 = vld [vmem:[%s6762_s26 + $0x31c8] sm:$0xff]  ;;  %v1803_v24 = vld [vmem:[%s6762_s26 + $0x3038] sm:$0xff] }
 0x339   : > { %5148 = vmatpush.msrb.mxu2 %v1770_v25  ;;  %5167 = vmatpush.msrb.mxu3 %v1787_v26  ;;  %v1820_v25 = vld [vmem:[%s6762_s26 + $0x30c0] sm:$0xff]  ;;  %v1835_v26 = vld [vmem:[%s6762_s26 + $0x3138] sm:$0xff] }
 0x33a   : > { %5109 = vmatpush.msrb.mxu0 %v1737_v27  ;;  %5128 = vmatpush.msrb.mxu1 %v1754_v28  ;;  %v1852_v27 = vld [vmem:[%s6762_s26 + $0x31c0] sm:$0xff]  ;;  %v1802_v28 = vld [vmem:[%s6762_s26 + $0x3030] sm:$0xff] }
 0x33b   : > { %5149 = vmatpush.msrb.mxu2 %v1769_v29  ;;  %5168 = vmatpush.msrb.mxu3 %v1786_v30  ;;  %v1819_v29 = vld [vmem:[%s6762_s26 + $0x30b8] sm:$0xff]  ;;  %v1834_v30 = vld [vmem:[%s6762_s26 + $0x3130] sm:$0xff] }
 0x33c   : > { %5110 = vmatpush.msrb.mxu0 %v1736_v31  ;;  %5129 = vmatpush.msrb.mxu1 %v1753_v32  ;;  %v1851_v31 = vld [vmem:[%s6762_s26 + $0x31b8] sm:$0xff]  ;;  %v1801_v32 = vld [vmem:[%s6762_s26 + $0x3028] sm:$0xff] }
 0x33d   : > { %5150 = vmatpush.msrb.mxu2 %v1768_v33  ;;  %5169 = vmatpush.msrb.mxu3 %v1785_v34  ;;  %v1818_v33 = vld [vmem:[%s6762_s26 + $0x30b0] sm:$0xff]  ;;  %v1833_v34 = vld [vmem:[%s6762_s26 + $0x3128] sm:$0xff] }
 0x33e   : > { %5111 = vmatpush.msrb.mxu0 %v1735_v35  ;;  %5130 = vmatpush.msrb.mxu1 %v1752_v36  ;;  %v1850_v35 = vld [vmem:[%s6762_s26 + $0x31b0] sm:$0xff]  ;;  %v1800_v36 = vld [vmem:[%s6762_s26 + $0x3020] sm:$0xff] }
 0x33f   : > { %5151 = vmatpush.msrb.mxu2 %v1767_v37  ;;  %5170 = vmatpush.msrb.mxu3 %v1784_v38  ;;  %v1817_v37 = vld [vmem:[%s6762_s26 + $0x30a8] sm:$0xff]  ;;  %v1832_v38 = vld [vmem:[%s6762_s26 + $0x3120] sm:$0xff] }
 0x340   : > { %5112 = vmatpush.msrb.mxu0 %v1734_v39  ;;  %5131 = vmatpush.msrb.mxu1 %v1751_v40  ;;  %v1849_v39 = vld [vmem:[%s6762_s26 + $0x31a8] sm:$0xff]  ;;  %v1799_v40 = vld [vmem:[%s6762_s26 + $0x3018] sm:$0xff] }
 0x341   : > { %5152 = vmatpush.msrb.mxu2 %v1766_v41  ;;  %5171 = vmatpush.msrb.mxu3 %v1783_v42  ;;  %v1816_v41 = vld [vmem:[%s6762_s26 + $0x30a0] sm:$0xff]  ;;  %v1831_v42 = vld [vmem:[%s6762_s26 + $0x3118] sm:$0xff] }
 0x342   : > { %5113 = vmatpush.msrb.mxu0 %v1733_v43  ;;  %5132 = vmatpush.msrb.mxu1 %v1750_v44  ;;  %v1848_v43 = vld [vmem:[%s6762_s26 + $0x31a0] sm:$0xff]  ;;  %v1798_v44 = vld [vmem:[%s6762_s26 + $0x3010] sm:$0xff] }
 0x343   : > { %5153 = vmatpush.msrb.mxu2 %v1765_v46  ;;  %5172 = vmatpush.msrb.mxu3 %v1782_v47  ;;  %v1830_v46 = vld [vmem:[%s6762_s26 + $0x3110] sm:$0xff]  ;;  %v1847_v47 = vld [vmem:[%s6762_s26 + $0x3198] sm:$0xff] }
 0x344   : > { %5114 = vmatpush.msrb.mxu0 %v1732_v48  ;;  %5133 = vmatpush.msrb.mxu1 %v1749_v49  ;;  %v1797_v48 = vld [vmem:[%s6762_s26 + $0x3008] sm:$0xff]  ;;  %v1814_v49 = vld [vmem:[%s6762_s26 + $0x3090] sm:$0xff] }
 0x345   : > { %5154 = vmatpush.msrb.mxu2 %v1764_v50  ;;  %5173 = vmatpush.msrb.mxu3 %v1781_v51  ;;  %v244_v50 = vld [vmem:[%s6757_s22 + $0xc8] sm:$0xff] }
 0x346   : > { %5115 = vmatmul.f32.vlgmr.msrb.gmra.mxu0 %v3010_v52  ;;  %5155 = vmatmul.f32.vlgmr.msrb.gmra.mxu2 %v3012_v53  ;;  %v1829_v51 = vld [vmem:[%s6762_s26 + $0x3108] sm:$0xff]  ;;  %v1846_v52 = vld [vmem:[%s6762_s26 + $0x3190] sm:$0xff]  ;;  %3015 = vst [vmem:[#allocation1 + $0x20] ss:$4 sm:$0xff] %v244_v50  ;;  %v1796_v53 = vld [vmem:[%s6762_s26 + $0x3000] sm:$0xff] }
 0x347   : > { %5179 = vmatpush.msra.mxu0 %v1811_v54  ;;  %5219 = vmatpush.msra.mxu2 %v1843_v55  ;;  %v1813_v54 = vld [vmem:[%s6762_s26 + $0x3088] sm:$0xff]  ;;  %v1828_v55 = vld [vmem:[%s6762_s26 + $0x3100] sm:$0xff] }
 0x348   : > { %5134 = vmatpush.msrb.mxu1 %v1748_v56  ;;  %5174 = vmatpush.msrb.mxu3 %v1780_v57  ;;  %v1845_v56 = vld [vmem:[%s6762_s26 + $0x3188] sm:$0xff]  ;;  %v3016_v57 = vld.sshfl [vmem:[#allocation1] sm:$0xff pattern:$0x73625140] }
 0x349   : > { %5135 = vmatmul.f32.vlgmr.msrb.gmra.mxu1 %v3011_v58  ;;  %5175 = vmatmul.f32.vlgmr.msrb.gmra.mxu3 %v3013_v59  ;;  %v3018_v58 = vld.sshfl [vmem:[#allocation1 + $0x10] sm:$0xff pattern:$0x73625140]  ;;  %v1875_v59 = vld [vmem:[%s6762_s26 + $0x3278] sm:$0xff]  ;;  %v1880_v50 = vld [vmem:[%s6762_s26 + $0x32a0] sm:$0xff] }
 0x34a   : > { %5180 = vmatpush.msra.mxu0 %v1810_v60  ;;  %5199 = vmatpush.msra.mxu1 %v1827_v61  ;;  %v1907_v60 = vld [vmem:[%s6762_s26 + $0x3378] sm:$0xff]  ;;  %v1812_v61 = vld [vmem:[%s6762_s26 + $0x3080] sm:$0xff] }
 0x34b   : > { %5220 = vmatpush.msra.mxu2 %v1842_v62  ;;  %5239 = vmatpush.msra.mxu3 %v1859_v63  ;;  %v1844_v62 = vld [vmem:[%s6762_s26 + $0x3180] sm:$0xff]  ;;  %v8393_v63 = vpop.f32.mrf.mxu0 }
 0x34c   : > { %5181 = vmatpush.msra.mxu0 %v1809_v0  ;;  %5200 = vmatpush.msra.mxu1 %v1826_v1  ;;  %v8395_v0 = vpop.f32.mrf.mxu2  ;;  %v3017_v1 = vld.sshfl [vmem:[#allocation1 + $0x8] sm:$0xff pattern:$0x73625140] }
 0x34d   : > { %5221 = vmatpush.msra.mxu2 %v1841_v2  ;;  %5240 = vmatpush.msra.mxu3 %v1858_v3  ;;  %v3019_v2 = vld.sshfl [vmem:[#allocation1 + $0x18] sm:$0xff pattern:$0x73625140]  ;;  %v1874_v3 = vld [vmem:[%s6762_s26 + $0x3270] sm:$0xff] }
 0x34e   : > { %5182 = vmatpush.msra.mxu0 %v1808_v4  ;;  %5201 = vmatpush.msra.mxu1 %v1825_v5  ;;  %v1891_v4 = vld [vmem:[%s6762_s26 + $0x32f8] sm:$0xff]  ;;  %v1906_v5 = vld [vmem:[%s6762_s26 + $0x3370] sm:$0xff] }
 0x34f   : > { %5222 = vmatpush.msra.mxu2 %v1840_v6  ;;  %5241 = vmatpush.msra.mxu3 %v1857_v7  ;;  %v1923_v6 = vld [vmem:[%s6762_s26 + $0x33f8] sm:$0xff]  ;;  %v8401_v7 = vpop.f32.mrf.mxu1 }
 0x350   : > { %5183 = vmatpush.msra.mxu0 %v1807_v8  ;;  %5202 = vmatpush.msra.mxu1 %v1824_v9  ;;  %v8403_v8 = vpop.f32.mrf.mxu3  ;;  %v1873_v9 = vld [vmem:[%s6762_s26 + $0x3268] sm:$0xff] }
 0x351   : > { %5223 = vmatpush.msra.mxu2 %v1839_v10  ;;  %5242 = vmatpush.msra.mxu3 %v1856_v11  ;;  %v1890_v10 = vld [vmem:[%s6762_s26 + $0x32f0] sm:$0xff]  ;;  %v1905_v11 = vld [vmem:[%s6762_s26 + $0x3368] sm:$0xff] }
 0x352   : > { %5184 = vmatpush.msra.mxu0 %v1806_v12  ;;  %5203 = vmatpush.msra.mxu1 %v1823_v13  ;;  %v1922_v12 = vld [vmem:[%s6762_s26 + $0x33f0] sm:$0xff]  ;;  %v1872_v13 = vld [vmem:[%s6762_s26 + $0x3260] sm:$0xff] }
 0x353   : > { %5224 = vmatpush.msra.mxu2 %v1838_v14  ;;  %5243 = vmatpush.msra.mxu3 %v1855_v15  ;;  %v1889_v14 = vld [vmem:[%s6762_s26 + $0x32e8] sm:$0xff]  ;;  %v1904_v15 = vld [vmem:[%s6762_s26 + $0x3360] sm:$0xff] }
 0x354   : > { %5185 = vmatpush.msra.mxu0 %v1805_v16  ;;  %5204 = vmatpush.msra.mxu1 %v1822_v17  ;;  %v1921_v16 = vld [vmem:[%s6762_s26 + $0x33e8] sm:$0xff]  ;;  %v1871_v17 = vld [vmem:[%s6762_s26 + $0x3258] sm:$0xff] }
 0x355   : > { %5225 = vmatpush.msra.mxu2 %v1837_v18  ;;  %5244 = vmatpush.msra.mxu3 %v1854_v19  ;;  %v1888_v18 = vld [vmem:[%s6762_s26 + $0x32e0] sm:$0xff]  ;;  %v1903_v19 = vld [vmem:[%s6762_s26 + $0x3358] sm:$0xff] }
 0x356   : > { %5186 = vmatpush.msra.mxu0 %v1804_v20  ;;  %5205 = vmatpush.msra.mxu1 %v1821_v21  ;;  %v1920_v20 = vld [vmem:[%s6762_s26 + $0x33e0] sm:$0xff]  ;;  %v1870_v21 = vld [vmem:[%s6762_s26 + $0x3250] sm:$0xff] }
 0x357   : > { %5226 = vmatpush.msra.mxu2 %v1836_v22  ;;  %5245 = vmatpush.msra.mxu3 %v1853_v23  ;;  %v1887_v22 = vld [vmem:[%s6762_s26 + $0x32d8] sm:$0xff]  ;;  %v1902_v23 = vld [vmem:[%s6762_s26 + $0x3350] sm:$0xff] }
 0x358   : > { %5187 = vmatpush.msra.mxu0 %v1803_v24  ;;  %5206 = vmatpush.msra.mxu1 %v1820_v25  ;;  %v1919_v24 = vld [vmem:[%s6762_s26 + $0x33d8] sm:$0xff]  ;;  %v1869_v25 = vld [vmem:[%s6762_s26 + $0x3248] sm:$0xff] }
 0x359   : > { %5227 = vmatpush.msra.mxu2 %v1835_v26  ;;  %5246 = vmatpush.msra.mxu3 %v1852_v27  ;;  %v1886_v26 = vld [vmem:[%s6762_s26 + $0x32d0] sm:$0xff]  ;;  %v1901_v27 = vld [vmem:[%s6762_s26 + $0x3348] sm:$0xff] }
 0x35a   : > { %5188 = vmatpush.msra.mxu0 %v1802_v28  ;;  %5207 = vmatpush.msra.mxu1 %v1819_v29  ;;  %v1918_v28 = vld [vmem:[%s6762_s26 + $0x33d0] sm:$0xff]  ;;  %v1868_v29 = vld [vmem:[%s6762_s26 + $0x3240] sm:$0xff] }
 0x35b   : > { %5228 = vmatpush.msra.mxu2 %v1834_v30  ;;  %5247 = vmatpush.msra.mxu3 %v1851_v31  ;;  %v1885_v30 = vld [vmem:[%s6762_s26 + $0x32c8] sm:$0xff]  ;;  %v1900_v31 = vld [vmem:[%s6762_s26 + $0x3340] sm:$0xff] }
 0x35c   : > { %5189 = vmatpush.msra.mxu0 %v1801_v32  ;;  %5208 = vmatpush.msra.mxu1 %v1818_v33  ;;  %v1917_v32 = vld [vmem:[%s6762_s26 + $0x33c8] sm:$0xff]  ;;  %v1867_v33 = vld [vmem:[%s6762_s26 + $0x3238] sm:$0xff] }
 0x35d   : > { %5229 = vmatpush.msra.mxu2 %v1833_v34  ;;  %5248 = vmatpush.msra.mxu3 %v1850_v35  ;;  %v1884_v34 = vld [vmem:[%s6762_s26 + $0x32c0] sm:$0xff]  ;;  %v1899_v35 = vld [vmem:[%s6762_s26 + $0x3338] sm:$0xff] }
 0x35e   : > { %5190 = vmatpush.msra.mxu0 %v1800_v36  ;;  %5209 = vmatpush.msra.mxu1 %v1817_v37  ;;  %v1916_v36 = vld [vmem:[%s6762_s26 + $0x33c0] sm:$0xff]  ;;  %v1866_v37 = vld [vmem:[%s6762_s26 + $0x3230] sm:$0xff] }
 0x35f   : > { %5230 = vmatpush.msra.mxu2 %v1832_v38  ;;  %5249 = vmatpush.msra.mxu3 %v1849_v39  ;;  %v1883_v38 = vld [vmem:[%s6762_s26 + $0x32b8] sm:$0xff]  ;;  %v1898_v39 = vld [vmem:[%s6762_s26 + $0x3330] sm:$0xff] }
 0x360   : > { %5191 = vmatpush.msra.mxu0 %v1799_v40  ;;  %5210 = vmatpush.msra.mxu1 %v1816_v41  ;;  %v1915_v40 = vld [vmem:[%s6762_s26 + $0x33b8] sm:$0xff]  ;;  %v1865_v41 = vld [vmem:[%s6762_s26 + $0x3228] sm:$0xff] }
 0x361   : > { %5231 = vmatpush.msra.mxu2 %v1831_v42  ;;  %5250 = vmatpush.msra.mxu3 %v1848_v43  ;;  %v1882_v42 = vld [vmem:[%s6762_s26 + $0x32b0] sm:$0xff]  ;;  %v1897_v43 = vld [vmem:[%s6762_s26 + $0x3328] sm:$0xff] }
 0x362   : > { %5192 = vmatpush.msra.mxu0 %v1798_v44  ;;  %5211 = vmatpush.msra.mxu1 %v1815_v45  ;;  %v1914_v44 = vld [vmem:[%s6762_s26 + $0x33b0] sm:$0xff]  ;;  %v1864_v45 = vld [vmem:[%s6762_s26 + $0x3220] sm:$0xff] }
 0x363   : > { %5232 = vmatpush.msra.mxu2 %v1830_v46  ;;  %5251 = vmatpush.msra.mxu3 %v1847_v47  ;;  %v1881_v46 = vld [vmem:[%s6762_s26 + $0x32a8] sm:$0xff]  ;;  %v1896_v47 = vld [vmem:[%s6762_s26 + $0x3320] sm:$0xff] }
 0x364   : > { %5193 = vmatpush.msra.mxu0 %v1797_v48  ;;  %5212 = vmatpush.msra.mxu1 %v1814_v49  ;;  %v1913_v48 = vld [vmem:[%s6762_s26 + $0x33a8] sm:$0xff]  ;;  %v1863_v49 = vld [vmem:[%s6762_s26 + $0x3218] sm:$0xff] }
 0x365   : > { %5233 = vmatpush.msra.mxu2 %v1829_v51  ;;  %5252 = vmatpush.msra.mxu3 %v1846_v52  ;;  %v1895_v51 = vld [vmem:[%s6762_s26 + $0x3318] sm:$0xff]  ;;  %v1912_v52 = vld [vmem:[%s6762_s26 + $0x33a0] sm:$0xff] }
 0x366   : > { %5194 = vmatpush.msra.mxu0 %v1796_v53  ;;  %5213 = vmatpush.msra.mxu1 %v1813_v54  ;;  %v1862_v53 = vld [vmem:[%s6762_s26 + $0x3210] sm:$0xff]  ;;  %v1879_v54 = vld [vmem:[%s6762_s26 + $0x3298] sm:$0xff] }
 0x367   : > { %5234 = vmatpush.msra.mxu2 %v1828_v55  ;;  %5253 = vmatpush.msra.mxu3 %v1845_v56  ;;  %v1894_v55 = vld [vmem:[%s6762_s26 + $0x3310] sm:$0xff]  ;;  %v1911_v56 = vld [vmem:[%s6762_s26 + $0x3398] sm:$0xff] }
 0x368   : > { %5195 = vmatmul.f32.vlgmr.msra.gmra.mxu0 %v3016_v57  ;;  %5235 = vmatmul.f32.vlgmr.msra.gmra.mxu2 %v3018_v58  ;;  %v1861_v57 = vld [vmem:[%s6762_s26 + $0x3208] sm:$0xff]  ;;  %v1878_v58 = vld [vmem:[%s6762_s26 + $0x3290] sm:$0xff] }
 0x369   : > { %5259 = vmatpush.msrb.mxu0 %v1875_v59  ;;  %5299 = vmatpush.msrb.mxu2 %v1907_v60  ;;  %v245_v59 = vld [vmem:[%s6757_s22 + $0xd0] sm:$0xff]  ;;  %v1893_v60 = vld [vmem:[%s6762_s26 + $0x3308] sm:$0xff] }
 0x36a   : > { %5214 = vmatpush.msra.mxu1 %v1812_v61  ;;  %5254 = vmatpush.msra.mxu3 %v1844_v62  ;;  %v1910_v61 = vld [vmem:[%s6762_s26 + $0x3390] sm:$0xff]  ;;  %3024 = vst [vmem:[#allocation1] ss:$4 sm:$0xff] %v245_v59  ;;  %v1860_v62 = vld [vmem:[%s6762_s26 + $0x3200] sm:$0xff]  ;;  %v1945_v59 = vld [vmem:[%s6762_s26 + $0x34a8] sm:$0xff] }
 0x36b   : > { %5215 = vmatmul.f32.vlgmr.msra.gmra.mxu1 %v3017_v1  ;;  %5255 = vmatmul.f32.vlgmr.msra.gmra.mxu3 %v3019_v2  ;;  %v1877_v1 = vld [vmem:[%s6762_s26 + $0x3288] sm:$0xff]  ;;  %v1892_v2 = vld [vmem:[%s6762_s26 + $0x3300] sm:$0xff] }
 0x36c   : > { %5260 = vmatpush.msrb.mxu0 %v1874_v3  ;;  %5279 = vmatpush.msrb.mxu1 %v1891_v4  ;;  %v1909_v3 = vld [vmem:[%s6762_s26 + $0x3388] sm:$0xff]  ;;  %v3020_v4 = vld.sshfl [vmem:[#allocation1 + $0x20] sm:$0xff pattern:$0x73625140] }
 0x36d   : > { %5300 = vmatpush.msrb.mxu2 %v1906_v5  ;;  %5319 = vmatpush.msrb.mxu3 %v1923_v6  ;;  %v3022_v5 = vld.sshfl [vmem:[#allocation1 + $0x30] sm:$0xff pattern:$0x73625140]  ;;  %v1939_v6 = vld [vmem:[%s6762_s26 + $0x3478] sm:$0xff] }
 0x36e   : > { %5261 = vmatpush.msrb.mxu0 %v1873_v9  ;;  %5280 = vmatpush.msrb.mxu1 %v1890_v10  ;;  %v1971_v9 = vld [vmem:[%s6762_s26 + $0x3578] sm:$0xff]  ;;  %v1876_v10 = vld [vmem:[%s6762_s26 + $0x3280] sm:$0xff] }
 0x36f   : > { %5301 = vmatpush.msrb.mxu2 %v1905_v11  ;;  %5320 = vmatpush.msrb.mxu3 %v1922_v12  ;;  %v1908_v11 = vld [vmem:[%s6762_s26 + $0x3380] sm:$0xff]  ;;  %v8466_v12 = vpop.f32.mrf.mxu0 }
 0x370   : > { %5262 = vmatpush.msrb.mxu0 %v1872_v13  ;;  %5281 = vmatpush.msrb.mxu1 %v1889_v14  ;;  %v8468_v13 = vpop.f32.mrf.mxu2  ;;  %v3021_v14 = vld.sshfl [vmem:[#allocation1 + $0x28] sm:$0xff pattern:$0x73625140] }
 0x371   : > { %5302 = vmatpush.msrb.mxu2 %v1904_v15  ;;  %5321 = vmatpush.msrb.mxu3 %v1921_v16  ;;  %v3023_v15 = vld.sshfl [vmem:[#allocation1 + $0x38] sm:$0xff pattern:$0x73625140]  ;;  %v1938_v16 = vld [vmem:[%s6762_s26 + $0x3470] sm:$0xff] }
 0x372   : > { %5263 = vmatpush.msrb.mxu0 %v1871_v17  ;;  %5282 = vmatpush.msrb.mxu1 %v1888_v18  ;;  %v1955_v17 = vld [vmem:[%s6762_s26 + $0x34f8] sm:$0xff]  ;;  %v1970_v18 = vld [vmem:[%s6762_s26 + $0x3570] sm:$0xff] }
 0x373   : > { %5303 = vmatpush.msrb.mxu2 %v1903_v19  ;;  %5322 = vmatpush.msrb.mxu3 %v1920_v20  ;;  %v1987_v19 = vld [vmem:[%s6762_s26 + $0x35f8] sm:$0xff]  ;;  %v8474_v20 = vpop.f32.mrf.mxu1 }
 0x374   : > { %5264 = vmatpush.msrb.mxu0 %v1870_v21  ;;  %5283 = vmatpush.msrb.mxu1 %v1887_v22  ;;  %v8476_v21 = vpop.f32.mrf.mxu3  ;;  %v1937_v22 = vld [vmem:[%s6762_s26 + $0x3468] sm:$0xff] }
 0x375   : > { %5304 = vmatpush.msrb.mxu2 %v1902_v23  ;;  %5323 = vmatpush.msrb.mxu3 %v1919_v24  ;;  %v1954_v23 = vld [vmem:[%s6762_s26 + $0x34f0] sm:$0xff]  ;;  %v1969_v24 = vld [vmem:[%s6762_s26 + $0x3568] sm:$0xff] }
 0x376   : > { %5265 = vmatpush.msrb.mxu0 %v1869_v25  ;;  %5284 = vmatpush.msrb.mxu1 %v1886_v26  ;;  %v1986_v25 = vld [vmem:[%s6762_s26 + $0x35f0] sm:$0xff]  ;;  %v1936_v26 = vld [vmem:[%s6762_s26 + $0x3460] sm:$0xff] }
 0x377   : > { %5305 = vmatpush.msrb.mxu2 %v1901_v27  ;;  %5324 = vmatpush.msrb.mxu3 %v1918_v28  ;;  %v1953_v27 = vld [vmem:[%s6762_s26 + $0x34e8] sm:$0xff]  ;;  %v1968_v28 = vld [vmem:[%s6762_s26 + $0x3560] sm:$0xff] }
 0x378   : > { %5266 = vmatpush.msrb.mxu0 %v1868_v29  ;;  %5285 = vmatpush.msrb.mxu1 %v1885_v30  ;;  %v1985_v29 = vld [vmem:[%s6762_s26 + $0x35e8] sm:$0xff]  ;;  %v1935_v30 = vld [vmem:[%s6762_s26 + $0x3458] sm:$0xff] }
 0x379   : > { %5306 = vmatpush.msrb.mxu2 %v1900_v31  ;;  %5325 = vmatpush.msrb.mxu3 %v1917_v32  ;;  %v1952_v31 = vld [vmem:[%s6762_s26 + $0x34e0] sm:$0xff]  ;;  %v1967_v32 = vld [vmem:[%s6762_s26 + $0x3558] sm:$0xff] }
 0x37a   : > { %5267 = vmatpush.msrb.mxu0 %v1867_v33  ;;  %5286 = vmatpush.msrb.mxu1 %v1884_v34  ;;  %v1984_v33 = vld [vmem:[%s6762_s26 + $0x35e0] sm:$0xff]  ;;  %v1934_v34 = vld [vmem:[%s6762_s26 + $0x3450] sm:$0xff] }
 0x37b   : > { %5307 = vmatpush.msrb.mxu2 %v1899_v35  ;;  %5326 = vmatpush.msrb.mxu3 %v1916_v36  ;;  %v1951_v35 = vld [vmem:[%s6762_s26 + $0x34d8] sm:$0xff]  ;;  %v1966_v36 = vld [vmem:[%s6762_s26 + $0x3550] sm:$0xff] }
 0x37c   : > { %5268 = vmatpush.msrb.mxu0 %v1866_v37  ;;  %5287 = vmatpush.msrb.mxu1 %v1883_v38  ;;  %v1983_v37 = vld [vmem:[%s6762_s26 + $0x35d8] sm:$0xff]  ;;  %v1933_v38 = vld [vmem:[%s6762_s26 + $0x3448] sm:$0xff] }
 0x37d   : > { %5308 = vmatpush.msrb.mxu2 %v1898_v39  ;;  %5327 = vmatpush.msrb.mxu3 %v1915_v40  ;;  %v1950_v39 = vld [vmem:[%s6762_s26 + $0x34d0] sm:$0xff]  ;;  %v1965_v40 = vld [vmem:[%s6762_s26 + $0x3548] sm:$0xff] }
 0x37e   : > { %5269 = vmatpush.msrb.mxu0 %v1865_v41  ;;  %5288 = vmatpush.msrb.mxu1 %v1882_v42  ;;  %v1982_v41 = vld [vmem:[%s6762_s26 + $0x35d0] sm:$0xff]  ;;  %v1932_v42 = vld [vmem:[%s6762_s26 + $0x3440] sm:$0xff] }
 0x37f   : > { %5309 = vmatpush.msrb.mxu2 %v1897_v43  ;;  %5328 = vmatpush.msrb.mxu3 %v1914_v44  ;;  %v1949_v43 = vld [vmem:[%s6762_s26 + $0x34c8] sm:$0xff]  ;;  %v1964_v44 = vld [vmem:[%s6762_s26 + $0x3540] sm:$0xff] }
 0x380   : > { %5270 = vmatpush.msrb.mxu0 %v1864_v45  ;;  %5289 = vmatpush.msrb.mxu1 %v1881_v46  ;;  %v1981_v45 = vld [vmem:[%s6762_s26 + $0x35c8] sm:$0xff]  ;;  %v1931_v46 = vld [vmem:[%s6762_s26 + $0x3438] sm:$0xff] }
 0x381   : > { %5310 = vmatpush.msrb.mxu2 %v1896_v47  ;;  %5329 = vmatpush.msrb.mxu3 %v1913_v48  ;;  %v1948_v47 = vld [vmem:[%s6762_s26 + $0x34c0] sm:$0xff]  ;;  %v1963_v48 = vld [vmem:[%s6762_s26 + $0x3538] sm:$0xff] }
 0x382   : > { %5271 = vmatpush.msrb.mxu0 %v1863_v49  ;;  %5290 = vmatpush.msrb.mxu1 %v1880_v50  ;;  %v1980_v49 = vld [vmem:[%s6762_s26 + $0x35c0] sm:$0xff]  ;;  %v1930_v50 = vld [vmem:[%s6762_s26 + $0x3430] sm:$0xff] }
 0x383   : > { %5311 = vmatpush.msrb.mxu2 %v1895_v51  ;;  %5330 = vmatpush.msrb.mxu3 %v1912_v52  ;;  %v1947_v51 = vld [vmem:[%s6762_s26 + $0x34b8] sm:$0xff]  ;;  %v1962_v52 = vld [vmem:[%s6762_s26 + $0x3530] sm:$0xff] }
 0x384   : > { %5272 = vmatpush.msrb.mxu0 %v1862_v53  ;;  %5291 = vmatpush.msrb.mxu1 %v1879_v54  ;;  %v1979_v53 = vld [vmem:[%s6762_s26 + $0x35b8] sm:$0xff]  ;;  %v1929_v54 = vld [vmem:[%s6762_s26 + $0x3428] sm:$0xff] }
 0x385   : > { %5312 = vmatpush.msrb.mxu2 %v1894_v55  ;;  %5331 = vmatpush.msrb.mxu3 %v1911_v56  ;;  %v1946_v55 = vld [vmem:[%s6762_s26 + $0x34b0] sm:$0xff]  ;;  %v1961_v56 = vld [vmem:[%s6762_s26 + $0x3528] sm:$0xff] }
 0x386   : > { %5273 = vmatpush.msrb.mxu0 %v1861_v57  ;;  %5292 = vmatpush.msrb.mxu1 %v1878_v58  ;;  %v1978_v57 = vld [vmem:[%s6762_s26 + $0x35b0] sm:$0xff]  ;;  %v1928_v58 = vld [vmem:[%s6762_s26 + $0x3420] sm:$0xff] }
 0x387   : > { %5313 = vmatpush.msrb.mxu2 %v1893_v60  ;;  %5332 = vmatpush.msrb.mxu3 %v1910_v61  ;;  %v1960_v60 = vld [vmem:[%s6762_s26 + $0x3520] sm:$0xff]  ;;  %v1977_v61 = vld [vmem:[%s6762_s26 + $0x35a8] sm:$0xff] }
 0x388   : > { %5274 = vmatpush.msrb.mxu0 %v1860_v62  ;;  %5293 = vmatpush.msrb.mxu1 %v1877_v1  ;;  %v1927_v62 = vld [vmem:[%s6762_s26 + $0x3418] sm:$0xff]  ;;  %v1944_v1 = vld [vmem:[%s6762_s26 + $0x34a0] sm:$0xff] }
 0x389   : > { %5314 = vmatpush.msrb.mxu2 %v1892_v2  ;;  %5333 = vmatpush.msrb.mxu3 %v1909_v3  ;;  %v1959_v2 = vld [vmem:[%s6762_s26 + $0x3518] sm:$0xff]  ;;  %v1976_v3 = vld [vmem:[%s6762_s26 + $0x35a0] sm:$0xff] }
 0x38a   : > { %5275 = vmatmul.f32.vlgmr.msrb.gmra.mxu0 %v3020_v4  ;;  %5315 = vmatmul.f32.vlgmr.msrb.gmra.mxu2 %v3022_v5  ;;  %v1926_v4 = vld [vmem:[%s6762_s26 + $0x3410] sm:$0xff]  ;;  %v1943_v5 = vld [vmem:[%s6762_s26 + $0x3498] sm:$0xff] }
 0x38b   : > { %5339 = vmatpush.msra.mxu0 %v1939_v6  ;;  %5379 = vmatpush.msra.mxu2 %v1971_v9  ;;  %v1958_v6 = vld [vmem:[%s6762_s26 + $0x3510] sm:$0xff]  ;;  %v1975_v9 = vld [vmem:[%s6762_s26 + $0x3598] sm:$0xff] }
 0x38c   : > { %5294 = vmatpush.msrb.mxu1 %v1876_v10  ;;  %5334 = vmatpush.msrb.mxu3 %v1908_v11  ;;  %v1925_v10 = vld [vmem:[%s6762_s26 + $0x3408] sm:$0xff]  ;;  %v1942_v11 = vld [vmem:[%s6762_s26 + $0x3490] sm:$0xff] }
 0x38d   : > { %5295 = vmatmul.f32.vlgmr.msrb.gmra.mxu1 %v3021_v14  ;;  %5335 = vmatmul.f32.vlgmr.msrb.gmra.mxu3 %v3023_v15  ;;  %v246_v14 = vld [vmem:[%s6757_s22 + $0xd8] sm:$0xff]  ;;  %v1957_v15 = vld [vmem:[%s6762_s26 + $0x3508] sm:$0xff] }
 0x38e   : > { %5340 = vmatpush.msra.mxu0 %v1938_v16  ;;  %5359 = vmatpush.msra.mxu1 %v1955_v17  ;;  %v1974_v16 = vld [vmem:[%s6762_s26 + $0x3590] sm:$0xff]  ;;  %3025 = vst [vmem:[#allocation1 + $0x20] ss:$4 sm:$0xff] %v246_v14  ;;  %v1924_v17 = vld [vmem:[%s6762_s26 + $0x3400] sm:$0xff] }
 0x38f   : > { %5380 = vmatpush.msra.mxu2 %v1970_v18  ;;  %5399 = vmatpush.msra.mxu3 %v1987_v19  ;;  %v1941_v18 = vld [vmem:[%s6762_s26 + $0x3488] sm:$0xff]  ;;  %v1956_v19 = vld [vmem:[%s6762_s26 + $0x3500] sm:$0xff]  ;;  %v2010_v14 = vld [vmem:[%s6762_s26 + $0x36b0] sm:$0xff] }
 0x390   : > { %5341 = vmatpush.msra.mxu0 %v1937_v22  ;;  %5360 = vmatpush.msra.mxu1 %v1954_v23  ;;  %v1973_v22 = vld [vmem:[%s6762_s26 + $0x3588] sm:$0xff]  ;;  %v3026_v23 = vld.sshfl [vmem:[#allocation1] sm:$0xff pattern:$0x73625140] }
 0x391   : > { %5381 = vmatpush.msra.mxu2 %v1969_v24  ;;  %5400 = vmatpush.msra.mxu3 %v1986_v25  ;;  %v3028_v24 = vld.sshfl [vmem:[#allocation1 + $0x10] sm:$0xff pattern:$0x73625140]  ;;  %v2003_v25 = vld [vmem:[%s6762_s26 + $0x3678] sm:$0xff] }
 0x392   : > { %5342 = vmatpush.msra.mxu0 %v1936_v26  ;;  %5361 = vmatpush.msra.mxu1 %v1953_v27  ;;  %v2035_v26 = vld [vmem:[%s6762_s26 + $0x3778] sm:$0xff]  ;;  %v1940_v27 = vld [vmem:[%s6762_s26 + $0x3480] sm:$0xff] }
 0x393   : > { %5382 = vmatpush.msra.mxu2 %v1968_v28  ;;  %5401 = vmatpush.msra.mxu3 %v1985_v29  ;;  %v1972_v28 = vld [vmem:[%s6762_s26 + $0x3580] sm:$0xff]  ;;  %v8539_v29 = vpop.f32.mrf.mxu0 }
 0x394   : > { %5343 = vmatpush.msra.mxu0 %v1935_v30  ;;  %5362 = vmatpush.msra.mxu1 %v1952_v31  ;;  %v8541_v30 = vpop.f32.mrf.mxu2  ;;  %v3027_v31 = vld.sshfl [vmem:[#allocation1 + $0x8] sm:$0xff pattern:$0x73625140] }
 0x395   : > { %5383 = vmatpush.msra.mxu2 %v1967_v32  ;;  %5402 = vmatpush.msra.mxu3 %v1984_v33  ;;  %v3029_v32 = vld.sshfl [vmem:[#allocation1 + $0x18] sm:$0xff pattern:$0x73625140]  ;;  %v2002_v33 = vld [vmem:[%s6762_s26 + $0x3670] sm:$0xff] }
 0x396   : > { %5344 = vmatpush.msra.mxu0 %v1934_v34  ;;  %5363 = vmatpush.msra.mxu1 %v1951_v35  ;;  %v2019_v34 = vld [vmem:[%s6762_s26 + $0x36f8] sm:$0xff]  ;;  %v2034_v35 = vld [vmem:[%s6762_s26 + $0x3770] sm:$0xff] }
 0x397   : > { %5384 = vmatpush.msra.mxu2 %v1966_v36  ;;  %5403 = vmatpush.msra.mxu3 %v1983_v37  ;;  %v2051_v36 = vld [vmem:[%s6762_s26 + $0x37f8] sm:$0xff]  ;;  %v8547_v37 = vpop.f32.mrf.mxu1 }
 0x398   : > { %5345 = vmatpush.msra.mxu0 %v1933_v38  ;;  %5364 = vmatpush.msra.mxu1 %v1950_v39  ;;  %v8549_v38 = vpop.f32.mrf.mxu3  ;;  %v2001_v39 = vld [vmem:[%s6762_s26 + $0x3668] sm:$0xff] }
 0x399   : > { %5385 = vmatpush.msra.mxu2 %v1965_v40  ;;  %5404 = vmatpush.msra.mxu3 %v1982_v41  ;;  %v2018_v40 = vld [vmem:[%s6762_s26 + $0x36f0] sm:$0xff]  ;;  %v2033_v41 = vld [vmem:[%s6762_s26 + $0x3768] sm:$0xff] }
 0x39a   : > { %5346 = vmatpush.msra.mxu0 %v1932_v42  ;;  %5365 = vmatpush.msra.mxu1 %v1949_v43  ;;  %v2050_v42 = vld [vmem:[%s6762_s26 + $0x37f0] sm:$0xff]  ;;  %v2000_v43 = vld [vmem:[%s6762_s26 + $0x3660] sm:$0xff] }
 0x39b   : > { %5386 = vmatpush.msra.mxu2 %v1964_v44  ;;  %5405 = vmatpush.msra.mxu3 %v1981_v45  ;;  %v2017_v44 = vld [vmem:[%s6762_s26 + $0x36e8] sm:$0xff]  ;;  %v2032_v45 = vld [vmem:[%s6762_s26 + $0x3760] sm:$0xff] }
 0x39c   : > { %5347 = vmatpush.msra.mxu0 %v1931_v46  ;;  %5366 = vmatpush.msra.mxu1 %v1948_v47  ;;  %v2049_v46 = vld [vmem:[%s6762_s26 + $0x37e8] sm:$0xff]  ;;  %v1999_v47 = vld [vmem:[%s6762_s26 + $0x3658] sm:$0xff] }
 0x39d   : > { %5387 = vmatpush.msra.mxu2 %v1963_v48  ;;  %5406 = vmatpush.msra.mxu3 %v1980_v49  ;;  %v2016_v48 = vld [vmem:[%s6762_s26 + $0x36e0] sm:$0xff]  ;;  %v2031_v49 = vld [vmem:[%s6762_s26 + $0x3758] sm:$0xff] }
 0x39e   : > { %5348 = vmatpush.msra.mxu0 %v1930_v50  ;;  %5367 = vmatpush.msra.mxu1 %v1947_v51  ;;  %v2048_v50 = vld [vmem:[%s6762_s26 + $0x37e0] sm:$0xff]  ;;  %v1998_v51 = vld [vmem:[%s6762_s26 + $0x3650] sm:$0xff] }
 0x39f   : > { %5388 = vmatpush.msra.mxu2 %v1962_v52  ;;  %5407 = vmatpush.msra.mxu3 %v1979_v53  ;;  %v2015_v52 = vld [vmem:[%s6762_s26 + $0x36d8] sm:$0xff]  ;;  %v2030_v53 = vld [vmem:[%s6762_s26 + $0x3750] sm:$0xff] }
 0x3a0   : > { %5349 = vmatpush.msra.mxu0 %v1929_v54  ;;  %5368 = vmatpush.msra.mxu1 %v1946_v55  ;;  %v2047_v54 = vld [vmem:[%s6762_s26 + $0x37d8] sm:$0xff]  ;;  %v1997_v55 = vld [vmem:[%s6762_s26 + $0x3648] sm:$0xff] }
 0x3a1   : > { %5389 = vmatpush.msra.mxu2 %v1961_v56  ;;  %5408 = vmatpush.msra.mxu3 %v1978_v57  ;;  %v2014_v56 = vld [vmem:[%s6762_s26 + $0x36d0] sm:$0xff]  ;;  %v2029_v57 = vld [vmem:[%s6762_s26 + $0x3748] sm:$0xff] }
 0x3a2   : > { %5350 = vmatpush.msra.mxu0 %v1928_v58  ;;  %5369 = vmatpush.msra.mxu1 %v1945_v59  ;;  %v2046_v58 = vld [vmem:[%s6762_s26 + $0x37d0] sm:$0xff]  ;;  %v1996_v59 = vld [vmem:[%s6762_s26 + $0x3640] sm:$0xff] }
 0x3a3   : > { %5390 = vmatpush.msra.mxu2 %v1960_v60  ;;  %5409 = vmatpush.msra.mxu3 %v1977_v61  ;;  %v2013_v60 = vld [vmem:[%s6762_s26 + $0x36c8] sm:$0xff]  ;;  %v2028_v61 = vld [vmem:[%s6762_s26 + $0x3740] sm:$0xff] }
 0x3a4   : > { %5351 = vmatpush.msra.mxu0 %v1927_v62  ;;  %5370 = vmatpush.msra.mxu1 %v1944_v1  ;;  %v2045_v62 = vld [vmem:[%s6762_s26 + $0x37c8] sm:$0xff]  ;;  %v1995_v1 = vld [vmem:[%s6762_s26 + $0x3638] sm:$0xff] }
 0x3a5   : > { %5391 = vmatpush.msra.mxu2 %v1959_v2  ;;  %5410 = vmatpush.msra.mxu3 %v1976_v3  ;;  %v2012_v2 = vld [vmem:[%s6762_s26 + $0x36c0] sm:$0xff]  ;;  %v2027_v3 = vld [vmem:[%s6762_s26 + $0x3738] sm:$0xff] }
 0x3a6   : > { %5352 = vmatpush.msra.mxu0 %v1926_v4  ;;  %5371 = vmatpush.msra.mxu1 %v1943_v5  ;;  %v2044_v4 = vld [vmem:[%s6762_s26 + $0x37c0] sm:$0xff]  ;;  %v1994_v5 = vld [vmem:[%s6762_s26 + $0x3630] sm:$0xff] }
 0x3a7   : > { %5392 = vmatpush.msra.mxu2 %v1958_v6  ;;  %5411 = vmatpush.msra.mxu3 %v1975_v9  ;;  %v2011_v6 = vld [vmem:[%s6762_s26 + $0x36b8] sm:$0xff]  ;;  %v2026_v9 = vld [vmem:[%s6762_s26 + $0x3730] sm:$0xff] }
 0x3a8   : > { %5353 = vmatpush.msra.mxu0 %v1925_v10  ;;  %5372 = vmatpush.msra.mxu1 %v1942_v11  ;;  %v2043_v10 = vld [vmem:[%s6762_s26 + $0x37b8] sm:$0xff]  ;;  %v1993_v11 = vld [vmem:[%s6762_s26 + $0x3628] sm:$0xff] }
 0x3a9   : > { %5393 = vmatpush.msra.mxu2 %v1957_v15  ;;  %5412 = vmatpush.msra.mxu3 %v1974_v16  ;;  %v2025_v15 = vld [vmem:[%s6762_s26 + $0x3728] sm:$0xff]  ;;  %v2042_v16 = vld [vmem:[%s6762_s26 + $0x37b0] sm:$0xff] }
 0x3aa   : > { %5354 = vmatpush.msra.mxu0 %v1924_v17  ;;  %5373 = vmatpush.msra.mxu1 %v1941_v18  ;;  %v1992_v17 = vld [vmem:[%s6762_s26 + $0x3620] sm:$0xff]  ;;  %v2009_v18 = vld [vmem:[%s6762_s26 + $0x36a8] sm:$0xff] }
 0x3ab   : > { %5394 = vmatpush.msra.mxu2 %v1956_v19  ;;  %5413 = vmatpush.msra.mxu3 %v1973_v22  ;;  %v2024_v19 = vld [vmem:[%s6762_s26 + $0x3720] sm:$0xff]  ;;  %v2041_v22 = vld [vmem:[%s6762_s26 + $0x37a8] sm:$0xff] }
 0x3ac   : > { %5355 = vmatmul.f32.vlgmr.msra.gmra.mxu0 %v3026_v23  ;;  %5395 = vmatmul.f32.vlgmr.msra.gmra.mxu2 %v3028_v24  ;;  %v1991_v23 = vld [vmem:[%s6762_s26 + $0x3618] sm:$0xff]  ;;  %v2008_v24 = vld [vmem:[%s6762_s26 + $0x36a0] sm:$0xff] }
 0x3ad   : > { %5419 = vmatpush.msrb.mxu0 %v2003_v25  ;;  %5459 = vmatpush.msrb.mxu2 %v2035_v26  ;;  %v2023_v25 = vld [vmem:[%s6762_s26 + $0x3718] sm:$0xff]  ;;  %v2040_v26 = vld [vmem:[%s6762_s26 + $0x37a0] sm:$0xff] }
 0x3ae   : > { %5374 = vmatpush.msra.mxu1 %v1940_v27  ;;  %5414 = vmatpush.msra.mxu3 %v1972_v28  ;;  %v1990_v27 = vld [vmem:[%s6762_s26 + $0x3610] sm:$0xff]  ;;  %v2007_v28 = vld [vmem:[%s6762_s26 + $0x3698] sm:$0xff] }
 0x3af   : > { %5375 = vmatmul.f32.vlgmr.msra.gmra.mxu1 %v3027_v31  ;;  %5415 = vmatmul.f32.vlgmr.msra.gmra.mxu3 %v3029_v32  ;;  %v2022_v31 = vld [vmem:[%s6762_s26 + $0x3710] sm:$0xff]  ;;  %v2039_v32 = vld [vmem:[%s6762_s26 + $0x3798] sm:$0xff] }
 0x3b0   : > { %5420 = vmatpush.msrb.mxu0 %v2002_v33  ;;  %5439 = vmatpush.msrb.mxu1 %v2019_v34  ;;  %v1989_v33 = vld [vmem:[%s6762_s26 + $0x3608] sm:$0xff]  ;;  %v2006_v34 = vld [vmem:[%s6762_s26 + $0x3690] sm:$0xff] }
 0x3b1   : > { %5460 = vmatpush.msrb.mxu2 %v2034_v35  ;;  %5479 = vmatpush.msrb.mxu3 %v2051_v36  ;;  %v247_v35 = vld [vmem:[%s6757_s22 + $0xe0] sm:$0xff]  ;;  %v2021_v36 = vld [vmem:[%s6762_s26 + $0x3708] sm:$0xff] }
 0x3b2   : > { %5421 = vmatpush.msrb.mxu0 %v2001_v39  ;;  %5440 = vmatpush.msrb.mxu1 %v2018_v40  ;;  %v2038_v39 = vld [vmem:[%s6762_s26 + $0x3790] sm:$0xff]  ;;  %3034 = vst [vmem:[#allocation1] ss:$4 sm:$0xff] %v247_v35  ;;  %v1988_v40 = vld [vmem:[%s6762_s26 + $0x3600] sm:$0xff]  ;;  %v2075_v35 = vld [vmem:[%s6762_s26 + $0x38b8] sm:$0xff] }
 0x3b3   : > { %5461 = vmatpush.msrb.mxu2 %v2033_v41  ;;  %5480 = vmatpush.msrb.mxu3 %v2050_v42  ;;  %v2005_v41 = vld [vmem:[%s6762_s26 + $0x3688] sm:$0xff]  ;;  %v2020_v42 = vld [vmem:[%s6762_s26 + $0x3700] sm:$0xff] }
 0x3b4   : > { %5422 = vmatpush.msrb.mxu0 %v2000_v43  ;;  %5441 = vmatpush.msrb.mxu1 %v2017_v44  ;;  %v2037_v43 = vld [vmem:[%s6762_s26 + $0x3788] sm:$0xff]  ;;  %v3030_v44 = vld.sshfl [vmem:[#allocation1 + $0x20] sm:$0xff pattern:$0x73625140] }
 0x3b5   : > { %5462 = vmatpush.msrb.mxu2 %v2032_v45  ;;  %5481 = vmatpush.msrb.mxu3 %v2049_v46  ;;  %v3032_v45 = vld.sshfl [vmem:[#allocation1 + $0x30] sm:$0xff pattern:$0x73625140]  ;;  %v2067_v46 = vld [vmem:[%s6762_s26 + $0x3878] sm:$0xff] }
 0x3b6   : > { %5423 = vmatpush.msrb.mxu0 %v1999_v47  ;;  %5442 = vmatpush.msrb.mxu1 %v2016_v48  ;;  %v2099_v47 = vld [vmem:[%s6762_s26 + $0x3978] sm:$0xff]  ;;  %v2004_v48 = vld [vmem:[%s6762_s26 + $0x3680] sm:$0xff] }
 0x3b7   : > { %5463 = vmatpush.msrb.mxu2 %v2031_v49  ;;  %5482 = vmatpush.msrb.mxu3 %v2048_v50  ;;  %v2036_v49 = vld [vmem:[%s6762_s26 + $0x3780] sm:$0xff]  ;;  %v8612_v50 = vpop.f32.mrf.mxu0 }
 0x3b8   : > { %5424 = vmatpush.msrb.mxu0 %v1998_v51  ;;  %5443 = vmatpush.msrb.mxu1 %v2015_v52  ;;  %v8614_v51 = vpop.f32.mrf.mxu2  ;;  %v3031_v52 = vld.sshfl [vmem:[#allocation1 + $0x28] sm:$0xff pattern:$0x73625140] }
 0x3b9   : > { %5464 = vmatpush.msrb.mxu2 %v2030_v53  ;;  %5483 = vmatpush.msrb.mxu3 %v2047_v54  ;;  %v3033_v53 = vld.sshfl [vmem:[#allocation1 + $0x38] sm:$0xff pattern:$0x73625140]  ;;  %v2066_v54 = vld [vmem:[%s6762_s26 + $0x3870] sm:$0xff] }
 0x3ba   : > { %5425 = vmatpush.msrb.mxu0 %v1997_v55  ;;  %5444 = vmatpush.msrb.mxu1 %v2014_v56  ;;  %v2083_v55 = vld [vmem:[%s6762_s26 + $0x38f8] sm:$0xff]  ;;  %v2098_v56 = vld [vmem:[%s6762_s26 + $0x3970] sm:$0xff] }
 0x3bb   : > { %5465 = vmatpush.msrb.mxu2 %v2029_v57  ;;  %5484 = vmatpush.msrb.mxu3 %v2046_v58  ;;  %v2115_v57 = vld [vmem:[%s6762_s26 + $0x39f8] sm:$0xff]  ;;  %v8620_v58 = vpop.f32.mrf.mxu1 }
 0x3bc   : > { %5426 = vmatpush.msrb.mxu0 %v1996_v59  ;;  %5445 = vmatpush.msrb.mxu1 %v2013_v60  ;;  %v8622_v59 = vpop.f32.mrf.mxu3  ;;  %v2065_v60 = vld [vmem:[%s6762_s26 + $0x3868] sm:$0xff] }
 0x3bd   : > { %5466 = vmatpush.msrb.mxu2 %v2028_v61  ;;  %5485 = vmatpush.msrb.mxu3 %v2045_v62  ;;  %v2082_v61 = vld [vmem:[%s6762_s26 + $0x38f0] sm:$0xff]  ;;  %v2097_v62 = vld [vmem:[%s6762_s26 + $0x3968] sm:$0xff] }
 0x3be   : > { %5427 = vmatpush.msrb.mxu0 %v1995_v1  ;;  %5446 = vmatpush.msrb.mxu1 %v2012_v2  ;;  %v2114_v1 = vld [vmem:[%s6762_s26 + $0x39f0] sm:$0xff]  ;;  %v2064_v2 = vld [vmem:[%s6762_s26 + $0x3860] sm:$0xff] }
 0x3bf   : > { %5467 = vmatpush.msrb.mxu2 %v2027_v3  ;;  %5486 = vmatpush.msrb.mxu3 %v2044_v4  ;;  %v2081_v3 = vld [vmem:[%s6762_s26 + $0x38e8] sm:$0xff]  ;;  %v2096_v4 = vld [vmem:[%s6762_s26 + $0x3960] sm:$0xff] }
 0x3c0   : > { %5428 = vmatpush.msrb.mxu0 %v1994_v5  ;;  %5447 = vmatpush.msrb.mxu1 %v2011_v6  ;;  %v2113_v5 = vld [vmem:[%s6762_s26 + $0x39e8] sm:$0xff]  ;;  %v2063_v6 = vld [vmem:[%s6762_s26 + $0x3858] sm:$0xff] }
 0x3c1   : > { %5468 = vmatpush.msrb.mxu2 %v2026_v9  ;;  %5487 = vmatpush.msrb.mxu3 %v2043_v10  ;;  %v2080_v9 = vld [vmem:[%s6762_s26 + $0x38e0] sm:$0xff]  ;;  %v2095_v10 = vld [vmem:[%s6762_s26 + $0x3958] sm:$0xff] }
 0x3c2   : > { %5429 = vmatpush.msrb.mxu0 %v1993_v11  ;;  %5448 = vmatpush.msrb.mxu1 %v2010_v14  ;;  %v2112_v11 = vld [vmem:[%s6762_s26 + $0x39e0] sm:$0xff]  ;;  %v2062_v14 = vld [vmem:[%s6762_s26 + $0x3850] sm:$0xff] }
 0x3c3   : > { %5469 = vmatpush.msrb.mxu2 %v2025_v15  ;;  %5488 = vmatpush.msrb.mxu3 %v2042_v16  ;;  %v2079_v15 = vld [vmem:[%s6762_s26 + $0x38d8] sm:$0xff]  ;;  %v2094_v16 = vld [vmem:[%s6762_s26 + $0x3950] sm:$0xff] }
 0x3c4   : > { %5430 = vmatpush.msrb.mxu0 %v1992_v17  ;;  %5449 = vmatpush.msrb.mxu1 %v2009_v18  ;;  %v2111_v17 = vld [vmem:[%s6762_s26 + $0x39d8] sm:$0xff]  ;;  %v2061_v18 = vld [vmem:[%s6762_s26 + $0x3848] sm:$0xff] }
 0x3c5   : > { %5470 = vmatpush.msrb.mxu2 %v2024_v19  ;;  %5489 = vmatpush.msrb.mxu3 %v2041_v22  ;;  %v2078_v19 = vld [vmem:[%s6762_s26 + $0x38d0] sm:$0xff]  ;;  %v2093_v22 = vld [vmem:[%s6762_s26 + $0x3948] sm:$0xff] }
 0x3c6   : > { %5431 = vmatpush.msrb.mxu0 %v1991_v23  ;;  %5450 = vmatpush.msrb.mxu1 %v2008_v24  ;;  %v2110_v23 = vld [vmem:[%s6762_s26 + $0x39d0] sm:$0xff]  ;;  %v2060_v24 = vld [vmem:[%s6762_s26 + $0x3840] sm:$0xff] }
 0x3c7   : > { %5471 = vmatpush.msrb.mxu2 %v2023_v25  ;;  %5490 = vmatpush.msrb.mxu3 %v2040_v26  ;;  %v2077_v25 = vld [vmem:[%s6762_s26 + $0x38c8] sm:$0xff]  ;;  %v2092_v26 = vld [vmem:[%s6762_s26 + $0x3940] sm:$0xff] }
 0x3c8   : > { %5432 = vmatpush.msrb.mxu0 %v1990_v27  ;;  %5451 = vmatpush.msrb.mxu1 %v2007_v28  ;;  %v2109_v27 = vld [vmem:[%s6762_s26 + $0x39c8] sm:$0xff]  ;;  %v2059_v28 = vld [vmem:[%s6762_s26 + $0x3838] sm:$0xff] }
 0x3c9   : > { %5472 = vmatpush.msrb.mxu2 %v2022_v31  ;;  %5491 = vmatpush.msrb.mxu3 %v2039_v32  ;;  %v2076_v31 = vld [vmem:[%s6762_s26 + $0x38c0] sm:$0xff]  ;;  %v2091_v32 = vld [vmem:[%s6762_s26 + $0x3938] sm:$0xff] }
 0x3ca   : > { %5433 = vmatpush.msrb.mxu0 %v1989_v33  ;;  %5452 = vmatpush.msrb.mxu1 %v2006_v34  ;;  %v2108_v33 = vld [vmem:[%s6762_s26 + $0x39c0] sm:$0xff]  ;;  %v2058_v34 = vld [vmem:[%s6762_s26 + $0x3830] sm:$0xff] }
 0x3cb   : > { %5473 = vmatpush.msrb.mxu2 %v2021_v36  ;;  %5492 = vmatpush.msrb.mxu3 %v2038_v39  ;;  %v2090_v36 = vld [vmem:[%s6762_s26 + $0x3930] sm:$0xff]  ;;  %v2107_v39 = vld [vmem:[%s6762_s26 + $0x39b8] sm:$0xff] }
 0x3cc   : > { %5434 = vmatpush.msrb.mxu0 %v1988_v40  ;;  %5453 = vmatpush.msrb.mxu1 %v2005_v41  ;;  %v2057_v40 = vld [vmem:[%s6762_s26 + $0x3828] sm:$0xff]  ;;  %v2074_v41 = vld [vmem:[%s6762_s26 + $0x38b0] sm:$0xff] }
 0x3cd   : > { %5474 = vmatpush.msrb.mxu2 %v2020_v42  ;;  %5493 = vmatpush.msrb.mxu3 %v2037_v43  ;;  %v2089_v42 = vld [vmem:[%s6762_s26 + $0x3928] sm:$0xff]  ;;  %v2106_v43 = vld [vmem:[%s6762_s26 + $0x39b0] sm:$0xff] }
 0x3ce   : > { %5435 = vmatmul.f32.vlgmr.msrb.gmra.mxu0 %v3030_v44  ;;  %5475 = vmatmul.f32.vlgmr.msrb.gmra.mxu2 %v3032_v45  ;;  %v2056_v44 = vld [vmem:[%s6762_s26 + $0x3820] sm:$0xff]  ;;  %v2073_v45 = vld [vmem:[%s6762_s26 + $0x38a8] sm:$0xff] }
 0x3cf   : > { %5499 = vmatpush.msra.mxu0 %v2067_v46  ;;  %5539 = vmatpush.msra.mxu2 %v2099_v47  ;;  %v2088_v46 = vld [vmem:[%s6762_s26 + $0x3920] sm:$0xff]  ;;  %v2105_v47 = vld [vmem:[%s6762_s26 + $0x39a8] sm:$0xff] }
 0x3d0   : > { %5454 = vmatpush.msrb.mxu1 %v2004_v48  ;;  %5494 = vmatpush.msrb.mxu3 %v2036_v49  ;;  %v2055_v48 = vld [vmem:[%s6762_s26 + $0x3818] sm:$0xff]  ;;  %v2072_v49 = vld [vmem:[%s6762_s26 + $0x38a0] sm:$0xff] }
 0x3d1   : > { %5455 = vmatmul.f32.vlgmr.msrb.gmra.mxu1 %v3031_v52  ;;  %5495 = vmatmul.f32.vlgmr.msrb.gmra.mxu3 %v3033_v53  ;;  %v2087_v52 = vld [vmem:[%s6762_s26 + $0x3918] sm:$0xff]  ;;  %v2104_v53 = vld [vmem:[%s6762_s26 + $0x39a0] sm:$0xff] }
 0x3d2   : > { %5500 = vmatpush.msra.mxu0 %v2066_v54  ;;  %5519 = vmatpush.msra.mxu1 %v2083_v55  ;;  %v2054_v54 = vld [vmem:[%s6762_s26 + $0x3810] sm:$0xff]  ;;  %v2071_v55 = vld [vmem:[%s6762_s26 + $0x3898] sm:$0xff] }
 0x3d3   : > { %5540 = vmatpush.msra.mxu2 %v2098_v56  ;;  %5559 = vmatpush.msra.mxu3 %v2115_v57  ;;  %v2086_v56 = vld [vmem:[%s6762_s26 + $0x3910] sm:$0xff]  ;;  %v2103_v57 = vld [vmem:[%s6762_s26 + $0x3998] sm:$0xff] }
 0x3d4   : > { %5501 = vmatpush.msra.mxu0 %v2065_v60  ;;  %5520 = vmatpush.msra.mxu1 %v2082_v61  ;;  %v2053_v60 = vld [vmem:[%s6762_s26 + $0x3808] sm:$0xff]  ;;  %v2070_v61 = vld [vmem:[%s6762_s26 + $0x3890] sm:$0xff] }
 0x3d5   : > { %5541 = vmatpush.msra.mxu2 %v2097_v62  ;;  %5560 = vmatpush.msra.mxu3 %v2114_v1  ;;  %v248_v62 = vld [vmem:[%s6757_s22 + $0xe8] sm:$0xff] }
 0x3d6   : > { %5502 = vmatpush.msra.mxu0 %v2064_v2  ;;  %5521 = vmatpush.msra.mxu1 %v2081_v3  ;;  %v2085_v1 = vld [vmem:[%s6762_s26 + $0x3908] sm:$0xff]  ;;  %v2102_v2 = vld [vmem:[%s6762_s26 + $0x3990] sm:$0xff]  ;;  %3035 = vst [vmem:[#allocation1 + $0x20] ss:$4 sm:$0xff] %v248_v62  ;;  %v2052_v3 = vld [vmem:[%s6762_s26 + $0x3800] sm:$0xff] }
 0x3d7   : > { %5542 = vmatpush.msra.mxu2 %v2096_v4  ;;  %5561 = vmatpush.msra.mxu3 %v2113_v5  ;;  %v2069_v4 = vld [vmem:[%s6762_s26 + $0x3888] sm:$0xff]  ;;  %v2084_v5 = vld [vmem:[%s6762_s26 + $0x3900] sm:$0xff] }
 0x3d8   : > { %5503 = vmatpush.msra.mxu0 %v2063_v6  ;;  %5522 = vmatpush.msra.mxu1 %v2080_v9  ;;  %v2101_v6 = vld [vmem:[%s6762_s26 + $0x3988] sm:$0xff]  ;;  %v3036_v9 = vld.sshfl [vmem:[#allocation1] sm:$0xff pattern:$0x73625140] }
 0x3d9   : > { %5543 = vmatpush.msra.mxu2 %v2095_v10  ;;  %5562 = vmatpush.msra.mxu3 %v2112_v11  ;;  %v3038_v10 = vld.sshfl [vmem:[#allocation1 + $0x10] sm:$0xff pattern:$0x73625140]  ;;  %v2131_v11 = vld [vmem:[%s6762_s26 + $0x3a78] sm:$0xff]  ;;  %v2140_v62 = vld [vmem:[%s6762_s26 + $0x3ac0] sm:$0xff] }
 0x3da   : > { %5504 = vmatpush.msra.mxu0 %v2062_v14  ;;  %5523 = vmatpush.msra.mxu1 %v2079_v15  ;;  %v2163_v14 = vld [vmem:[%s6762_s26 + $0x3b78] sm:$0xff]  ;;  %v2068_v15 = vld [vmem:[%s6762_s26 + $0x3880] sm:$0xff] }
 0x3db   : > { %5544 = vmatpush.msra.mxu2 %v2094_v16  ;;  %5563 = vmatpush.msra.mxu3 %v2111_v17  ;;  %v2100_v16 = vld [vmem:[%s6762_s26 + $0x3980] sm:$0xff]  ;;  %v8685_v17 = vpop.f32.mrf.mxu0 }
 0x3dc   : > { %5505 = vmatpush.msra.mxu0 %v2061_v18  ;;  %5524 = vmatpush.msra.mxu1 %v2078_v19  ;;  %v8687_v18 = vpop.f32.mrf.mxu2  ;;  %v3037_v19 = vld.sshfl [vmem:[#allocation1 + $0x8] sm:$0xff pattern:$0x73625140] }
 0x3dd   : > { %5545 = vmatpush.msra.mxu2 %v2093_v22  ;;  %5564 = vmatpush.msra.mxu3 %v2110_v23  ;;  %v3039_v22 = vld.sshfl [vmem:[#allocation1 + $0x18] sm:$0xff pattern:$0x73625140]  ;;  %v2130_v23 = vld [vmem:[%s6762_s26 + $0x3a70] sm:$0xff] }
 0x3de   : > { %5506 = vmatpush.msra.mxu0 %v2060_v24  ;;  %5525 = vmatpush.msra.mxu1 %v2077_v25  ;;  %v2147_v24 = vld [vmem:[%s6762_s26 + $0x3af8] sm:$0xff]  ;;  %v2162_v25 = vld [vmem:[%s6762_s26 + $0x3b70] sm:$0xff] }
 0x3df   : > { %5546 = vmatpush.msra.mxu2 %v2092_v26  ;;  %5565 = vmatpush.msra.mxu3 %v2109_v27  ;;  %v2179_v26 = vld [vmem:[%s6762_s26 + $0x3bf8] sm:$0xff]  ;;  %v8693_v27 = vpop.f32.mrf.mxu1 }
 0x3e0   : > { %5507 = vmatpush.msra.mxu0 %v2059_v28  ;;  %5526 = vmatpush.msra.mxu1 %v2076_v31  ;;  %v8695_v28 = vpop.f32.mrf.mxu3  ;;  %v2129_v31 = vld [vmem:[%s6762_s26 + $0x3a68] sm:$0xff] }
 0x3e1   : > { %5547 = vmatpush.msra.mxu2 %v2091_v32  ;;  %5566 = vmatpush.msra.mxu3 %v2108_v33  ;;  %v2146_v32 = vld [vmem:[%s6762_s26 + $0x3af0] sm:$0xff]  ;;  %v2161_v33 = vld [vmem:[%s6762_s26 + $0x3b68] sm:$0xff] }
 0x3e2   : > { %5508 = vmatpush.msra.mxu0 %v2058_v34  ;;  %5527 = vmatpush.msra.mxu1 %v2075_v35  ;;  %v2178_v34 = vld [vmem:[%s6762_s26 + $0x3bf0] sm:$0xff]  ;;  %v2128_v35 = vld [vmem:[%s6762_s26 + $0x3a60] sm:$0xff] }
 0x3e3   : > { %5548 = vmatpush.msra.mxu2 %v2090_v36  ;;  %5567 = vmatpush.msra.mxu3 %v2107_v39  ;;  %v2145_v36 = vld [vmem:[%s6762_s26 + $0x3ae8] sm:$0xff]  ;;  %v2160_v39 = vld [vmem:[%s6762_s26 + $0x3b60] sm:$0xff] }
 0x3e4   : > { %5509 = vmatpush.msra.mxu0 %v2057_v40  ;;  %5528 = vmatpush.msra.mxu1 %v2074_v41  ;;  %v2177_v40 = vld [vmem:[%s6762_s26 + $0x3be8] sm:$0xff]  ;;  %v2127_v41 = vld [vmem:[%s6762_s26 + $0x3a58] sm:$0xff] }
 0x3e5   : > { %5549 = vmatpush.msra.mxu2 %v2089_v42  ;;  %5568 = vmatpush.msra.mxu3 %v2106_v43  ;;  %v2144_v42 = vld [vmem:[%s6762_s26 + $0x3ae0] sm:$0xff]  ;;  %v2159_v43 = vld [vmem:[%s6762_s26 + $0x3b58] sm:$0xff] }
 0x3e6   : > { %5510 = vmatpush.msra.mxu0 %v2056_v44  ;;  %5529 = vmatpush.msra.mxu1 %v2073_v45  ;;  %v2176_v44 = vld [vmem:[%s6762_s26 + $0x3be0] sm:$0xff]  ;;  %v2126_v45 = vld [vmem:[%s6762_s26 + $0x3a50] sm:$0xff] }
 0x3e7   : > { %5550 = vmatpush.msra.mxu2 %v2088_v46  ;;  %5569 = vmatpush.msra.mxu3 %v2105_v47  ;;  %v2143_v46 = vld [vmem:[%s6762_s26 + $0x3ad8] sm:$0xff]  ;;  %v2158_v47 = vld [vmem:[%s6762_s26 + $0x3b50] sm:$0xff] }
 0x3e8   : > { %5511 = vmatpush.msra.mxu0 %v2055_v48  ;;  %5530 = vmatpush.msra.mxu1 %v2072_v49  ;;  %v2175_v48 = vld [vmem:[%s6762_s26 + $0x3bd8] sm:$0xff]  ;;  %v2125_v49 = vld [vmem:[%s6762_s26 + $0x3a48] sm:$0xff] }
 0x3e9   : > { %5551 = vmatpush.msra.mxu2 %v2087_v52  ;;  %5570 = vmatpush.msra.mxu3 %v2104_v53  ;;  %v2142_v52 = vld [vmem:[%s6762_s26 + $0x3ad0] sm:$0xff]  ;;  %v2157_v53 = vld [vmem:[%s6762_s26 + $0x3b48] sm:$0xff] }
 0x3ea   : > { %5512 = vmatpush.msra.mxu0 %v2054_v54  ;;  %5531 = vmatpush.msra.mxu1 %v2071_v55  ;;  %v2174_v54 = vld [vmem:[%s6762_s26 + $0x3bd0] sm:$0xff]  ;;  %v2124_v55 = vld [vmem:[%s6762_s26 + $0x3a40] sm:$0xff] }
 0x3eb   : > { %5552 = vmatpush.msra.mxu2 %v2086_v56  ;;  %5571 = vmatpush.msra.mxu3 %v2103_v57  ;;  %v2141_v56 = vld [vmem:[%s6762_s26 + $0x3ac8] sm:$0xff]  ;;  %v2156_v57 = vld [vmem:[%s6762_s26 + $0x3b40] sm:$0xff] }
 0x3ec   : > { %5513 = vmatpush.msra.mxu0 %v2053_v60  ;;  %5532 = vmatpush.msra.mxu1 %v2070_v61  ;;  %v2173_v60 = vld [vmem:[%s6762_s26 + $0x3bc8] sm:$0xff]  ;;  %v2123_v61 = vld [vmem:[%s6762_s26 + $0x3a38] sm:$0xff] }
 0x3ed   : > { %5553 = vmatpush.msra.mxu2 %v2085_v1  ;;  %5572 = vmatpush.msra.mxu3 %v2102_v2  ;;  %v2155_v1 = vld [vmem:[%s6762_s26 + $0x3b38] sm:$0xff]  ;;  %v2172_v2 = vld [vmem:[%s6762_s26 + $0x3bc0] sm:$0xff] }
 0x3ee   : > { %5514 = vmatpush.msra.mxu0 %v2052_v3  ;;  %5533 = vmatpush.msra.mxu1 %v2069_v4  ;;  %v2122_v3 = vld [vmem:[%s6762_s26 + $0x3a30] sm:$0xff]  ;;  %v2139_v4 = vld [vmem:[%s6762_s26 + $0x3ab8] sm:$0xff] }
 0x3ef   : > { %5554 = vmatpush.msra.mxu2 %v2084_v5  ;;  %5573 = vmatpush.msra.mxu3 %v2101_v6  ;;  %v2154_v5 = vld [vmem:[%s6762_s26 + $0x3b30] sm:$0xff]  ;;  %v2171_v6 = vld [vmem:[%s6762_s26 + $0x3bb8] sm:$0xff] }
 0x3f0   : > { %5515 = vmatmul.f32.vlgmr.msra.gmra.mxu0 %v3036_v9  ;;  %5555 = vmatmul.f32.vlgmr.msra.gmra.mxu2 %v3038_v10  ;;  %v2121_v9 = vld [vmem:[%s6762_s26 + $0x3a28] sm:$0xff]  ;;  %v2138_v10 = vld [vmem:[%s6762_s26 + $0x3ab0] sm:$0xff] }
 0x3f1   : > { %5579 = vmatpush.msrb.mxu0 %v2131_v11  ;;  %5619 = vmatpush.msrb.mxu2 %v2163_v14  ;;  %v2153_v11 = vld [vmem:[%s6762_s26 + $0x3b28] sm:$0xff]  ;;  %v2170_v14 = vld [vmem:[%s6762_s26 + $0x3bb0] sm:$0xff] }
 0x3f2   : > { %5534 = vmatpush.msra.mxu1 %v2068_v15  ;;  %5574 = vmatpush.msra.mxu3 %v2100_v16  ;;  %v2120_v15 = vld [vmem:[%s6762_s26 + $0x3a20] sm:$0xff]  ;;  %v2137_v16 = vld [vmem:[%s6762_s26 + $0x3aa8] sm:$0xff] }
 0x3f3   : > { %5535 = vmatmul.f32.vlgmr.msra.gmra.mxu1 %v3037_v19  ;;  %5575 = vmatmul.f32.vlgmr.msra.gmra.mxu3 %v3039_v22  ;;  %v2152_v19 = vld [vmem:[%s6762_s26 + $0x3b20] sm:$0xff]  ;;  %v2169_v22 = vld [vmem:[%s6762_s26 + $0x3ba8] sm:$0xff] }
 0x3f4   : > { %5580 = vmatpush.msrb.mxu0 %v2130_v23  ;;  %5599 = vmatpush.msrb.mxu1 %v2147_v24  ;;  %v2119_v23 = vld [vmem:[%s6762_s26 + $0x3a18] sm:$0xff]  ;;  %v2136_v24 = vld [vmem:[%s6762_s26 + $0x3aa0] sm:$0xff] }
 0x3f5   : > { %5620 = vmatpush.msrb.mxu2 %v2162_v25  ;;  %5639 = vmatpush.msrb.mxu3 %v2179_v26  ;;  %v2151_v25 = vld [vmem:[%s6762_s26 + $0x3b18] sm:$0xff]  ;;  %v2168_v26 = vld [vmem:[%s6762_s26 + $0x3ba0] sm:$0xff] }
 0x3f6   : > { %5581 = vmatpush.msrb.mxu0 %v2129_v31  ;;  %5600 = vmatpush.msrb.mxu1 %v2146_v32  ;;  %v2118_v31 = vld [vmem:[%s6762_s26 + $0x3a10] sm:$0xff]  ;;  %v2135_v32 = vld [vmem:[%s6762_s26 + $0x3a98] sm:$0xff] }
 0x3f7   : > { %5621 = vmatpush.msrb.mxu2 %v2161_v33  ;;  %5640 = vmatpush.msrb.mxu3 %v2178_v34  ;;  %v2150_v33 = vld [vmem:[%s6762_s26 + $0x3b10] sm:$0xff]  ;;  %v2167_v34 = vld [vmem:[%s6762_s26 + $0x3b98] sm:$0xff] }
 0x3f8   : > { %5582 = vmatpush.msrb.mxu0 %v2128_v35  ;;  %5601 = vmatpush.msrb.mxu1 %v2145_v36  ;;  %v2117_v35 = vld [vmem:[%s6762_s26 + $0x3a08] sm:$0xff]  ;;  %v2134_v36 = vld [vmem:[%s6762_s26 + $0x3a90] sm:$0xff] }
 0x3f9   : > { %5622 = vmatpush.msrb.mxu2 %v2160_v39  ;;  %5641 = vmatpush.msrb.mxu3 %v2177_v40  ;;  %v249_v39 = vld [vmem:[%s6757_s22 + $0xf0] sm:$0xff]  ;;  %v2149_v40 = vld [vmem:[%s6762_s26 + $0x3b08] sm:$0xff] }
 0x3fa   : > { %5583 = vmatpush.msrb.mxu0 %v2127_v41  ;;  %5602 = vmatpush.msrb.mxu1 %v2144_v42  ;;  %v2166_v41 = vld [vmem:[%s6762_s26 + $0x3b90] sm:$0xff]  ;;  %3044 = vst [vmem:[#allocation1] ss:$4 sm:$0xff] %v249_v39  ;;  %v2116_v42 = vld [vmem:[%s6762_s26 + $0x3a00] sm:$0xff]  ;;  %v2205_v39 = vld [vmem:[%s6762_s26 + $0x3cc8] sm:$0xff] }
 0x3fb   : > { %5623 = vmatpush.msrb.mxu2 %v2159_v43  ;;  %5642 = vmatpush.msrb.mxu3 %v2176_v44  ;;  %v2133_v43 = vld [vmem:[%s6762_s26 + $0x3a88] sm:$0xff]  ;;  %v2148_v44 = vld [vmem:[%s6762_s26 + $0x3b00] sm:$0xff] }
 0x3fc   : > { %5584 = vmatpush.msrb.mxu0 %v2126_v45  ;;  %5603 = vmatpush.msrb.mxu1 %v2143_v46  ;;  %v2165_v45 = vld [vmem:[%s6762_s26 + $0x3b88] sm:$0xff]  ;;  %v3040_v46 = vld.sshfl [vmem:[#allocation1 + $0x20] sm:$0xff pattern:$0x73625140] }
 0x3fd   : > { %5624 = vmatpush.msrb.mxu2 %v2158_v47  ;;  %5643 = vmatpush.msrb.mxu3 %v2175_v48  ;;  %v3042_v47 = vld.sshfl [vmem:[#allocation1 + $0x30] sm:$0xff pattern:$0x73625140]  ;;  %v2195_v48 = vld [vmem:[%s6762_s26 + $0x3c78] sm:$0xff] }
 0x3fe   : > { %5585 = vmatpush.msrb.mxu0 %v2125_v49  ;;  %5604 = vmatpush.msrb.mxu1 %v2142_v52  ;;  %v2227_v49 = vld [vmem:[%s6762_s26 + $0x3d78] sm:$0xff]  ;;  %v2132_v52 = vld [vmem:[%s6762_s26 + $0x3a80] sm:$0xff] }
 0x3ff   : > { %5625 = vmatpush.msrb.mxu2 %v2157_v53  ;;  %5644 = vmatpush.msrb.mxu3 %v2174_v54  ;;  %v2164_v53 = vld [vmem:[%s6762_s26 + $0x3b80] sm:$0xff]  ;;  %v8758_v54 = vpop.f32.mrf.mxu0 }
 0x400   : > { %5586 = vmatpush.msrb.mxu0 %v2124_v55  ;;  %5605 = vmatpush.msrb.mxu1 %v2141_v56  ;;  %v8760_v55 = vpop.f32.mrf.mxu2  ;;  %v3041_v56 = vld.sshfl [vmem:[#allocation1 + $0x28] sm:$0xff pattern:$0x73625140] }
 0x401   : > { %5626 = vmatpush.msrb.mxu2 %v2156_v57  ;;  %5645 = vmatpush.msrb.mxu3 %v2173_v60  ;;  %v3043_v57 = vld.sshfl [vmem:[#allocation1 + $0x38] sm:$0xff pattern:$0x73625140]  ;;  %v2194_v60 = vld [vmem:[%s6762_s26 + $0x3c70] sm:$0xff] }
 0x402   : > { %5587 = vmatpush.msrb.mxu0 %v2123_v61  ;;  %5606 = vmatpush.msrb.mxu1 %v2140_v62  ;;  %v2211_v61 = vld [vmem:[%s6762_s26 + $0x3cf8] sm:$0xff]  ;;  %v2226_v62 = vld [vmem:[%s6762_s26 + $0x3d70] sm:$0xff] }
 0x403   : > { %5627 = vmatpush.msrb.mxu2 %v2155_v1  ;;  %5646 = vmatpush.msrb.mxu3 %v2172_v2  ;;  %v2243_v1 = vld [vmem:[%s6762_s26 + $0x3df8] sm:$0xff]  ;;  %v8766_v2 = vpop.f32.mrf.mxu1 }
 0x404   : > { %5588 = vmatpush.msrb.mxu0 %v2122_v3  ;;  %5607 = vmatpush.msrb.mxu1 %v2139_v4  ;;  %v8768_v3 = vpop.f32.mrf.mxu3  ;;  %v2193_v4 = vld [vmem:[%s6762_s26 + $0x3c68] sm:$0xff] }
 0x405   : > { %5628 = vmatpush.msrb.mxu2 %v2154_v5  ;;  %5647 = vmatpush.msrb.mxu3 %v2171_v6  ;;  %v2210_v5 = vld [vmem:[%s6762_s26 + $0x3cf0] sm:$0xff]  ;;  %v2225_v6 = vld [vmem:[%s6762_s26 + $0x3d68] sm:$0xff] }
 0x406   : > { %5589 = vmatpush.msrb.mxu0 %v2121_v9  ;;  %5608 = vmatpush.msrb.mxu1 %v2138_v10  ;;  %v2242_v9 = vld [vmem:[%s6762_s26 + $0x3df0] sm:$0xff]  ;;  %v2192_v10 = vld [vmem:[%s6762_s26 + $0x3c60] sm:$0xff] }
 0x407   : > { %5629 = vmatpush.msrb.mxu2 %v2153_v11  ;;  %5648 = vmatpush.msrb.mxu3 %v2170_v14  ;;  %v2209_v11 = vld [vmem:[%s6762_s26 + $0x3ce8] sm:$0xff]  ;;  %v2224_v14 = vld [vmem:[%s6762_s26 + $0x3d60] sm:$0xff] }
 0x408   : > { %5590 = vmatpush.msrb.mxu0 %v2120_v15  ;;  %5609 = vmatpush.msrb.mxu1 %v2137_v16  ;;  %v2241_v15 = vld [vmem:[%s6762_s26 + $0x3de8] sm:$0xff]  ;;  %v2191_v16 = vld [vmem:[%s6762_s26 + $0x3c58] sm:$0xff] }
 0x409   : > { %5630 = vmatpush.msrb.mxu2 %v2152_v19  ;;  %5649 = vmatpush.msrb.mxu3 %v2169_v22  ;;  %v2208_v19 = vld [vmem:[%s6762_s26 + $0x3ce0] sm:$0xff]  ;;  %v2223_v22 = vld [vmem:[%s6762_s26 + $0x3d58] sm:$0xff] }
 0x40a   : > { %5591 = vmatpush.msrb.mxu0 %v2119_v23  ;;  %5610 = vmatpush.msrb.mxu1 %v2136_v24  ;;  %v2240_v23 = vld [vmem:[%s6762_s26 + $0x3de0] sm:$0xff]  ;;  %v2190_v24 = vld [vmem:[%s6762_s26 + $0x3c50] sm:$0xff] }
 0x40b   : > { %5631 = vmatpush.msrb.mxu2 %v2151_v25  ;;  %5650 = vmatpush.msrb.mxu3 %v2168_v26  ;;  %v2207_v25 = vld [vmem:[%s6762_s26 + $0x3cd8] sm:$0xff]  ;;  %v2222_v26 = vld [vmem:[%s6762_s26 + $0x3d50] sm:$0xff] }
 0x40c   : > { %5592 = vmatpush.msrb.mxu0 %v2118_v31  ;;  %5611 = vmatpush.msrb.mxu1 %v2135_v32  ;;  %v2239_v31 = vld [vmem:[%s6762_s26 + $0x3dd8] sm:$0xff]  ;;  %v2189_v32 = vld [vmem:[%s6762_s26 + $0x3c48] sm:$0xff] }
 0x40d   : > { %5632 = vmatpush.msrb.mxu2 %v2150_v33  ;;  %5651 = vmatpush.msrb.mxu3 %v2167_v34  ;;  %v2206_v33 = vld [vmem:[%s6762_s26 + $0x3cd0] sm:$0xff]  ;;  %v2221_v34 = vld [vmem:[%s6762_s26 + $0x3d48] sm:$0xff] }
 0x40e   : > { %5593 = vmatpush.msrb.mxu0 %v2117_v35  ;;  %5612 = vmatpush.msrb.mxu1 %v2134_v36  ;;  %v2238_v35 = vld [vmem:[%s6762_s26 + $0x3dd0] sm:$0xff]  ;;  %v2188_v36 = vld [vmem:[%s6762_s26 + $0x3c40] sm:$0xff] }
 0x40f   : > { %5633 = vmatpush.msrb.mxu2 %v2149_v40  ;;  %5652 = vmatpush.msrb.mxu3 %v2166_v41  ;;  %v2220_v40 = vld [vmem:[%s6762_s26 + $0x3d40] sm:$0xff]  ;;  %v2237_v41 = vld [vmem:[%s6762_s26 + $0x3dc8] sm:$0xff] }
 0x410   : > { %5594 = vmatpush.msrb.mxu0 %v2116_v42  ;;  %5613 = vmatpush.msrb.mxu1 %v2133_v43  ;;  %v2187_v42 = vld [vmem:[%s6762_s26 + $0x3c38] sm:$0xff]  ;;  %v2204_v43 = vld [vmem:[%s6762_s26 + $0x3cc0] sm:$0xff] }
 0x411   : > { %5634 = vmatpush.msrb.mxu2 %v2148_v44  ;;  %5653 = vmatpush.msrb.mxu3 %v2165_v45  ;;  %v3297_v44 = vadd.f32 %v8401_v7, %v8393_v63  ;;  %v2219_v45 = vld [vmem:[%s6762_s26 + $0x3d38] sm:$0xff]  ;;  %v2185_v63 = vld [vmem:[%s6762_s26 + $0x3c28] sm:$0xff]  ;;  %v2202_v7 = vld [vmem:[%s6762_s26 + $0x3cb0] sm:$0xff] }
 0x412   : > { %5595 = vmatmul.f32.vlgmr.msrb.gmra.mxu0 %v3040_v46  ;;  %5635 = vmatmul.f32.vlgmr.msrb.gmra.mxu2 %v3042_v47  ;;  %v2236_v46 = vld [vmem:[%s6762_s26 + $0x3dc0] sm:$0xff]  ;;  %v2186_v47 = vld [vmem:[%s6762_s26 + $0x3c30] sm:$0xff] }
 0x413   : > { %5659 = vmatpush.msra.mxu0 %v2195_v48  ;;  %5699 = vmatpush.msra.mxu2 %v2227_v49  ;;  %v2203_v48 = vld [vmem:[%s6762_s26 + $0x3cb8] sm:$0xff]  ;;  %v2218_v49 = vld [vmem:[%s6762_s26 + $0x3d30] sm:$0xff] }
 0x414   : > { %5614 = vmatpush.msrb.mxu1 %v2132_v52  ;;  %5654 = vmatpush.msrb.mxu3 %v2164_v53  ;;  %v2235_v52 = vld [vmem:[%s6762_s26 + $0x3db8] sm:$0xff]  ;;  %v3317_v53 = vadd.f32 %v8395_v0, %v3297_v44  ;;  %v2258_v44 = vld [vmem:[%s6762_s26 + $0x3e70] sm:$0xff] }
 0x415   : > { %5615 = vmatmul.f32.vlgmr.msrb.gmra.mxu1 %v3041_v56  ;;  %5655 = vmatmul.f32.vlgmr.msrb.gmra.mxu3 %v3043_v57  ;;  %v2217_v56 = vld [vmem:[%s6762_s26 + $0x3d28] sm:$0xff]  ;;  %v2234_v57 = vld [vmem:[%s6762_s26 + $0x3db0] sm:$0xff]  ;;  %v2183_v0 = vld [vmem:[%s6762_s26 + $0x3c18] sm:$0xff] }
 0x416   : > { %5660 = vmatpush.msra.mxu0 %v2194_v60  ;;  %5679 = vmatpush.msra.mxu1 %v2211_v61  ;;  %v2184_v60 = vld [vmem:[%s6762_s26 + $0x3c20] sm:$0xff]  ;;  %v2201_v61 = vld [vmem:[%s6762_s26 + $0x3ca8] sm:$0xff] }
 0x417   : > { %5700 = vmatpush.msra.mxu2 %v2226_v62  ;;  %5719 = vmatpush.msra.mxu3 %v2243_v1  ;;  %v2216_v62 = vld [vmem:[%s6762_s26 + $0x3d20] sm:$0xff]  ;;  %v2233_v1 = vld [vmem:[%s6762_s26 + $0x3da8] sm:$0xff] }
 0x418   : > { %5661 = vmatpush.msra.mxu0 %v2193_v4  ;;  %5680 = vmatpush.msra.mxu1 %v2210_v5  ;;  %v2200_v4 = vld [vmem:[%s6762_s26 + $0x3ca0] sm:$0xff]  ;;  %v3337_v5 = vadd.f32 %v8403_v8, %v3317_v53  ;;  %v2181_v8 = vld [vmem:[%s6762_s26 + $0x3c08] sm:$0xff]  ;;  %v2306_v53 = vld [vmem:[%s6762_s26 + $0x3ff0] sm:$0xff] }
 0x419   : > { %5701 = vmatpush.msra.mxu2 %v2225_v6  ;;  %5720 = vmatpush.msra.mxu3 %v2242_v9  ;;  %v2215_v6 = vld [vmem:[%s6762_s26 + $0x3d18] sm:$0xff]  ;;  %v2232_v9 = vld [vmem:[%s6762_s26 + $0x3da0] sm:$0xff] }
 0x41a   : > { %5662 = vmatpush.msra.mxu0 %v2192_v10  ;;  %5681 = vmatpush.msra.mxu1 %v2209_v11  ;;  %v2182_v10 = vld [vmem:[%s6762_s26 + $0x3c10] sm:$0xff]  ;;  %v2199_v11 = vld [vmem:[%s6762_s26 + $0x3c98] sm:$0xff] }
 0x41b   : > { %5702 = vmatpush.msra.mxu2 %v2224_v14  ;;  %5721 = vmatpush.msra.mxu3 %v2241_v15  ;;  %v2214_v14 = vld [vmem:[%s6762_s26 + $0x3d10] sm:$0xff]  ;;  %v2231_v15 = vld [vmem:[%s6762_s26 + $0x3d98] sm:$0xff] }
 0x41c   : > { %5663 = vmatpush.msra.mxu0 %v2191_v16  ;;  %5682 = vmatpush.msra.mxu1 %v2208_v19  ;;  %v2198_v16 = vld [vmem:[%s6762_s26 + $0x3c90] sm:$0xff]  ;;  %v250_v19 = vld [vmem:[%s6757_s22 + $0xf8] sm:$0xff] }
 0x41d   : > { %5703 = vmatpush.msra.mxu2 %v2223_v22  ;;  %5722 = vmatpush.msra.mxu3 %v2240_v23  ;;  %v3357_v22 = vadd.f32 %v8466_v12, %v3337_v5  ;;  %v2213_v23 = vld [vmem:[%s6762_s26 + $0x3d08] sm:$0xff]  ;;  %3045 = vst [vmem:[#allocation1 + $0x20] ss:$4 sm:$0xff] %v250_v19  ;;  %v3046_v12 = vld.sshfl [vmem:[#allocation1] sm:$0xff pattern:$0x73625140] }
 0x41e   : > { %5664 = vmatpush.msra.mxu0 %v2190_v24  ;;  %5683 = vmatpush.msra.mxu1 %v2207_v25  ;;  %v2230_v24 = vld [vmem:[%s6762_s26 + $0x3d90] sm:$0xff]  ;;  %v2180_v25 = vld [vmem:[%s6762_s26 + $0x3c00] sm:$0xff]  ;;  %v2287_v5 = vld [vmem:[%s6762_s26 + $0x3f58] sm:$0xff] }
 0x41f   : > { %5704 = vmatpush.msra.mxu2 %v2222_v26  ;;  %5723 = vmatpush.msra.mxu3 %v2239_v31  ;;  %v2197_v26 = vld [vmem:[%s6762_s26 + $0x3c88] sm:$0xff]  ;;  %v2212_v31 = vld [vmem:[%s6762_s26 + $0x3d00] sm:$0xff] }
 0x420   : > { %5665 = vmatpush.msra.mxu0 %v2189_v32  ;;  %5684 = vmatpush.msra.mxu1 %v2206_v33  ;;  %v2229_v32 = vld [vmem:[%s6762_s26 + $0x3d88] sm:$0xff]  ;;  %v3048_v33 = vld.sshfl [vmem:[#allocation1 + $0x10] sm:$0xff pattern:$0x73625140]  ;;  %v2252_v19 = vld [vmem:[%s6762_s26 + $0x3e40] sm:$0xff] }
 0x421   : > { %5705 = vmatpush.msra.mxu2 %v2221_v34  ;;  %5724 = vmatpush.msra.mxu3 %v2238_v35  ;;  %v3377_v34 = vadd.f32 %v8474_v20, %v3357_v22  ;;  %v2259_v35 = vld [vmem:[%s6762_s26 + $0x3e78] sm:$0xff]  ;;  %v3047_v20 = vld.sshfl [vmem:[#allocation1 + $0x8] sm:$0xff pattern:$0x73625140] }
 0x422   : > { %5666 = vmatpush.msra.mxu0 %v2188_v36  ;;  %5685 = vmatpush.msra.mxu1 %v2205_v39  ;;  %v2291_v36 = vld [vmem:[%s6762_s26 + $0x3f78] sm:$0xff]  ;;  %v2196_v39 = vld [vmem:[%s6762_s26 + $0x3c80] sm:$0xff]  ;;  %v2269_v22 = vld [vmem:[%s6762_s26 + $0x3ec8] sm:$0xff] }
 0x423   : > { %5706 = vmatpush.msra.mxu2 %v2220_v40  ;;  %5725 = vmatpush.msra.mxu3 %v2237_v41  ;;  %v2228_v40 = vld [vmem:[%s6762_s26 + $0x3d80] sm:$0xff]  ;;  %v8837_v41 = vpop.f32.mrf.mxu0 }
 0x424   : > { %5667 = vmatpush.msra.mxu0 %v2187_v42  ;;  %5686 = vmatpush.msra.mxu1 %v2204_v43  ;;  %v8839_v42 = vpop.f32.mrf.mxu2  ;;  %v3049_v43 = vld.sshfl [vmem:[#allocation1 + $0x18] sm:$0xff pattern:$0x73625140] }
 0x425   : > { %5707 = vmatpush.msra.mxu2 %v2219_v45  ;;  %5726 = vmatpush.msra.mxu3 %v2236_v46  ;;  %v2275_v45 = vld [vmem:[%s6762_s26 + $0x3ef8] sm:$0xff]  ;;  %v3397_v46 = vadd.f32 %v8468_v13, %v3377_v34  ;;  %v2289_v13 = vld [vmem:[%s6762_s26 + $0x3f68] sm:$0xff]  ;;  %v2282_v34 = vld [vmem:[%s6762_s26 + $0x3f30] sm:$0xff] }
 0x426   : > { %5668 = vmatpush.msra.mxu0 %v2186_v47  ;;  %5687 = vmatpush.msra.mxu1 %v2203_v48  ;;  %v2290_v47 = vld [vmem:[%s6762_s26 + $0x3f70] sm:$0xff]  ;;  %v2307_v48 = vld [vmem:[%s6762_s26 + $0x3ff8] sm:$0xff] }
 0x427   : > { %5708 = vmatpush.msra.mxu2 %v2218_v49  ;;  %5727 = vmatpush.msra.mxu3 %v2235_v52  ;;  %v8846_v49 = vpop.f32.mrf.mxu1  ;;  %v8848_v52 = vpop.f32.mrf.mxu3 }
 0x428   : > { %5669 = vmatpush.msra.mxu0 %v2185_v63  ;;  %5688 = vmatpush.msra.mxu1 %v2202_v7  ;;  %v2257_v63 = vld [vmem:[%s6762_s26 + $0x3e68] sm:$0xff]  ;;  %v2274_v7 = vld [vmem:[%s6762_s26 + $0x3ef0] sm:$0xff] }
 0x429   : > { %5709 = vmatpush.msra.mxu2 %v2217_v56  ;;  %5728 = vmatpush.msra.mxu3 %v2234_v57  ;;  %v2256_v56 = vld [vmem:[%s6762_s26 + $0x3e60] sm:$0xff]  ;;  %v2273_v57 = vld [vmem:[%s6762_s26 + $0x3ee8] sm:$0xff] }
 0x42a   : > { %5670 = vmatpush.msra.mxu0 %v2184_v60  ;;  %5689 = vmatpush.msra.mxu1 %v2201_v61  ;;  %v3417_v60 = vadd.f32 %v8476_v21, %v3397_v46  ;;  %v2288_v61 = vld [vmem:[%s6762_s26 + $0x3f60] sm:$0xff]  ;;  %v2297_v46 = vld [vmem:[%s6762_s26 + $0x3fa8] sm:$0xff] }
 0x42b   : > { %5710 = vmatpush.msra.mxu2 %v2216_v62  ;;  %5729 = vmatpush.msra.mxu3 %v2233_v1  ;;  %v2305_v62 = vld [vmem:[%s6762_s26 + $0x3fe8] sm:$0xff]  ;;  %v2255_v1 = vld [vmem:[%s6762_s26 + $0x3e58] sm:$0xff]  ;;  %v2304_v21 = vld [vmem:[%s6762_s26 + $0x3fe0] sm:$0xff] }
 0x42c   : > { %5671 = vmatpush.msra.mxu0 %v2183_v0  ;;  %5690 = vmatpush.msra.mxu1 %v2200_v4  ;;  %v2272_v0 = vld [vmem:[%s6762_s26 + $0x3ee0] sm:$0xff]  ;;  %v3437_v4 = vadd.f32 %v8539_v29, %v3417_v60  ;;  %v2253_v29 = vld [vmem:[%s6762_s26 + $0x3e48] sm:$0xff] }
 0x42d   : > { %5711 = vmatpush.msra.mxu2 %v2215_v6  ;;  %5730 = vmatpush.msra.mxu3 %v2232_v9  ;;  %v2254_v6 = vld [vmem:[%s6762_s26 + $0x3e50] sm:$0xff]  ;;  %v2271_v9 = vld [vmem:[%s6762_s26 + $0x3ed8] sm:$0xff]  ;;  %v2245_v60 = vld [vmem:[%s6762_s26 + $0x3e08] sm:$0xff] }
 0x42e   : > { %5672 = vmatpush.msra.mxu0 %v2182_v10  ;;  %5691 = vmatpush.msra.mxu1 %v2199_v11  ;;  %v2286_v10 = vld [vmem:[%s6762_s26 + $0x3f50] sm:$0xff]  ;;  %v2303_v11 = vld [vmem:[%s6762_s26 + $0x3fd8] sm:$0xff] }
 0x42f   : > { %5712 = vmatpush.msra.mxu2 %v2214_v14  ;;  %5731 = vmatpush.msra.mxu3 %v2231_v15  ;;  %v2270_v14 = vld [vmem:[%s6762_s26 + $0x3ed0] sm:$0xff]  ;;  %v3457_v15 = vadd.f32 %v8547_v37, %v3437_v4  ;;  %v2301_v37 = vld [vmem:[%s6762_s26 + $0x3fc8] sm:$0xff] }
 0x430   : > { %5673 = vmatpush.msra.mxu0 %v2181_v8  ;;  %5692 = vmatpush.msra.mxu1 %v2198_v16  ;;  %v2285_v8 = vld [vmem:[%s6762_s26 + $0x3f48] sm:$0xff]  ;;  %v2302_v16 = vld [vmem:[%s6762_s26 + $0x3fd0] sm:$0xff] }
 0x431   : > { %5713 = vmatpush.msra.mxu2 %v2213_v23  ;;  %5732 = vmatpush.msra.mxu3 %v2230_v24  ;;  %v3477_v23 = vadd.f32 %v8541_v30, %v3457_v15  ;;  %v2284_v24 = vld [vmem:[%s6762_s26 + $0x3f40] sm:$0xff]  ;;  %v2250_v30 = vld [vmem:[%s6762_s26 + $0x3e30] sm:$0xff]  ;;  %v2261_v4 = vld [vmem:[%s6762_s26 + $0x3e88] sm:$0xff] }
 0x432   : > { %5674 = vmatpush.msra.mxu0 %v2180_v25  ;;  %5693 = vmatpush.msra.mxu1 %v2197_v26  ;;  %v2251_v25 = vld [vmem:[%s6762_s26 + $0x3e38] sm:$0xff]  ;;  %v2268_v26 = vld [vmem:[%s6762_s26 + $0x3ec0] sm:$0xff] }
 0x433   : > { %5714 = vmatpush.msra.mxu2 %v2212_v31  ;;  %5733 = vmatpush.msra.mxu3 %v2229_v32  ;;  %v2283_v31 = vld [vmem:[%s6762_s26 + $0x3f38] sm:$0xff]  ;;  %v2300_v32 = vld [vmem:[%s6762_s26 + $0x3fc0] sm:$0xff] }
 0x434   : > { %5675 = vmatmul.f32.vlgmr.msra.gmra.mxu0 %v3046_v12  ;;  %5715 = vmatmul.f32.vlgmr.msra.gmra.mxu2 %v3048_v33  ;;  %v2267_v12 = vld [vmem:[%s6762_s26 + $0x3eb8] sm:$0xff]  ;;  %v3497_v33 = vadd.f32 %v8549_v38, %v3477_v23  ;;  %v2298_v38 = vld [vmem:[%s6762_s26 + $0x3fb0] sm:$0xff]  ;;  %v2292_v15 = vld [vmem:[%s6762_s26 + $0x3f80] sm:$0xff] }
 0x435   : > { %5739 = vmatpush.msrb.mxu0 %v2259_v35  ;;  %5779 = vmatpush.msrb.mxu2 %v2291_v36  ;;  %v2299_v35 = vld [vmem:[%s6762_s26 + $0x3fb8] sm:$0xff]  ;;  %v2249_v36 = vld [vmem:[%s6762_s26 + $0x3e28] sm:$0xff] }
 0x436   : > { %5694 = vmatpush.msra.mxu1 %v2196_v39  ;;  %5734 = vmatpush.msra.mxu3 %v2228_v40  ;;  %v2266_v39 = vld [vmem:[%s6762_s26 + $0x3eb0] sm:$0xff]  ;;  %v3517_v40 = vadd.f32 %v8612_v50, %v3497_v33  ;;  %v2247_v50 = vld [vmem:[%s6762_s26 + $0x3e18] sm:$0xff] }
 0x437   : > { %5695 = vmatmul.f32.vlgmr.msra.gmra.mxu1 %v3047_v20  ;;  %5735 = vmatmul.f32.vlgmr.msra.gmra.mxu3 %v3049_v43  ;;  %v2281_v20 = vld [vmem:[%s6762_s26 + $0x3f28] sm:$0xff]  ;;  %v2248_v43 = vld [vmem:[%s6762_s26 + $0x3e20] sm:$0xff]  ;;  %v2339_v23 = vld [vmem:[%s6762_s26 + $0x40f8] sm:$0xff] }
 0x438   : > { %5740 = vmatpush.msrb.mxu0 %v2258_v44  ;;  %5759 = vmatpush.msrb.mxu1 %v2275_v45  ;;  %v2265_v44 = vld [vmem:[%s6762_s26 + $0x3ea8] sm:$0xff]  ;;  %v2280_v45 = vld [vmem:[%s6762_s26 + $0x3f20] sm:$0xff]  ;;  %v2370_v33 = vld [vmem:[%s6762_s26 + $0x41f0] sm:$0xff] }
 0x439   : > { %5780 = vmatpush.msrb.mxu2 %v2290_v47  ;;  %5799 = vmatpush.msrb.mxu3 %v2307_v48  ;;  %v2264_v47 = vld [vmem:[%s6762_s26 + $0x3ea0] sm:$0xff]  ;;  %v3537_v48 = vadd.f32 %v8620_v58, %v3517_v40  ;;  %v2278_v58 = vld [vmem:[%s6762_s26 + $0x3f10] sm:$0xff] }
 0x43a   : > { %5741 = vmatpush.msrb.mxu0 %v2257_v63  ;;  %5760 = vmatpush.msrb.mxu1 %v2274_v7  ;;  %v2279_v63 = vld [vmem:[%s6762_s26 + $0x3f18] sm:$0xff]  ;;  %v2296_v7 = vld [vmem:[%s6762_s26 + $0x3fa0] sm:$0xff] }
 0x43b   : > { %5781 = vmatpush.msrb.mxu2 %v2289_v13  ;;  %5800 = vmatpush.msrb.mxu3 %v2306_v53  ;;  %v2246_v13 = vld [vmem:[%s6762_s26 + $0x3e10] sm:$0xff]  ;;  %v2263_v53 = vld [vmem:[%s6762_s26 + $0x3e98] sm:$0xff]  ;;  %v2336_v40 = vld [vmem:[%s6762_s26 + $0x40e0] sm:$0xff] }
 0x43c   : > { %5742 = vmatpush.msrb.mxu0 %v2256_v56  ;;  %5761 = vmatpush.msrb.mxu1 %v2273_v57  ;;  %v3557_v56 = vadd.f32 %v8614_v51, %v3537_v48  ;;  %v2295_v57 = vld [vmem:[%s6762_s26 + $0x3f98] sm:$0xff]  ;;  %v2244_v51 = vld [vmem:[%s6762_s26 + $0x3e00] sm:$0xff]  ;;  %v2334_v48 = vld [vmem:[%s6762_s26 + $0x40d0] sm:$0xff] }
 0x43d   : > { %5782 = vmatpush.msrb.mxu2 %v2288_v61  ;;  %5801 = vmatpush.msrb.mxu3 %v2305_v62  ;;  %v2262_v61 = vld [vmem:[%s6762_s26 + $0x3e90] sm:$0xff]  ;;  %v251_v62 = vld [vmem:[%s6757_s22 + $0x100] sm:$0xff] }
 0x43e   : > { %5743 = vmatpush.msrb.mxu0 %v2255_v1  ;;  %5762 = vmatpush.msrb.mxu1 %v2272_v0  ;;  %v2277_v1 = vld [vmem:[%s6762_s26 + $0x3f08] sm:$0xff]  ;;  %v2294_v0 = vld [vmem:[%s6762_s26 + $0x3f90] sm:$0xff]  ;;  %3054 = vst [vmem:[#allocation1] ss:$4 sm:$0xff] %v251_v62  ;;  %v2347_v62 = vld [vmem:[%s6762_s26 + $0x4138] sm:$0xff] }
 0x43f   : > { %5783 = vmatpush.msrb.mxu2 %v2287_v5  ;;  %5802 = vmatpush.msrb.mxu3 %v2304_v21  ;;  %v3577_v5 = vadd.f32 %v8622_v59, %v3557_v56  ;;  %v2276_v21 = vld [vmem:[%s6762_s26 + $0x3f00] sm:$0xff] }
 0x440   : > { %5744 = vmatpush.msrb.mxu0 %v2254_v6  ;;  %5763 = vmatpush.msrb.mxu1 %v2271_v9  ;;  %v2293_v6 = vld [vmem:[%s6762_s26 + $0x3f88] sm:$0xff]  ;;  %v3050_v9 = vld.sshfl [vmem:[#allocation1 + $0x20] sm:$0xff pattern:$0x73625140] }
 0x441   : > { %5784 = vmatpush.msrb.mxu2 %v2286_v10  ;;  %5803 = vmatpush.msrb.mxu3 %v2303_v11  ;;  %v3052_v10 = vld.sshfl [vmem:[#allocation1 + $0x30] sm:$0xff pattern:$0x73625140]  ;;  %v3597_v11 = vadd.f32 %v8685_v17, %v3577_v5  ;;  %v2260_v59 = vld [vmem:[%s6762_s26 + $0x3e80] sm:$0xff] }
 0x442   : > { %5745 = vmatpush.msrb.mxu0 %v2253_v29  ;;  %5764 = vmatpush.msrb.mxu1 %v2270_v14  ;;  %v2323_v29 = vld [vmem:[%s6762_s26 + $0x4078] sm:$0xff]  ;;  %v3051_v17 = vld.sshfl [vmem:[#allocation1 + $0x28] sm:$0xff pattern:$0x73625140]  ;;  %v2348_v56 = vld [vmem:[%s6762_s26 + $0x4140] sm:$0xff] }
 0x443   : > { %5785 = vmatpush.msrb.mxu2 %v2285_v8  ;;  %5804 = vmatpush.msrb.mxu3 %v2302_v16  ;;  %v2355_v14 = vld [vmem:[%s6762_s26 + $0x4178] sm:$0xff]  ;;  %v8921_v8 = vpop.f32.mrf.mxu0  ;;  %v8923_v16 = vpop.f32.mrf.mxu2  ;;  %v2330_v5 = vld [vmem:[%s6762_s26 + $0x40b0] sm:$0xff] }
 0x444   : > { %5746 = vmatpush.msrb.mxu0 %v2252_v19  ;;  %5765 = vmatpush.msrb.mxu1 %v2269_v22  ;;  %v3053_v19 = vld.sshfl [vmem:[#allocation1 + $0x38] sm:$0xff pattern:$0x73625140]  ;;  %v2322_v22 = vld [vmem:[%s6762_s26 + $0x4070] sm:$0xff] }
 0x445   : > { %5786 = vmatpush.msrb.mxu2 %v2284_v24  ;;  %5805 = vmatpush.msrb.mxu3 %v2301_v37  ;;  %v3617_v24 = vadd.f32 %v8693_v27, %v3597_v11  ;;  %v2354_v37 = vld [vmem:[%s6762_s26 + $0x4170] sm:$0xff]  ;;  %v2353_v27 = vld [vmem:[%s6762_s26 + $0x4168] sm:$0xff] }
 0x446   : > { %5747 = vmatpush.msrb.mxu0 %v2251_v25  ;;  %5766 = vmatpush.msrb.mxu1 %v2268_v26  ;;  %v2371_v25 = vld [vmem:[%s6762_s26 + $0x41f8] sm:$0xff]  ;;  %v8930_v26 = vpop.f32.mrf.mxu1  ;;  %v2329_v11 = vld [vmem:[%s6762_s26 + $0x40a8] sm:$0xff] }
 0x447   : > { %5787 = vmatpush.msrb.mxu2 %v2283_v31  ;;  %5806 = vmatpush.msrb.mxu3 %v2300_v32  ;;  %v8932_v31 = vpop.f32.mrf.mxu3  ;;  %v2321_v32 = vld [vmem:[%s6762_s26 + $0x4068] sm:$0xff] }
 0x448   : > { %5748 = vmatpush.msrb.mxu0 %v2250_v30  ;;  %5767 = vmatpush.msrb.mxu1 %v2267_v12  ;;  %v2338_v30 = vld [vmem:[%s6762_s26 + $0x40f0] sm:$0xff]  ;;  %v3637_v12 = vadd.f32 %v8687_v18, %v3617_v24  ;;  %v2319_v18 = vld [vmem:[%s6762_s26 + $0x4058] sm:$0xff] }
 0x449   : > { %5788 = vmatpush.msrb.mxu2 %v2282_v34  ;;  %5807 = vmatpush.msrb.mxu3 %v2299_v35  ;;  %v2320_v34 = vld [vmem:[%s6762_s26 + $0x4060] sm:$0xff]  ;;  %v2337_v35 = vld [vmem:[%s6762_s26 + $0x40e8] sm:$0xff]  ;;  %v2342_v24 = vld [vmem:[%s6762_s26 + $0x4110] sm:$0xff] }
 0x44a   : > { %5749 = vmatpush.msrb.mxu0 %v2249_v36  ;;  %5768 = vmatpush.msrb.mxu1 %v2266_v39  ;;  %v2352_v36 = vld [vmem:[%s6762_s26 + $0x4160] sm:$0xff]  ;;  %v2369_v39 = vld [vmem:[%s6762_s26 + $0x41e8] sm:$0xff] }
 0x44b   : > { %5789 = vmatpush.msrb.mxu2 %v2281_v20  ;;  %5808 = vmatpush.msrb.mxu3 %v2298_v38  ;;  %v3657_v20 = vadd.f32 %v8695_v28, %v3637_v12  ;;  %v2351_v38 = vld [vmem:[%s6762_s26 + $0x4158] sm:$0xff] }
 0x44c   : > { %5750 = vmatpush.msrb.mxu0 %v2248_v43  ;;  %5769 = vmatpush.msrb.mxu1 %v2265_v44  ;;  %v2368_v43 = vld [vmem:[%s6762_s26 + $0x41e0] sm:$0xff]  ;;  %v2318_v44 = vld [vmem:[%s6762_s26 + $0x4050] sm:$0xff]  ;;  %v2367_v28 = vld [vmem:[%s6762_s26 + $0x41d8] sm:$0xff] }
 0x44d   : > { %5790 = vmatpush.msrb.mxu2 %v2280_v45  ;;  %5809 = vmatpush.msrb.mxu3 %v2297_v46  ;;  %v2335_v45 = vld [vmem:[%s6762_s26 + $0x40d8] sm:$0xff]  ;;  %v3677_v46 = vadd.f32 %v8758_v54, %v3657_v20  ;;  %v2316_v54 = vld [vmem:[%s6762_s26 + $0x4040] sm:$0xff] }
 0x44e   : > { %5751 = vmatpush.msrb.mxu0 %v2247_v50  ;;  %5770 = vmatpush.msrb.mxu1 %v2264_v47  ;;  %v2350_v50 = vld [vmem:[%s6762_s26 + $0x4150] sm:$0xff]  ;;  %v2317_v47 = vld [vmem:[%s6762_s26 + $0x4048] sm:$0xff]  ;;  %v2419_v20 = vld [vmem:[%s6762_s26 + $0x4378] sm:$0xff] }
 0x44f   : > { %5791 = vmatpush.msrb.mxu2 %v2279_v63  ;;  %5810 = vmatpush.msrb.mxu3 %v2296_v7  ;;  %v2349_v63 = vld [vmem:[%s6762_s26 + $0x4148] sm:$0xff]  ;;  %v2366_v7 = vld [vmem:[%s6762_s26 + $0x41d0] sm:$0xff] }
 0x450   : > { %5752 = vmatpush.msrb.mxu0 %v2246_v13  ;;  %5771 = vmatpush.msrb.mxu1 %v2263_v53  ;;  %v2333_v13 = vld [vmem:[%s6762_s26 + $0x40c8] sm:$0xff]  ;;  %v3697_v53 = vadd.f32 %v8766_v2, %v3677_v46  ;;  %v2364_v2 = vld [vmem:[%s6762_s26 + $0x41c0] sm:$0xff]  ;;  %v9006_v46 = vpop.f32.mrf.mxu2 }
 0x451   : > { %5792 = vmatpush.msrb.mxu2 %v2278_v58  ;;  %5811 = vmatpush.msrb.mxu3 %v2295_v57  ;;  %v2365_v58 = vld [vmem:[%s6762_s26 + $0x41c8] sm:$0xff]  ;;  %v2315_v57 = vld [vmem:[%s6762_s26 + $0x4038] sm:$0xff] }
 0x452   : > { %5753 = vmatpush.msrb.mxu0 %v2245_v60  ;;  %5772 = vmatpush.msrb.mxu1 %v2262_v61  ;;  %v2332_v60 = vld [vmem:[%s6762_s26 + $0x40c0] sm:$0xff]  ;;  %v3717_v61 = vadd.f32 %v8760_v55, %v3697_v53  ;;  %v2313_v55 = vld [vmem:[%s6762_s26 + $0x4028] sm:$0xff] }
 0x453   : > { %5793 = vmatpush.msrb.mxu2 %v2277_v1  ;;  %5812 = vmatpush.msrb.mxu3 %v2294_v0  ;;  %v2314_v1 = vld [vmem:[%s6762_s26 + $0x4030] sm:$0xff]  ;;  %v2331_v0 = vld [vmem:[%s6762_s26 + $0x40b8] sm:$0xff] }
 0x454   : > { %5754 = vmatpush.msrb.mxu0 %v2244_v51  ;;  %5773 = vmatpush.msrb.mxu1 %v2261_v4  ;;  %v2346_v51 = vld [vmem:[%s6762_s26 + $0x4130] sm:$0xff]  ;;  %v2363_v4 = vld [vmem:[%s6762_s26 + $0x41b8] sm:$0xff] }
 0x455   : > { %5794 = vmatpush.msrb.mxu2 %v2276_v21  ;;  %5813 = vmatpush.msrb.mxu3 %v2293_v6  ;;  %v3737_v21 = vadd.f32 %v8768_v3, %v3717_v61  ;;  %v2345_v6 = vld [vmem:[%s6762_s26 + $0x4128] sm:$0xff] }
 0x456   : > { %5755 = vmatmul.f32.vlgmr.msrb.gmra.mxu0 %v3050_v9  ;;  %5795 = vmatmul.f32.vlgmr.msrb.gmra.mxu2 %v3052_v10  ;;  %v2362_v9 = vld [vmem:[%s6762_s26 + $0x41b0] sm:$0xff]  ;;  %v2312_v10 = vld [vmem:[%s6762_s26 + $0x4020] sm:$0xff]  ;;  %v2361_v3 = vld [vmem:[%s6762_s26 + $0x41a8] sm:$0xff] }
 0x457   : > { %5819 = vmatpush.msra.mxu0 %v2323_v29  ;;  %5859 = vmatpush.msra.mxu2 %v2355_v14  ;;  %v3757_v29 = vadd.f32 %v8837_v41, %v3737_v21  ;;  %v2344_v14 = vld [vmem:[%s6762_s26 + $0x4120] sm:$0xff]  ;;  %v2310_v41 = vld [vmem:[%s6762_s26 + $0x4010] sm:$0xff]  ;;  %v2431_v21 = vld [vmem:[%s6762_s26 + $0x43d8] sm:$0xff] }
 0x458   : > { %5774 = vmatpush.msrb.mxu1 %v2260_v59  ;;  %5814 = vmatpush.msrb.mxu3 %v2292_v15  ;;  %v2311_v59 = vld [vmem:[%s6762_s26 + $0x4018] sm:$0xff]  ;;  %v2328_v15 = vld [vmem:[%s6762_s26 + $0x40a0] sm:$0xff] }
 0x459   : > { %5775 = vmatmul.f32.vlgmr.msrb.gmra.mxu1 %v3051_v17  ;;  %5815 = vmatmul.f32.vlgmr.msrb.gmra.mxu3 %v3053_v19  ;;  %v2343_v17 = vld [vmem:[%s6762_s26 + $0x4118] sm:$0xff]  ;;  %v2360_v19 = vld [vmem:[%s6762_s26 + $0x41a0] sm:$0xff] }
 0x45a   : > { %5820 = vmatpush.msra.mxu0 %v2322_v22  ;;  %5839 = vmatpush.msra.mxu1 %v2339_v23  ;;  %v2327_v22 = vld [vmem:[%s6762_s26 + $0x4098] sm:$0xff]  ;;  %v3777_v23 = vadd.f32 %v8846_v49, %v3757_v29  ;;  %v2308_v49 = vld [vmem:[%s6762_s26 + $0x4000] sm:$0xff]  ;;  %v2430_v29 = vld [vmem:[%s6762_s26 + $0x43d0] sm:$0xff] }
 0x45b   : > { %5860 = vmatpush.msra.mxu2 %v2354_v37  ;;  %5879 = vmatpush.msra.mxu3 %v2371_v25  ;;  %v2359_v37 = vld [vmem:[%s6762_s26 + $0x4198] sm:$0xff]  ;;  %v2309_v25 = vld [vmem:[%s6762_s26 + $0x4008] sm:$0xff] }
 0x45c   : > { %5821 = vmatpush.msra.mxu0 %v2321_v32  ;;  %5840 = vmatpush.msra.mxu1 %v2338_v30  ;;  %v2326_v32 = vld [vmem:[%s6762_s26 + $0x4090] sm:$0xff]  ;;  %v252_v30 = vld [vmem:[%s6757_s22 + $0x108] sm:$0xff]  ;;  %v3797_v12 = vadd.f32 %v8839_v42, %v3777_v23  ;;  %v3056_v42 = vld.sshfl [vmem:[#allocation1] sm:$0xff pattern:$0x73625140] }
 0x45d   : > { %5861 = vmatpush.msra.mxu2 %v2353_v27  ;;  %5880 = vmatpush.msra.mxu3 %v2370_v33  ;;  %v2341_v27 = vld [vmem:[%s6762_s26 + $0x4108] sm:$0xff]  ;;  %v2358_v33 = vld [vmem:[%s6762_s26 + $0x4190] sm:$0xff]  ;;  %3055 = vst [vmem:[#allocation1 + $0x20] ss:$4 sm:$0xff] %v252_v30 }
 0x45e   : > { %5822 = vmatpush.msra.mxu0 %v2320_v34  ;;  %5841 = vmatpush.msra.mxu1 %v2337_v35  ;;  %v2325_v34 = vld [vmem:[%s6762_s26 + $0x4088] sm:$0xff]  ;;  %v2340_v35 = vld [vmem:[%s6762_s26 + $0x4100] sm:$0xff]  ;;  %v2378_v23 = vld [vmem:[%s6762_s26 + $0x4230] sm:$0xff] }
 0x45f   : > { %5862 = vmatpush.msra.mxu2 %v2352_v36  ;;  %5881 = vmatpush.msra.mxu3 %v2369_v39  ;;  %v2357_v36 = vld [vmem:[%s6762_s26 + $0x4188] sm:$0xff]  ;;  %v3058_v39 = vld.sshfl [vmem:[#allocation1 + $0x10] sm:$0xff pattern:$0x73625140] }
 0x460   : > { %5823 = vmatpush.msra.mxu0 %v2319_v18  ;;  %5842 = vmatpush.msra.mxu1 %v2336_v40  ;;  %v3817_v18 = vadd.f32 %v8848_v52, %v3797_v12  ;;  %v2387_v40 = vld [vmem:[%s6762_s26 + $0x4278] sm:$0xff]  ;;  %v3057_v52 = vld.sshfl [vmem:[#allocation1 + $0x8] sm:$0xff pattern:$0x73625140]  ;;  %v2394_v12 = vld [vmem:[%s6762_s26 + $0x42b0] sm:$0xff] }
 0x461   : > { %5863 = vmatpush.msra.mxu2 %v2351_v38  ;;  %5882 = vmatpush.msra.mxu3 %v2368_v43  ;;  %v2324_v38 = vld [vmem:[%s6762_s26 + $0x4080] sm:$0xff]  ;;  %v2377_v30 = vld [vmem:[%s6762_s26 + $0x4228] sm:$0xff] }
 0x462   : > { %5824 = vmatpush.msra.mxu0 %v2318_v44  ;;  %5843 = vmatpush.msra.mxu1 %v2335_v45  ;;  %v2356_v43 = vld [vmem:[%s6762_s26 + $0x4180] sm:$0xff]  ;;  %v3837_v44 = vadd.f32 %v8921_v8, %v3817_v18  ;;  %v3916_v45 = vpop.f32.mrf.mxu0  ;;  %v2435_v8 = vld [vmem:[%s6762_s26 + $0x43f8] sm:$0xff] }
 0x463   : > { %5864 = vmatpush.msra.mxu2 %v2350_v50  ;;  %5883 = vmatpush.msra.mxu3 %v2367_v28  ;;  %v3059_v50 = vld.sshfl [vmem:[#allocation1 + $0x18] sm:$0xff pattern:$0x73625140]  ;;  %v2386_v28 = vld [vmem:[%s6762_s26 + $0x4270] sm:$0xff] }
 0x464   : > { %5825 = vmatpush.msra.mxu0 %v2317_v47  ;;  %5844 = vmatpush.msra.mxu1 %v2334_v48  ;;  %v2403_v47 = vld [vmem:[%s6762_s26 + $0x42f8] sm:$0xff]  ;;  %v2418_v48 = vld [vmem:[%s6762_s26 + $0x4370] sm:$0xff]  ;;  %v3857_v53 = vadd.f32 %v8930_v26, %v3837_v44  ;;  %v2433_v26 = vld [vmem:[%s6762_s26 + $0x43e8] sm:$0xff] }
 0x465   : > { %5865 = vmatpush.msra.mxu2 %v2349_v63  ;;  %5884 = vmatpush.msra.mxu3 %v2366_v7  ;;  %v3936_v63 = vpop.f32.mrf.mxu1  ;;  %v9012_v7 = vpop.f32.mrf.mxu3  ;;  %v2375_v18 = vld [vmem:[%s6762_s26 + $0x4218] sm:$0xff] }
 0x466   : > { %5826 = vmatpush.msra.mxu0 %v2316_v54  ;;  %5845 = vmatpush.msra.mxu1 %v2333_v13  ;;  %v2385_v54 = vld [vmem:[%s6762_s26 + $0x4268] sm:$0xff]  ;;  %v2402_v13 = vld [vmem:[%s6762_s26 + $0x42f0] sm:$0xff]  ;;  %v3877_v61 = vadd.f32 %v8923_v16, %v3857_v53 }
 0x467   : > { %5866 = vmatpush.msra.mxu2 %v2348_v56  ;;  %5885 = vmatpush.msra.mxu3 %v2365_v58  ;;  %v2417_v56 = vld [vmem:[%s6762_s26 + $0x4368] sm:$0xff]  ;;  %v2434_v58 = vld [vmem:[%s6762_s26 + $0x43f0] sm:$0xff] }
 0x468   : > { %5827 = vmatpush.msra.mxu0 %v2315_v57  ;;  %5846 = vmatpush.msra.mxu1 %v2332_v60  ;;  %v2384_v57 = vld [vmem:[%s6762_s26 + $0x4260] sm:$0xff]  ;;  %v2401_v60 = vld [vmem:[%s6762_s26 + $0x42e8] sm:$0xff]  ;;  %v2382_v16 = vld [vmem:[%s6762_s26 + $0x4250] sm:$0xff] }
 0x469   : > { %5867 = vmatpush.msra.mxu2 %v2347_v62  ;;  %5886 = vmatpush.msra.mxu3 %v2364_v2  ;;  %v2416_v62 = vld [vmem:[%s6762_s26 + $0x4360] sm:$0xff]  ;;  %v2383_v2 = vld [vmem:[%s6762_s26 + $0x4258] sm:$0xff]  ;;  %v2389_v53 = vld [vmem:[%s6762_s26 + $0x4288] sm:$0xff] }
 0x46a   : > { %5828 = vmatpush.msra.mxu0 %v2314_v1  ;;  %5847 = vmatpush.msra.mxu1 %v2331_v0  ;;  %v2400_v1 = vld [vmem:[%s6762_s26 + $0x42e0] sm:$0xff]  ;;  %v2415_v0 = vld [vmem:[%s6762_s26 + $0x4358] sm:$0xff] }
 0x46b   : > { %5868 = vmatpush.msra.mxu2 %v2346_v51  ;;  %5887 = vmatpush.msra.mxu3 %v2363_v4  ;;  %v2432_v51 = vld [vmem:[%s6762_s26 + $0x43e0] sm:$0xff]  ;;  %v2399_v4 = vld [vmem:[%s6762_s26 + $0x42d8] sm:$0xff] }
 0x46c   : > { %5829 = vmatpush.msra.mxu0 %v2313_v55  ;;  %5848 = vmatpush.msra.mxu1 %v2330_v5  ;;  %v3897_v55 = vadd.f32 %v8932_v31, %v3877_v61  ;;  %v2414_v5 = vld [vmem:[%s6762_s26 + $0x4350] sm:$0xff]  ;;  %v2380_v31 = vld [vmem:[%s6762_s26 + $0x4240] sm:$0xff] }
 0x46d   : > { %5869 = vmatpush.msra.mxu2 %v2345_v6  ;;  %5888 = vmatpush.msra.mxu3 %v2362_v9  ;;  %v2381_v6 = vld [vmem:[%s6762_s26 + $0x4248] sm:$0xff]  ;;  %v2398_v9 = vld [vmem:[%s6762_s26 + $0x42d0] sm:$0xff]  ;;  %v4016_v44 = vpop.f32.mrf.mxu1  ;;  %v3060_v61 = vld.sshfl [vmem:[#allocation1 + $0x20] sm:$0xff pattern:$0x73625140] }
 0x46e   : > { %5830 = vmatpush.msra.mxu0 %v2312_v10  ;;  %5849 = vmatpush.msra.mxu1 %v2329_v11  ;;  %v3917_v10 = vadd.f32 %v3916_v45, %v3897_v55  ;;  %v2413_v11 = vld [vmem:[%s6762_s26 + $0x4348] sm:$0xff]  ;;  %v2374_v45 = vld [vmem:[%s6762_s26 + $0x4210] sm:$0xff]  ;;  %v3063_v55 = vld.sshfl [vmem:[#allocation1 + $0x38] sm:$0xff pattern:$0x73625140] }
 0x46f   : > { %5870 = vmatpush.msra.mxu2 %v2344_v14  ;;  %5889 = vmatpush.msra.mxu3 %v2361_v3  ;;  %v2397_v14 = vld [vmem:[%s6762_s26 + $0x42c8] sm:$0xff]  ;;  %v2412_v3 = vld [vmem:[%s6762_s26 + $0x4340] sm:$0xff] }
 0x470   : > { %5831 = vmatpush.msra.mxu0 %v2311_v59  ;;  %5850 = vmatpush.msra.mxu1 %v2328_v15  ;;  %v2429_v59 = vld [vmem:[%s6762_s26 + $0x43c8] sm:$0xff]  ;;  %v2379_v15 = vld [vmem:[%s6762_s26 + $0x4238] sm:$0xff] }
 0x471   : > { %5871 = vmatpush.msra.mxu2 %v2343_v17  ;;  %5890 = vmatpush.msra.mxu3 %v2360_v19  ;;  %v2396_v17 = vld [vmem:[%s6762_s26 + $0x42c0] sm:$0xff]  ;;  %v3937_v19 = vadd.f32 %v3936_v63, %v3917_v10  ;;  %v2499_v10 = vld [vmem:[%s6762_s26 + $0x45f8] sm:$0xff] }
 0x472   : > { %5832 = vmatpush.msra.mxu0 %v2310_v41  ;;  %5851 = vmatpush.msra.mxu1 %v2327_v22  ;;  %v2411_v41 = vld [vmem:[%s6762_s26 + $0x4338] sm:$0xff]  ;;  %v2428_v22 = vld [vmem:[%s6762_s26 + $0x43c0] sm:$0xff] }
 0x473   : > { %5872 = vmatpush.msra.mxu2 %v2342_v24  ;;  %5891 = vmatpush.msra.mxu3 %v2359_v37  ;;  %v2395_v24 = vld [vmem:[%s6762_s26 + $0x42b8] sm:$0xff]  ;;  %v3957_v37 = vadd.f32 %v9006_v46, %v3937_v19 }
 0x474   : > { %5833 = vmatpush.msra.mxu0 %v2309_v25  ;;  %5852 = vmatpush.msra.mxu1 %v2326_v32  ;;  %v2410_v25 = vld [vmem:[%s6762_s26 + $0x4330] sm:$0xff]  ;;  %v2427_v32 = vld [vmem:[%s6762_s26 + $0x43b8] sm:$0xff] }
 0x475   : > { %5873 = vmatpush.msra.mxu2 %v2341_v27  ;;  %5892 = vmatpush.msra.mxu3 %v2358_v33  ;;  %v2409_v27 = vld [vmem:[%s6762_s26 + $0x4328] sm:$0xff]  ;;  %v2426_v33 = vld [vmem:[%s6762_s26 + $0x43b0] sm:$0xff]  ;;  %v2391_v46 = vld [vmem:[%s6762_s26 + $0x4298] sm:$0xff] }
 0x476   : > { %5834 = vmatpush.msra.mxu0 %v2308_v49  ;;  %5853 = vmatpush.msra.mxu1 %v2325_v34  ;;  %v3996_v49 = vpop.f32.mrf.mxu0  ;;  %v2376_v34 = vld [vmem:[%s6762_s26 + $0x4220] sm:$0xff] }
 0x477   : > { %5874 = vmatpush.msra.mxu2 %v2340_v35  ;;  %5893 = vmatpush.msra.mxu3 %v2357_v36  ;;  %v2393_v35 = vld [vmem:[%s6762_s26 + $0x42a8] sm:$0xff]  ;;  %v3977_v36 = vadd.f32 %v9012_v7, %v3957_v37 }
 0x478   : > { %5835 = vmatmul.f32.vlgmr.msra.gmra.mxu0 %v3056_v42  ;;  %5875 = vmatmul.f32.vlgmr.msra.gmra.mxu2 %v3058_v39  ;;  %v2408_v42 = vld [vmem:[%s6762_s26 + $0x4320] sm:$0xff]  ;;  %v2425_v39 = vld [vmem:[%s6762_s26 + $0x43a8] sm:$0xff] }
 0x479   : > { %5899 = vmatpush.msrb.mxu0 %v2387_v40  ;;  %5939 = vmatpush.msrb.mxu2 %v2419_v20  ;;  %v2392_v40 = vld [vmem:[%s6762_s26 + $0x42a0] sm:$0xff]  ;;  %v3997_v20 = vadd.f32 %v3996_v49, %v3977_v36  ;;  %v2405_v7 = vld [vmem:[%s6762_s26 + $0x4308] sm:$0xff]  ;;  %v2495_v49 = vld [vmem:[%s6762_s26 + $0x45d8] sm:$0xff] }
 0x47a   : > { %5854 = vmatpush.msra.mxu1 %v2324_v38  ;;  %5894 = vmatpush.msra.mxu3 %v2356_v43  ;;  %v2407_v38 = vld [vmem:[%s6762_s26 + $0x4318] sm:$0xff]  ;;  %v2424_v43 = vld [vmem:[%s6762_s26 + $0x43a0] sm:$0xff]  ;;  %v2462_v36 = vld [vmem:[%s6762_s26 + $0x44d0] sm:$0xff] }
 0x47b   : > { %5855 = vmatmul.f32.vlgmr.msra.gmra.mxu1 %v3057_v52  ;;  %5895 = vmatmul.f32.vlgmr.msra.gmra.mxu3 %v3059_v50  ;;  %v2406_v52 = vld [vmem:[%s6762_s26 + $0x4310] sm:$0xff]  ;;  %v2423_v50 = vld [vmem:[%s6762_s26 + $0x4398] sm:$0xff]  ;;  %v4017_v63 = vadd.f32 %v4016_v44, %v3997_v20  ;;  %v2461_v20 = vld [vmem:[%s6762_s26 + $0x44c8] sm:$0xff] }
 0x47c   : > { %5900 = vmatpush.msrb.mxu0 %v2386_v28  ;;  %5919 = vmatpush.msrb.mxu1 %v2403_v47  ;;  %v4036_v28 = vpop.f32.mrf.mxu2  ;;  %v2373_v47 = vld [vmem:[%s6762_s26 + $0x4208] sm:$0xff] }
 0x47d   : > { %5940 = vmatpush.msrb.mxu2 %v2418_v48  ;;  %5959 = vmatpush.msrb.mxu3 %v2435_v8  ;;  %v2390_v48 = vld [vmem:[%s6762_s26 + $0x4290] sm:$0xff]  ;;  %v2493_v44 = vld [vmem:[%s6762_s26 + $0x45c8] sm:$0xff] }
 0x47e   : > { %5901 = vmatpush.msrb.mxu0 %v2385_v54  ;;  %5920 = vmatpush.msrb.mxu1 %v2402_v13  ;;  %v253_v8 = vld [vmem:[%s6757_s22 + $0x110] sm:$0xff]  ;;  %v2372_v13 = vld [vmem:[%s6762_s26 + $0x4200] sm:$0xff] }
 0x47f   : > { %5941 = vmatpush.msrb.mxu2 %v2417_v56  ;;  %5960 = vmatpush.msrb.mxu3 %v2434_v58  ;;  %v2422_v54 = vld [vmem:[%s6762_s26 + $0x4390] sm:$0xff]  ;;  %3064 = vst [vmem:[#allocation1] ss:$4 sm:$0xff] %v253_v8  ;;  %v4037_v56 = vadd.f32 %v4036_v28, %v4017_v63  ;;  %v2404_v58 = vld [vmem:[%s6762_s26 + $0x4300] sm:$0xff]  ;;  %v2459_v8 = vld [vmem:[%s6762_s26 + $0x44b8] sm:$0xff] }
 0x480   : > { %5902 = vmatpush.msrb.mxu0 %v2384_v57  ;;  %5921 = vmatpush.msrb.mxu1 %v2401_v60  ;;  %v2421_v57 = vld [vmem:[%s6762_s26 + $0x4388] sm:$0xff]  ;;  %v4056_v60 = vpop.f32.mrf.mxu3  ;;  %v2492_v28 = vld [vmem:[%s6762_s26 + $0x45c0] sm:$0xff] }
 0x481   : > { %5942 = vmatpush.msrb.mxu2 %v2416_v62  ;;  %5961 = vmatpush.msrb.mxu3 %v2433_v26  ;;  %v3062_v62 = vld.sshfl [vmem:[#allocation1 + $0x30] sm:$0xff pattern:$0x73625140]  ;;  %v2451_v26 = vld [vmem:[%s6762_s26 + $0x4478] sm:$0xff] }
 0x482   : > { %5903 = vmatpush.msrb.mxu0 %v2383_v2  ;;  %5922 = vmatpush.msrb.mxu1 %v2400_v1  ;;  %v2483_v2 = vld [vmem:[%s6762_s26 + $0x4578] sm:$0xff]  ;;  %v4076_v1 = vpop.f32.mrf.mxu0 }
 0x483   : > { %5943 = vmatpush.msrb.mxu2 %v2415_v0  ;;  %5962 = vmatpush.msrb.mxu3 %v2432_v51  ;;  %v2388_v0 = vld [vmem:[%s6762_s26 + $0x4280] sm:$0xff] }
 0x484   : > { %5904 = vmatpush.msrb.mxu0 %v2382_v16  ;;  %5923 = vmatpush.msrb.mxu1 %v2399_v4  ;;  %v2420_v51 = vld [vmem:[%s6762_s26 + $0x4380] sm:$0xff]  ;;  %v4057_v16 = vadd.f32 %v4056_v60, %v4037_v56  ;;  %v3061_v4 = vld.sshfl [vmem:[#allocation1 + $0x28] sm:$0xff pattern:$0x73625140] }
 0x485   : > { %5944 = vmatpush.msrb.mxu2 %v2414_v5  ;;  %5963 = vmatpush.msrb.mxu3 %v2431_v21  ;;  %v2450_v5 = vld [vmem:[%s6762_s26 + $0x4470] sm:$0xff]  ;;  %v2467_v21 = vld [vmem:[%s6762_s26 + $0x44f8] sm:$0xff] }
 0x486   : > { %5905 = vmatpush.msrb.mxu0 %v2381_v6  ;;  %5924 = vmatpush.msrb.mxu1 %v2398_v9  ;;  %v4077_v6 = vadd.f32 %v4076_v1, %v4057_v16  ;;  %v2482_v9 = vld [vmem:[%s6762_s26 + $0x4570] sm:$0xff] }
 0x487   : > { %5945 = vmatpush.msrb.mxu2 %v2413_v11  ;;  %5964 = vmatpush.msrb.mxu3 %v2430_v29  ;;  %v4096_v11 = vpop.f32.mrf.mxu1  ;;  %v2449_v29 = vld [vmem:[%s6762_s26 + $0x4468] sm:$0xff] }
 0x488   : > { %5906 = vmatpush.msrb.mxu0 %v2380_v31  ;;  %5925 = vmatpush.msrb.mxu1 %v2397_v14  ;;  %v2466_v31 = vld [vmem:[%s6762_s26 + $0x44f0] sm:$0xff]  ;;  %v2481_v14 = vld [vmem:[%s6762_s26 + $0x4568] sm:$0xff]  ;;  %v4097_v19 = vadd.f32 %v4096_v11, %v4077_v6 }
 0x489   : > { %5946 = vmatpush.msrb.mxu2 %v2412_v3  ;;  %5965 = vmatpush.msrb.mxu3 %v2429_v59  ;;  %v2498_v3 = vld [vmem:[%s6762_s26 + $0x45f0] sm:$0xff]  ;;  %v4116_v59 = vpop.f32.mrf.mxu2 }
 0x48a   : > { %5907 = vmatpush.msrb.mxu0 %v2379_v15  ;;  %5926 = vmatpush.msrb.mxu1 %v2396_v17  ;;  %v2448_v15 = vld [vmem:[%s6762_s26 + $0x4460] sm:$0xff]  ;;  %v2465_v17 = vld [vmem:[%s6762_s26 + $0x44e8] sm:$0xff]  ;;  %v4117_v37 = vadd.f32 %v4116_v59, %v4097_v19  ;;  %v2486_v59 = vld [vmem:[%s6762_s26 + $0x4590] sm:$0xff] }
 0x48b   : > { %5947 = vmatpush.msrb.mxu2 %v2411_v41  ;;  %5966 = vmatpush.msrb.mxu3 %v2428_v22  ;;  %v2480_v41 = vld [vmem:[%s6762_s26 + $0x4560] sm:$0xff]  ;;  %v2497_v22 = vld [vmem:[%s6762_s26 + $0x45e8] sm:$0xff] }
 0x48c   : > { %5908 = vmatpush.msrb.mxu0 %v2378_v23  ;;  %5927 = vmatpush.msrb.mxu1 %v2395_v24  ;;  %v2447_v23 = vld [vmem:[%s6762_s26 + $0x4458] sm:$0xff]  ;;  %v2464_v24 = vld [vmem:[%s6762_s26 + $0x44e0] sm:$0xff]  ;;  %v2453_v19 = vld [vmem:[%s6762_s26 + $0x4488] sm:$0xff] }
 0x48d   : > { %5948 = vmatpush.msrb.mxu2 %v2410_v25  ;;  %5967 = vmatpush.msrb.mxu3 %v2427_v32  ;;  %v2479_v25 = vld [vmem:[%s6762_s26 + $0x4558] sm:$0xff]  ;;  %v2496_v32 = vld [vmem:[%s6762_s26 + $0x45e0] sm:$0xff] }
 0x48e   : > { %5909 = vmatpush.msrb.mxu0 %v2377_v30  ;;  %5928 = vmatpush.msrb.mxu1 %v2394_v12  ;;  %v4136_v30 = vpop.f32.mrf.mxu3  ;;  %v2446_v12 = vld [vmem:[%s6762_s26 + $0x4450] sm:$0xff] }
 0x48f   : > { %5949 = vmatpush.msrb.mxu2 %v2409_v27  ;;  %5968 = vmatpush.msrb.mxu3 %v2426_v33  ;;  %v2463_v27 = vld [vmem:[%s6762_s26 + $0x44d8] sm:$0xff]  ;;  %v2478_v33 = vld [vmem:[%s6762_s26 + $0x4550] sm:$0xff] }
 0x490   : > { %5910 = vmatpush.msrb.mxu0 %v2376_v34  ;;  %5929 = vmatpush.msrb.mxu1 %v2393_v35  ;;  %v4156_v34 = vpop.f32.mrf.mxu0  ;;  %v2445_v35 = vld [vmem:[%s6762_s26 + $0x4448] sm:$0xff] }
 0x491   : > { %5950 = vmatpush.msrb.mxu2 %v2408_v42  ;;  %5969 = vmatpush.msrb.mxu3 %v2425_v39  ;;  %v4137_v42 = vadd.f32 %v4136_v30, %v4117_v37  ;;  %v2477_v39 = vld [vmem:[%s6762_s26 + $0x4548] sm:$0xff]  ;;  %v3068_v37 = vld.sshfl [vmem:[#allocation1 + $0x10] sm:$0xff pattern:$0x73625140]  ;;  %v2547_v30 = vld [vmem:[%s6762_s26 + $0x4778] sm:$0xff] }
 0x492   : > { %5911 = vmatpush.msrb.mxu0 %v2375_v18  ;;  %5930 = vmatpush.msrb.mxu1 %v2392_v40  ;;  %v2494_v18 = vld [vmem:[%s6762_s26 + $0x45d0] sm:$0xff]  ;;  %v2444_v40 = vld [vmem:[%s6762_s26 + $0x4440] sm:$0xff] }
 0x493   : > { %5951 = vmatpush.msrb.mxu2 %v2407_v38  ;;  %5970 = vmatpush.msrb.mxu3 %v2424_v43  ;;  %v4157_v38 = vadd.f32 %v4156_v34, %v4137_v42  ;;  %v2476_v43 = vld [vmem:[%s6762_s26 + $0x4540] sm:$0xff]  ;;  %v3069_v34 = vld.sshfl [vmem:[#allocation1 + $0x18] sm:$0xff pattern:$0x73625140] }
 0x494   : > { %5912 = vmatpush.msrb.mxu0 %v2374_v45  ;;  %5931 = vmatpush.msrb.mxu1 %v2391_v46  ;;  %v4176_v45 = vpop.f32.mrf.mxu1  ;;  %v2443_v46 = vld [vmem:[%s6762_s26 + $0x4438] sm:$0xff] }
 0x495   : > { %5952 = vmatpush.msrb.mxu2 %v2406_v52  ;;  %5971 = vmatpush.msrb.mxu3 %v2423_v50  ;;  %v2460_v52 = vld [vmem:[%s6762_s26 + $0x44c0] sm:$0xff]  ;;  %v2475_v50 = vld [vmem:[%s6762_s26 + $0x4538] sm:$0xff]  ;;  %v4177_v63 = vadd.f32 %v4176_v45, %v4157_v38  ;;  %v2530_v38 = vld [vmem:[%s6762_s26 + $0x46f0] sm:$0xff] }
 0x496   : > { %5913 = vmatpush.msrb.mxu0 %v2373_v47  ;;  %5932 = vmatpush.msrb.mxu1 %v2390_v48  ;;  %v4196_v47 = vpop.f32.mrf.mxu2  ;;  %v2442_v48 = vld [vmem:[%s6762_s26 + $0x4430] sm:$0xff]  ;;  %v4216_v60 = vpop.f32.mrf.mxu3  ;;  %v2531_v42 = vld [vmem:[%s6762_s26 + $0x46f8] sm:$0xff] }
 0x497   : > { %5953 = vmatpush.msrb.mxu2 %v2405_v7  ;;  %5972 = vmatpush.msrb.mxu3 %v2422_v54  ;;  %v2474_v7 = vld [vmem:[%s6762_s26 + $0x4530] sm:$0xff]  ;;  %v2491_v54 = vld [vmem:[%s6762_s26 + $0x45b8] sm:$0xff]  ;;  %v4197_v56 = vadd.f32 %v4196_v47, %v4177_v63  ;;  %v2561_v47 = vld [vmem:[%s6762_s26 + $0x47e8] sm:$0xff] }
 0x498   : > { %5914 = vmatpush.msrb.mxu0 %v2372_v13  ;;  %5933 = vmatpush.msrb.mxu1 %v2389_v53  ;;  %v2441_v13 = vld [vmem:[%s6762_s26 + $0x4428] sm:$0xff]  ;;  %v2458_v53 = vld [vmem:[%s6762_s26 + $0x44b0] sm:$0xff]  ;;  %v4236_v1 = vpop.f32.mrf.mxu0  ;;  %v2528_v63 = vld [vmem:[%s6762_s26 + $0x46e0] sm:$0xff] }
 0x499   : > { %5954 = vmatpush.msrb.mxu2 %v2404_v58  ;;  %5973 = vmatpush.msrb.mxu3 %v2421_v57  ;;  %v2473_v58 = vld [vmem:[%s6762_s26 + $0x4528] sm:$0xff]  ;;  %v2490_v57 = vld [vmem:[%s6762_s26 + $0x45b0] sm:$0xff]  ;;  %v4217_v16 = vadd.f32 %v4216_v60, %v4197_v56  ;;  %v2527_v56 = vld [vmem:[%s6762_s26 + $0x46d8] sm:$0xff] }
 0x49a   : > { %5915 = vmatmul.f32.vlgmr.msrb.gmra.mxu0 %v3060_v61  ;;  %5955 = vmatmul.f32.vlgmr.msrb.gmra.mxu2 %v3062_v62  ;;  %v2440_v61 = vld [vmem:[%s6762_s26 + $0x4420] sm:$0xff]  ;;  %v2457_v62 = vld [vmem:[%s6762_s26 + $0x44a8] sm:$0xff]  ;;  %v2562_v45 = vld [vmem:[%s6762_s26 + $0x47f0] sm:$0xff] }
 0x49b   : > { %5979 = vmatpush.msra.mxu0 %v2451_v26  ;;  %6019 = vmatpush.msra.mxu2 %v2483_v2  ;;  %v2472_v26 = vld [vmem:[%s6762_s26 + $0x4520] sm:$0xff]  ;;  %v2489_v2 = vld [vmem:[%s6762_s26 + $0x45a8] sm:$0xff]  ;;  %v4237_v6 = vadd.f32 %v4236_v1, %v4217_v16  ;;  %v2559_v60 = vld [vmem:[%s6762_s26 + $0x47d8] sm:$0xff] }
 0x49c   : > { %5934 = vmatpush.msrb.mxu1 %v2388_v0  ;;  %5974 = vmatpush.msrb.mxu3 %v2420_v51  ;;  %v2439_v0 = vld [vmem:[%s6762_s26 + $0x4418] sm:$0xff]  ;;  %v2456_v51 = vld [vmem:[%s6762_s26 + $0x44a0] sm:$0xff]  ;;  %v4256_v11 = vpop.f32.mrf.mxu1  ;;  %v2558_v1 = vld [vmem:[%s6762_s26 + $0x47d0] sm:$0xff] }
 0x49d   : > { %5935 = vmatmul.f32.vlgmr.msrb.gmra.mxu1 %v3061_v4  ;;  %5975 = vmatmul.f32.vlgmr.msrb.gmra.mxu3 %v3063_v55  ;;  %v2471_v4 = vld [vmem:[%s6762_s26 + $0x4518] sm:$0xff]  ;;  %v2488_v55 = vld [vmem:[%s6762_s26 + $0x45a0] sm:$0xff]  ;;  %v2525_v16 = vld [vmem:[%s6762_s26 + $0x46c8] sm:$0xff] }
 0x49e   : > { %5980 = vmatpush.msra.mxu0 %v2450_v5  ;;  %5999 = vmatpush.msra.mxu1 %v2467_v21  ;;  %v2438_v5 = vld [vmem:[%s6762_s26 + $0x4410] sm:$0xff]  ;;  %v2455_v21 = vld [vmem:[%s6762_s26 + $0x4498] sm:$0xff] }
 0x49f   : > { %6020 = vmatpush.msra.mxu2 %v2482_v9  ;;  %6039 = vmatpush.msra.mxu3 %v2499_v10  ;;  %v2470_v9 = vld [vmem:[%s6762_s26 + $0x4510] sm:$0xff]  ;;  %v2487_v10 = vld [vmem:[%s6762_s26 + $0x4598] sm:$0xff] }
 0x4a0   : > { %5981 = vmatpush.msra.mxu0 %v2449_v29  ;;  %6000 = vmatpush.msra.mxu1 %v2466_v31  ;;  %v2437_v29 = vld [vmem:[%s6762_s26 + $0x4408] sm:$0xff]  ;;  %v2454_v31 = vld [vmem:[%s6762_s26 + $0x4490] sm:$0xff] }
 0x4a1   : > { %6021 = vmatpush.msra.mxu2 %v2481_v14  ;;  %6040 = vmatpush.msra.mxu3 %v2498_v3  ;;  %v254_v14 = vld [vmem:[%s6757_s22 + $0x118] sm:$0xff]  ;;  %v2469_v3 = vld [vmem:[%s6762_s26 + $0x4508] sm:$0xff] }
 0x4a2   : > { %5982 = vmatpush.msra.mxu0 %v2448_v15  ;;  %6001 = vmatpush.msra.mxu1 %v2465_v17  ;;  %3065 = vst [vmem:[#allocation1 + $0x20] ss:$4 sm:$0xff] %v254_v14  ;;  %v4276_v15 = vpop.f32.mrf.mxu2  ;;  %v2436_v17 = vld [vmem:[%s6762_s26 + $0x4400] sm:$0xff]  ;;  %v2523_v14 = vld [vmem:[%s6762_s26 + $0x46b8] sm:$0xff] }
 0x4a3   : > { %6022 = vmatpush.msra.mxu2 %v2480_v41  ;;  %6041 = vmatpush.msra.mxu3 %v2497_v22  ;;  %v4257_v41 = vadd.f32 %v4256_v11, %v4237_v6  ;;  %v2468_v22 = vld [vmem:[%s6762_s26 + $0x4500] sm:$0xff] }
 0x4a4   : > { %5983 = vmatpush.msra.mxu0 %v2447_v23  ;;  %6002 = vmatpush.msra.mxu1 %v2464_v24  ;;  %v2485_v23 = vld [vmem:[%s6762_s26 + $0x4588] sm:$0xff]  ;;  %v3066_v24 = vld.sshfl [vmem:[#allocation1] sm:$0xff pattern:$0x73625140] }
 0x4a5   : > { %6023 = vmatpush.msra.mxu2 %v2479_v25  ;;  %6042 = vmatpush.msra.mxu3 %v2496_v32  ;;  %v4277_v25 = vadd.f32 %v4276_v15, %v4257_v41  ;;  %v2515_v32 = vld [vmem:[%s6762_s26 + $0x4678] sm:$0xff]  ;;  %v2524_v6 = vld [vmem:[%s6762_s26 + $0x46c0] sm:$0xff] }
 0x4a6   : > { %5984 = vmatpush.msra.mxu0 %v2446_v12  ;;  %6003 = vmatpush.msra.mxu1 %v2463_v27  ;;  %v4296_v12 = vpop.f32.mrf.mxu3  ;;  %v2452_v27 = vld [vmem:[%s6762_s26 + $0x4480] sm:$0xff] }
 0x4a7   : > { %6024 = vmatpush.msra.mxu2 %v2478_v33  ;;  %6043 = vmatpush.msra.mxu3 %v2495_v49  ;;  %v2484_v33 = vld [vmem:[%s6762_s26 + $0x4580] sm:$0xff]  ;;  %v3067_v49 = vld.sshfl [vmem:[#allocation1 + $0x8] sm:$0xff pattern:$0x73625140] }
 0x4a8   : > { %5985 = vmatpush.msra.mxu0 %v2445_v35  ;;  %6004 = vmatpush.msra.mxu1 %v2462_v36  ;;  %v4316_v35 = vpop.f32.mrf.mxu0  ;;  %v2514_v36 = vld [vmem:[%s6762_s26 + $0x4670] sm:$0xff]  ;;  %v2556_v11 = vld [vmem:[%s6762_s26 + $0x47c0] sm:$0xff] }
 0x4a9   : > { %6025 = vmatpush.msra.mxu2 %v2477_v39  ;;  %6044 = vmatpush.msra.mxu3 %v2494_v18  ;;  %v4297_v39 = vadd.f32 %v4296_v12, %v4277_v25  ;;  %v2546_v18 = vld [vmem:[%s6762_s26 + $0x4770] sm:$0xff] }
 0x4aa   : > { %5986 = vmatpush.msra.mxu0 %v2444_v40  ;;  %6005 = vmatpush.msra.mxu1 %v2461_v20  ;;  %v2563_v40 = vld [vmem:[%s6762_s26 + $0x47f8] sm:$0xff]  ;;  %v2513_v20 = vld [vmem:[%s6762_s26 + $0x4668] sm:$0xff] }
 0x4ab   : > { %6026 = vmatpush.msra.mxu2 %v2476_v43  ;;  %6045 = vmatpush.msra.mxu3 %v2493_v44  ;;  %v4317_v43 = vadd.f32 %v4316_v35, %v4297_v39  ;;  %v2545_v44 = vld [vmem:[%s6762_s26 + $0x4768] sm:$0xff] }
 0x4ac   : > { %5987 = vmatpush.msra.mxu0 %v2443_v46  ;;  %6006 = vmatpush.msra.mxu1 %v2460_v52  ;;  %v4336_v46 = vpop.f32.mrf.mxu1  ;;  %v2512_v52 = vld [vmem:[%s6762_s26 + $0x4660] sm:$0xff] }
 0x4ad   : > { %6027 = vmatpush.msra.mxu2 %v2475_v50  ;;  %6046 = vmatpush.msra.mxu3 %v2492_v28  ;;  %v2529_v50 = vld [vmem:[%s6762_s26 + $0x46e8] sm:$0xff]  ;;  %v2544_v28 = vld [vmem:[%s6762_s26 + $0x4760] sm:$0xff] }
 0x4ae   : > { %5988 = vmatpush.msra.mxu0 %v2442_v48  ;;  %6007 = vmatpush.msra.mxu1 %v2459_v8  ;;  %v4356_v48 = vpop.f32.mrf.mxu2  ;;  %v2511_v8 = vld [vmem:[%s6762_s26 + $0x4658] sm:$0xff] }
 0x4af   : > { %6028 = vmatpush.msra.mxu2 %v2474_v7  ;;  %6047 = vmatpush.msra.mxu3 %v2491_v54  ;;  %v4337_v7 = vadd.f32 %v4336_v46, %v4317_v43  ;;  %v2543_v54 = vld [vmem:[%s6762_s26 + $0x4758] sm:$0xff]  ;;  %v255_v43 = vld [vmem:[%s6757_s22 + $0x120] sm:$0xff]  ;;  %v2550_v46 = vld [vmem:[%s6762_s26 + $0x4790] sm:$0xff] }
 0x4b0   : > { %5989 = vmatpush.msra.mxu0 %v2441_v13  ;;  %6008 = vmatpush.msra.mxu1 %v2458_v53  ;;  %v2560_v13 = vld [vmem:[%s6762_s26 + $0x47e0] sm:$0xff]  ;;  %v2510_v53 = vld [vmem:[%s6762_s26 + $0x4650] sm:$0xff]  ;;  %3074 = vst [vmem:[#allocation1] ss:$4 sm:$0xff] %v255_v43  ;;  %v2587_v43 = vld [vmem:[%s6762_s26 + $0x48b8] sm:$0xff] }
 0x4b1   : > { %6029 = vmatpush.msra.mxu2 %v2473_v58  ;;  %6048 = vmatpush.msra.mxu3 %v2490_v57  ;;  %v4357_v58 = vadd.f32 %v4356_v48, %v4337_v7  ;;  %v2542_v57 = vld [vmem:[%s6762_s26 + $0x4750] sm:$0xff]  ;;  %v2549_v48 = vld [vmem:[%s6762_s26 + $0x4788] sm:$0xff] }
 0x4b2   : > { %5990 = vmatpush.msra.mxu0 %v2440_v61  ;;  %6009 = vmatpush.msra.mxu1 %v2457_v62  ;;  %v4376_v61 = vpop.f32.mrf.mxu3  ;;  %v2509_v62 = vld [vmem:[%s6762_s26 + $0x4648] sm:$0xff]  ;;  %v3072_v7 = vld.sshfl [vmem:[#allocation1 + $0x30] sm:$0xff pattern:$0x73625140] }
 0x4b3   : > { %6030 = vmatpush.msra.mxu2 %v2472_v26  ;;  %6049 = vmatpush.msra.mxu3 %v2489_v2  ;;  %v2526_v26 = vld [vmem:[%s6762_s26 + $0x46d0] sm:$0xff]  ;;  %v2541_v2 = vld [vmem:[%s6762_s26 + $0x4748] sm:$0xff] }
 0x4b4   : > { %5991 = vmatpush.msra.mxu0 %v2439_v0  ;;  %6010 = vmatpush.msra.mxu1 %v2456_v51  ;;  %v4396_v0 = vpop.f32.mrf.mxu0  ;;  %v2508_v51 = vld [vmem:[%s6762_s26 + $0x4640] sm:$0xff] }
 0x4b5   : > { %6031 = vmatpush.msra.mxu2 %v2471_v4  ;;  %6050 = vmatpush.msra.mxu3 %v2488_v55  ;;  %v4377_v4 = vadd.f32 %v4376_v61, %v4357_v58  ;;  %v2540_v55 = vld [vmem:[%s6762_s26 + $0x4740] sm:$0xff]  ;;  %v3073_v61 = vld.sshfl [vmem:[#allocation1 + $0x38] sm:$0xff pattern:$0x73625140] }
 0x4b6   : > { %5992 = vmatpush.msra.mxu0 %v2438_v5  ;;  %6011 = vmatpush.msra.mxu1 %v2455_v21  ;;  %v2557_v5 = vld [vmem:[%s6762_s26 + $0x47c8] sm:$0xff]  ;;  %v2507_v21 = vld [vmem:[%s6762_s26 + $0x4638] sm:$0xff]  ;;  %v4436_v15 = vpop.f32.mrf.mxu2  ;;  %v2548_v58 = vld [vmem:[%s6762_s26 + $0x4780] sm:$0xff] }
 0x4b7   : > { %6032 = vmatpush.msra.mxu2 %v2470_v9  ;;  %6051 = vmatpush.msra.mxu3 %v2487_v10  ;;  %v4397_v9 = vadd.f32 %v4396_v0, %v4377_v4  ;;  %v2539_v10 = vld [vmem:[%s6762_s26 + $0x4738] sm:$0xff]  ;;  %v2594_v4 = vld [vmem:[%s6762_s26 + $0x48f0] sm:$0xff] }
 0x4b8   : > { %5993 = vmatpush.msra.mxu0 %v2437_v29  ;;  %6012 = vmatpush.msra.mxu1 %v2454_v31  ;;  %v4416_v29 = vpop.f32.mrf.mxu1  ;;  %v2506_v31 = vld [vmem:[%s6762_s26 + $0x4630] sm:$0xff]  ;;  %v2627_v0 = vld [vmem:[%s6762_s26 + $0x49f8] sm:$0xff] }
 0x4b9   : > { %6033 = vmatpush.msra.mxu2 %v2469_v3  ;;  %6052 = vmatpush.msra.mxu3 %v2486_v59  ;;  %v2538_v3 = vld [vmem:[%s6762_s26 + $0x4730] sm:$0xff]  ;;  %v2555_v59 = vld [vmem:[%s6762_s26 + $0x47b8] sm:$0xff]  ;;  %v4417_v41 = vadd.f32 %v4416_v29, %v4397_v9  ;;  %v2593_v9 = vld [vmem:[%s6762_s26 + $0x48e8] sm:$0xff] }
 0x4ba   : > { %5994 = vmatpush.msra.mxu0 %v2436_v17  ;;  %6013 = vmatpush.msra.mxu1 %v2453_v19  ;;  %v2505_v17 = vld [vmem:[%s6762_s26 + $0x4628] sm:$0xff]  ;;  %v2522_v19 = vld [vmem:[%s6762_s26 + $0x46b0] sm:$0xff]  ;;  %v4456_v12 = vpop.f32.mrf.mxu3 }
 0x4bb   : > { %6034 = vmatpush.msra.mxu2 %v2468_v22  ;;  %6053 = vmatpush.msra.mxu3 %v2485_v23  ;;  %v2537_v22 = vld [vmem:[%s6762_s26 + $0x4728] sm:$0xff]  ;;  %v2554_v23 = vld [vmem:[%s6762_s26 + $0x47b0] sm:$0xff]  ;;  %v4437_v25 = vadd.f32 %v4436_v15, %v4417_v41  ;;  %v2624_v15 = vld [vmem:[%s6762_s26 + $0x49e0] sm:$0xff] }
 0x4bc   : > { %5995 = vmatmul.f32.vlgmr.msra.gmra.mxu0 %v3066_v24  ;;  %6035 = vmatmul.f32.vlgmr.msra.gmra.mxu2 %v3068_v37  ;;  %v2504_v24 = vld [vmem:[%s6762_s26 + $0x4620] sm:$0xff]  ;;  %v2521_v37 = vld [vmem:[%s6762_s26 + $0x46a8] sm:$0xff]  ;;  %v4476_v35 = vpop.f32.mrf.mxu0  ;;  %v2591_v41 = vld [vmem:[%s6762_s26 + $0x48d8] sm:$0xff] }
 0x4bd   : > { %6059 = vmatpush.msrb.mxu0 %v2515_v32  ;;  %6099 = vmatpush.msrb.mxu2 %v2547_v30  ;;  %v2536_v32 = vld [vmem:[%s6762_s26 + $0x4720] sm:$0xff]  ;;  %v2553_v30 = vld [vmem:[%s6762_s26 + $0x47a8] sm:$0xff]  ;;  %v4457_v39 = vadd.f32 %v4456_v12, %v4437_v25  ;;  %v2590_v25 = vld [vmem:[%s6762_s26 + $0x48d0] sm:$0xff] }
 0x4be   : > { %6014 = vmatpush.msra.mxu1 %v2452_v27  ;;  %6054 = vmatpush.msra.mxu3 %v2484_v33  ;;  %v2503_v27 = vld [vmem:[%s6762_s26 + $0x4618] sm:$0xff]  ;;  %v2520_v33 = vld [vmem:[%s6762_s26 + $0x46a0] sm:$0xff]  ;;  %v2625_v29 = vld [vmem:[%s6762_s26 + $0x49e8] sm:$0xff] }
 0x4bf   : > { %6015 = vmatmul.f32.vlgmr.msra.gmra.mxu1 %v3067_v49  ;;  %6055 = vmatmul.f32.vlgmr.msra.gmra.mxu3 %v3069_v34  ;;  %v2535_v49 = vld [vmem:[%s6762_s26 + $0x4718] sm:$0xff]  ;;  %v2552_v34 = vld [vmem:[%s6762_s26 + $0x47a0] sm:$0xff]  ;;  %v2622_v12 = vld [vmem:[%s6762_s26 + $0x49d0] sm:$0xff] }
 0x4c0   : > { %6060 = vmatpush.msrb.mxu0 %v2514_v36  ;;  %6079 = vmatpush.msrb.mxu1 %v2531_v42  ;;  %v2502_v36 = vld [vmem:[%s6762_s26 + $0x4610] sm:$0xff]  ;;  %v2519_v42 = vld [vmem:[%s6762_s26 + $0x4698] sm:$0xff] }
 0x4c1   : > { %6100 = vmatpush.msrb.mxu2 %v2546_v18  ;;  %6119 = vmatpush.msrb.mxu3 %v2563_v40  ;;  %v2534_v18 = vld [vmem:[%s6762_s26 + $0x4710] sm:$0xff]  ;;  %v2551_v40 = vld [vmem:[%s6762_s26 + $0x4798] sm:$0xff] }
 0x4c2   : > { %6061 = vmatpush.msrb.mxu0 %v2513_v20  ;;  %6080 = vmatpush.msrb.mxu1 %v2530_v38  ;;  %v2501_v20 = vld [vmem:[%s6762_s26 + $0x4608] sm:$0xff]  ;;  %v2518_v38 = vld [vmem:[%s6762_s26 + $0x4690] sm:$0xff] }
 0x4c3   : > { %6101 = vmatpush.msrb.mxu2 %v2545_v44  ;;  %6120 = vmatpush.msrb.mxu3 %v2562_v45  ;;  %v4477_v44 = vadd.f32 %v4476_v35, %v4457_v39  ;;  %v2533_v45 = vld [vmem:[%s6762_s26 + $0x4708] sm:$0xff]  ;;  %v2588_v39 = vld [vmem:[%s6762_s26 + $0x48c0] sm:$0xff] }
 0x4c4   : > { %6062 = vmatpush.msrb.mxu0 %v2512_v52  ;;  %6081 = vmatpush.msrb.mxu1 %v2529_v50  ;;  %v4496_v52 = vpop.f32.mrf.mxu1  ;;  %v2500_v50 = vld [vmem:[%s6762_s26 + $0x4600] sm:$0xff]  ;;  %v2621_v35 = vld [vmem:[%s6762_s26 + $0x49c8] sm:$0xff] }
 0x4c5   : > { %6102 = vmatpush.msrb.mxu2 %v2544_v28  ;;  %6121 = vmatpush.msrb.mxu3 %v2561_v47  ;;  %v2517_v28 = vld [vmem:[%s6762_s26 + $0x4688] sm:$0xff]  ;;  %v2532_v47 = vld [vmem:[%s6762_s26 + $0x4700] sm:$0xff] }
 0x4c6   : > { %6063 = vmatpush.msrb.mxu0 %v2511_v8  ;;  %6082 = vmatpush.msrb.mxu1 %v2528_v63  ;;  %v4516_v8 = vpop.f32.mrf.mxu2  ;;  %v3070_v63 = vld.sshfl [vmem:[#allocation1 + $0x20] sm:$0xff pattern:$0x73625140] }
 0x4c7   : > { %6103 = vmatpush.msrb.mxu2 %v2543_v54  ;;  %6122 = vmatpush.msrb.mxu3 %v2560_v13  ;;  %v4497_v54 = vadd.f32 %v4496_v52, %v4477_v44  ;;  %v2579_v13 = vld [vmem:[%s6762_s26 + $0x4878] sm:$0xff] }
 0x4c8   : > { %6064 = vmatpush.msrb.mxu0 %v2510_v53  ;;  %6083 = vmatpush.msrb.mxu1 %v2527_v56  ;;  %v2611_v53 = vld [vmem:[%s6762_s26 + $0x4978] sm:$0xff]  ;;  %v2516_v56 = vld [vmem:[%s6762_s26 + $0x4680] sm:$0xff] }
 0x4c9   : > { %6104 = vmatpush.msrb.mxu2 %v2542_v57  ;;  %6123 = vmatpush.msrb.mxu3 %v2559_v60  ;;  %v4517_v57 = vadd.f32 %v4516_v8, %v4497_v54  ;;  %v3071_v60 = vld.sshfl [vmem:[#allocation1 + $0x28] sm:$0xff pattern:$0x73625140] }
 0x4ca   : > { %6065 = vmatpush.msrb.mxu0 %v2509_v62  ;;  %6084 = vmatpush.msrb.mxu1 %v2526_v26  ;;  %v4536_v62 = vpop.f32.mrf.mxu3  ;;  %v2578_v26 = vld [vmem:[%s6762_s26 + $0x4870] sm:$0xff] }
 0x4cb   : > { %6105 = vmatpush.msrb.mxu2 %v2541_v2  ;;  %6124 = vmatpush.msrb.mxu3 %v2558_v1  ;;  %v2595_v2 = vld [vmem:[%s6762_s26 + $0x48f8] sm:$0xff]  ;;  %v2610_v1 = vld [vmem:[%s6762_s26 + $0x4970] sm:$0xff] }
 0x4cc   : > { %6066 = vmatpush.msrb.mxu0 %v2508_v51  ;;  %6085 = vmatpush.msrb.mxu1 %v2525_v16  ;;  %v4556_v51 = vpop.f32.mrf.mxu0  ;;  %v2577_v16 = vld [vmem:[%s6762_s26 + $0x4868] sm:$0xff] }
 0x4cd   : > { %6106 = vmatpush.msrb.mxu2 %v2540_v55  ;;  %6125 = vmatpush.msrb.mxu3 %v2557_v5  ;;  %v4537_v55 = vadd.f32 %v4536_v62, %v4517_v57  ;;  %v2609_v5 = vld [vmem:[%s6762_s26 + $0x4968] sm:$0xff] }
 0x4ce   : > { %6067 = vmatpush.msrb.mxu0 %v2507_v21  ;;  %6086 = vmatpush.msrb.mxu1 %v2524_v6  ;;  %v2626_v21 = vld [vmem:[%s6762_s26 + $0x49f0] sm:$0xff]  ;;  %v2576_v6 = vld [vmem:[%s6762_s26 + $0x4860] sm:$0xff] }
 0x4cf   : > { %6107 = vmatpush.msrb.mxu2 %v2539_v10  ;;  %6126 = vmatpush.msrb.mxu3 %v2556_v11  ;;  %v4557_v10 = vadd.f32 %v4556_v51, %v4537_v55  ;;  %v2608_v11 = vld [vmem:[%s6762_s26 + $0x4960] sm:$0xff]  ;;  %v256_v55 = vld [vmem:[%s6757_s22 + $0x128] sm:$0xff] }
 0x4d0   : > { %6068 = vmatpush.msrb.mxu0 %v2506_v31  ;;  %6087 = vmatpush.msrb.mxu1 %v2523_v14  ;;  %v4576_v31 = vpop.f32.mrf.mxu1  ;;  %v2575_v14 = vld [vmem:[%s6762_s26 + $0x4858] sm:$0xff]  ;;  %3075 = vst [vmem:[#allocation1 + $0x20] ss:$4 sm:$0xff] %v256_v55 }
 0x4d1   : > { %6108 = vmatpush.msrb.mxu2 %v2538_v3  ;;  %6127 = vmatpush.msrb.mxu3 %v2555_v59  ;;  %v2592_v3 = vld [vmem:[%s6762_s26 + $0x48e0] sm:$0xff]  ;;  %v2607_v59 = vld [vmem:[%s6762_s26 + $0x4958] sm:$0xff] }
 0x4d2   : > { %6069 = vmatpush.msrb.mxu0 %v2505_v17  ;;  %6088 = vmatpush.msrb.mxu1 %v2522_v19  ;;  %v4596_v17 = vpop.f32.mrf.mxu2  ;;  %v2574_v19 = vld [vmem:[%s6762_s26 + $0x4850] sm:$0xff]  ;;  %v2651_v55 = vld [vmem:[%s6762_s26 + $0x4ab8] sm:$0xff] }
 0x4d3   : > { %6109 = vmatpush.msrb.mxu2 %v2537_v22  ;;  %6128 = vmatpush.msrb.mxu3 %v2554_v23  ;;  %v4577_v22 = vadd.f32 %v4576_v31, %v4557_v10  ;;  %v2606_v23 = vld [vmem:[%s6762_s26 + $0x4950] sm:$0xff]  ;;  %v2581_v10 = vld [vmem:[%s6762_s26 + $0x4888] sm:$0xff] }
 0x4d4   : > { %6070 = vmatpush.msrb.mxu0 %v2504_v24  ;;  %6089 = vmatpush.msrb.mxu1 %v2521_v37  ;;  %v2623_v24 = vld [vmem:[%s6762_s26 + $0x49d8] sm:$0xff]  ;;  %v2573_v37 = vld [vmem:[%s6762_s26 + $0x4848] sm:$0xff] }
 0x4d5   : > { %6110 = vmatpush.msrb.mxu2 %v2536_v32  ;;  %6129 = vmatpush.msrb.mxu3 %v2553_v30  ;;  %v4597_v32 = vadd.f32 %v4596_v17, %v4577_v22  ;;  %v2605_v30 = vld [vmem:[%s6762_s26 + $0x4948] sm:$0xff]  ;;  %v2675_v17 = vld [vmem:[%s6762_s26 + $0x4b78] sm:$0xff]  ;;  %v2612_v22 = vld [vmem:[%s6762_s26 + $0x4980] sm:$0xff] }
 0x4d6   : > { %6071 = vmatpush.msrb.mxu0 %v2503_v27  ;;  %6090 = vmatpush.msrb.mxu1 %v2520_v33  ;;  %v4616_v27 = vpop.f32.mrf.mxu3  ;;  %v2572_v33 = vld [vmem:[%s6762_s26 + $0x4840] sm:$0xff]  ;;  %v2613_v31 = vld [vmem:[%s6762_s26 + $0x4988] sm:$0xff] }
 0x4d7   : > { %6111 = vmatpush.msrb.mxu2 %v2535_v49  ;;  %6130 = vmatpush.msrb.mxu3 %v2552_v34  ;;  %v2589_v49 = vld [vmem:[%s6762_s26 + $0x48c8] sm:$0xff]  ;;  %v2604_v34 = vld [vmem:[%s6762_s26 + $0x4940] sm:$0xff] }
 0x4d8   : > { %6072 = vmatpush.msrb.mxu0 %v2502_v36  ;;  %6091 = vmatpush.msrb.mxu1 %v2519_v42  ;;  %v4636_v36 = vpop.f32.mrf.mxu0  ;;  %v2571_v42 = vld [vmem:[%s6762_s26 + $0x4838] sm:$0xff]  ;;  %v4656_v52 = vpop.f32.mrf.mxu1 }
 0x4d9   : > { %6112 = vmatpush.msrb.mxu2 %v2534_v18  ;;  %6131 = vmatpush.msrb.mxu3 %v2551_v40  ;;  %v4617_v18 = vadd.f32 %v4616_v27, %v4597_v32  ;;  %v2603_v40 = vld [vmem:[%s6762_s26 + $0x4938] sm:$0xff] }
 0x4da   : > { %6073 = vmatpush.msrb.mxu0 %v2501_v20  ;;  %6092 = vmatpush.msrb.mxu1 %v2518_v38  ;;  %v2620_v20 = vld [vmem:[%s6762_s26 + $0x49c0] sm:$0xff]  ;;  %v2570_v38 = vld [vmem:[%s6762_s26 + $0x4830] sm:$0xff]  ;;  %v4676_v8 = vpop.f32.mrf.mxu2  ;;  %v2659_v32 = vld [vmem:[%s6762_s26 + $0x4af8] sm:$0xff] }
 0x4db   : > { %6113 = vmatpush.msrb.mxu2 %v2533_v45  ;;  %6132 = vmatpush.msrb.mxu3 %v2550_v46  ;;  %v4637_v44 = vadd.f32 %v4636_v36, %v4617_v18  ;;  %v2602_v45 = vld [vmem:[%s6762_s26 + $0x4930] sm:$0xff]  ;;  %v2619_v46 = vld [vmem:[%s6762_s26 + $0x49b8] sm:$0xff]  ;;  %v2657_v18 = vld [vmem:[%s6762_s26 + $0x4ae8] sm:$0xff] }
 0x4dc   : > { %6074 = vmatpush.msrb.mxu0 %v2500_v50  ;;  %6093 = vmatpush.msrb.mxu1 %v2517_v28  ;;  %v2569_v50 = vld [vmem:[%s6762_s26 + $0x4828] sm:$0xff]  ;;  %v2586_v28 = vld [vmem:[%s6762_s26 + $0x48b0] sm:$0xff]  ;;  %v2691_v27 = vld [vmem:[%s6762_s26 + $0x4bf8] sm:$0xff] }
 0x4dd   : > { %6114 = vmatpush.msrb.mxu2 %v2532_v47  ;;  %6133 = vmatpush.msrb.mxu3 %v2549_v48  ;;  %v2601_v47 = vld [vmem:[%s6762_s26 + $0x4928] sm:$0xff]  ;;  %v2618_v48 = vld [vmem:[%s6762_s26 + $0x49b0] sm:$0xff]  ;;  %v4657_v54 = vadd.f32 %v4656_v52, %v4637_v44  ;;  %v2656_v44 = vld [vmem:[%s6762_s26 + $0x4ae0] sm:$0xff] }
 0x4de   : > { %6075 = vmatmul.f32.vlgmr.msrb.gmra.mxu0 %v3070_v63  ;;  %6115 = vmatmul.f32.vlgmr.msrb.gmra.mxu2 %v3072_v7  ;;  %v2568_v63 = vld [vmem:[%s6762_s26 + $0x4820] sm:$0xff]  ;;  %v2585_v7 = vld [vmem:[%s6762_s26 + $0x48a8] sm:$0xff]  ;;  %v4696_v62 = vpop.f32.mrf.mxu3  ;;  %v2690_v36 = vld [vmem:[%s6762_s26 + $0x4bf0] sm:$0xff] }
 0x4df   : > { %6139 = vmatpush.msra.mxu0 %v2579_v13  ;;  %6179 = vmatpush.msra.mxu2 %v2611_v53  ;;  %v2600_v13 = vld [vmem:[%s6762_s26 + $0x4920] sm:$0xff]  ;;  %v2617_v53 = vld [vmem:[%s6762_s26 + $0x49a8] sm:$0xff]  ;;  %v4677_v57 = vadd.f32 %v4676_v8, %v4657_v54  ;;  %v2687_v8 = vld [vmem:[%s6762_s26 + $0x4bd8] sm:$0xff] }
 0x4e0   : > { %6094 = vmatpush.msrb.mxu1 %v2516_v56  ;;  %6134 = vmatpush.msrb.mxu3 %v2548_v58  ;;  %v2567_v56 = vld [vmem:[%s6762_s26 + $0x4818] sm:$0xff]  ;;  %v2584_v58 = vld [vmem:[%s6762_s26 + $0x48a0] sm:$0xff]  ;;  %v4716_v51 = vpop.f32.mrf.mxu0  ;;  %v2654_v54 = vld [vmem:[%s6762_s26 + $0x4ad0] sm:$0xff] }
 0x4e1   : > { %6095 = vmatmul.f32.vlgmr.msrb.gmra.mxu1 %v3071_v60  ;;  %6135 = vmatmul.f32.vlgmr.msrb.gmra.mxu3 %v3073_v61  ;;  %v2599_v60 = vld [vmem:[%s6762_s26 + $0x4918] sm:$0xff]  ;;  %v2616_v61 = vld [vmem:[%s6762_s26 + $0x49a0] sm:$0xff] }
 0x4e2   : > { %6140 = vmatpush.msra.mxu0 %v2578_v26  ;;  %6159 = vmatpush.msra.mxu1 %v2595_v2  ;;  %v2566_v26 = vld [vmem:[%s6762_s26 + $0x4810] sm:$0xff]  ;;  %v2583_v2 = vld [vmem:[%s6762_s26 + $0x4898] sm:$0xff]  ;;  %v2688_v52 = vld [vmem:[%s6762_s26 + $0x4be0] sm:$0xff] }
 0x4e3   : > { %6180 = vmatpush.msra.mxu2 %v2610_v1  ;;  %6199 = vmatpush.msra.mxu3 %v2627_v0  ;;  %v2598_v1 = vld [vmem:[%s6762_s26 + $0x4910] sm:$0xff]  ;;  %v2615_v0 = vld [vmem:[%s6762_s26 + $0x4998] sm:$0xff] }
 0x4e4   : > { %6141 = vmatpush.msra.mxu0 %v2577_v16  ;;  %6160 = vmatpush.msra.mxu1 %v2594_v4  ;;  %v2565_v16 = vld [vmem:[%s6762_s26 + $0x4808] sm:$0xff]  ;;  %v2582_v4 = vld [vmem:[%s6762_s26 + $0x4890] sm:$0xff] }
 0x4e5   : > { %6181 = vmatpush.msra.mxu2 %v2609_v5  ;;  %6200 = vmatpush.msra.mxu3 %v2626_v21  ;;  %v4697_v5 = vadd.f32 %v4696_v62, %v4677_v57  ;;  %v2597_v21 = vld [vmem:[%s6762_s26 + $0x4908] sm:$0xff] }
 0x4e6   : > { %6142 = vmatpush.msra.mxu0 %v2576_v6  ;;  %6161 = vmatpush.msra.mxu1 %v2593_v9  ;;  %v2614_v6 = vld [vmem:[%s6762_s26 + $0x4990] sm:$0xff]  ;;  %v2564_v9 = vld [vmem:[%s6762_s26 + $0x4800] sm:$0xff]  ;;  %v2653_v57 = vld [vmem:[%s6762_s26 + $0x4ac8] sm:$0xff] }
 0x4e7   : > { %6182 = vmatpush.msra.mxu2 %v2608_v11  ;;  %6201 = vmatpush.msra.mxu3 %v2625_v29  ;;  %v4717_v11 = vadd.f32 %v4716_v51, %v4697_v5  ;;  %v2596_v29 = vld [vmem:[%s6762_s26 + $0x4900] sm:$0xff]  ;;  %v2685_v62 = vld [vmem:[%s6762_s26 + $0x4bc8] sm:$0xff] }
 0x4e8   : > { %6143 = vmatpush.msra.mxu0 %v2575_v14  ;;  %6162 = vmatpush.msra.mxu1 %v2592_v3  ;;  %v4736_v14 = vpop.f32.mrf.mxu1  ;;  %v3076_v3 = vld.sshfl [vmem:[#allocation1] sm:$0xff pattern:$0x73625140] }
 0x4e9   : > { %6183 = vmatpush.msra.mxu2 %v2607_v59  ;;  %6202 = vmatpush.msra.mxu3 %v2624_v15  ;;  %v3078_v59 = vld.sshfl [vmem:[#allocation1 + $0x10] sm:$0xff pattern:$0x73625140]  ;;  %v2643_v15 = vld [vmem:[%s6762_s26 + $0x4a78] sm:$0xff]  ;;  %v2684_v51 = vld [vmem:[%s6762_s26 + $0x4bc0] sm:$0xff] }
 0x4ea   : > { %6144 = vmatpush.msra.mxu0 %v2574_v19  ;;  %6163 = vmatpush.msra.mxu1 %v2591_v41  ;;  %v4756_v19 = vpop.f32.mrf.mxu2  ;;  %v2580_v41 = vld [vmem:[%s6762_s26 + $0x4880] sm:$0xff] }
 0x4eb   : > { %6184 = vmatpush.msra.mxu2 %v2606_v23  ;;  %6203 = vmatpush.msra.mxu3 %v2623_v24  ;;  %v4737_v23 = vadd.f32 %v4736_v14, %v4717_v11  ;;  %v3077_v24 = vld.sshfl [vmem:[#allocation1 + $0x8] sm:$0xff pattern:$0x73625140] }
 0x4ec   : > { %6145 = vmatpush.msra.mxu0 %v2573_v37  ;;  %6164 = vmatpush.msra.mxu1 %v2590_v25  ;;  %v3079_v37 = vld.sshfl [vmem:[#allocation1 + $0x18] sm:$0xff pattern:$0x73625140]  ;;  %v2642_v25 = vld [vmem:[%s6762_s26 + $0x4a70] sm:$0xff] }
 0x4ed   : > { %6185 = vmatpush.msra.mxu2 %v2605_v30  ;;  %6204 = vmatpush.msra.mxu3 %v2622_v12  ;;  %v4757_v30 = vadd.f32 %v4756_v19, %v4737_v23  ;;  %v2674_v12 = vld [vmem:[%s6762_s26 + $0x4b70] sm:$0xff] }
 0x4ee   : > { %6146 = vmatpush.msra.mxu0 %v2572_v33  ;;  %6165 = vmatpush.msra.mxu1 %v2589_v49  ;;  %v4776_v33 = vpop.f32.mrf.mxu3  ;;  %v2641_v49 = vld [vmem:[%s6762_s26 + $0x4a68] sm:$0xff] }
 0x4ef   : > { %6186 = vmatpush.msra.mxu2 %v2604_v34  ;;  %6205 = vmatpush.msra.mxu3 %v2621_v35  ;;  %v2658_v34 = vld [vmem:[%s6762_s26 + $0x4af0] sm:$0xff]  ;;  %v2673_v35 = vld [vmem:[%s6762_s26 + $0x4b68] sm:$0xff] }
 0x4f0   : > { %6147 = vmatpush.msra.mxu0 %v2571_v42  ;;  %6166 = vmatpush.msra.mxu1 %v2588_v39  ;;  %v4796_v42 = vpop.f32.mrf.mxu0  ;;  %v2640_v39 = vld [vmem:[%s6762_s26 + $0x4a60] sm:$0xff] }
 0x4f1   : > { %6187 = vmatpush.msra.mxu2 %v2603_v40  ;;  %6206 = vmatpush.msra.mxu3 %v2620_v20  ;;  %v4777_v40 = vadd.f32 %v4776_v33, %v4757_v30  ;;  %v2672_v20 = vld [vmem:[%s6762_s26 + $0x4b60] sm:$0xff] }
 0x4f2   : > { %6148 = vmatpush.msra.mxu0 %v2570_v38  ;;  %6167 = vmatpush.msra.mxu1 %v2587_v43  ;;  %v2689_v38 = vld [vmem:[%s6762_s26 + $0x4be8] sm:$0xff]  ;;  %v2639_v43 = vld [vmem:[%s6762_s26 + $0x4a58] sm:$0xff] }
 0x4f3   : > { %6188 = vmatpush.msra.mxu2 %v2602_v45  ;;  %6207 = vmatpush.msra.mxu3 %v2619_v46  ;;  %v4797_v45 = vadd.f32 %v4796_v42, %v4777_v40  ;;  %v2671_v46 = vld [vmem:[%s6762_s26 + $0x4b58] sm:$0xff]  ;;  %v2678_v42 = vld [vmem:[%s6762_s26 + $0x4b90] sm:$0xff]  ;;  %v2645_v40 = vld [vmem:[%s6762_s26 + $0x4a88] sm:$0xff] }
 0x4f4   : > { %6149 = vmatpush.msra.mxu0 %v2569_v50  ;;  %6168 = vmatpush.msra.mxu1 %v2586_v28  ;;  %v4816_v50 = vpop.f32.mrf.mxu1  ;;  %v2638_v28 = vld [vmem:[%s6762_s26 + $0x4a50] sm:$0xff] }
 0x4f5   : > { %6189 = vmatpush.msra.mxu2 %v2601_v47  ;;  %6208 = vmatpush.msra.mxu3 %v2618_v48  ;;  %v2655_v47 = vld [vmem:[%s6762_s26 + $0x4ad8] sm:$0xff]  ;;  %v2670_v48 = vld [vmem:[%s6762_s26 + $0x4b50] sm:$0xff] }
 0x4f6   : > { %6150 = vmatpush.msra.mxu0 %v2568_v63  ;;  %6169 = vmatpush.msra.mxu1 %v2585_v7  ;;  %v4836_v63 = vpop.f32.mrf.mxu2  ;;  %v2637_v7 = vld [vmem:[%s6762_s26 + $0x4a48] sm:$0xff] }
 0x4f7   : > { %6190 = vmatpush.msra.mxu2 %v2600_v13  ;;  %6209 = vmatpush.msra.mxu3 %v2617_v53  ;;  %v4817_v13 = vadd.f32 %v4816_v50, %v4797_v45  ;;  %v2669_v53 = vld [vmem:[%s6762_s26 + $0x4b48] sm:$0xff]  ;;  %v3082_v45 = vld.sshfl [vmem:[#allocation1 + $0x30] sm:$0xff pattern:$0x73625140]  ;;  %v2739_v50 = vld [vmem:[%s6762_s26 + $0x4d78] sm:$0xff] }
 0x4f8   : > { %6151 = vmatpush.msra.mxu0 %v2567_v56  ;;  %6170 = vmatpush.msra.mxu1 %v2584_v58  ;;  %v2686_v56 = vld [vmem:[%s6762_s26 + $0x4bd0] sm:$0xff]  ;;  %v2636_v58 = vld [vmem:[%s6762_s26 + $0x4a40] sm:$0xff] }
 0x4f9   : > { %6191 = vmatpush.msra.mxu2 %v2599_v60  ;;  %6210 = vmatpush.msra.mxu3 %v2616_v61  ;;  %v4837_v60 = vadd.f32 %v4836_v63, %v4817_v13  ;;  %v2668_v61 = vld [vmem:[%s6762_s26 + $0x4b40] sm:$0xff]  ;;  %v3083_v63 = vld.sshfl [vmem:[#allocation1 + $0x38] sm:$0xff pattern:$0x73625140] }
 0x4fa   : > { %6152 = vmatpush.msra.mxu0 %v2566_v26  ;;  %6171 = vmatpush.msra.mxu1 %v2583_v2  ;;  %v4856_v26 = vpop.f32.mrf.mxu3  ;;  %v2635_v2 = vld [vmem:[%s6762_s26 + $0x4a38] sm:$0xff] }
 0x4fb   : > { %6192 = vmatpush.msra.mxu2 %v2598_v1  ;;  %6211 = vmatpush.msra.mxu3 %v2615_v0  ;;  %v2652_v1 = vld [vmem:[%s6762_s26 + $0x4ac0] sm:$0xff]  ;;  %v2667_v0 = vld [vmem:[%s6762_s26 + $0x4b38] sm:$0xff]  ;;  %v4857_v5 = vadd.f32 %v4856_v26, %v4837_v60  ;;  %v2722_v60 = vld [vmem:[%s6762_s26 + $0x4cf0] sm:$0xff] }
 0x4fc   : > { %6153 = vmatpush.msra.mxu0 %v2565_v16  ;;  %6172 = vmatpush.msra.mxu1 %v2582_v4  ;;  %v4876_v16 = vpop.f32.mrf.mxu0  ;;  %v2634_v4 = vld [vmem:[%s6762_s26 + $0x4a30] sm:$0xff]  ;;  %v4896_v14 = vpop.f32.mrf.mxu1  ;;  %v2723_v13 = vld [vmem:[%s6762_s26 + $0x4cf8] sm:$0xff] }
 0x4fd   : > { %6193 = vmatpush.msra.mxu2 %v2597_v21  ;;  %6212 = vmatpush.msra.mxu3 %v2614_v6  ;;  %v2666_v21 = vld [vmem:[%s6762_s26 + $0x4b30] sm:$0xff]  ;;  %v2683_v6 = vld [vmem:[%s6762_s26 + $0x4bb8] sm:$0xff]  ;;  %v4877_v11 = vadd.f32 %v4876_v16, %v4857_v5  ;;  %v2753_v16 = vld [vmem:[%s6762_s26 + $0x4de8] sm:$0xff] }
 0x4fe   : > { %6154 = vmatpush.msra.mxu0 %v2564_v9  ;;  %6173 = vmatpush.msra.mxu1 %v2581_v10  ;;  %v2633_v9 = vld [vmem:[%s6762_s26 + $0x4a28] sm:$0xff]  ;;  %v2650_v10 = vld [vmem:[%s6762_s26 + $0x4ab0] sm:$0xff]  ;;  %v4916_v19 = vpop.f32.mrf.mxu2  ;;  %v2720_v5 = vld [vmem:[%s6762_s26 + $0x4ce0] sm:$0xff] }
 0x4ff   : > { %6194 = vmatpush.msra.mxu2 %v2596_v29  ;;  %6213 = vmatpush.msra.mxu3 %v2613_v31  ;;  %v2665_v29 = vld [vmem:[%s6762_s26 + $0x4b28] sm:$0xff]  ;;  %v2682_v31 = vld [vmem:[%s6762_s26 + $0x4bb0] sm:$0xff]  ;;  %v4897_v23 = vadd.f32 %v4896_v14, %v4877_v11  ;;  %v2719_v11 = vld [vmem:[%s6762_s26 + $0x4cd8] sm:$0xff] }
 0x500   : > { %6155 = vmatmul.f32.vlgmr.msra.gmra.mxu0 %v3076_v3  ;;  %6195 = vmatmul.f32.vlgmr.msra.gmra.mxu2 %v3078_v59  ;;  %v2632_v3 = vld [vmem:[%s6762_s26 + $0x4a20] sm:$0xff]  ;;  %v2649_v59 = vld [vmem:[%s6762_s26 + $0x4aa8] sm:$0xff]  ;;  %v2754_v26 = vld [vmem:[%s6762_s26 + $0x4df0] sm:$0xff] }
 0x501   : > { %6219 = vmatpush.msrb.mxu0 %v2643_v15  ;;  %6259 = vmatpush.msrb.mxu2 %v2675_v17  ;;  %v2664_v15 = vld [vmem:[%s6762_s26 + $0x4b20] sm:$0xff]  ;;  %v2681_v17 = vld [vmem:[%s6762_s26 + $0x4ba8] sm:$0xff]  ;;  %v4917_v30 = vadd.f32 %v4916_v19, %v4897_v23  ;;  %v2751_v14 = vld [vmem:[%s6762_s26 + $0x4dd8] sm:$0xff] }
 0x502   : > { %6174 = vmatpush.msra.mxu1 %v2580_v41  ;;  %6214 = vmatpush.msra.mxu3 %v2612_v22  ;;  %v2631_v41 = vld [vmem:[%s6762_s26 + $0x4a18] sm:$0xff]  ;;  %v2648_v22 = vld [vmem:[%s6762_s26 + $0x4aa0] sm:$0xff]  ;;  %v4936_v33 = vpop.f32.mrf.mxu3  ;;  %v2750_v19 = vld [vmem:[%s6762_s26 + $0x4dd0] sm:$0xff] }
 0x503   : > { %6175 = vmatmul.f32.vlgmr.msra.gmra.mxu1 %v3077_v24  ;;  %6215 = vmatmul.f32.vlgmr.msra.gmra.mxu3 %v3079_v37  ;;  %v2663_v24 = vld [vmem:[%s6762_s26 + $0x4b18] sm:$0xff]  ;;  %v2680_v37 = vld [vmem:[%s6762_s26 + $0x4ba0] sm:$0xff]  ;;  %v2717_v23 = vld [vmem:[%s6762_s26 + $0x4cc8] sm:$0xff] }
 0x504   : > { %6220 = vmatpush.msrb.mxu0 %v2642_v25  ;;  %6239 = vmatpush.msrb.mxu1 %v2659_v32  ;;  %v2630_v25 = vld [vmem:[%s6762_s26 + $0x4a10] sm:$0xff]  ;;  %v2647_v32 = vld [vmem:[%s6762_s26 + $0x4a98] sm:$0xff] }
 0x505   : > { %6260 = vmatpush.msrb.mxu2 %v2674_v12  ;;  %6279 = vmatpush.msrb.mxu3 %v2691_v27  ;;  %v2662_v12 = vld [vmem:[%s6762_s26 + $0x4b10] sm:$0xff]  ;;  %v2679_v27 = vld [vmem:[%s6762_s26 + $0x4b98] sm:$0xff] }
 0x506   : > { %6221 = vmatpush.msrb.mxu0 %v2641_v49  ;;  %6240 = vmatpush.msrb.mxu1 %v2658_v34  ;;  %v2629_v49 = vld [vmem:[%s6762_s26 + $0x4a08] sm:$0xff]  ;;  %v2646_v34 = vld [vmem:[%s6762_s26 + $0x4a90] sm:$0xff] }
 0x507   : > { %6261 = vmatpush.msrb.mxu2 %v2673_v35  ;;  %6280 = vmatpush.msrb.mxu3 %v2690_v36  ;;  %v257_v35 = vld [vmem:[%s6757_s22 + $0x130] sm:$0xff]  ;;  %v2661_v36 = vld [vmem:[%s6762_s26 + $0x4b08] sm:$0xff] }
 0x508   : > { %6222 = vmatpush.msrb.mxu0 %v2640_v39  ;;  %6241 = vmatpush.msrb.mxu1 %v2657_v18  ;;  %3084 = vst [vmem:[#allocation1] ss:$4 sm:$0xff] %v257_v35  ;;  %v4956_v39 = vpop.f32.mrf.mxu0  ;;  %v2628_v18 = vld [vmem:[%s6762_s26 + $0x4a00] sm:$0xff]  ;;  %v2715_v35 = vld [vmem:[%s6762_s26 + $0x4cb8] sm:$0xff] }
 0x509   : > { %6262 = vmatpush.msrb.mxu2 %v2672_v20  ;;  %6281 = vmatpush.msrb.mxu3 %v2689_v38  ;;  %v4937_v20 = vadd.f32 %v4936_v33, %v4917_v30  ;;  %v2660_v38 = vld [vmem:[%s6762_s26 + $0x4b00] sm:$0xff] }
 0x50a   : > { %6223 = vmatpush.msrb.mxu0 %v2639_v43  ;;  %6242 = vmatpush.msrb.mxu1 %v2656_v44  ;;  %v2677_v43 = vld [vmem:[%s6762_s26 + $0x4b88] sm:$0xff]  ;;  %v3080_v44 = vld.sshfl [vmem:[#allocation1 + $0x20] sm:$0xff pattern:$0x73625140] }
 0x50b   : > { %6263 = vmatpush.msrb.mxu2 %v2671_v46  ;;  %6282 = vmatpush.msrb.mxu3 %v2688_v52  ;;  %v4957_v46 = vadd.f32 %v4956_v39, %v4937_v20  ;;  %v2707_v52 = vld [vmem:[%s6762_s26 + $0x4c78] sm:$0xff]  ;;  %v2716_v30 = vld [vmem:[%s6762_s26 + $0x4cc0] sm:$0xff] }
 0x50c   : > { %6224 = vmatpush.msrb.mxu0 %v2638_v28  ;;  %6243 = vmatpush.msrb.mxu1 %v2655_v47  ;;  %v4976_v28 = vpop.f32.mrf.mxu1  ;;  %v2644_v47 = vld [vmem:[%s6762_s26 + $0x4a80] sm:$0xff] }
 0x50d   : > { %6264 = vmatpush.msrb.mxu2 %v2670_v48  ;;  %6283 = vmatpush.msrb.mxu3 %v2687_v8  ;;  %v2676_v48 = vld [vmem:[%s6762_s26 + $0x4b80] sm:$0xff]  ;;  %v3081_v8 = vld.sshfl [vmem:[#allocation1 + $0x28] sm:$0xff pattern:$0x73625140] }
 0x50e   : > { %6225 = vmatpush.msrb.mxu0 %v2637_v7  ;;  %6244 = vmatpush.msrb.mxu1 %v2654_v54  ;;  %v4996_v7 = vpop.f32.mrf.mxu2  ;;  %v2706_v54 = vld [vmem:[%s6762_s26 + $0x4c70] sm:$0xff]  ;;  %v2748_v33 = vld [vmem:[%s6762_s26 + $0x4dc0] sm:$0xff] }
 0x50f   : > { %6265 = vmatpush.msrb.mxu2 %v2669_v53  ;;  %6284 = vmatpush.msrb.mxu3 %v2686_v56  ;;  %v4977_v53 = vadd.f32 %v4976_v28, %v4957_v46  ;;  %v2738_v56 = vld [vmem:[%s6762_s26 + $0x4d70] sm:$0xff] }
 0x510   : > { %6226 = vmatpush.msrb.mxu0 %v2636_v58  ;;  %6245 = vmatpush.msrb.mxu1 %v2653_v57  ;;  %v2755_v58 = vld [vmem:[%s6762_s26 + $0x4df8] sm:$0xff]  ;;  %v2705_v57 = vld [vmem:[%s6762_s26 + $0x4c68] sm:$0xff] }
 0x511   : > { %6266 = vmatpush.msrb.mxu2 %v2668_v61  ;;  %6285 = vmatpush.msrb.mxu3 %v2685_v62  ;;  %v4997_v61 = vadd.f32 %v4996_v7, %v4977_v53  ;;  %v2737_v62 = vld [vmem:[%s6762_s26 + $0x4d68] sm:$0xff] }
 0x512   : > { %6227 = vmatpush.msrb.mxu0 %v2635_v2  ;;  %6246 = vmatpush.msrb.mxu1 %v2652_v1  ;;  %v5016_v2 = vpop.f32.mrf.mxu3  ;;  %v2704_v1 = vld [vmem:[%s6762_s26 + $0x4c60] sm:$0xff] }
 0x513   : > { %6267 = vmatpush.msrb.mxu2 %v2667_v0  ;;  %6286 = vmatpush.msrb.mxu3 %v2684_v51  ;;  %v2721_v0 = vld [vmem:[%s6762_s26 + $0x4ce8] sm:$0xff]  ;;  %v2736_v51 = vld [vmem:[%s6762_s26 + $0x4d60] sm:$0xff] }
 0x514   : > { %6228 = vmatpush.msrb.mxu0 %v2634_v4  ;;  %6247 = vmatpush.msrb.mxu1 %v2651_v55  ;;  %v5036_v4 = vpop.f32.mrf.mxu0  ;;  %v2703_v55 = vld [vmem:[%s6762_s26 + $0x4c58] sm:$0xff] }
 0x515   : > { %6268 = vmatpush.msrb.mxu2 %v2666_v21  ;;  %6287 = vmatpush.msrb.mxu3 %v2683_v6  ;;  %v5017_v21 = vadd.f32 %v5016_v2, %v4997_v61  ;;  %v2735_v6 = vld [vmem:[%s6762_s26 + $0x4d58] sm:$0xff]  ;;  %v2742_v2 = vld [vmem:[%s6762_s26 + $0x4d90] sm:$0xff] }
 0x516   : > { %6229 = vmatpush.msrb.mxu0 %v2633_v9  ;;  %6248 = vmatpush.msrb.mxu1 %v2650_v10  ;;  %v2752_v9 = vld [vmem:[%s6762_s26 + $0x4de0] sm:$0xff]  ;;  %v2702_v10 = vld [vmem:[%s6762_s26 + $0x4c50] sm:$0xff]  ;;  %v258_v61 = vld [vmem:[%s6757_s22 + $0x138] sm:$0xff] }
 0x517   : > { %6269 = vmatpush.msrb.mxu2 %v2665_v29  ;;  %6288 = vmatpush.msrb.mxu3 %v2682_v31  ;;  %v5037_v29 = vadd.f32 %v5036_v4, %v5017_v21  ;;  %v2734_v31 = vld [vmem:[%s6762_s26 + $0x4d50] sm:$0xff]  ;;  %3085 = vst [vmem:[#allocation1 + $0x20] ss:$4 sm:$0xff] %v258_v61  ;;  %v2741_v4 = vld [vmem:[%s6762_s26 + $0x4d88] sm:$0xff]  ;;  %v2779_v61 = vld [vmem:[%s6762_s26 + $0x4eb8] sm:$0xff] }
 0x518   : > { %6230 = vmatpush.msrb.mxu0 %v2632_v3  ;;  %6249 = vmatpush.msrb.mxu1 %v2649_v59  ;;  %v5056_v3 = vpop.f32.mrf.mxu1  ;;  %v2701_v59 = vld [vmem:[%s6762_s26 + $0x4c48] sm:$0xff]  ;;  %v3088_v21 = vld.sshfl [vmem:[#allocation1 + $0x10] sm:$0xff pattern:$0x73625140] }
 0x519   : > { %6270 = vmatpush.msrb.mxu2 %v2664_v15  ;;  %6289 = vmatpush.msrb.mxu3 %v2681_v17  ;;  %v2718_v15 = vld [vmem:[%s6762_s26 + $0x4cd0] sm:$0xff]  ;;  %v2733_v17 = vld [vmem:[%s6762_s26 + $0x4d48] sm:$0xff] }
 0x51a   : > { %6231 = vmatpush.msrb.mxu0 %v2631_v41  ;;  %6250 = vmatpush.msrb.mxu1 %v2648_v22  ;;  %v5076_v41 = vpop.f32.mrf.mxu2  ;;  %v2700_v22 = vld [vmem:[%s6762_s26 + $0x4c40] sm:$0xff] }
 0x51b   : > { %6271 = vmatpush.msrb.mxu2 %v2663_v24  ;;  %6290 = vmatpush.msrb.mxu3 %v2680_v37  ;;  %v5057_v24 = vadd.f32 %v5056_v3, %v5037_v29  ;;  %v2732_v37 = vld [vmem:[%s6762_s26 + $0x4d40] sm:$0xff]  ;;  %v3089_v3 = vld.sshfl [vmem:[#allocation1 + $0x18] sm:$0xff pattern:$0x73625140] }
 0x51c   : > { %6232 = vmatpush.msrb.mxu0 %v2630_v25  ;;  %6251 = vmatpush.msrb.mxu1 %v2647_v32  ;;  %v2749_v25 = vld [vmem:[%s6762_s26 + $0x4dc8] sm:$0xff]  ;;  %v2699_v32 = vld [vmem:[%s6762_s26 + $0x4c38] sm:$0xff]  ;;  %v5116_v39 = vpop.f32.mrf.mxu0  ;;  %v2740_v29 = vld [vmem:[%s6762_s26 + $0x4d80] sm:$0xff] }
 0x51d   : > { %6272 = vmatpush.msrb.mxu2 %v2662_v12  ;;  %6291 = vmatpush.msrb.mxu3 %v2679_v27  ;;  %v5077_v12 = vadd.f32 %v5076_v41, %v5057_v24  ;;  %v2731_v27 = vld [vmem:[%s6762_s26 + $0x4d38] sm:$0xff]  ;;  %v2786_v24 = vld [vmem:[%s6762_s26 + $0x4ef0] sm:$0xff] }
 0x51e   : > { %6233 = vmatpush.msrb.mxu0 %v2629_v49  ;;  %6252 = vmatpush.msrb.mxu1 %v2646_v34  ;;  %v5096_v49 = vpop.f32.mrf.mxu3  ;;  %v2698_v34 = vld [vmem:[%s6762_s26 + $0x4c30] sm:$0xff]  ;;  %v2819_v41 = vld [vmem:[%s6762_s26 + $0x4ff8] sm:$0xff] }
 0x51f   : > { %6273 = vmatpush.msrb.mxu2 %v2661_v36  ;;  %6292 = vmatpush.msrb.mxu3 %v2678_v42  ;;  %v2730_v36 = vld [vmem:[%s6762_s26 + $0x4d30] sm:$0xff]  ;;  %v2747_v42 = vld [vmem:[%s6762_s26 + $0x4db8] sm:$0xff]  ;;  %v5097_v20 = vadd.f32 %v5096_v49, %v5077_v12  ;;  %v2785_v12 = vld [vmem:[%s6762_s26 + $0x4ee8] sm:$0xff] }
 0x520   : > { %6234 = vmatpush.msrb.mxu0 %v2628_v18  ;;  %6253 = vmatpush.msrb.mxu1 %v2645_v40  ;;  %v2697_v18 = vld [vmem:[%s6762_s26 + $0x4c28] sm:$0xff]  ;;  %v2714_v40 = vld [vmem:[%s6762_s26 + $0x4cb0] sm:$0xff]  ;;  %v5136_v28 = vpop.f32.mrf.mxu1 }
 0x521   : > { %6274 = vmatpush.msrb.mxu2 %v2660_v38  ;;  %6293 = vmatpush.msrb.mxu3 %v2677_v43  ;;  %v2729_v38 = vld [vmem:[%s6762_s26 + $0x4d28] sm:$0xff]  ;;  %v2746_v43 = vld [vmem:[%s6762_s26 + $0x4db0] sm:$0xff]  ;;  %v5117_v46 = vadd.f32 %v5116_v39, %v5097_v20  ;;  %v2816_v39 = vld [vmem:[%s6762_s26 + $0x4fe0] sm:$0xff] }
 0x522   : > { %6235 = vmatmul.f32.vlgmr.msrb.gmra.mxu0 %v3080_v44  ;;  %6275 = vmatmul.f32.vlgmr.msrb.gmra.mxu2 %v3082_v45  ;;  %v2696_v44 = vld [vmem:[%s6762_s26 + $0x4c20] sm:$0xff]  ;;  %v2713_v45 = vld [vmem:[%s6762_s26 + $0x4ca8] sm:$0xff]  ;;  %v5156_v7 = vpop.f32.mrf.mxu2  ;;  %v2783_v20 = vld [vmem:[%s6762_s26 + $0x4ed8] sm:$0xff] }
 0x523   : > { %6299 = vmatpush.msra.mxu0 %v2707_v52  ;;  %6339 = vmatpush.msra.mxu2 %v2739_v50  ;;  %v2728_v52 = vld [vmem:[%s6762_s26 + $0x4d20] sm:$0xff]  ;;  %v2745_v50 = vld [vmem:[%s6762_s26 + $0x4da8] sm:$0xff]  ;;  %v5137_v53 = vadd.f32 %v5136_v28, %v5117_v46  ;;  %v2782_v46 = vld [vmem:[%s6762_s26 + $0x4ed0] sm:$0xff] }
 0x524   : > { %6254 = vmatpush.msrb.mxu1 %v2644_v47  ;;  %6294 = vmatpush.msrb.mxu3 %v2676_v48  ;;  %v2695_v47 = vld [vmem:[%s6762_s26 + $0x4c18] sm:$0xff]  ;;  %v2712_v48 = vld [vmem:[%s6762_s26 + $0x4ca0] sm:$0xff]  ;;  %v2817_v49 = vld [vmem:[%s6762_s26 + $0x4fe8] sm:$0xff] }
 0x525   : > { %6255 = vmatmul.f32.vlgmr.msrb.gmra.mxu1 %v3081_v8  ;;  %6295 = vmatmul.f32.vlgmr.msrb.gmra.mxu3 %v3083_v63  ;;  %v2727_v8 = vld [vmem:[%s6762_s26 + $0x4d18] sm:$0xff]  ;;  %v2744_v63 = vld [vmem:[%s6762_s26 + $0x4da0] sm:$0xff]  ;;  %v2814_v28 = vld [vmem:[%s6762_s26 + $0x4fd0] sm:$0xff] }
 0x526   : > { %6300 = vmatpush.msra.mxu0 %v2706_v54  ;;  %6319 = vmatpush.msra.mxu1 %v2723_v13  ;;  %v2694_v54 = vld [vmem:[%s6762_s26 + $0x4c10] sm:$0xff]  ;;  %v2711_v13 = vld [vmem:[%s6762_s26 + $0x4c98] sm:$0xff] }
 0x527   : > { %6340 = vmatpush.msra.mxu2 %v2738_v56  ;;  %6359 = vmatpush.msra.mxu3 %v2755_v58  ;;  %v2726_v56 = vld [vmem:[%s6762_s26 + $0x4d10] sm:$0xff]  ;;  %v2743_v58 = vld [vmem:[%s6762_s26 + $0x4d98] sm:$0xff] }
 0x528   : > { %6301 = vmatpush.msra.mxu0 %v2705_v57  ;;  %6320 = vmatpush.msra.mxu1 %v2722_v60  ;;  %v2693_v57 = vld [vmem:[%s6762_s26 + $0x4c08] sm:$0xff]  ;;  %v2710_v60 = vld [vmem:[%s6762_s26 + $0x4c90] sm:$0xff] }
 0x529   : > { %6341 = vmatpush.msra.mxu2 %v2737_v62  ;;  %6360 = vmatpush.msra.mxu3 %v2754_v26  ;;  %v5157_v62 = vadd.f32 %v5156_v7, %v5137_v53  ;;  %v2725_v26 = vld [vmem:[%s6762_s26 + $0x4d08] sm:$0xff]  ;;  %v2780_v53 = vld [vmem:[%s6762_s26 + $0x4ec0] sm:$0xff] }
 0x52a   : > { %6302 = vmatpush.msra.mxu0 %v2704_v1  ;;  %6321 = vmatpush.msra.mxu1 %v2721_v0  ;;  %v5176_v1 = vpop.f32.mrf.mxu3  ;;  %v2692_v0 = vld [vmem:[%s6762_s26 + $0x4c00] sm:$0xff]  ;;  %v2813_v7 = vld [vmem:[%s6762_s26 + $0x4fc8] sm:$0xff] }
 0x52b   : > { %6342 = vmatpush.msra.mxu2 %v2736_v51  ;;  %6361 = vmatpush.msra.mxu3 %v2753_v16  ;;  %v2709_v51 = vld [vmem:[%s6762_s26 + $0x4c88] sm:$0xff]  ;;  %v2724_v16 = vld [vmem:[%s6762_s26 + $0x4d00] sm:$0xff] }
 0x52c   : > { %6303 = vmatpush.msra.mxu0 %v2703_v55  ;;  %6322 = vmatpush.msra.mxu1 %v2720_v5  ;;  %v5196_v55 = vpop.f32.mrf.mxu0  ;;  %v3086_v5 = vld.sshfl [vmem:[#allocation1] sm:$0xff pattern:$0x73625140] }
 0x52d   : > { %6343 = vmatpush.msra.mxu2 %v2735_v6  ;;  %6362 = vmatpush.msra.mxu3 %v2752_v9  ;;  %v5177_v6 = vadd.f32 %v5176_v1, %v5157_v62  ;;  %v2771_v9 = vld [vmem:[%s6762_s26 + $0x4e78] sm:$0xff] }
 0x52e   : > { %6304 = vmatpush.msra.mxu0 %v2702_v10  ;;  %6323 = vmatpush.msra.mxu1 %v2719_v11  ;;  %v2803_v10 = vld [vmem:[%s6762_s26 + $0x4f78] sm:$0xff]  ;;  %v2708_v11 = vld [vmem:[%s6762_s26 + $0x4c80] sm:$0xff] }
 0x52f   : > { %6344 = vmatpush.msra.mxu2 %v2734_v31  ;;  %6363 = vmatpush.msra.mxu3 %v2751_v14  ;;  %v5197_v31 = vadd.f32 %v5196_v55, %v5177_v6  ;;  %v3087_v14 = vld.sshfl [vmem:[#allocation1 + $0x8] sm:$0xff pattern:$0x73625140] }
 0x530   : > { %6305 = vmatpush.msra.mxu0 %v2701_v59  ;;  %6324 = vmatpush.msra.mxu1 %v2718_v15  ;;  %v5216_v59 = vpop.f32.mrf.mxu1  ;;  %v2770_v15 = vld [vmem:[%s6762_s26 + $0x4e70] sm:$0xff] }
 0x531   : > { %6345 = vmatpush.msra.mxu2 %v2733_v17  ;;  %6364 = vmatpush.msra.mxu3 %v2750_v19  ;;  %v2787_v17 = vld [vmem:[%s6762_s26 + $0x4ef8] sm:$0xff]  ;;  %v2802_v19 = vld [vmem:[%s6762_s26 + $0x4f70] sm:$0xff] }
 0x532   : > { %6306 = vmatpush.msra.mxu0 %v2700_v22  ;;  %6325 = vmatpush.msra.mxu1 %v2717_v23  ;;  %v5236_v22 = vpop.f32.mrf.mxu2  ;;  %v2769_v23 = vld [vmem:[%s6762_s26 + $0x4e68] sm:$0xff] }
 0x533   : > { %6346 = vmatpush.msra.mxu2 %v2732_v37  ;;  %6365 = vmatpush.msra.mxu3 %v2749_v25  ;;  %v5217_v37 = vadd.f32 %v5216_v59, %v5197_v31  ;;  %v2801_v25 = vld [vmem:[%s6762_s26 + $0x4f68] sm:$0xff] }
 0x534   : > { %6307 = vmatpush.msra.mxu0 %v2699_v32  ;;  %6326 = vmatpush.msra.mxu1 %v2716_v30  ;;  %v2818_v32 = vld [vmem:[%s6762_s26 + $0x4ff0] sm:$0xff]  ;;  %v2768_v30 = vld [vmem:[%s6762_s26 + $0x4e60] sm:$0xff] }
 0x535   : > { %6347 = vmatpush.msra.mxu2 %v2731_v27  ;;  %6366 = vmatpush.msra.mxu3 %v2748_v33  ;;  %v5237_v27 = vadd.f32 %v5236_v22, %v5217_v37  ;;  %v2800_v33 = vld [vmem:[%s6762_s26 + $0x4f60] sm:$0xff]  ;;  %v2774_v37 = vld [vmem:[%s6762_s26 + $0x4e90] sm:$0xff] }
 0x536   : > { %6308 = vmatpush.msra.mxu0 %v2698_v34  ;;  %6327 = vmatpush.msra.mxu1 %v2715_v35  ;;  %v5256_v34 = vpop.f32.mrf.mxu3  ;;  %v2767_v35 = vld [vmem:[%s6762_s26 + $0x4e58] sm:$0xff]  ;;  %v259_v22 = vld [vmem:[%s6757_s22 + $0x140] sm:$0xf] }
 0x537   : > { %6348 = vmatpush.msra.mxu2 %v2730_v36  ;;  %6367 = vmatpush.msra.mxu3 %v2747_v42  ;;  %v2784_v36 = vld [vmem:[%s6762_s26 + $0x4ee0] sm:$0xff]  ;;  %v2799_v42 = vld [vmem:[%s6762_s26 + $0x4f58] sm:$0xff]  ;;  %3094 = vst [vmem:[#allocation1] ss:$4 sm:$0xff] %v259_v22 }
 0x538   : > { %6309 = vmatpush.msra.mxu0 %v2697_v18  ;;  %6328 = vmatpush.msra.mxu1 %v2714_v40  ;;  %v5276_v18 = vpop.f32.mrf.mxu0  ;;  %v2766_v40 = vld [vmem:[%s6762_s26 + $0x4e50] sm:$0xff] }
 0x539   : > { %6349 = vmatpush.msra.mxu2 %v2729_v38  ;;  %6368 = vmatpush.msra.mxu3 %v2746_v43  ;;  %v5257_v38 = vadd.f32 %v5256_v34, %v5237_v27  ;;  %v2798_v43 = vld [vmem:[%s6762_s26 + $0x4f50] sm:$0xff]  ;;  %v2773_v27 = vld [vmem:[%s6762_s26 + $0x4e88] sm:$0xff] }
 0x53a   : > { %6310 = vmatpush.msra.mxu0 %v2696_v44  ;;  %6329 = vmatpush.msra.mxu1 %v2713_v45  ;;  %v2815_v44 = vld [vmem:[%s6762_s26 + $0x4fd8] sm:$0xff]  ;;  %v2765_v45 = vld [vmem:[%s6762_s26 + $0x4e48] sm:$0xff] }
 0x53b   : > { %6350 = vmatpush.msra.mxu2 %v2728_v52  ;;  %6369 = vmatpush.msra.mxu3 %v2745_v50  ;;  %v5277_v52 = vadd.f32 %v5276_v18, %v5257_v38  ;;  %v2797_v50 = vld [vmem:[%s6762_s26 + $0x4f48] sm:$0xff]  ;;  %v2772_v18 = vld [vmem:[%s6762_s26 + $0x4e80] sm:$0xff] }
 0x53c   : > { %6311 = vmatpush.msra.mxu0 %v2695_v47  ;;  %6330 = vmatpush.msra.mxu1 %v2712_v48  ;;  %v5296_v47 = vpop.f32.mrf.mxu1  ;;  %v2764_v48 = vld [vmem:[%s6762_s26 + $0x4e40] sm:$0xff]  ;;  %v2805_v34 = vld [vmem:[%s6762_s26 + $0x4f88] sm:$0xff] }
 0x53d   : > { %6351 = vmatpush.msra.mxu2 %v2727_v8  ;;  %6370 = vmatpush.msra.mxu3 %v2744_v63  ;;  %v2781_v8 = vld [vmem:[%s6762_s26 + $0x4ec8] sm:$0xff]  ;;  %v2796_v63 = vld [vmem:[%s6762_s26 + $0x4f40] sm:$0xff] }
 0x53e   : > { %6312 = vmatpush.msra.mxu0 %v2694_v54  ;;  %6331 = vmatpush.msra.mxu1 %v2711_v13  ;;  %v5316_v54 = vpop.f32.mrf.mxu2  ;;  %v2763_v13 = vld [vmem:[%s6762_s26 + $0x4e38] sm:$0xff]  ;;  %v5336_v1 = vpop.f32.mrf.mxu3  ;;  %v3091_v38 = vld.sshfl [vmem:[#allocation1 + $0x28] sm:$0xff pattern:$0x73625140] }
 0x53f   : > { %6352 = vmatpush.msra.mxu2 %v2726_v56  ;;  %6371 = vmatpush.msra.mxu3 %v2743_v58  ;;  %v5297_v56 = vadd.f32 %v5296_v47, %v5277_v52  ;;  %v2795_v58 = vld [vmem:[%s6762_s26 + $0x4f38] sm:$0xff]  ;;  %v2850_v47 = vld [vmem:[%s6762_s26 + $0x50f0] sm:$0xff] }
 0x540   : > { %6313 = vmatpush.msra.mxu0 %v2693_v57  ;;  %6332 = vmatpush.msra.mxu1 %v2710_v60  ;;  %v2812_v57 = vld [vmem:[%s6762_s26 + $0x4fc0] sm:$0xff]  ;;  %v2762_v60 = vld [vmem:[%s6762_s26 + $0x4e30] sm:$0xff]  ;;  %v5356_v55 = vpop.f32.mrf.mxu0 }
 0x541   : > { %6353 = vmatpush.msra.mxu2 %v2725_v26  ;;  %6372 = vmatpush.msra.mxu3 %v2742_v2  ;;  %v5317_v62 = vadd.f32 %v5316_v54, %v5297_v56  ;;  %v2794_v26 = vld [vmem:[%s6762_s26 + $0x4f30] sm:$0xff]  ;;  %v2811_v2 = vld [vmem:[%s6762_s26 + $0x4fb8] sm:$0xff] }
 0x542   : > { %6314 = vmatpush.msra.mxu0 %v2692_v0  ;;  %6333 = vmatpush.msra.mxu1 %v2709_v51  ;;  %v2761_v0 = vld [vmem:[%s6762_s26 + $0x4e28] sm:$0xff]  ;;  %v2778_v51 = vld [vmem:[%s6762_s26 + $0x4eb0] sm:$0xff]  ;;  %v2831_v54 = vld [vmem:[%s6762_s26 + $0x5058] sm:$0xff] }
 0x543   : > { %6354 = vmatpush.msra.mxu2 %v2724_v16  ;;  %6373 = vmatpush.msra.mxu3 %v2741_v4  ;;  %v2793_v16 = vld [vmem:[%s6762_s26 + $0x4f28] sm:$0xff]  ;;  %v2810_v4 = vld [vmem:[%s6762_s26 + $0x4fb0] sm:$0xff]  ;;  %v5337_v6 = vadd.f32 %v5336_v1, %v5317_v62 }
 0x544   : > { %6315 = vmatmul.f32.vlgmr.msra.gmra.mxu0 %v3086_v5  ;;  %6355 = vmatmul.f32.vlgmr.msra.gmra.mxu2 %v3088_v21  ;;  %v2760_v5 = vld [vmem:[%s6762_s26 + $0x4e20] sm:$0xff]  ;;  %v2777_v21 = vld [vmem:[%s6762_s26 + $0x4ea8] sm:$0xff]  ;;  %v5376_v59 = vpop.f32.mrf.mxu1  ;;  %v2830_v56 = vld [vmem:[%s6762_s26 + $0x5050] sm:$0xff] }
 0x545   : > { %6379 = vmatpush.msrb.mxu0 %v2771_v9  ;;  %6419 = vmatpush.msrb.mxu2 %v2803_v10  ;;  %v2792_v9 = vld [vmem:[%s6762_s26 + $0x4f20] sm:$0xff]  ;;  %v2809_v10 = vld [vmem:[%s6762_s26 + $0x4fa8] sm:$0xff]  ;;  %v5357_v31 = vadd.f32 %v5356_v55, %v5337_v6  ;;  %v2846_v62 = vld [vmem:[%s6762_s26 + $0x50d0] sm:$0xff] }
 0x546   : > { %6334 = vmatpush.msra.mxu1 %v2708_v11  ;;  %6374 = vmatpush.msra.mxu3 %v2740_v29  ;;  %v2759_v11 = vld [vmem:[%s6762_s26 + $0x4e18] sm:$0xff]  ;;  %v2776_v29 = vld [vmem:[%s6762_s26 + $0x4ea0] sm:$0xff]  ;;  %v2845_v1 = vld [vmem:[%s6762_s26 + $0x50c8] sm:$0xff] }
 0x547   : > { %6335 = vmatmul.f32.vlgmr.msra.gmra.mxu1 %v3087_v14  ;;  %6375 = vmatmul.f32.vlgmr.msra.gmra.mxu3 %v3089_v3  ;;  %v2791_v14 = vld [vmem:[%s6762_s26 + $0x4f18] sm:$0xff]  ;;  %v2808_v3 = vld [vmem:[%s6762_s26 + $0x4fa0] sm:$0xff]  ;;  %v2826_v55 = vld [vmem:[%s6762_s26 + $0x5030] sm:$0xff] }
 0x548   : > { %6380 = vmatpush.msrb.mxu0 %v2770_v15  ;;  %6399 = vmatpush.msrb.mxu1 %v2787_v17  ;;  %v2758_v15 = vld [vmem:[%s6762_s26 + $0x4e10] sm:$0xff]  ;;  %v2775_v17 = vld [vmem:[%s6762_s26 + $0x4e98] sm:$0xff] }
 0x549   : > { %6420 = vmatpush.msrb.mxu2 %v2802_v19  ;;  %6439 = vmatpush.msrb.mxu3 %v2819_v41  ;;  %v2790_v19 = vld [vmem:[%s6762_s26 + $0x4f10] sm:$0xff]  ;;  %v2807_v41 = vld [vmem:[%s6762_s26 + $0x4f98] sm:$0xff] }
 0x54a   : > { %6381 = vmatpush.msrb.mxu0 %v2769_v23  ;;  %6400 = vmatpush.msrb.mxu1 %v2786_v24  ;;  %v5396_v23 = vpop.f32.mrf.mxu2  ;;  %v2757_v24 = vld [vmem:[%s6762_s26 + $0x4e08] sm:$0xff] }
 0x54b   : > { %6421 = vmatpush.msrb.mxu2 %v2801_v25  ;;  %6440 = vmatpush.msrb.mxu3 %v2818_v32  ;;  %v5377_v25 = vadd.f32 %v5376_v59, %v5357_v31  ;;  %v2789_v32 = vld [vmem:[%s6762_s26 + $0x4f08] sm:$0xff] }
 0x54c   : > { %6382 = vmatpush.msrb.mxu0 %v2768_v30  ;;  %6401 = vmatpush.msrb.mxu1 %v2785_v12  ;;  %v2806_v30 = vld [vmem:[%s6762_s26 + $0x4f90] sm:$0xff]  ;;  %v2756_v12 = vld [vmem:[%s6762_s26 + $0x4e00] sm:$0xff] }
 0x54d   : > { %6422 = vmatpush.msrb.mxu2 %v2800_v33  ;;  %6441 = vmatpush.msrb.mxu3 %v2817_v49  ;;  %v5397_v33 = vadd.f32 %v5396_v23, %v5377_v25  ;;  %v2788_v49 = vld [vmem:[%s6762_s26 + $0x4f00] sm:$0xff]  ;;  %v2821_v23 = vld [vmem:[%s6762_s26 + $0x5008] sm:$0xff] }
 0x54e   : > { %6383 = vmatpush.msrb.mxu0 %v2767_v35  ;;  %6402 = vmatpush.msrb.mxu1 %v2784_v36  ;;  %v5416_v35 = vpop.f32.mrf.mxu3  ;;  %v3090_v36 = vld.sshfl [vmem:[#allocation1 + $0x20] sm:$0xff pattern:$0x73625140] }
 0x54f   : > { %6423 = vmatpush.msrb.mxu2 %v2799_v42  ;;  %6442 = vmatpush.msrb.mxu3 %v2816_v39  ;;  %v3092_v42 = vld.sshfl [vmem:[#allocation1 + $0x30] sm:$0xff pattern:$0x73625140]  ;;  %v2835_v39 = vld [vmem:[%s6762_s26 + $0x5078] sm:$0xff]  ;;  %v2820_v25 = vld [vmem:[%s6762_s26 + $0x5000] sm:$0xff] }
 0x550   : > { %6384 = vmatpush.msrb.mxu0 %v2766_v40  ;;  %6403 = vmatpush.msrb.mxu1 %v2783_v20  ;;  %v5436_v40 = vpop.f32.mrf.mxu0  ;;  %v2804_v20 = vld [vmem:[%s6762_s26 + $0x4f80] sm:$0xff] }
 0x551   : > { %6424 = vmatpush.msrb.mxu2 %v2798_v43  ;;  %6443 = vmatpush.msrb.mxu3 %v2815_v44  ;;  %v5417_v43 = vadd.f32 %v5416_v35, %v5397_v33  ;;  %v3093_v44 = vld.sshfl [vmem:[#allocation1 + $0x38] sm:$0xff pattern:$0x73625140]  ;;  %v2836_v33 = vld [vmem:[%s6762_s26 + $0x5080] sm:$0xff] }
 0x552   : > { %6385 = vmatpush.msrb.mxu0 %v2765_v45  ;;  %6404 = vmatpush.msrb.mxu1 %v2782_v46  ;;  %v2834_v45 = vld [vmem:[%s6762_s26 + $0x5070] sm:$0xff]  ;;  %v2851_v46 = vld [vmem:[%s6762_s26 + $0x50f8] sm:$0xff] }
 0x553   : > { %6425 = vmatpush.msrb.mxu2 %v2797_v50  ;;  %6444 = vmatpush.msrb.mxu3 %v2814_v28  ;;  %v5437_v52 = vadd.f32 %v5436_v40, %v5417_v43  ;;  %v2833_v50 = vld [vmem:[%s6762_s26 + $0x5068] sm:$0xff]  ;;  %v5456_v28 = vpop.f32.mrf.mxu1 }
 0x554   : > { %6386 = vmatpush.msrb.mxu0 %v2764_v48  ;;  %6405 = vmatpush.msrb.mxu1 %v2781_v8  ;;  %v2832_v48 = vld [vmem:[%s6762_s26 + $0x5060] sm:$0xff]  ;;  %v5476_v8 = vpop.f32.mrf.mxu2 }
 0x555   : > { %6426 = vmatpush.msrb.mxu2 %v2796_v63  ;;  %6445 = vmatpush.msrb.mxu3 %v2813_v7  ;;  %v2849_v63 = vld [vmem:[%s6762_s26 + $0x50e8] sm:$0xff]  ;;  %v5457_v7 = vadd.f32 %v5456_v28, %v5437_v52 }
 0x556   : > { %6387 = vmatpush.msrb.mxu0 %v2763_v13  ;;  %6406 = vmatpush.msrb.mxu1 %v2780_v53  ;;  %v2848_v13 = vld [vmem:[%s6762_s26 + $0x50e0] sm:$0xff] }
 0x557   : > { %6427 = vmatpush.msrb.mxu2 %v2795_v58  ;;  %6446 = vmatpush.msrb.mxu3 %v2812_v57  ;;  %v5477_v53 = vadd.f32 %v5476_v8, %v5457_v7  ;;  %v5496_v58 = vpop.f32.mrf.mxu3  ;;  %v2847_v57 = vld [vmem:[%s6762_s26 + $0x50d8] sm:$0xff] }
 0x558   : > { %6388 = vmatpush.msrb.mxu0 %v2762_v60  ;;  %6407 = vmatpush.msrb.mxu1 %v2779_v61  ;;  %v2829_v60 = vld [vmem:[%s6762_s26 + $0x5048] sm:$0xff]  ;;  %v5516_v61 = vpop.f32.mrf.mxu0 }
 0x559   : > { %6428 = vmatpush.msrb.mxu2 %v2794_v26  ;;  %6447 = vmatpush.msrb.mxu3 %v2811_v2  ;;  %v5497_v26 = vadd.f32 %v5496_v58, %v5477_v53  ;;  %v2828_v2 = vld [vmem:[%s6762_s26 + $0x5040] sm:$0xff] }
 0x55a   : > { %6389 = vmatpush.msrb.mxu0 %v2761_v0  ;;  %6408 = vmatpush.msrb.mxu1 %v2778_v51  ;;  %v2827_v51 = vld [vmem:[%s6762_s26 + $0x5038] sm:$0xff] }
 0x55b   : > { %6429 = vmatpush.msrb.mxu2 %v2793_v16  ;;  %6448 = vmatpush.msrb.mxu3 %v2810_v4  ;;  %v5517_v0 = vadd.f32 %v5516_v61, %v5497_v26  ;;  %v5536_v16 = vpop.f32.mrf.mxu1  ;;  %v2844_v4 = vld [vmem:[%s6762_s26 + $0x50c0] sm:$0xff] }
 0x55c   : > { %6390 = vmatpush.msrb.mxu0 %v2760_v5  ;;  %6409 = vmatpush.msrb.mxu1 %v2777_v21  ;;  %v5556_v5 = vpop.f32.mrf.mxu2  ;;  %v2843_v21 = vld [vmem:[%s6762_s26 + $0x50b8] sm:$0xff] }
 0x55d   : > { %6430 = vmatpush.msrb.mxu2 %v2792_v9  ;;  %6449 = vmatpush.msrb.mxu3 %v2809_v10  ;;  %v5537_v6 = vadd.f32 %v5536_v16, %v5517_v0  ;;  %v2825_v9 = vld [vmem:[%s6762_s26 + $0x5028] sm:$0xff]  ;;  %v2842_v10 = vld [vmem:[%s6762_s26 + $0x50b0] sm:$0xff] }
 0x55e   : > { %6391 = vmatpush.msrb.mxu0 %v2759_v11  ;;  %6410 = vmatpush.msrb.mxu1 %v2776_v29  ;;  %v2824_v29 = vld [vmem:[%s6762_s26 + $0x5020] sm:$0xff] }
 0x55f   : > { %6431 = vmatpush.msrb.mxu2 %v2791_v14  ;;  %6450 = vmatpush.msrb.mxu3 %v2808_v3  ;;  %v5557_v11 = vadd.f32 %v5556_v5, %v5537_v6  ;;  %v5576_v31 = vpop.f32.mrf.mxu3  ;;  %v2841_v14 = vld [vmem:[%s6762_s26 + $0x50a8] sm:$0xff]  ;;  %v2823_v3 = vld [vmem:[%s6762_s26 + $0x5018] sm:$0xff] }
 0x560   : > { %6392 = vmatpush.msrb.mxu0 %v2758_v15  ;;  %6411 = vmatpush.msrb.mxu1 %v2775_v17  ;;  %v5596_v59 = vpop.f32.mrf.mxu0  ;;  %v2840_v15 = vld [vmem:[%s6762_s26 + $0x50a0] sm:$0xff] }
 0x561   : > { %6432 = vmatpush.msrb.mxu2 %v2790_v19  ;;  %6451 = vmatpush.msrb.mxu3 %v2807_v41  ;;  %v5577_v17 = vadd.f32 %v5576_v31, %v5557_v11  ;;  %v2822_v19 = vld [vmem:[%s6762_s26 + $0x5010] sm:$0xff]  ;;  %v2839_v41 = vld [vmem:[%s6762_s26 + $0x5098] sm:$0xff] }
 0x562   : > { %6393 = vmatpush.msrb.mxu0 %v2757_v24  ;;  %6412 = vmatpush.msrb.mxu1 %v2774_v37  ;;  %v2838_v37 = vld [vmem:[%s6762_s26 + $0x5090] sm:$0xff] }
 0x563   : > { %6433 = vmatpush.msrb.mxu2 %v2789_v32  ;;  %6452 = vmatpush.msrb.mxu3 %v2806_v30  ;;  %v5597_v22 = vadd.f32 %v5596_v59, %v5577_v17  ;;  %v5616_v24 = vpop.f32.mrf.mxu1  ;;  %v2837_v30 = vld [vmem:[%s6762_s26 + $0x5088] sm:$0xff] }
 0x564   : > { %6394 = vmatpush.msrb.mxu0 %v2756_v12  ;;  %6413 = vmatpush.msrb.mxu1 %v2773_v27  ;;  %v5636_v32 = vpop.f32.mrf.mxu2  ;;  %v3095_v12 = vld.sshfl [vmem:[#allocation1] sm:$0xff pattern:$0x73625140] }
 0x565   : > { %6434 = vmatpush.msrb.mxu2 %v2788_v49  ;;  %6453 = vmatpush.msrb.mxu3 %v2805_v34  ;;  %v5617_v27 = vadd.f32 %v5616_v24, %v5597_v22  ;;  %v3096_v34 = vld.sshfl [vmem:[#allocation1 + $0x8] sm:$0xff pattern:$0x73625140] }
 0x566   : > { %6395 = vmatmul.f32.vlgmr.msrb.gmra.mxu0 %v3090_v36  ;;  %6435 = vmatmul.f32.vlgmr.msrb.gmra.mxu2 %v3092_v42 }
 0x567   : > { %6459 = vmatpush.msra.mxu0 %v2835_v39  ;;  %6414 = vmatpush.msrb.mxu1 %v2772_v18  ;;  %v5637_v49 = vadd.f32 %v5636_v32, %v5617_v27  ;;  %v5656_v35 = vpop.f32.mrf.mxu3 }
 0x568   : > { %6454 = vmatpush.msrb.mxu3 %v2804_v20  ;;  %6415 = vmatmul.f32.vlgmr.msrb.gmra.mxu1 %v3091_v38  ;;  %v5676_v36 = vpop.f32.mrf.mxu0 }
 0x569   : > { %6455 = vmatmul.f32.vlgmr.msrb.gmra.mxu3 %v3093_v44  ;;  %6460 = vmatpush.msra.mxu0 %v2834_v45  ;;  %v5657_v42 = vadd.f32 %v5656_v35, %v5637_v49 }
 0x56a   : > { %6479 = vmatpush.msra.mxu1 %v2851_v46 }
 0x56b   : > { %6461 = vmatpush.msra.mxu0 %v2833_v50  ;;  %v5677_v39 = vadd.f32 %v5676_v36, %v5657_v42  ;;  %v5696_v18 = vpop.f32.mrf.mxu1 }
 0x56c   : > { %6480 = vmatpush.msra.mxu1 %v2850_v47  ;;  %v5716_v40 = vpop.f32.mrf.mxu2 }
 0x56d   : > { %6462 = vmatpush.msra.mxu0 %v2832_v48  ;;  %v5697_v20 = vadd.f32 %v5696_v18, %v5677_v39 }
 0x56e   : > { %6481 = vmatpush.msra.mxu1 %v2849_v63 }
 0x56f   : > { %6463 = vmatpush.msra.mxu0 %v2831_v54  ;;  %v5717_v38 = vadd.f32 %v5716_v40, %v5697_v20  ;;  %v5736_v43 = vpop.f32.mrf.mxu3 }
 0x570   : > { %6482 = vmatpush.msra.mxu1 %v2848_v13  ;;  %v5756_v44 = vpop.f32.mrf.mxu0 }
 0x571   : > { %6464 = vmatpush.msra.mxu0 %v2830_v56  ;;  %v5737_v45 = vadd.f32 %v5736_v43, %v5717_v38 }
 0x572   : > { %6483 = vmatpush.msra.mxu1 %v2847_v57 }
 0x573   : > { %6465 = vmatpush.msra.mxu0 %v2829_v60  ;;  %v5757_v46 = vadd.f32 %v5756_v44, %v5737_v45  ;;  %v5776_v52 = vpop.f32.mrf.mxu1 }
 0x574   : > { %6484 = vmatpush.msra.mxu1 %v2846_v62  ;;  %v5796_v50 = vpop.f32.mrf.mxu2 }
 0x575   : > { %6466 = vmatpush.msra.mxu0 %v2828_v2  ;;  %v5777_v28 = vadd.f32 %v5776_v52, %v5757_v46 }
 0x576   : > { %6485 = vmatpush.msra.mxu1 %v2845_v1 }
 0x577   : > { %6467 = vmatpush.msra.mxu0 %v2827_v51  ;;  %v5797_v47 = vadd.f32 %v5796_v50, %v5777_v28  ;;  %v5816_v48 = vpop.f32.mrf.mxu3 }
 0x578   : > { %6486 = vmatpush.msra.mxu1 %v2844_v4  ;;  %v5836_v8 = vpop.f32.mrf.mxu0 }
 0x579   : > { %6468 = vmatpush.msra.mxu0 %v2826_v55  ;;  %v5817_v63 = vadd.f32 %v5816_v48, %v5797_v47 }
 0x57a   : > { %6487 = vmatpush.msra.mxu1 %v2843_v21 }
 0x57b   : > { %6469 = vmatpush.msra.mxu0 %v2825_v9  ;;  %v5837_v7 = vadd.f32 %v5836_v8, %v5817_v63  ;;  %v5856_v54 = vpop.f32.mrf.mxu1 }
 0x57c   : > { %6488 = vmatpush.msra.mxu1 %v2842_v10  ;;  %v5876_v13 = vpop.f32.mrf.mxu2 }
 0x57d   : > { %6470 = vmatpush.msra.mxu0 %v2824_v29  ;;  %v5857_v53 = vadd.f32 %v5856_v54, %v5837_v7  ;;  %v218_v54 = vld [vmem:[#allocation2] sm:$0x3] }
 0x57e   : > { %6489 = vmatpush.msra.mxu1 %v2841_v14 }
 0x57f   : > { %6471 = vmatpush.msra.mxu0 %v2823_v3  ;;  %v5877_v56 = vadd.f32 %v5876_v13, %v5857_v53  ;;  %v5896_v58 = vpop.f32.mrf.mxu3 }
 0x580   : > { %6490 = vmatpush.msra.mxu1 %v2840_v15  ;;  %v5916_v57 = vpop.f32.mrf.mxu0 }
 0x581   : > { %6472 = vmatpush.msra.mxu0 %v2822_v19  ;;  %v5897_v60 = vadd.f32 %v5896_v58, %v5877_v56 }
 0x582   : > { %6491 = vmatpush.msra.mxu1 %v2839_v41 }
 0x583   : > { %6473 = vmatpush.msra.mxu0 %v2821_v23  ;;  %v5917_v61 = vadd.f32 %v5916_v57, %v5897_v60  ;;  %v5936_v62 = vpop.f32.mrf.mxu1 }
 0x584   : > { %6492 = vmatpush.msra.mxu1 %v2838_v37  ;;  %v5956_v26 = vpop.f32.mrf.mxu2 }
 0x585   : > { %6474 = vmatpush.msra.mxu0 %v2820_v25  ;;  %v5937_v2 = vadd.f32 %v5936_v62, %v5917_v61 }
 0x586   : > { %6493 = vmatpush.msra.mxu1 %v2837_v30  ;;  %6475 = vmatmul.f32.vlgmr.msra.gmra.mxu0 %v3095_v12 }
 0x587   : > { %v5957_v1 = vadd.f32 %v5956_v26, %v5937_v2  ;;  %v5976_v0 = vpop.f32.mrf.mxu3 }
 0x588   : > { %6494 = vmatpush.msra.mxu1 %v2836_v33  ;;  %v5996_v51 = vpop.f32.mrf.mxu0 }
 0x589   : > { %6495 = vmatmul.f32.vlgmr.msra.gmra.mxu1 %v3096_v34  ;;  %v5977_v16 = vadd.f32 %v5976_v0, %v5957_v1 }
 0x58b   : > { %v5997_v4 = vadd.f32 %v5996_v51, %v5977_v16  ;;  %v6016_v55 = vpop.f32.mrf.mxu1 }
 0x58c   : > { %v6036_v5 = vpop.f32.mrf.mxu2 }
 0x58d   : > { %v6017_v21 = vadd.f32 %v6016_v55, %v5997_v4 }
 0x58f   : > { %v6037_v6 = vadd.f32 %v6036_v5, %v6017_v21  ;;  %v6056_v9 = vpop.f32.mrf.mxu3 }
 0x590   : > { %v6076_v10 = vpop.f32.mrf.mxu0 }
 0x591   : > { %v6057_v11 = vadd.f32 %v6056_v9, %v6037_v6 }
 0x593   : > { %v6077_v29 = vadd.f32 %v6076_v10, %v6057_v11  ;;  %v6096_v31 = vpop.f32.mrf.mxu1 }
 0x594   : > { %v6116_v14 = vpop.f32.mrf.mxu2 }
 0x595   : > { %v6097_v3 = vadd.f32 %v6096_v31, %v6077_v29 }
 0x597   : > { %v6117_v59 = vadd.f32 %v6116_v14, %v6097_v3  ;;  %v6136_v15 = vpop.f32.mrf.mxu3 }
 0x598   : > { %v6156_v17 = vpop.f32.mrf.mxu0 }
 0x599   : > { %v6137_v19 = vadd.f32 %v6136_v15, %v6117_v59 }
 0x59b   : > { %v6157_v41 = vadd.f32 %v6156_v17, %v6137_v19  ;;  %v6176_v22 = vpop.f32.mrf.mxu1 }
 0x59c   : > { %v6196_v23 = vpop.f32.mrf.mxu2 }
 0x59d   : > { %v6177_v24 = vadd.f32 %v6176_v22, %v6157_v41 }
 0x59f   : > { %v6197_v37 = vadd.f32 %v6196_v23, %v6177_v24  ;;  %v6216_v25 = vpop.f32.mrf.mxu3 }
 0x5a0   : > { %v6236_v32 = vpop.f32.mrf.mxu0 }
 0x5a1   : > { %v6217_v30 = vadd.f32 %v6216_v25, %v6197_v37 }
 0x5a3   : > { %v6237_v12 = vadd.f32 %v6236_v32, %v6217_v30  ;;  %v6256_v27 = vpop.f32.mrf.mxu1 }
 0x5a5   : > { %v6276_v33 = vpop.f32.mrf.mxu2  ;;  %v6257_v49 = vadd.f32 %v6256_v27, %v6237_v12 }
 0x5a7   : > { %v6277_v34 = vadd.f32 %v6276_v33, %v6257_v49 }
 0x5a8   : > { %v6296_v35 = vpop.f32.mrf.mxu3 }
 0x5a9   : > { %v6297_v42 = vadd.f32 %v6296_v35, %v6277_v34 }
 0x5c1   : > { %v6316_v36 = vpop.f32.mrf.mxu0 }
 0x5c2   : > { %v6317_v39 = vadd.f32 %v6316_v36, %v6297_v42 }
 0x5c4   : > { %v6336_v18 = vpop.f32.mrf.mxu1 }
 0x5c5   : > { %v6337_v20 = vadd.f32 %v6336_v18, %v6317_v39 }
 0x5c7   : > { %v6356_v40 = vpop.f32.mrf.mxu2 }
 0x5c8   : > { %v6357_v38 = vadd.f32 %v6356_v40, %v6337_v20 }
 0x5ca   : > { %v6376_v43 = vpop.f32.mrf.mxu3 }
 0x5cb   : > { %v6377_v45 = vadd.f32 %v6376_v43, %v6357_v38 }
 0x5e3   : > { %v6396_v44 = vpop.f32.mrf.mxu0 }
 0x5e4   : > { %v6397_v46 = vadd.f32 %v6396_v44, %v6377_v45 }
 0x5e5   : > { %v6416_v52 = vpop.f32.mrf.mxu1 }
 0x5e6   : > { %v6417_v28 = vadd.f32 %v6416_v52, %v6397_v46 }
 0x5e9   : > { %v6436_v50 = vpop.f32.mrf.mxu2 }
 0x5ea   : > { %v6437_v47 = vadd.f32 %v6436_v50, %v6417_v28 }
 0x5ec   : > { %v6456_v48 = vpop.f32.mrf.mxu3 }
 0x5ed   : > { %v6457_v8 = vadd.f32 %v6456_v48, %v6437_v47 }
 0x603   : > { %v6476_v63 = vpop.f32.mrf.mxu0 }
 0x604   : > { %v6477_v7 = vadd.f32 %v6476_v63, %v6457_v8 }
 0x606   : > { %v6496_v13 = vpop.f32.mrf.mxu1 }
 0x607   : > { %v6497_v53 = vadd.f32 %v6496_v13, %v6477_v7  ;;  %6505 = sbr.rel (%p6611_p7) target bundleno = 1814 (0x716), region = 40 }
 0x609   : > { %v6499_v56 = vadd.f32 %v6497_v53, %v218_v54 }
 0x60b   : > { %6501 = vst.msk [vmem:[#allocation2] sm:$0x3] %vm6500_vm1, %v6499_v56 }
 0x60c   : > { %v6648_v57 = vld [vmem:[%s9524_s2] ss:$0 sm:$0xff] }
 0x612   : > { %v6506_v58 = vld [vmem:[#allocation2] sm:$0x3] }
 0x613   : > { %v6511_v60 = vadd.f32 %v6648_v57, %v6506_v58 }
 0x615   : > { %v6512_v61 = vsel %vm6500_vm1, %v6511_v60, -inf }
 0x616   : > { %6513 = vmax.xlane.f32.xlu0 %v6512_v61 }
 0x689   : > { %v6514_v62 = vpop.xlane.xlu0 %6513 }
 0x68a   : > { %v6515_v26 = vsub.f32 %v6511_v60, %v6514_v62 }
 0x68c   : > { %v6516_v2 = vmul.f32 1.442695, %v6515_v26 }
 0x68e   : > { %6649 = vpow2.f32 %v6516_v2 }
 0x694   : > { %v6650_v1 = vpop.eup %6649 }
 0x695   : > { %v6518_v0 = vsel %vm6500_vm1, %v6650_v1, 0.0 }
 0x696   : > { %6519 = vadd.xlane.f32.xlu0 %v6518_v0 }
 0x709   : > { %v6520_v51 = vpop.xlane.xlu0 %6519 }
 0x70a   : > { %6651 = vlog2.f32 %v6520_v51 }
 0x710   : > { %v6652_v16 = vpop.eup %6651 }
 0x711   : > { %v6522_v4 = vmul.f32 0.6931472, %v6652_v16 }
 0x713   : > { %v6523_v55 = vsub.f32 %v6515_v26, %v6522_v4 }
 0x715   : > { %6524 = vst.msk [vmem:[#allocation2] sm:$0x3] %vm6500_vm1, %v6523_v55 }
 0x716 PF: > { %p6620_p8 = scmp.eq.s32.totalorder %s6604_s15, 2  ;;  %s6535_s4 = sshll.u32 %s9525_s3, 4  ;;  %s6536_s4 = int_to_ptr.hbm [resolvable:$true] %s6535_s4 }
 0x717   : > { %s6710_s5 = smov [#allocation2]  }
 0x718   : > { %s6533_s6 = sshll.u32 %s6710_s5, 4  ;;  %s6534_s6 = int_to_ptr.vmem [resolvable:$true] %s6533_s6 }
 0x719   : > { %6617 = dma.vmem_to_hbm [thread:$0]  (%p6620_p8), %s6534_s6, 32, %s6536_s4, [#allocation3]  }
 0x71a   : > { %6694 = dma.done.wait (%p6620_p8), [#allocation3], 32  }
 0x71b   : > { %6696 = vsyncadd (%p6620_p8), [#allocation3], 4294967264 }
 0x71c PF: > { %s14_s14 = sadd.s32 1, %s6707_s14   ;;  %s9526_s12 = smov %s6703_s13 }
 0x71d   : > { %p11_p9 = scmp.ge.s32.totalorder %s14_s14, 5   ;;  %s9527_s13 = smov %s9529_s16 }
 0x71f   :  { %13 = sbr.rel (!%p11_p9) target bundleno = 2 (0x2), region = 72 }
 0x724   :  { %6549 = vsyncpa [#allocation3], 1 }
 0x725   :  { %6551 = vsyncpa [#allocation3 + $0x1], 1 }

</bundles_post_ra>
